<compile_context>
chip_gen: v7x
topology: tpu7x:2x2x1
jax: 0.10.0
libtpu: 0.0.40
codegen_flags: <defaults>
</compile_context>

<pallas_src>
import numpy as np
import jax
import jax.numpy as jnp
from jax.experimental import pallas as pl
from jax.experimental.pallas import tpu as pltpu

N = 4            # demo batch (batch rides on the lane axis; widen freely)
C_IN = 12        # Conv1d in_channels
C_IN_PAD = 16    # input channels zero-padded to a sublane multiple for im2col
L_IN = 128       # length chain: 128 -conv-> 124 -pool-> 60 -> 28 -> 12 -> 4
C_MID = 32       # conv channels
K = 5            # conv kernel size
PAD = K // 2     # conv_pad padding == halo width
H = 64           # LSTM hidden size
H4 = 4 * H
N_CLASSES = 2


# ----------------------------- in-kernel helpers -----------------------------

def _roll_lanes(a, shift):
    """Circular shift along the lane (last) axis (jnp.roll semantics)."""
    w = a.shape[-1]
    s = shift % w
    return pltpu.roll(a, shift=s, axis=1) if s else a


def _conv_pad_relu(a, wp_ref, b_col):
    """relu(Conv1d 32->32, k=5, padding=2) on a halo-folded (C_MID, n*lg) activation.

    im2col: the 5 rolled taps stack on sublanes and contract in ONE
    (32,160)@(160, n*lg) MXU matmul (batch already folded into the lanes).
    Only the non-halo columns of the result are valid.
    """
    rhs = jnp.concatenate([_roll_lanes(a, PAD - k) for k in range(K)], axis=0)
    y = jnp.dot(wp_ref[...], rhs, preferred_element_type=jnp.float32) + b_col
    return jnp.maximum(y, 0.0)


def _maxpool_sel(a, sel):
    """MaxPool1d(k=5, s=2): sliding max (VPU + XLU rolls) then a constant 0/1
    selection matmul that performs the stride-2 decimation AND re-emits the
    result in the next stage's zero-halo geometry (or LSTM step-major order)."""
    m = a
    for k in range(1, K):
        m = jnp.maximum(m, _roll_lanes(a, -k))
    return jnp.dot(m, sel, preferred_element_type=jnp.float32)


def _lstm_gates(g, c):
    """PyTorch gate order (i, f, g, o).  g: (4H, n), c: (H, n) -> (h', c')."""
    i = jax.nn.sigmoid(g[0 * H:1 * H, :])
    f = jax.nn.sigmoid(g[1 * H:2 * H, :])
    gg = jnp.tanh(g[2 * H:3 * H, :])
    o = jax.nn.sigmoid(g[3 * H:4 * H, :])
    c_new = f * c + i * gg
    return o * jnp.tanh(c_new), c_new


# ----------------------------- static tables (host-side) -----------------------------

def _build_static_tables(n, l_in):
    """Valid-column masks and pool-selection matrices: pure functions of static shapes."""
    ls, lgs = [], []
    l = l_in - K + 1                       # first conv is 'valid'
    for _ in range(4):
        assert l >= K, "pool chain needs length >= kernel size at every stage"
        ls.append(l)
        lgs.append(l + 2 * PAD)
        l = (l - K) // 2 + 1               # MaxPool1d(k=5, s=2)
    t_steps = l                            # LSTM sequence length (4 for L_IN=128)
    assert t_steps >= 2

    masks = []
    for l_s, lg_s in zip(ls, lgs):
        m = np.zeros((1, n * lg_s), np.float32)
        for b in range(n):
            m[0, b * lg_s + PAD: b * lg_s + PAD + l_s] = 1.0
        masks.append(m)

    sels = []
    for s in range(3):                     # pools 0..2: emit next conv stage's halo layout
        lg_s, lp, lg2 = lgs[s], ls[s + 1], lgs[s + 1]
        sel = np.zeros((n * lg_s, n * lg2), np.float32)
        for b in range(n):
            for j in range(lp):
                sel[b * lg_s + PAD + 2 * j, b * lg2 + PAD + j] = 1.0
        sels.append(sel)

    lg_s = lgs[3]                          # last pool: emit LSTM step-major columns (t*n + b)
    sel = np.zeros((n * lg_s, t_steps * n), np.float32)
    for b in range(n):
        for t in range(t_steps):
            sel[b * lg_s + PAD + 2 * t, t * n + b] = 1.0
    sels.append(sel)
    return masks, sels, t_steps


# ----------------------------- fused kernel -----------------------------

def _make_fused_kernel(n, t_steps):
    def kernel(x_ref, w1_ref, b1_ref, wp_ref, bp_ref,
               wih0_ref, bl0_ref, wbig_ref, bl1_ref,
               f1w_ref, f1b_ref, f2w_ref, f2b_ref,
               m0_ref, m1_ref, m2_ref, m3_ref,
               s0_ref, s1_ref, s2_ref, s3_ref,
               out_ref):
        mask_refs = (m0_ref, m1_ref, m2_ref, m3_ref)
        sel_refs = (s0_ref, s1_ref, s2_ref, s3_ref)

        # -------- first conv ("residual = self.conv(x)", valid, 12->32, k=5): one im2col pass
        xf = x_ref[...]                                      # (C_IN_PAD, n*L_IN)
        rhs = jnp.concatenate([_roll_lanes(xf, PAD - k) for k in range(K)], axis=0)
        a = jnp.dot(w1_ref[...], rhs, preferred_element_type=jnp.float32) + b1_ref[...]
        a = a * m0_ref[...]          # zero halos -> exact zero padding for conv_pad

        # -------- 4x [relu(conv_pad); relu(conv_pad); maxpool(5, 2)] --------
        bpc = bp_ref[...]
        for s in range(4):
            a = _conv_pad_relu(a, wp_ref, bpc) * mask_refs[s][...]   # re-zero halos
            a = _conv_pad_relu(a, wp_ref, bpc)     # pool reads only valid window starts
            a = _maxpool_sel(a, sel_refs[s][...])  # stride-2 decimation, constant matmul

        # a: (C_MID, t_steps*n); column t*n+b holds sample b at LSTM timestep t.

        # -------- 2-layer LSTM, software-pipelined block recurrence --------
        # TODO(synk): nn.LSTM inter-layer dropout (p=0.3) treated as eval-mode identity.
        xp = jnp.dot(wih0_ref[...], a, preferred_element_type=jnp.float32) + bl0_ref[...]
        wbig = wbig_ref[...]                   # [[W_hh0, 0], [W_ih1, W_hh1]]  (8H, 2H)
        bl1 = bl1_ref[...]

        # step 0: h/c start at zero -> no recurrent matmul needed
        h0, c0 = _lstm_gates(xp[:, 0:n], jnp.zeros((H, n), jnp.float32))
        h1 = jnp.zeros((H, n), jnp.float32)
        c1 = jnp.zeros((H, n), jnp.float32)

        # steps s = 1..T-1: layer 0 at step s and layer 1 at step s-1 share one matmul
        for s in range(1, t_steps):
            hcat = jnp.concatenate([h0, h1], axis=0)          # [h0_{s-1} ; h1_{s-2}]
            g = jnp.dot(wbig, hcat, preferred_element_type=jnp.float32)
            h0, c0 = _lstm_gates(g[:H4, :] + xp[:, s * n:(s + 1) * n], c0)
            h1, c1 = _lstm_gates(g[H4:, :] + bl1, c1)

        # epilogue: layer 1's final step (input = final h0), bottom half of wbig only
        hcat = jnp.concatenate([h0, h1], axis=0)
        g1 = jnp.dot(wbig[H4:, :], hcat, preferred_element_type=jnp.float32) + bl1
        h1, c1 = _lstm_gates(g1, c1)

        # -------- FC head on hn = flatten(h_n.transpose(0, 1)) --------
        hn = jnp.concatenate([h0, h1], axis=0)                # (2H, n): [layer0 ; layer1]
        y = jnp.dot(f1w_ref[...], hn, preferred_element_type=jnp.float32) + f1b_ref[...]
        # TODO(synk): drop_20 (p=0.2) treated as eval-mode identity.
        y = jnp.dot(f2w_ref[...], y, preferred_element_type=jnp.float32) + f2b_ref[...]
        out_ref[...] = y                                      # (N_CLASSES, n)
    return kernel


# ----------------------------- params & wrapper -----------------------------

def init_params(key):
    """Random weights in the layouts the kernel consumes.

    Mapping from a PyTorch state_dict (all float32):
      conv_w[co, k*16 + ci] = conv.weight[co, ci, k] for ci < 12 (cols 12..15 are zero pad)
      conv_b  = conv.bias[:, None]
      convp_w[co, k*32 + ci] = conv_pad.weight[co, ci, k];  convp_b = conv_pad.bias[:, None]
      wih0 = rnn.weight_ih_l0 (256, 32); whh0 = rnn.weight_hh_l0 (256, 64)
      b0   = (rnn.bias_ih_l0 + rnn.bias_hh_l0)[:, None]   (gate order i, f, g, o kept)
      wih1 / whh1 / b1: same for layer 1
      fc1_w = fc1.weight (256, 128); fc1_b = fc1.bias[:, None]; fc2_w = fc2.weight (2, 256)
    conv1_1 and drop_50 exist in __init__ but are unused in forward(), so no params here.
    """
    ks = jax.random.split(key, 14)
    s = 0.05
    p = {}
    w1 = s * jax.random.normal(ks[0], (C_MID, K, C_IN), jnp.float32)
    p["conv_w"] = jnp.pad(w1, ((0, 0), (0, 0), (0, C_IN_PAD - C_IN))).reshape(C_MID, K * C_IN_PAD)
    p["conv_b"] = s * jax.random.normal(ks[1], (C_MID, 1), jnp.float32)
    p["convp_w"] = s * jax.random.normal(ks[2], (C_MID, K * C_MID), jnp.float32)
    p["convp_b"] = s * jax.random.normal(ks[3], (C_MID, 1), jnp.float32)
    p["wih0"] = s * jax.random.normal(ks[4], (H4, C_MID), jnp.float32)
    p["whh0"] = s * jax.random.normal(ks[5], (H4, H), jnp.float32)
    p["b0"] = s * jax.random.normal(ks[6], (H4, 1), jnp.float32)
    p["wih1"] = s * jax.random.normal(ks[7], (H4, H), jnp.float32)
    p["whh1"] = s * jax.random.normal(ks[8], (H4, H), jnp.float32)
    p["b1"] = s * jax.random.normal(ks[9], (H4, 1), jnp.float32)
    p["fc1_w"] = s * jax.random.normal(ks[10], (H4, 2 * H), jnp.float32)
    p["fc1_b"] = s * jax.random.normal(ks[11], (H4, 1), jnp.float32)
    p["fc2_w"] = s * jax.random.normal(ks[12], (N_CLASSES, H4), jnp.float32)
    p["fc2_b"] = s * jax.random.normal(ks[13], (N_CLASSES, 1), jnp.float32)
    return p


def rnn_classifier_forward(x, p):
    n, c_in, l_in = x.shape
    masks, sels, t_steps = _build_static_tables(n, l_in)

    # one-time layout fold of the input: (N, C, L) -> (C_pad, N*L), batch on the lane axis
    x_fold = jnp.transpose(x, (1, 0, 2)).reshape(c_in, n * l_in)
    x_fold = jnp.pad(x_fold, ((0, C_IN_PAD - c_in), (0, 0)))

    # fused block-recurrence weight: [[W_hh0, 0], [W_ih1, W_hh1]]  -> (512, 128)
    w_big = jnp.concatenate(
        [jnp.concatenate([p["whh0"], jnp.zeros((H4, H), jnp.float32)], axis=1),
         jnp.concatenate([p["wih1"], p["whh1"]], axis=1)], axis=0)

    operands = [x_fold, p["conv_w"], p["conv_b"], p["convp_w"], p["convp_b"],
                p["wih0"], p["b0"], w_big, p["b1"],
                p["fc1_w"], p["fc1_b"], p["fc2_w"], p["fc2_b"]]
    operands += [jnp.asarray(m) for m in masks]
    operands += [jnp.asarray(s) for s in sels]

    vmem = pl.BlockSpec(memory_space=pltpu.MemorySpace.VMEM)
    y_cols = pl.pallas_call(
        _make_fused_kernel(n, t_steps),
        out_shape=jax.ShapeDtypeStruct((N_CLASSES, n), jnp.float32),
        in_specs=[vmem] * len(operands),
        out_specs=vmem,
    )(*operands)
    return y_cols.T                                          # (N, num_classes)


if __name__ == "__main__":
    key = jax.random.PRNGKey(0)
    kx, kp = jax.random.split(key)
    # Input consistent with Conv1d(in_channels=12): (batch, channels=12, length=128).
    x = jax.random.normal(kx, (N, C_IN, L_IN), jnp.float32)
    params = init_params(kp)

    fwd = jax.jit(rnn_classifier_forward)
    y = fwd(x, params)
    jax.block_until_ready(y)
    assert y.shape == (N, N_CLASSES) and y.dtype == jnp.float32
    print("KERNEL_OK")
</pallas_src>

<mosaic_0001>
module attributes {stable_mosaic.version = 11 : i64} {
  func.func @kernel(%arg0: memref<16x512xf32, #tpu.memory_space<vmem>>, %arg1: memref<32x80xf32, #tpu.memory_space<vmem>>, %arg2: memref<32x1xf32, #tpu.memory_space<vmem>>, %arg3: memref<32x160xf32, #tpu.memory_space<vmem>>, %arg4: memref<32x1xf32, #tpu.memory_space<vmem>>, %arg5: memref<256x32xf32, #tpu.memory_space<vmem>>, %arg6: memref<256x1xf32, #tpu.memory_space<vmem>>, %arg7: memref<512x128xf32, #tpu.memory_space<vmem>>, %arg8: memref<256x1xf32, #tpu.memory_space<vmem>>, %arg9: memref<256x128xf32, #tpu.memory_space<vmem>>, %arg10: memref<256x1xf32, #tpu.memory_space<vmem>>, %arg11: memref<2x256xf32, #tpu.memory_space<vmem>>, %arg12: memref<2x1xf32, #tpu.memory_space<vmem>>, %arg13: memref<1x512xf32, #tpu.memory_space<vmem>>, %arg14: memref<1x256xf32, #tpu.memory_space<vmem>>, %arg15: memref<1x128xf32, #tpu.memory_space<vmem>>, %arg16: memref<1x64xf32, #tpu.memory_space<vmem>>, %arg17: memref<512x256xf32, #tpu.memory_space<vmem>>, %arg18: memref<256x128xf32, #tpu.memory_space<vmem>>, %arg19: memref<128x64xf32, #tpu.memory_space<vmem>>, %arg20: memref<64x16xf32, #tpu.memory_space<vmem>>, %arg21: memref<2x4xf32, #tpu.memory_space<vmem>>) attributes {dimension_semantics = [], scalar_prefetch = 0 : i64, scratch_operands = 0 : i64, tpu.core_type = #tpu.core_type<tc>} {
    %c0 = arith.constant 0 : index
    %c0_0 = arith.constant 0 : index
    %0 = vector.load %arg0[%c0, %c0_0] : memref<16x512xf32, #tpu.memory_space<vmem>>, vector<16x512xf32>
    %c2_i32 = arith.constant 2 : i32
    %1 = tpu.dynamic_rotate %0 by %c2_i32 dim 1 : vector<16x512xf32>, i32 -> vector<16x512xf32>
    %c1_i32 = arith.constant 1 : i32
    %2 = tpu.dynamic_rotate %0 by %c1_i32 dim 1 : vector<16x512xf32>, i32 -> vector<16x512xf32>
    %c511_i32 = arith.constant 511 : i32
    %3 = tpu.dynamic_rotate %0 by %c511_i32 dim 1 : vector<16x512xf32>, i32 -> vector<16x512xf32>
    %c510_i32 = arith.constant 510 : i32
    %4 = tpu.dynamic_rotate %0 by %c510_i32 dim 1 : vector<16x512xf32>, i32 -> vector<16x512xf32>
    %5 = tpu.concatenate %1, %2, %0, %3, %4 in 0 : vector<16x512xf32>, vector<16x512xf32>, vector<16x512xf32>, vector<16x512xf32>, vector<16x512xf32> -> vector<80x512xf32>
    %c0_1 = arith.constant 0 : index
    %c0_2 = arith.constant 0 : index
    %6 = vector.load %arg1[%c0_1, %c0_2] : memref<32x80xf32, #tpu.memory_space<vmem>>, vector<32x80xf32>
    %cst = arith.constant dense<0.000000e+00> : vector<32x512xf32>
    %7 = tpu.matmul %6, %5, %cst {dimension_numbers = #tpu.dot_dimension_numbers<[1], [0], [0], [1], [0, 0, 1, 1], [], []>} : vector<32x80xf32>, vector<80x512xf32>, vector<32x512xf32> -> vector<32x512xf32>
    %c0_3 = arith.constant 0 : index
    %c0_4 = arith.constant 0 : index
    %8 = vector.load %arg2[%c0_3, %c0_4] : memref<32x1xf32, #tpu.memory_space<vmem>>, vector<32x1xf32>
    %9 = vector.broadcast %8 : vector<32x1xf32> to vector<32x512xf32>
    %10 = arith.addf %7, %9 : vector<32x512xf32>
    %c0_5 = arith.constant 0 : index
    %c0_6 = arith.constant 0 : index
    %11 = vector.load %arg13[%c0_5, %c0_6] : memref<1x512xf32, #tpu.memory_space<vmem>>, vector<1x512xf32>
    %12 = vector.broadcast %11 : vector<1x512xf32> to vector<32x512xf32>
    %13 = arith.mulf %10, %12 : vector<32x512xf32>
    %c0_7 = arith.constant 0 : index
    %c0_8 = arith.constant 0 : index
    %14 = vector.load %arg4[%c0_7, %c0_8] : memref<32x1xf32, #tpu.memory_space<vmem>>, vector<32x1xf32>
    %c2_i32_9 = arith.constant 2 : i32
    %15 = tpu.dynamic_rotate %13 by %c2_i32_9 dim 1 : vector<32x512xf32>, i32 -> vector<32x512xf32>
    %c1_i32_10 = arith.constant 1 : i32
    %16 = tpu.dynamic_rotate %13 by %c1_i32_10 dim 1 : vector<32x512xf32>, i32 -> vector<32x512xf32>
    %c511_i32_11 = arith.constant 511 : i32
    %17 = tpu.dynamic_rotate %13 by %c511_i32_11 dim 1 : vector<32x512xf32>, i32 -> vector<32x512xf32>
    %c510_i32_12 = arith.constant 510 : i32
    %18 = tpu.dynamic_rotate %13 by %c510_i32_12 dim 1 : vector<32x512xf32>, i32 -> vector<32x512xf32>
    %19 = tpu.concatenate %15, %16, %13, %17, %18 in 0 : vector<32x512xf32>, vector<32x512xf32>, vector<32x512xf32>, vector<32x512xf32>, vector<32x512xf32> -> vector<160x512xf32>
    %c0_13 = arith.constant 0 : index
    %c0_14 = arith.constant 0 : index
    %20 = vector.load %arg3[%c0_13, %c0_14] : memref<32x160xf32, #tpu.memory_space<vmem>>, vector<32x160xf32>
    %cst_15 = arith.constant dense<0.000000e+00> : vector<32x512xf32>
    %21 = tpu.matmul %20, %19, %cst_15 {dimension_numbers = #tpu.dot_dimension_numbers<[1], [0], [0], [1], [0, 0, 1, 1], [], []>} : vector<32x160xf32>, vector<160x512xf32>, vector<32x512xf32> -> vector<32x512xf32>
    %22 = vector.broadcast %14 : vector<32x1xf32> to vector<32x512xf32>
    %23 = arith.addf %21, %22 : vector<32x512xf32>
    %cst_16 = arith.constant 0.000000e+00 : f32
    %24 = vector.broadcast %cst_16 : f32 to vector<32x512xf32>
    %25 = arith.maximumf %23, %24 : vector<32x512xf32>
    %c0_17 = arith.constant 0 : index
    %c0_18 = arith.constant 0 : index
    %26 = vector.load %arg13[%c0_17, %c0_18] : memref<1x512xf32, #tpu.memory_space<vmem>>, vector<1x512xf32>
    %27 = vector.broadcast %26 : vector<1x512xf32> to vector<32x512xf32>
    %28 = arith.mulf %25, %27 : vector<32x512xf32>
    %c2_i32_19 = arith.constant 2 : i32
    %29 = tpu.dynamic_rotate %28 by %c2_i32_19 dim 1 : vector<32x512xf32>, i32 -> vector<32x512xf32>
    %c1_i32_20 = arith.constant 1 : i32
    %30 = tpu.dynamic_rotate %28 by %c1_i32_20 dim 1 : vector<32x512xf32>, i32 -> vector<32x512xf32>
    %c511_i32_21 = arith.constant 511 : i32
    %31 = tpu.dynamic_rotate %28 by %c511_i32_21 dim 1 : vector<32x512xf32>, i32 -> vector<32x512xf32>
    %c510_i32_22 = arith.constant 510 : i32
    %32 = tpu.dynamic_rotate %28 by %c510_i32_22 dim 1 : vector<32x512xf32>, i32 -> vector<32x512xf32>
    %33 = tpu.concatenate %29, %30, %28, %31, %32 in 0 : vector<32x512xf32>, vector<32x512xf32>, vector<32x512xf32>, vector<32x512xf32>, vector<32x512xf32> -> vector<160x512xf32>
    %c0_23 = arith.constant 0 : index
    %c0_24 = arith.constant 0 : index
    %34 = vector.load %arg3[%c0_23, %c0_24] : memref<32x160xf32, #tpu.memory_space<vmem>>, vector<32x160xf32>
    %cst_25 = arith.constant dense<0.000000e+00> : vector<32x512xf32>
    %35 = tpu.matmul %34, %33, %cst_25 {dimension_numbers = #tpu.dot_dimension_numbers<[1], [0], [0], [1], [0, 0, 1, 1], [], []>} : vector<32x160xf32>, vector<160x512xf32>, vector<32x512xf32> -> vector<32x512xf32>
    %36 = vector.broadcast %14 : vector<32x1xf32> to vector<32x512xf32>
    %37 = arith.addf %35, %36 : vector<32x512xf32>
    %cst_26 = arith.constant 0.000000e+00 : f32
    %38 = vector.broadcast %cst_26 : f32 to vector<32x512xf32>
    %39 = arith.maximumf %37, %38 : vector<32x512xf32>
    %c0_27 = arith.constant 0 : index
    %c0_28 = arith.constant 0 : index
    %40 = vector.load %arg17[%c0_27, %c0_28] : memref<512x256xf32, #tpu.memory_space<vmem>>, vector<512x256xf32>
    %c511_i32_29 = arith.constant 511 : i32
    %41 = tpu.dynamic_rotate %39 by %c511_i32_29 dim 1 : vector<32x512xf32>, i32 -> vector<32x512xf32>
    %42 = arith.maximumf %39, %41 : vector<32x512xf32>
    %c510_i32_30 = arith.constant 510 : i32
    %43 = tpu.dynamic_rotate %39 by %c510_i32_30 dim 1 : vector<32x512xf32>, i32 -> vector<32x512xf32>
    %44 = arith.maximumf %42, %43 : vector<32x512xf32>
    %c509_i32 = arith.constant 509 : i32
    %45 = tpu.dynamic_rotate %39 by %c509_i32 dim 1 : vector<32x512xf32>, i32 -> vector<32x512xf32>
    %46 = arith.maximumf %44, %45 : vector<32x512xf32>
    %c508_i32 = arith.constant 508 : i32
    %47 = tpu.dynamic_rotate %39 by %c508_i32 dim 1 : vector<32x512xf32>, i32 -> vector<32x512xf32>
    %48 = arith.maximumf %46, %47 : vector<32x512xf32>
    %cst_31 = arith.constant dense<0.000000e+00> : vector<32x256xf32>
    %49 = tpu.matmul %48, %40, %cst_31 {dimension_numbers = #tpu.dot_dimension_numbers<[1], [0], [0], [1], [0, 0, 1, 1], [], []>} : vector<32x512xf32>, vector<512x256xf32>, vector<32x256xf32> -> vector<32x256xf32>
    %c2_i32_32 = arith.constant 2 : i32
    %50 = tpu.dynamic_rotate %49 by %c2_i32_32 dim 1 : vector<32x256xf32>, i32 -> vector<32x256xf32>
    %c1_i32_33 = arith.constant 1 : i32
    %51 = tpu.dynamic_rotate %49 by %c1_i32_33 dim 1 : vector<32x256xf32>, i32 -> vector<32x256xf32>
    %c255_i32 = arith.constant 255 : i32
    %52 = tpu.dynamic_rotate %49 by %c255_i32 dim 1 : vector<32x256xf32>, i32 -> vector<32x256xf32>
    %c254_i32 = arith.constant 254 : i32
    %53 = tpu.dynamic_rotate %49 by %c254_i32 dim 1 : vector<32x256xf32>, i32 -> vector<32x256xf32>
    %54 = tpu.concatenate %50, %51, %49, %52, %53 in 0 : vector<32x256xf32>, vector<32x256xf32>, vector<32x256xf32>, vector<32x256xf32>, vector<32x256xf32> -> vector<160x256xf32>
    %c0_34 = arith.constant 0 : index
    %c0_35 = arith.constant 0 : index
    %55 = vector.load %arg3[%c0_34, %c0_35] : memref<32x160xf32, #tpu.memory_space<vmem>>, vector<32x160xf32>
    %cst_36 = arith.constant dense<0.000000e+00> : vector<32x256xf32>
    %56 = tpu.matmul %55, %54, %cst_36 {dimension_numbers = #tpu.dot_dimension_numbers<[1], [0], [0], [1], [0, 0, 1, 1], [], []>} : vector<32x160xf32>, vector<160x256xf32>, vector<32x256xf32> -> vector<32x256xf32>
    %57 = vector.broadcast %14 : vector<32x1xf32> to vector<32x256xf32>
    %58 = arith.addf %56, %57 : vector<32x256xf32>
    %cst_37 = arith.constant 0.000000e+00 : f32
    %59 = vector.broadcast %cst_37 : f32 to vector<32x256xf32>
    %60 = arith.maximumf %58, %59 : vector<32x256xf32>
    %c0_38 = arith.constant 0 : index
    %c0_39 = arith.constant 0 : index
    %61 = vector.load %arg14[%c0_38, %c0_39] : memref<1x256xf32, #tpu.memory_space<vmem>>, vector<1x256xf32>
    %62 = vector.broadcast %61 : vector<1x256xf32> to vector<32x256xf32>
    %63 = arith.mulf %60, %62 : vector<32x256xf32>
    %c2_i32_40 = arith.constant 2 : i32
    %64 = tpu.dynamic_rotate %63 by %c2_i32_40 dim 1 : vector<32x256xf32>, i32 -> vector<32x256xf32>
    %c1_i32_41 = arith.constant 1 : i32
    %65 = tpu.dynamic_rotate %63 by %c1_i32_41 dim 1 : vector<32x256xf32>, i32 -> vector<32x256xf32>
    %c255_i32_42 = arith.constant 255 : i32
    %66 = tpu.dynamic_rotate %63 by %c255_i32_42 dim 1 : vector<32x256xf32>, i32 -> vector<32x256xf32>
    %c254_i32_43 = arith.constant 254 : i32
    %67 = tpu.dynamic_rotate %63 by %c254_i32_43 dim 1 : vector<32x256xf32>, i32 -> vector<32x256xf32>
    %68 = tpu.concatenate %64, %65, %63, %66, %67 in 0 : vector<32x256xf32>, vector<32x256xf32>, vector<32x256xf32>, vector<32x256xf32>, vector<32x256xf32> -> vector<160x256xf32>
    %c0_44 = arith.constant 0 : index
    %c0_45 = arith.constant 0 : index
    %69 = vector.load %arg3[%c0_44, %c0_45] : memref<32x160xf32, #tpu.memory_space<vmem>>, vector<32x160xf32>
    %cst_46 = arith.constant dense<0.000000e+00> : vector<32x256xf32>
    %70 = tpu.matmul %69, %68, %cst_46 {dimension_numbers = #tpu.dot_dimension_numbers<[1], [0], [0], [1], [0, 0, 1, 1], [], []>} : vector<32x160xf32>, vector<160x256xf32>, vector<32x256xf32> -> vector<32x256xf32>
    %71 = vector.broadcast %14 : vector<32x1xf32> to vector<32x256xf32>
    %72 = arith.addf %70, %71 : vector<32x256xf32>
    %cst_47 = arith.constant 0.000000e+00 : f32
    %73 = vector.broadcast %cst_47 : f32 to vector<32x256xf32>
    %74 = arith.maximumf %72, %73 : vector<32x256xf32>
    %c0_48 = arith.constant 0 : index
    %c0_49 = arith.constant 0 : index
    %75 = vector.load %arg18[%c0_48, %c0_49] : memref<256x128xf32, #tpu.memory_space<vmem>>, vector<256x128xf32>
    %c255_i32_50 = arith.constant 255 : i32
    %76 = tpu.dynamic_rotate %74 by %c255_i32_50 dim 1 : vector<32x256xf32>, i32 -> vector<32x256xf32>
    %77 = arith.maximumf %74, %76 : vector<32x256xf32>
    %c254_i32_51 = arith.constant 254 : i32
    %78 = tpu.dynamic_rotate %74 by %c254_i32_51 dim 1 : vector<32x256xf32>, i32 -> vector<32x256xf32>
    %79 = arith.maximumf %77, %78 : vector<32x256xf32>
    %c253_i32 = arith.constant 253 : i32
    %80 = tpu.dynamic_rotate %74 by %c253_i32 dim 1 : vector<32x256xf32>, i32 -> vector<32x256xf32>
    %81 = arith.maximumf %79, %80 : vector<32x256xf32>
    %c252_i32 = arith.constant 252 : i32
    %82 = tpu.dynamic_rotate %74 by %c252_i32 dim 1 : vector<32x256xf32>, i32 -> vector<32x256xf32>
    %83 = arith.maximumf %81, %82 : vector<32x256xf32>
    %cst_52 = arith.constant dense<0.000000e+00> : vector<32x128xf32>
    %84 = tpu.matmul %83, %75, %cst_52 {dimension_numbers = #tpu.dot_dimension_numbers<[1], [0], [0], [1], [0, 0, 1, 1], [], []>} : vector<32x256xf32>, vector<256x128xf32>, vector<32x128xf32> -> vector<32x128xf32>
    %c2_i32_53 = arith.constant 2 : i32
    %85 = tpu.dynamic_rotate %84 by %c2_i32_53 dim 1 : vector<32x128xf32>, i32 -> vector<32x128xf32>
    %c1_i32_54 = arith.constant 1 : i32
    %86 = tpu.dynamic_rotate %84 by %c1_i32_54 dim 1 : vector<32x128xf32>, i32 -> vector<32x128xf32>
    %c127_i32 = arith.constant 127 : i32
    %87 = tpu.dynamic_rotate %84 by %c127_i32 dim 1 : vector<32x128xf32>, i32 -> vector<32x128xf32>
    %c126_i32 = arith.constant 126 : i32
    %88 = tpu.dynamic_rotate %84 by %c126_i32 dim 1 : vector<32x128xf32>, i32 -> vector<32x128xf32>
    %89 = tpu.concatenate %85, %86, %84, %87, %88 in 0 : vector<32x128xf32>, vector<32x128xf32>, vector<32x128xf32>, vector<32x128xf32>, vector<32x128xf32> -> vector<160x128xf32>
    %c0_55 = arith.constant 0 : index
    %c0_56 = arith.constant 0 : index
    %90 = vector.load %arg3[%c0_55, %c0_56] : memref<32x160xf32, #tpu.memory_space<vmem>>, vector<32x160xf32>
    %cst_57 = arith.constant dense<0.000000e+00> : vector<32x128xf32>
    %91 = tpu.matmul %90, %89, %cst_57 {dimension_numbers = #tpu.dot_dimension_numbers<[1], [0], [0], [1], [0, 0, 1, 1], [], []>} : vector<32x160xf32>, vector<160x128xf32>, vector<32x128xf32> -> vector<32x128xf32>
    %92 = vector.broadcast %14 : vector<32x1xf32> to vector<32x128xf32>
    %93 = arith.addf %91, %92 : vector<32x128xf32>
    %cst_58 = arith.constant 0.000000e+00 : f32
    %94 = vector.broadcast %cst_58 : f32 to vector<32x128xf32>
    %95 = arith.maximumf %93, %94 : vector<32x128xf32>
    %c0_59 = arith.constant 0 : index
    %c0_60 = arith.constant 0 : index
    %96 = vector.load %arg15[%c0_59, %c0_60] : memref<1x128xf32, #tpu.memory_space<vmem>>, vector<1x128xf32>
    %97 = vector.broadcast %96 : vector<1x128xf32> to vector<32x128xf32>
    %98 = arith.mulf %95, %97 : vector<32x128xf32>
    %c2_i32_61 = arith.constant 2 : i32
    %99 = tpu.dynamic_rotate %98 by %c2_i32_61 dim 1 : vector<32x128xf32>, i32 -> vector<32x128xf32>
    %c1_i32_62 = arith.constant 1 : i32
    %100 = tpu.dynamic_rotate %98 by %c1_i32_62 dim 1 : vector<32x128xf32>, i32 -> vector<32x128xf32>
    %c127_i32_63 = arith.constant 127 : i32
    %101 = tpu.dynamic_rotate %98 by %c127_i32_63 dim 1 : vector<32x128xf32>, i32 -> vector<32x128xf32>
    %c126_i32_64 = arith.constant 126 : i32
    %102 = tpu.dynamic_rotate %98 by %c126_i32_64 dim 1 : vector<32x128xf32>, i32 -> vector<32x128xf32>
    %103 = tpu.concatenate %99, %100, %98, %101, %102 in 0 : vector<32x128xf32>, vector<32x128xf32>, vector<32x128xf32>, vector<32x128xf32>, vector<32x128xf32> -> vector<160x128xf32>
    %c0_65 = arith.constant 0 : index
    %c0_66 = arith.constant 0 : index
    %104 = vector.load %arg3[%c0_65, %c0_66] : memref<32x160xf32, #tpu.memory_space<vmem>>, vector<32x160xf32>
    %cst_67 = arith.constant dense<0.000000e+00> : vector<32x128xf32>
    %105 = tpu.matmul %104, %103, %cst_67 {dimension_numbers = #tpu.dot_dimension_numbers<[1], [0], [0], [1], [0, 0, 1, 1], [], []>} : vector<32x160xf32>, vector<160x128xf32>, vector<32x128xf32> -> vector<32x128xf32>
    %106 = vector.broadcast %14 : vector<32x1xf32> to vector<32x128xf32>
    %107 = arith.addf %105, %106 : vector<32x128xf32>
    %cst_68 = arith.constant 0.000000e+00 : f32
    %108 = vector.broadcast %cst_68 : f32 to vector<32x128xf32>
    %109 = arith.maximumf %107, %108 : vector<32x128xf32>
    %c0_69 = arith.constant 0 : index
    %c0_70 = arith.constant 0 : index
    %110 = vector.load %arg19[%c0_69, %c0_70] : memref<128x64xf32, #tpu.memory_space<vmem>>, vector<128x64xf32>
    %c127_i32_71 = arith.constant 127 : i32
    %111 = tpu.dynamic_rotate %109 by %c127_i32_71 dim 1 : vector<32x128xf32>, i32 -> vector<32x128xf32>
    %112 = arith.maximumf %109, %111 : vector<32x128xf32>
    %c126_i32_72 = arith.constant 126 : i32
    %113 = tpu.dynamic_rotate %109 by %c126_i32_72 dim 1 : vector<32x128xf32>, i32 -> vector<32x128xf32>
    %114 = arith.maximumf %112, %113 : vector<32x128xf32>
    %c125_i32 = arith.constant 125 : i32
    %115 = tpu.dynamic_rotate %109 by %c125_i32 dim 1 : vector<32x128xf32>, i32 -> vector<32x128xf32>
    %116 = arith.maximumf %114, %115 : vector<32x128xf32>
    %c124_i32 = arith.constant 124 : i32
    %117 = tpu.dynamic_rotate %109 by %c124_i32 dim 1 : vector<32x128xf32>, i32 -> vector<32x128xf32>
    %118 = arith.maximumf %116, %117 : vector<32x128xf32>
    %cst_73 = arith.constant dense<0.000000e+00> : vector<32x64xf32>
    %119 = tpu.matmul %118, %110, %cst_73 {dimension_numbers = #tpu.dot_dimension_numbers<[1], [0], [0], [1], [0, 0, 1, 1], [], []>} : vector<32x128xf32>, vector<128x64xf32>, vector<32x64xf32> -> vector<32x64xf32>
    %c2_i32_74 = arith.constant 2 : i32
    %120 = tpu.dynamic_rotate %119 by %c2_i32_74 dim 1 : vector<32x64xf32>, i32 -> vector<32x64xf32>
    %c1_i32_75 = arith.constant 1 : i32
    %121 = tpu.dynamic_rotate %119 by %c1_i32_75 dim 1 : vector<32x64xf32>, i32 -> vector<32x64xf32>
    %c63_i32 = arith.constant 63 : i32
    %122 = tpu.dynamic_rotate %119 by %c63_i32 dim 1 : vector<32x64xf32>, i32 -> vector<32x64xf32>
    %c62_i32 = arith.constant 62 : i32
    %123 = tpu.dynamic_rotate %119 by %c62_i32 dim 1 : vector<32x64xf32>, i32 -> vector<32x64xf32>
    %124 = tpu.concatenate %120, %121, %119, %122, %123 in 0 : vector<32x64xf32>, vector<32x64xf32>, vector<32x64xf32>, vector<32x64xf32>, vector<32x64xf32> -> vector<160x64xf32>
    %c0_76 = arith.constant 0 : index
    %c0_77 = arith.constant 0 : index
    %125 = vector.load %arg3[%c0_76, %c0_77] : memref<32x160xf32, #tpu.memory_space<vmem>>, vector<32x160xf32>
    %cst_78 = arith.constant dense<0.000000e+00> : vector<32x64xf32>
    %126 = tpu.matmul %125, %124, %cst_78 {dimension_numbers = #tpu.dot_dimension_numbers<[1], [0], [0], [1], [0, 0, 1, 1], [], []>} : vector<32x160xf32>, vector<160x64xf32>, vector<32x64xf32> -> vector<32x64xf32>
    %127 = vector.broadcast %14 : vector<32x1xf32> to vector<32x64xf32>
    %128 = arith.addf %126, %127 : vector<32x64xf32>
    %cst_79 = arith.constant 0.000000e+00 : f32
    %129 = vector.broadcast %cst_79 : f32 to vector<32x64xf32>
    %130 = arith.maximumf %128, %129 : vector<32x64xf32>
    %c0_80 = arith.constant 0 : index
    %c0_81 = arith.constant 0 : index
    %131 = vector.load %arg16[%c0_80, %c0_81] : memref<1x64xf32, #tpu.memory_space<vmem>>, vector<1x64xf32>
    %132 = vector.broadcast %131 : vector<1x64xf32> to vector<32x64xf32>
    %133 = arith.mulf %130, %132 : vector<32x64xf32>
    %c2_i32_82 = arith.constant 2 : i32
    %134 = tpu.dynamic_rotate %133 by %c2_i32_82 dim 1 : vector<32x64xf32>, i32 -> vector<32x64xf32>
    %c1_i32_83 = arith.constant 1 : i32
    %135 = tpu.dynamic_rotate %133 by %c1_i32_83 dim 1 : vector<32x64xf32>, i32 -> vector<32x64xf32>
    %c63_i32_84 = arith.constant 63 : i32
    %136 = tpu.dynamic_rotate %133 by %c63_i32_84 dim 1 : vector<32x64xf32>, i32 -> vector<32x64xf32>
    %c62_i32_85 = arith.constant 62 : i32
    %137 = tpu.dynamic_rotate %133 by %c62_i32_85 dim 1 : vector<32x64xf32>, i32 -> vector<32x64xf32>
    %138 = tpu.concatenate %134, %135, %133, %136, %137 in 0 : vector<32x64xf32>, vector<32x64xf32>, vector<32x64xf32>, vector<32x64xf32>, vector<32x64xf32> -> vector<160x64xf32>
    %c0_86 = arith.constant 0 : index
    %c0_87 = arith.constant 0 : index
    %139 = vector.load %arg3[%c0_86, %c0_87] : memref<32x160xf32, #tpu.memory_space<vmem>>, vector<32x160xf32>
    %cst_88 = arith.constant dense<0.000000e+00> : vector<32x64xf32>
    %140 = tpu.matmul %139, %138, %cst_88 {dimension_numbers = #tpu.dot_dimension_numbers<[1], [0], [0], [1], [0, 0, 1, 1], [], []>} : vector<32x160xf32>, vector<160x64xf32>, vector<32x64xf32> -> vector<32x64xf32>
    %141 = vector.broadcast %14 : vector<32x1xf32> to vector<32x64xf32>
    %142 = arith.addf %140, %141 : vector<32x64xf32>
    %cst_89 = arith.constant 0.000000e+00 : f32
    %143 = vector.broadcast %cst_89 : f32 to vector<32x64xf32>
    %144 = arith.maximumf %142, %143 : vector<32x64xf32>
    %c0_90 = arith.constant 0 : index
    %c0_91 = arith.constant 0 : index
    %145 = vector.load %arg20[%c0_90, %c0_91] : memref<64x16xf32, #tpu.memory_space<vmem>>, vector<64x16xf32>
    %c63_i32_92 = arith.constant 63 : i32
    %146 = tpu.dynamic_rotate %144 by %c63_i32_92 dim 1 : vector<32x64xf32>, i32 -> vector<32x64xf32>
    %147 = arith.maximumf %144, %146 : vector<32x64xf32>
    %c62_i32_93 = arith.constant 62 : i32
    %148 = tpu.dynamic_rotate %144 by %c62_i32_93 dim 1 : vector<32x64xf32>, i32 -> vector<32x64xf32>
    %149 = arith.maximumf %147, %148 : vector<32x64xf32>
    %c61_i32 = arith.constant 61 : i32
    %150 = tpu.dynamic_rotate %144 by %c61_i32 dim 1 : vector<32x64xf32>, i32 -> vector<32x64xf32>
    %151 = arith.maximumf %149, %150 : vector<32x64xf32>
    %c60_i32 = arith.constant 60 : i32
    %152 = tpu.dynamic_rotate %144 by %c60_i32 dim 1 : vector<32x64xf32>, i32 -> vector<32x64xf32>
    %153 = arith.maximumf %151, %152 : vector<32x64xf32>
    %cst_94 = arith.constant dense<0.000000e+00> : vector<32x16xf32>
    %154 = tpu.matmul %153, %145, %cst_94 {dimension_numbers = #tpu.dot_dimension_numbers<[1], [0], [0], [1], [0, 0, 1, 1], [], []>} : vector<32x64xf32>, vector<64x16xf32>, vector<32x16xf32> -> vector<32x16xf32>
    %c0_95 = arith.constant 0 : index
    %c0_96 = arith.constant 0 : index
    %155 = vector.load %arg5[%c0_95, %c0_96] : memref<256x32xf32, #tpu.memory_space<vmem>>, vector<256x32xf32>
    %cst_97 = arith.constant dense<0.000000e+00> : vector<256x16xf32>
    %156 = tpu.matmul %155, %154, %cst_97 {dimension_numbers = #tpu.dot_dimension_numbers<[1], [0], [0], [1], [0, 0, 1, 1], [], []>} : vector<256x32xf32>, vector<32x16xf32>, vector<256x16xf32> -> vector<256x16xf32>
    %c0_98 = arith.constant 0 : index
    %c0_99 = arith.constant 0 : index
    %157 = vector.load %arg6[%c0_98, %c0_99] : memref<256x1xf32, #tpu.memory_space<vmem>>, vector<256x1xf32>
    %158 = vector.broadcast %157 : vector<256x1xf32> to vector<256x16xf32>
    %159 = arith.addf %156, %158 : vector<256x16xf32>
    %c0_100 = arith.constant 0 : index
    %c0_101 = arith.constant 0 : index
    %160 = vector.load %arg7[%c0_100, %c0_101] : memref<512x128xf32, #tpu.memory_space<vmem>>, vector<512x128xf32>
    %c0_102 = arith.constant 0 : index
    %c0_103 = arith.constant 0 : index
    %161 = vector.load %arg8[%c0_102, %c0_103] : memref<256x1xf32, #tpu.memory_space<vmem>>, vector<256x1xf32>
    %162 = vector.extract_strided_slice %159 {offsets = [0, 0], sizes = [256, 4], strides = [1, 1]} : vector<256x16xf32> to vector<256x4xf32>
    %cst_104 = arith.constant 0.000000e+00 : f32
    %163 = vector.broadcast %cst_104 : f32 to vector<64x4xf32>
    %164 = vector.extract_strided_slice %162 {offsets = [0, 0], sizes = [64, 4], strides = [1, 1]} : vector<256x4xf32> to vector<64x4xf32>
    %165 = arith.negf %164 : vector<64x4xf32>
    %166 = math.exp %165 : vector<64x4xf32>
    %cst_105 = arith.constant 1.000000e+00 : f32
    %167 = vector.broadcast %cst_105 : f32 to vector<64x4xf32>
    %168 = arith.addf %167, %166 : vector<64x4xf32>
    %169 = arith.divf %167, %168 : vector<64x4xf32>
    %170 = vector.extract_strided_slice %162 {offsets = [64, 0], sizes = [64, 4], strides = [1, 1]} : vector<256x4xf32> to vector<64x4xf32>
    %171 = arith.negf %170 : vector<64x4xf32>
    %172 = math.exp %171 : vector<64x4xf32>
    %cst_106 = arith.constant 1.000000e+00 : f32
    %173 = vector.broadcast %cst_106 : f32 to vector<64x4xf32>
    %174 = arith.addf %173, %172 : vector<64x4xf32>
    %175 = arith.divf %173, %174 : vector<64x4xf32>
    %176 = vector.extract_strided_slice %162 {offsets = [128, 0], sizes = [64, 4], strides = [1, 1]} : vector<256x4xf32> to vector<64x4xf32>
    %177 = math.tanh %176 : vector<64x4xf32>
    %178 = vector.extract_strided_slice %162 {offsets = [192, 0], sizes = [64, 4], strides = [1, 1]} : vector<256x4xf32> to vector<64x4xf32>
    %179 = arith.negf %178 : vector<64x4xf32>
    %180 = math.exp %179 : vector<64x4xf32>
    %cst_107 = arith.constant 1.000000e+00 : f32
    %181 = vector.broadcast %cst_107 : f32 to vector<64x4xf32>
    %182 = arith.addf %181, %180 : vector<64x4xf32>
    %183 = arith.divf %181, %182 : vector<64x4xf32>
    %184 = arith.mulf %175, %163 : vector<64x4xf32>
    %185 = arith.mulf %169, %177 : vector<64x4xf32>
    %186 = arith.addf %184, %185 : vector<64x4xf32>
    %187 = math.tanh %186 : vector<64x4xf32>
    %188 = arith.mulf %183, %187 : vector<64x4xf32>
    %cst_108 = arith.constant 0.000000e+00 : f32
    %189 = vector.broadcast %cst_108 : f32 to vector<64x4xf32>
    %cst_109 = arith.constant 0.000000e+00 : f32
    %190 = vector.broadcast %cst_109 : f32 to vector<64x4xf32>
    %191 = tpu.concatenate %188, %189 in 0 : vector<64x4xf32>, vector<64x4xf32> -> vector<128x4xf32>
    %cst_110 = arith.constant dense<0.000000e+00> : vector<512x4xf32>
    %192 = tpu.matmul %160, %191, %cst_110 {dimension_numbers = #tpu.dot_dimension_numbers<[1], [0], [0], [1], [0, 0, 1, 1], [], []>} : vector<512x128xf32>, vector<128x4xf32>, vector<512x4xf32> -> vector<512x4xf32>
    %193 = vector.extract_strided_slice %192 {offsets = [0, 0], sizes = [256, 4], strides = [1, 1]} : vector<512x4xf32> to vector<256x4xf32>
    %194 = vector.extract_strided_slice %159 {offsets = [0, 4], sizes = [256, 4], strides = [1, 1]} : vector<256x16xf32> to vector<256x4xf32>
    %195 = arith.addf %193, %194 : vector<256x4xf32>
    %196 = vector.extract_strided_slice %195 {offsets = [0, 0], sizes = [64, 4], strides = [1, 1]} : vector<256x4xf32> to vector<64x4xf32>
    %197 = arith.negf %196 : vector<64x4xf32>
    %198 = math.exp %197 : vector<64x4xf32>
    %cst_111 = arith.constant 1.000000e+00 : f32
    %199 = vector.broadcast %cst_111 : f32 to vector<64x4xf32>
    %200 = arith.addf %199, %198 : vector<64x4xf32>
    %201 = arith.divf %199, %200 : vector<64x4xf32>
    %202 = vector.extract_strided_slice %195 {offsets = [64, 0], sizes = [64, 4], strides = [1, 1]} : vector<256x4xf32> to vector<64x4xf32>
    %203 = arith.negf %202 : vector<64x4xf32>
    %204 = math.exp %203 : vector<64x4xf32>
    %cst_112 = arith.constant 1.000000e+00 : f32
    %205 = vector.broadcast %cst_112 : f32 to vector<64x4xf32>
    %206 = arith.addf %205, %204 : vector<64x4xf32>
    %207 = arith.divf %205, %206 : vector<64x4xf32>
    %208 = vector.extract_strided_slice %195 {offsets = [128, 0], sizes = [64, 4], strides = [1, 1]} : vector<256x4xf32> to vector<64x4xf32>
    %209 = math.tanh %208 : vector<64x4xf32>
    %210 = vector.extract_strided_slice %195 {offsets = [192, 0], sizes = [64, 4], strides = [1, 1]} : vector<256x4xf32> to vector<64x4xf32>
    %211 = arith.negf %210 : vector<64x4xf32>
    %212 = math.exp %211 : vector<64x4xf32>
    %cst_113 = arith.constant 1.000000e+00 : f32
    %213 = vector.broadcast %cst_113 : f32 to vector<64x4xf32>
    %214 = arith.addf %213, %212 : vector<64x4xf32>
    %215 = arith.divf %213, %214 : vector<64x4xf32>
    %216 = arith.mulf %207, %186 : vector<64x4xf32>
    %217 = arith.mulf %201, %209 : vector<64x4xf32>
    %218 = arith.addf %216, %217 : vector<64x4xf32>
    %219 = math.tanh %218 : vector<64x4xf32>
    %220 = arith.mulf %215, %219 : vector<64x4xf32>
    %221 = vector.extract_strided_slice %192 {offsets = [256, 0], sizes = [256, 4], strides = [1, 1]} : vector<512x4xf32> to vector<256x4xf32>
    %222 = vector.broadcast %161 : vector<256x1xf32> to vector<256x4xf32>
    %223 = arith.addf %221, %222 : vector<256x4xf32>
    %224 = vector.extract_strided_slice %223 {offsets = [0, 0], sizes = [64, 4], strides = [1, 1]} : vector<256x4xf32> to vector<64x4xf32>
    %225 = arith.negf %224 : vector<64x4xf32>
    %226 = math.exp %225 : vector<64x4xf32>
    %cst_114 = arith.constant 1.000000e+00 : f32
    %227 = vector.broadcast %cst_114 : f32 to vector<64x4xf32>
    %228 = arith.addf %227, %226 : vector<64x4xf32>
    %229 = arith.divf %227, %228 : vector<64x4xf32>
    %230 = vector.extract_strided_slice %223 {offsets = [64, 0], sizes = [64, 4], strides = [1, 1]} : vector<256x4xf32> to vector<64x4xf32>
    %231 = arith.negf %230 : vector<64x4xf32>
    %232 = math.exp %231 : vector<64x4xf32>
    %cst_115 = arith.constant 1.000000e+00 : f32
    %233 = vector.broadcast %cst_115 : f32 to vector<64x4xf32>
    %234 = arith.addf %233, %232 : vector<64x4xf32>
    %235 = arith.divf %233, %234 : vector<64x4xf32>
    %236 = vector.extract_strided_slice %223 {offsets = [128, 0], sizes = [64, 4], strides = [1, 1]} : vector<256x4xf32> to vector<64x4xf32>
    %237 = math.tanh %236 : vector<64x4xf32>
    %238 = vector.extract_strided_slice %223 {offsets = [192, 0], sizes = [64, 4], strides = [1, 1]} : vector<256x4xf32> to vector<64x4xf32>
    %239 = arith.negf %238 : vector<64x4xf32>
    %240 = math.exp %239 : vector<64x4xf32>
    %cst_116 = arith.constant 1.000000e+00 : f32
    %241 = vector.broadcast %cst_116 : f32 to vector<64x4xf32>
    %242 = arith.addf %241, %240 : vector<64x4xf32>
    %243 = arith.divf %241, %242 : vector<64x4xf32>
    %244 = arith.mulf %235, %190 : vector<64x4xf32>
    %245 = arith.mulf %229, %237 : vector<64x4xf32>
    %246 = arith.addf %244, %245 : vector<64x4xf32>
    %247 = math.tanh %246 : vector<64x4xf32>
    %248 = arith.mulf %243, %247 : vector<64x4xf32>
    %249 = tpu.concatenate %220, %248 in 0 : vector<64x4xf32>, vector<64x4xf32> -> vector<128x4xf32>
    %cst_117 = arith.constant dense<0.000000e+00> : vector<512x4xf32>
    %250 = tpu.matmul %160, %249, %cst_117 {dimension_numbers = #tpu.dot_dimension_numbers<[1], [0], [0], [1], [0, 0, 1, 1], [], []>} : vector<512x128xf32>, vector<128x4xf32>, vector<512x4xf32> -> vector<512x4xf32>
    %251 = vector.extract_strided_slice %250 {offsets = [0, 0], sizes = [256, 4], strides = [1, 1]} : vector<512x4xf32> to vector<256x4xf32>
    %252 = vector.extract_strided_slice %159 {offsets = [0, 8], sizes = [256, 4], strides = [1, 1]} : vector<256x16xf32> to vector<256x4xf32>
    %253 = arith.addf %251, %252 : vector<256x4xf32>
    %254 = vector.extract_strided_slice %253 {offsets = [0, 0], sizes = [64, 4], strides = [1, 1]} : vector<256x4xf32> to vector<64x4xf32>
    %255 = arith.negf %254 : vector<64x4xf32>
    %256 = math.exp %255 : vector<64x4xf32>
    %cst_118 = arith.constant 1.000000e+00 : f32
    %257 = vector.broadcast %cst_118 : f32 to vector<64x4xf32>
    %258 = arith.addf %257, %256 : vector<64x4xf32>
    %259 = arith.divf %257, %258 : vector<64x4xf32>
    %260 = vector.extract_strided_slice %253 {offsets = [64, 0], sizes = [64, 4], strides = [1, 1]} : vector<256x4xf32> to vector<64x4xf32>
    %261 = arith.negf %260 : vector<64x4xf32>
    %262 = math.exp %261 : vector<64x4xf32>
    %cst_119 = arith.constant 1.000000e+00 : f32
    %263 = vector.broadcast %cst_119 : f32 to vector<64x4xf32>
    %264 = arith.addf %263, %262 : vector<64x4xf32>
    %265 = arith.divf %263, %264 : vector<64x4xf32>
    %266 = vector.extract_strided_slice %253 {offsets = [128, 0], sizes = [64, 4], strides = [1, 1]} : vector<256x4xf32> to vector<64x4xf32>
    %267 = math.tanh %266 : vector<64x4xf32>
    %268 = vector.extract_strided_slice %253 {offsets = [192, 0], sizes = [64, 4], strides = [1, 1]} : vector<256x4xf32> to vector<64x4xf32>
    %269 = arith.negf %268 : vector<64x4xf32>
    %270 = math.exp %269 : vector<64x4xf32>
    %cst_120 = arith.constant 1.000000e+00 : f32
    %271 = vector.broadcast %cst_120 : f32 to vector<64x4xf32>
    %272 = arith.addf %271, %270 : vector<64x4xf32>
    %273 = arith.divf %271, %272 : vector<64x4xf32>
    %274 = arith.mulf %265, %218 : vector<64x4xf32>
    %275 = arith.mulf %259, %267 : vector<64x4xf32>
    %276 = arith.addf %274, %275 : vector<64x4xf32>
    %277 = math.tanh %276 : vector<64x4xf32>
    %278 = arith.mulf %273, %277 : vector<64x4xf32>
    %279 = vector.extract_strided_slice %250 {offsets = [256, 0], sizes = [256, 4], strides = [1, 1]} : vector<512x4xf32> to vector<256x4xf32>
    %280 = vector.broadcast %161 : vector<256x1xf32> to vector<256x4xf32>
    %281 = arith.addf %279, %280 : vector<256x4xf32>
    %282 = vector.extract_strided_slice %281 {offsets = [0, 0], sizes = [64, 4], strides = [1, 1]} : vector<256x4xf32> to vector<64x4xf32>
    %283 = arith.negf %282 : vector<64x4xf32>
    %284 = math.exp %283 : vector<64x4xf32>
    %cst_121 = arith.constant 1.000000e+00 : f32
    %285 = vector.broadcast %cst_121 : f32 to vector<64x4xf32>
    %286 = arith.addf %285, %284 : vector<64x4xf32>
    %287 = arith.divf %285, %286 : vector<64x4xf32>
    %288 = vector.extract_strided_slice %281 {offsets = [64, 0], sizes = [64, 4], strides = [1, 1]} : vector<256x4xf32> to vector<64x4xf32>
    %289 = arith.negf %288 : vector<64x4xf32>
    %290 = math.exp %289 : vector<64x4xf32>
    %cst_122 = arith.constant 1.000000e+00 : f32
    %291 = vector.broadcast %cst_122 : f32 to vector<64x4xf32>
    %292 = arith.addf %291, %290 : vector<64x4xf32>
    %293 = arith.divf %291, %292 : vector<64x4xf32>
    %294 = vector.extract_strided_slice %281 {offsets = [128, 0], sizes = [64, 4], strides = [1, 1]} : vector<256x4xf32> to vector<64x4xf32>
    %295 = math.tanh %294 : vector<64x4xf32>
    %296 = vector.extract_strided_slice %281 {offsets = [192, 0], sizes = [64, 4], strides = [1, 1]} : vector<256x4xf32> to vector<64x4xf32>
    %297 = arith.negf %296 : vector<64x4xf32>
    %298 = math.exp %297 : vector<64x4xf32>
    %cst_123 = arith.constant 1.000000e+00 : f32
    %299 = vector.broadcast %cst_123 : f32 to vector<64x4xf32>
    %300 = arith.addf %299, %298 : vector<64x4xf32>
    %301 = arith.divf %299, %300 : vector<64x4xf32>
    %302 = arith.mulf %293, %246 : vector<64x4xf32>
    %303 = arith.mulf %287, %295 : vector<64x4xf32>
    %304 = arith.addf %302, %303 : vector<64x4xf32>
    %305 = math.tanh %304 : vector<64x4xf32>
    %306 = arith.mulf %301, %305 : vector<64x4xf32>
    %307 = tpu.concatenate %278, %306 in 0 : vector<64x4xf32>, vector<64x4xf32> -> vector<128x4xf32>
    %cst_124 = arith.constant dense<0.000000e+00> : vector<512x4xf32>
    %308 = tpu.matmul %160, %307, %cst_124 {dimension_numbers = #tpu.dot_dimension_numbers<[1], [0], [0], [1], [0, 0, 1, 1], [], []>} : vector<512x128xf32>, vector<128x4xf32>, vector<512x4xf32> -> vector<512x4xf32>
    %309 = vector.extract_strided_slice %308 {offsets = [0, 0], sizes = [256, 4], strides = [1, 1]} : vector<512x4xf32> to vector<256x4xf32>
    %310 = vector.extract_strided_slice %159 {offsets = [0, 12], sizes = [256, 4], strides = [1, 1]} : vector<256x16xf32> to vector<256x4xf32>
    %311 = arith.addf %309, %310 : vector<256x4xf32>
    %312 = vector.extract_strided_slice %311 {offsets = [0, 0], sizes = [64, 4], strides = [1, 1]} : vector<256x4xf32> to vector<64x4xf32>
    %313 = arith.negf %312 : vector<64x4xf32>
    %314 = math.exp %313 : vector<64x4xf32>
    %cst_125 = arith.constant 1.000000e+00 : f32
    %315 = vector.broadcast %cst_125 : f32 to vector<64x4xf32>
    %316 = arith.addf %315, %314 : vector<64x4xf32>
    %317 = arith.divf %315, %316 : vector<64x4xf32>
    %318 = vector.extract_strided_slice %311 {offsets = [64, 0], sizes = [64, 4], strides = [1, 1]} : vector<256x4xf32> to vector<64x4xf32>
    %319 = arith.negf %318 : vector<64x4xf32>
    %320 = math.exp %319 : vector<64x4xf32>
    %cst_126 = arith.constant 1.000000e+00 : f32
    %321 = vector.broadcast %cst_126 : f32 to vector<64x4xf32>
    %322 = arith.addf %321, %320 : vector<64x4xf32>
    %323 = arith.divf %321, %322 : vector<64x4xf32>
    %324 = vector.extract_strided_slice %311 {offsets = [128, 0], sizes = [64, 4], strides = [1, 1]} : vector<256x4xf32> to vector<64x4xf32>
    %325 = math.tanh %324 : vector<64x4xf32>
    %326 = vector.extract_strided_slice %311 {offsets = [192, 0], sizes = [64, 4], strides = [1, 1]} : vector<256x4xf32> to vector<64x4xf32>
    %327 = arith.negf %326 : vector<64x4xf32>
    %328 = math.exp %327 : vector<64x4xf32>
    %cst_127 = arith.constant 1.000000e+00 : f32
    %329 = vector.broadcast %cst_127 : f32 to vector<64x4xf32>
    %330 = arith.addf %329, %328 : vector<64x4xf32>
    %331 = arith.divf %329, %330 : vector<64x4xf32>
    %332 = arith.mulf %323, %276 : vector<64x4xf32>
    %333 = arith.mulf %317, %325 : vector<64x4xf32>
    %334 = arith.addf %332, %333 : vector<64x4xf32>
    %335 = math.tanh %334 : vector<64x4xf32>
    %336 = arith.mulf %331, %335 : vector<64x4xf32>
    %337 = vector.extract_strided_slice %308 {offsets = [256, 0], sizes = [256, 4], strides = [1, 1]} : vector<512x4xf32> to vector<256x4xf32>
    %338 = vector.broadcast %161 : vector<256x1xf32> to vector<256x4xf32>
    %339 = arith.addf %337, %338 : vector<256x4xf32>
    %340 = vector.extract_strided_slice %339 {offsets = [0, 0], sizes = [64, 4], strides = [1, 1]} : vector<256x4xf32> to vector<64x4xf32>
    %341 = arith.negf %340 : vector<64x4xf32>
    %342 = math.exp %341 : vector<64x4xf32>
    %cst_128 = arith.constant 1.000000e+00 : f32
    %343 = vector.broadcast %cst_128 : f32 to vector<64x4xf32>
    %344 = arith.addf %343, %342 : vector<64x4xf32>
    %345 = arith.divf %343, %344 : vector<64x4xf32>
    %346 = vector.extract_strided_slice %339 {offsets = [64, 0], sizes = [64, 4], strides = [1, 1]} : vector<256x4xf32> to vector<64x4xf32>
    %347 = arith.negf %346 : vector<64x4xf32>
    %348 = math.exp %347 : vector<64x4xf32>
    %cst_129 = arith.constant 1.000000e+00 : f32
    %349 = vector.broadcast %cst_129 : f32 to vector<64x4xf32>
    %350 = arith.addf %349, %348 : vector<64x4xf32>
    %351 = arith.divf %349, %350 : vector<64x4xf32>
    %352 = vector.extract_strided_slice %339 {offsets = [128, 0], sizes = [64, 4], strides = [1, 1]} : vector<256x4xf32> to vector<64x4xf32>
    %353 = math.tanh %352 : vector<64x4xf32>
    %354 = vector.extract_strided_slice %339 {offsets = [192, 0], sizes = [64, 4], strides = [1, 1]} : vector<256x4xf32> to vector<64x4xf32>
    %355 = arith.negf %354 : vector<64x4xf32>
    %356 = math.exp %355 : vector<64x4xf32>
    %cst_130 = arith.constant 1.000000e+00 : f32
    %357 = vector.broadcast %cst_130 : f32 to vector<64x4xf32>
    %358 = arith.addf %357, %356 : vector<64x4xf32>
    %359 = arith.divf %357, %358 : vector<64x4xf32>
    %360 = arith.mulf %351, %304 : vector<64x4xf32>
    %361 = arith.mulf %345, %353 : vector<64x4xf32>
    %362 = arith.addf %360, %361 : vector<64x4xf32>
    %363 = math.tanh %362 : vector<64x4xf32>
    %364 = arith.mulf %359, %363 : vector<64x4xf32>
    %365 = tpu.concatenate %336, %364 in 0 : vector<64x4xf32>, vector<64x4xf32> -> vector<128x4xf32>
    %366 = vector.extract_strided_slice %160 {offsets = [256, 0], sizes = [256, 128], strides = [1, 1]} : vector<512x128xf32> to vector<256x128xf32>
    %cst_131 = arith.constant dense<0.000000e+00> : vector<256x4xf32>
    %367 = tpu.matmul %366, %365, %cst_131 {dimension_numbers = #tpu.dot_dimension_numbers<[1], [0], [0], [1], [0, 0, 1, 1], [], []>} : vector<256x128xf32>, vector<128x4xf32>, vector<256x4xf32> -> vector<256x4xf32>
    %368 = vector.broadcast %161 : vector<256x1xf32> to vector<256x4xf32>
    %369 = arith.addf %367, %368 : vector<256x4xf32>
    %370 = vector.extract_strided_slice %369 {offsets = [0, 0], sizes = [64, 4], strides = [1, 1]} : vector<256x4xf32> to vector<64x4xf32>
    %371 = arith.negf %370 : vector<64x4xf32>
    %372 = math.exp %371 : vector<64x4xf32>
    %cst_132 = arith.constant 1.000000e+00 : f32
    %373 = vector.broadcast %cst_132 : f32 to vector<64x4xf32>
    %374 = arith.addf %373, %372 : vector<64x4xf32>
    %375 = arith.divf %373, %374 : vector<64x4xf32>
    %376 = vector.extract_strided_slice %369 {offsets = [64, 0], sizes = [64, 4], strides = [1, 1]} : vector<256x4xf32> to vector<64x4xf32>
    %377 = arith.negf %376 : vector<64x4xf32>
    %378 = math.exp %377 : vector<64x4xf32>
    %cst_133 = arith.constant 1.000000e+00 : f32
    %379 = vector.broadcast %cst_133 : f32 to vector<64x4xf32>
    %380 = arith.addf %379, %378 : vector<64x4xf32>
    %381 = arith.divf %379, %380 : vector<64x4xf32>
    %382 = vector.extract_strided_slice %369 {offsets = [128, 0], sizes = [64, 4], strides = [1, 1]} : vector<256x4xf32> to vector<64x4xf32>
    %383 = math.tanh %382 : vector<64x4xf32>
    %384 = vector.extract_strided_slice %369 {offsets = [192, 0], sizes = [64, 4], strides = [1, 1]} : vector<256x4xf32> to vector<64x4xf32>
    %385 = arith.negf %384 : vector<64x4xf32>
    %386 = math.exp %385 : vector<64x4xf32>
    %cst_134 = arith.constant 1.000000e+00 : f32
    %387 = vector.broadcast %cst_134 : f32 to vector<64x4xf32>
    %388 = arith.addf %387, %386 : vector<64x4xf32>
    %389 = arith.divf %387, %388 : vector<64x4xf32>
    %390 = arith.mulf %381, %362 : vector<64x4xf32>
    %391 = arith.mulf %375, %383 : vector<64x4xf32>
    %392 = arith.addf %390, %391 : vector<64x4xf32>
    %393 = math.tanh %392 : vector<64x4xf32>
    %394 = arith.mulf %389, %393 : vector<64x4xf32>
    %395 = tpu.concatenate %336, %394 in 0 : vector<64x4xf32>, vector<64x4xf32> -> vector<128x4xf32>
    %c0_135 = arith.constant 0 : index
    %c0_136 = arith.constant 0 : index
    %396 = vector.load %arg9[%c0_135, %c0_136] : memref<256x128xf32, #tpu.memory_space<vmem>>, vector<256x128xf32>
    %cst_137 = arith.constant dense<0.000000e+00> : vector<256x4xf32>
    %397 = tpu.matmul %396, %395, %cst_137 {dimension_numbers = #tpu.dot_dimension_numbers<[1], [0], [0], [1], [0, 0, 1, 1], [], []>} : vector<256x128xf32>, vector<128x4xf32>, vector<256x4xf32> -> vector<256x4xf32>
    %c0_138 = arith.constant 0 : index
    %c0_139 = arith.constant 0 : index
    %398 = vector.load %arg10[%c0_138, %c0_139] : memref<256x1xf32, #tpu.memory_space<vmem>>, vector<256x1xf32>
    %399 = vector.broadcast %398 : vector<256x1xf32> to vector<256x4xf32>
    %400 = arith.addf %397, %399 : vector<256x4xf32>
    %c0_140 = arith.constant 0 : index
    %c0_141 = arith.constant 0 : index
    %401 = vector.load %arg11[%c0_140, %c0_141] : memref<2x256xf32, #tpu.memory_space<vmem>>, vector<2x256xf32>
    %cst_142 = arith.constant dense<0.000000e+00> : vector<2x4xf32>
    %402 = tpu.matmul %401, %400, %cst_142 {dimension_numbers = #tpu.dot_dimension_numbers<[1], [0], [0], [1], [0, 0, 1, 1], [], []>} : vector<2x256xf32>, vector<256x4xf32>, vector<2x4xf32> -> vector<2x4xf32>
    %c0_143 = arith.constant 0 : index
    %c0_144 = arith.constant 0 : index
    %403 = vector.load %arg12[%c0_143, %c0_144] : memref<2x1xf32, #tpu.memory_space<vmem>>, vector<2x1xf32>
    %404 = vector.broadcast %403 : vector<2x1xf32> to vector<2x4xf32>
    %405 = arith.addf %402, %404 : vector<2x4xf32>
    %c0_145 = arith.constant 0 : index
    %c0_146 = arith.constant 0 : index
    %406 = vector.load %arg21[%c0_145, %c0_146] : memref<2x4xf32, #tpu.memory_space<vmem>>, vector<2x4xf32>
    tpu.vector_store %arg21[%c0_145, %c0_146], %405 {strides = array<i32>} : memref<2x4xf32, #tpu.memory_space<vmem>>, vector<2x4xf32>,
    return
  }
}

</mosaic_0001>

<bundles_post_ra>
// kernel: rnn_classifier_forward.1
= control target key start
LH: loop header
LB: loop body
LE: loop exit
PB: predicated region body
PF: predicated region fallthrough
CT: control target
= control target key end

     0   :  { %s18338_s0 = inlined_call_operand.vmem [shape: f32[16,512], index: 0, kind: input, shape index: {}]   ;;  %s18339_s1 = inlined_call_operand.vmem [shape: f32[32,80], index: 1, kind: input, shape index: {}]   ;;  %s18340_s2 = inlined_call_operand.vmem [shape: f32[32,1], index: 2, kind: input, shape index: {}]   ;;  %s18341_s3 = inlined_call_operand.vmem [shape: f32[32,160], index: 3, kind: input, shape index: {}]   ;;  %s18342_s4 = inlined_call_operand.vmem [shape: f32[32,1], index: 4, kind: input, shape index: {}]   ;;  %s18343_s5 = inlined_call_operand.vmem [shape: f32[256,32], index: 5, kind: input, shape index: {}]   ;;  %s18344_s6 = inlined_call_operand.vmem [shape: f32[256,1], index: 6, kind: input, shape index: {}]   ;;  %s18345_s7 = inlined_call_operand.vmem [shape: f32[512,128], index: 7, kind: input, shape index: {}]   ;;  %s18346_s8 = inlined_call_operand.vmem [shape: f32[256,1], index: 8, kind: input, shape index: {}]   ;;  %s18347_s9 = inlined_call_operand.vmem [shape: f32[256,128], index: 9, kind: input, shape index: {}]   ;;  %s18348_s10 = inlined_call_operand.vmem [shape: f32[256,1], index: 10, kind: input, shape index: {}]   ;;  %s18349_s11 = inlined_call_operand.vmem [shape: f32[2,256], index: 11, kind: input, shape index: {}]   ;;  %s18350_s12 = inlined_call_operand.vmem [shape: f32[2,1], index: 12, kind: input, shape index: {}]   ;;  %s18351_s13 = inlined_call_operand.vmem [shape: f32[1,512], index: 13, kind: input, shape index: {}]   ;;  %s18352_s14 = inlined_call_operand.vmem [shape: f32[1,256], index: 14, kind: input, shape index: {}]   ;;  %s18353_s15 = inlined_call_operand.vmem [shape: f32[1,128], index: 15, kind: input, shape index: {}]   ;;  %s18354_s16 = inlined_call_operand.vmem [shape: f32[1,64], index: 16, kind: input, shape index: {}]   ;;  %s18355_s17 = inlined_call_operand.vmem [shape: f32[512,256], index: 17, kind: input, shape index: {}]   ;;  %s18356_s18 = inlined_call_operand.vmem [shape: f32[256,128], index: 18, kind: input, shape index: {}]   ;;  %s18357_s19 = inlined_call_operand.vmem [shape: f32[128,64], index: 19, kind: input, shape index: {}]   ;;  %s18358_s20 = inlined_call_operand.vmem [shape: f32[64,16], index: 20, kind: input, shape index: {}]   ;;  %s18359_s21 = inlined_call_operand.hbm [shape: f32[2,4], index: 21, kind: output, shape index: {}]  }
   0x1   :  { %18445 = sst [smem:[#allocation26_spill]] %s18338_s0 }
   0x2   :  { %18446 = sst [smem:[#allocation27_spill]] %s18339_s1 }
   0x3   :  { %18447 = sst [smem:[#allocation28_spill]] %s18340_s2 }
   0x4   :  { %18448 = sst [smem:[#allocation29_spill]] %s18341_s3 }
   0x5   :  { %18449 = sst [smem:[#allocation30_spill]] %s18342_s4 }
   0x6   :  { %18450 = sst [smem:[#allocation31_spill]] %s18343_s5 }
   0x7   :  { %s18451_s26 = sld [smem:[#allocation26_spill]] }
   0xd   :  { %v13010_v0 = vld [vmem:[%s18451_s26 + $0x10] sm:$0xff]  ;;  %v13020_v2 = vld [vmem:[%s18451_s26] sm:$0xff]  ;;  %v13032_v5 = vld [vmem:[%s18451_s26 + $0x18] sm:$0xff] }
   0xe   :  { %v13015_v1 = vld [vmem:[%s18451_s26 + $0x30] sm:$0xff]  ;;  %v13027_v4 = vld [vmem:[%s18451_s26 + $0x20] sm:$0xff]  ;;  %v13037_v6 = vld [vmem:[%s18451_s26 + $0x38] sm:$0xff] }
   0xf   :  { %v10533_v3 = vpack.i.bf16 %v13015_v1, %v13010_v0  ;;  %v10523_v7 = vpack.i.bf16 %v13027_v4, %v13020_v2  ;;  %v13044_v8 = vld [vmem:[%s18451_s26 + $0x8] sm:$0xff] }
  0x10   :  { %v13049_v9 = vld [vmem:[%s18451_s26 + $0x28] sm:$0xff] }
  0x11   :  { %26 = vsyncpa [#allocation3], 0  ;;  %s12880_s27 = smov 2   ;;  %v10538_v10 = vpack.i.bf16 %v13037_v6, %v13032_v5  ;;  %v10528_v11 = vpack.i.bf16 %v13049_v9, %v13044_v8  ;;  %s12881_s3 = smov 1   ;;  %v9710_v12 = vpack.c.bf16 %v13049_v9, %v13044_v8  ;;  %v9712_v13 = vpack.c.bf16 %v13027_v4, %v13020_v2 }
  0x12   :  { %10534 = vrot.lane.b32.xlu1 %v10533_v3, %s12880_s27  ;;  %10524 = vrot.lane.b32.xlu0 %v10523_v7, %s12880_s27  ;;  %v9730_v14 = vpack.c.bf16 %v13037_v6, %v13032_v5  ;;  %v9732_v15 = vpack.c.bf16 %v13015_v1, %v13010_v0  ;;  %s12882_s26 = smov 127   ;;  %v12883_v16 = vmov 0.0   ;;  %s12884_s28 = smov 126   ;;  %v12885_v19 = vmov 0  }
  0x13   :  { %284 = vmatprep.mubr.f32.mxu0 %v12883_v16  ;;  %373 = vmatprep.mubr.f32.mxu1 %v12883_v16  ;;  %s18452_s4 = sld [smem:[#allocation28_spill]]  ;;  %v93_v22 = vlaneseq  ;;  %s18453_s29 = sld [smem:[#allocation27_spill]]  ;;  %vm207_vm4 = vcmask 654336   ;;  %vm660_vm5 = vcmask 261120   ;;  %vm2886_vm8 = vcmask 1048064  }
  0x14   :  { %10604 = vset.pattern.permute.xlu1 %v12885_v19  ;;  %10603 = vset.pattern.permute.xlu0 %v12885_v19  ;;  %s18455_s25 = sld [smem:[#allocation29_spill]]  ;;  %s12886_s1 = smov 125   ;;  %vm3424_vm9 = vcmask 523264   ;;  %vm8288_vm10 = vcmask 25600  }
  0x15   :  { %v13094_v24 = vand.u32 127, %v93_v22  ;;  %s18389_s0 = smov 124   ;;  %s12891_s2 = smov 61  }
  0x16   :  { %10539 = vrot.lane.b32.xlu1 %v10538_v10, %s12880_s27  ;;  %10529 = vrot.lane.b32.xlu0 %v10528_v11, %s12880_s27 }
  0x17   :  { %vm95_vm0 = vcmp.lt.s32.totalorder %v13094_v24, 2  ;;  %vm120_vm1 = vcmp.lt.s32.totalorder %v13094_v24, 1  ;;  %vm145_vm2 = vcmp.lt.s32.totalorder %v13094_v24, 127  ;;  %vm170_vm3 = vcmp.lt.s32.totalorder %v13094_v24, 126 }
  0x18   :  { %vm1557_vm6 = vcmp.lt.s32.totalorder %v13094_v24, 125  ;;  %vm1622_vm7 = vcmp.lt.s32.totalorder %v13094_v24, 124 }
  0x19   :  { %v184_v17 = vld [vmem:[%s18452_s4 + $0x8] sm:$0xff]  ;;  %v183_v18 = vld [vmem:[%s18452_s4] sm:$0xff]  ;;  %v185_v20 = vld [vmem:[%s18452_s4 + $0x10] sm:$0xff] }
  0x1a   :  { %10549 = vrot.lane.b32.xlu1 %v10528_v11, %s12881_s3  ;;  %10544 = vrot.lane.b32.xlu0 %v10523_v7, %s12881_s3  ;;  %v186_v21 = vld [vmem:[%s18452_s4 + $0x18] sm:$0xff]  ;;  %s18456_s4 = sld [smem:[#allocation30_spill]] }
  0x1e   :  { %10559 = vrot.lane.b32.xlu1 %v10538_v10, %s12881_s3  ;;  %10554 = vrot.lane.b32.xlu0 %v10533_v3, %s12881_s3 }
  0x22   :  { %10569 = vrot.lane.b32.xlu1 %v10533_v3, %s12882_s26  ;;  %10564 = vrot.lane.b32.xlu0 %v10528_v11, %s12882_s26 }
  0x26   :  { %10579 = vrot.lane.b32.xlu1 %v10538_v10, %s12882_s26  ;;  %10574 = vrot.lane.b32.xlu0 %v10523_v7, %s12882_s26 }
  0x2a   :  { %10589 = vrot.lane.b32.xlu1 %v10533_v3, %s12884_s28  ;;  %10584 = vrot.lane.b32.xlu0 %v10528_v11, %s12884_s28 }
  0x2e   :  { %10599 = vrot.lane.b32.xlu1 %v10538_v10, %s12884_s28  ;;  %10594 = vrot.lane.b32.xlu0 %v10523_v7, %s12884_s28 }
  0x32   :  { %194 = vperm.xlu1 %10604, %v184_v17   ;;  %189 = vperm.xlu0 %10603, %v183_v18  }
  0x36   :  { %199 = vperm.xlu1 %10604, %v185_v20   ;;  %204 = vperm.xlu0 %10603, %v186_v21  }
  0x84   :  { %v10535_v23 = vpop.permute.xlu1 %10534  ;;  %v10525_v25 = vpop.permute.xlu0 %10524 }
  0x85   :  { %v10537_v26 = vunpack.i.h.bf16 %v10535_v23  ;;  %v10536_v27 = vunpack.i.l.bf16 %v10535_v23  ;;  %v10527_v29 = vunpack.i.h.bf16 %v10525_v25  ;;  %v10526_v30 = vunpack.i.l.bf16 %v10525_v25 }
  0x88   :  { %v10540_v28 = vpop.permute.xlu1 %10539  ;;  %v10530_v33 = vpop.permute.xlu0 %10529 }
  0x89   :  { %v10542_v31 = vunpack.i.h.bf16 %v10540_v28  ;;  %v10541_v32 = vunpack.i.l.bf16 %v10540_v28  ;;  %v10532_v34 = vunpack.i.h.bf16 %v10530_v33  ;;  %v10531_v35 = vunpack.i.l.bf16 %v10530_v33 }
  0x8b   :  { %v96_v36 = vsel %vm95_vm0, %v10536_v27, %v10541_v32  ;;  %v97_v37 = vsel %vm95_vm0, %v10537_v26, %v10542_v31  ;;  %v102_v38 = vsel %vm95_vm0, %v10541_v32, %v10526_v30  ;;  %v103_v39 = vsel %vm95_vm0, %v10542_v31, %v10527_v29 }
  0x8c   :  { %v10550_v40 = vpop.permute.xlu1 %10549  ;;  %v100_v41 = vsel %vm95_vm0, %v10526_v30, %v10531_v35  ;;  %v101_v42 = vsel %vm95_vm0, %v10527_v29, %v10532_v34  ;;  %v9722_v43 = vpack.c.bf16 %v97_v37, %v96_v36  ;;  %v9704_v44 = vpack.c.bf16 %v103_v39, %v102_v38  ;;  %v10545_v47 = vpop.permute.xlu0 %10544 }
  0x8d   :  { %v10552_v45 = vunpack.i.h.bf16 %v10550_v40  ;;  %v10551_v46 = vunpack.i.l.bf16 %v10550_v40  ;;  %v9702_v48 = vpack.c.bf16 %v101_v42, %v100_v41  ;;  %v98_v49 = vsel %vm95_vm0, %v10531_v35, %v10536_v27 }
  0x8e   :  { %v10547_v50 = vunpack.i.h.bf16 %v10545_v47  ;;  %v10546_v51 = vunpack.i.l.bf16 %v10545_v47  ;;  %9723 = vmatprep.subr.bf16.mxu1 %v9722_v43  ;;  %v99_v52 = vsel %vm95_vm0, %v10532_v34, %v10537_v26 }
  0x8f   :  { %9703 = vmatprep.subr.bf16.mxu0 %v9702_v48  ;;  %v9724_v53 = vpack.c.bf16 %v99_v52, %v98_v49 }
  0x90   :  { %9705 = vmatpush1.bf16.msra.mxu0 %v9704_v44  ;;  %v10560_v54 = vpop.permute.xlu1 %10559  ;;  %v125_v55 = vsel %vm120_vm1, %v10546_v51, %v10551_v46  ;;  %v126_v56 = vsel %vm120_vm1, %v10547_v50, %v10552_v45  ;;  %v10555_v59 = vpop.permute.xlu0 %10554 }
  0x91   :  { %9725 = vmatpush1.bf16.msra.mxu1 %v9724_v53  ;;  %v10562_v57 = vunpack.i.h.bf16 %v10560_v54  ;;  %v10561_v58 = vunpack.i.l.bf16 %v10560_v54  ;;  %v9706_v60 = vpack.c.bf16 %v126_v56, %v125_v55  ;;  %v10557_v61 = vunpack.i.h.bf16 %v10555_v59 }
  0x92   :  { %v10556_v62 = vunpack.i.l.bf16 %v10555_v59  ;;  %v179_v59 = vld [vmem:[%s18453_s29] sm:$0xff] }
  0x93   :  { %9707 = vmatprep.subr.bf16.mxu0 %v9706_v60  ;;  %v127_v63 = vsel %vm120_vm1, %v10561_v58, %v10546_v51  ;;  %v128_v3 = vsel %vm120_vm1, %v10562_v57, %v10547_v50  ;;  %v122_v17 = vsel %vm120_vm1, %v10557_v61, %v10562_v57  ;;  %v124_v25 = vsel %vm120_vm1, %v10552_v45, %v10557_v61  ;;  %v180_v60 = vld [vmem:[%s18453_s29 + $0x8] sm:$0xff]  ;;  %v181_v61 = vld [vmem:[%s18453_s29 + $0x10] sm:$0xff] }
  0x94   :  { %v10570_v7 = vpop.permute.xlu1 %10569  ;;  %v9708_v10 = vpack.c.bf16 %v128_v3, %v127_v63  ;;  %v121_v11 = vsel %vm120_vm1, %v10556_v62, %v10561_v58  ;;  %v123_v18 = vsel %vm120_vm1, %v10551_v46, %v10556_v62  ;;  %v10565_v21 = vpop.permute.xlu0 %10564  ;;  %v182_v62 = vld [vmem:[%s18453_s29 + $0x18] sm:$0xff]  ;;  %v13203_v63 = vshrl.u32 %v93_v22, 7  ;;  %s12892_s29 = smov 60  }
  0x95   :  { %v10572_v19 = vunpack.i.h.bf16 %v10570_v7  ;;  %v10571_v20 = vunpack.i.l.bf16 %v10570_v7  ;;  %v9726_v23 = vpack.c.bf16 %v122_v17, %v121_v11  ;;  %v10567_v26 = vunpack.i.h.bf16 %v10565_v21  ;;  %v398_v11 = vld [vmem:[%s18351_s13] sm:$0xf] }
  0x96   :  { %v10566_v27 = vunpack.i.l.bf16 %v10565_v21  ;;  %9709 = vmatpush1.bf16.msra.mxu0 %v9708_v10  ;;  %v9728_v28 = vpack.c.bf16 %v124_v25, %v123_v18  ;;  %18454 = vst [vmem:[#allocation5_spill] sm:$0xff] %v13203_v63  ;;  %v18367_v3 = vsub.s32 0, %v13203_v63  ;;  %v18366_v7 = vsub.s32 1, %v13203_v63 }
  0x97   :  { %9727 = vmatprep.subr.bf16.mxu1 %v9726_v23  ;;  %9711 = vmatprep.subr.bf16.mxu0 %v9710_v12  ;;  %v149_v31 = vsel %vm145_vm2, %v10567_v26, %v10572_v19  ;;  %v410_v18 = vsub.s32 2, %v13203_v63 }
  0x98   :  { %9729 = vmatpush1.bf16.msra.mxu1 %v9728_v28  ;;  %v10580_v29 = vpop.permute.xlu1 %10579  ;;  %v148_v30 = vsel %vm145_vm2, %v10566_v27, %v10571_v20  ;;  %v10575_v34 = vpop.permute.xlu0 %10574  ;;  %v13214_v22 = vrot.slane %v398_v11, %v18367_v3 }
  0x99   :  { %v10582_v32 = vunpack.i.h.bf16 %v10580_v29  ;;  %v10581_v33 = vunpack.i.l.bf16 %v10580_v29  ;;  %9731 = vmatprep.subr.bf16.mxu1 %v9730_v14  ;;  %v9714_v35 = vpack.c.bf16 %v149_v31, %v148_v30  ;;  %v10577_v36 = vunpack.i.h.bf16 %v10575_v34 }
  0x9a   :  { %v10576_v37 = vunpack.i.l.bf16 %v10575_v34  ;;  %9713 = vmatpush1.bf16.msra.mxu0 %v9712_v13  ;;  %v13220_v29 = vrot.slane %v398_v11, %v410_v18 }
  0x9b   :  { %9715 = vmatprep.subr.bf16.mxu0 %v9714_v35  ;;  %v146_v8 = vsel %vm145_vm2, %v10571_v20, %v10581_v33  ;;  %v147_v9 = vsel %vm145_vm2, %v10572_v19, %v10582_v32  ;;  %v151_v2 = vsel %vm145_vm2, %v10577_v36, %v10567_v26  ;;  %v153_v12 = vsel %vm145_vm2, %v10582_v32, %v10577_v36 }
  0x9c   :  { %9733 = vmatpush1.bf16.msra.mxu1 %v9732_v15  ;;  %v10590_v5 = vpop.permute.xlu1 %10589  ;;  %v150_v6 = vsel %vm145_vm2, %v10576_v37, %v10566_v27  ;;  %v152_v4 = vsel %vm145_vm2, %v10581_v33, %v10576_v37  ;;  %v10585_v38 = vpop.permute.xlu0 %10584  ;;  %v9736_v15 = vpack.c.bf16 %v147_v9, %v146_v8  ;;  %v13218_v27 = vrot.slane %v398_v11, %v18366_v7 }
  0x9d   :  { %v10592_v13 = vunpack.i.h.bf16 %v10590_v5  ;;  %v10591_v14 = vunpack.i.l.bf16 %v10590_v5  ;;  %v9716_v39 = vpack.c.bf16 %v151_v2, %v150_v6  ;;  %v9734_v40 = vpack.c.bf16 %v153_v12, %v152_v4 }
  0x9e   :  { %v10587_v0 = vunpack.i.h.bf16 %v10585_v38  ;;  %v10586_v1 = vunpack.i.l.bf16 %v10585_v38 }
  0x9f   :  { %9717 = vmatpush1.bf16.msra.mxu0 %v9716_v39  ;;  %9735 = vmatprep.subr.bf16.mxu1 %v9734_v40 }
  0xa0   :  { %9737 = vmatpush1.bf16.msra.mxu1 %v9736_v15  ;;  %v10600_v41 = vpop.permute.xlu1 %10599  ;;  %v173_v42 = vsel %vm170_vm3, %v10586_v1, %v10591_v14  ;;  %v174_v43 = vsel %vm170_vm3, %v10587_v0, %v10592_v13  ;;  %v10595_v46 = vpop.permute.xlu0 %10594 }
  0xa1   :  { %v10602_v44 = vunpack.i.h.bf16 %v10600_v41  ;;  %v10601_v45 = vunpack.i.l.bf16 %v10600_v41  ;;  %v9718_v47 = vpack.c.bf16 %v174_v43, %v173_v42  ;;  %v10597_v48 = vunpack.i.h.bf16 %v10595_v46 }
  0xa2   :  { %v10596_v49 = vunpack.i.l.bf16 %v10595_v46 }
  0xa3   :  { %9719 = vmatprep.subr.bf16.mxu0 %v9718_v47  ;;  %v171_v50 = vsel %vm170_vm3, %v10591_v14, %v10601_v45  ;;  %v172_v51 = vsel %vm170_vm3, %v10592_v13, %v10602_v44  ;;  %v176_v53 = vsel %vm170_vm3, %v10597_v48, %v10587_v0  ;;  %v178_v55 = vsel %vm170_vm3, %v10602_v44, %v10597_v48 }
  0xa4   :  { %v175_v52 = vsel %vm170_vm3, %v10596_v49, %v10586_v1  ;;  %v177_v54 = vsel %vm170_vm3, %v10601_v45, %v10596_v49  ;;  %v9740_v58 = vpack.c.bf16 %v172_v51, %v171_v50 }
  0xa5   :  { %v9720_v56 = vpack.c.bf16 %v176_v53, %v175_v52  ;;  %v9738_v57 = vpack.c.bf16 %v178_v55, %v177_v54 }
  0xa7   :  { %9721 = vmatpush1.bf16.msra.mxu0 %v9720_v56  ;;  %9739 = vmatprep.subr.bf16.mxu1 %v9738_v57 }
  0xa8   :  { %9741 = vmatpush1.bf16.msra.mxu1 %v9740_v58 }
  0xaa   :  { %8304 = vmatmul.mubr.msk.f32.vlgmr.msra.gmra.mrb[0].mxu0 %vm207_vm4, %v179_v59 }
  0xab   :  { %8308 = vmatmul.mubr.msk.f32.vlgmr.msra.gmra.mrb[0].mxu1 %vm207_vm4, %v179_v59  ;;  %290 = vmatprep.mubr.f32.mxu0 %v12883_v16 }
  0xac   :  { %379 = vmatprep.mubr.f32.mxu1 %v12883_v16 }
  0xae   :  { %8305 = vmatmul.mubr.msk.f32.gmra.mrb[2].mxu0 %vm207_vm4, %v180_v60 }
  0xaf   :  { %8309 = vmatmul.mubr.msk.f32.gmra.mrb[2].mxu1 %vm207_vm4, %v180_v60  ;;  %296 = vmatprep.mubr.f32.mxu0 %v12883_v16 }
  0xb0   :  { %385 = vmatprep.mubr.f32.mxu1 %v12883_v16 }
  0xb1   :  { %v190_v17 = vpop.permute.xlu0 %189  ;;  %v195_v21 = vpop.permute.xlu1 %194 }
  0xb2   :  { %8306 = vmatmul.mubr.msk.f32.gmra.mrb[4].mxu0 %vm207_vm4, %v181_v61 }
  0xb3   :  { %8310 = vmatmul.mubr.msk.f32.gmra.mrb[4].mxu1 %vm207_vm4, %v181_v61  ;;  %302 = vmatprep.mubr.f32.mxu0 %v12883_v16 }
  0xb4   :  { %391 = vmatprep.mubr.f32.mxu1 %v12883_v16  ;;  %v414_v16 = vsub.s32 3, %v13203_v63 }
  0xb5   :  { %v200_v13 = vpop.permute.xlu1 %199  ;;  %v205_v50 = vpop.permute.xlu0 %204 }
  0xb6   :  { %8307 = vmatmul.mubr.msk.f32.gmra.mrb[6].mxu0 %vm207_vm4, %v182_v62  ;;  %v13222_v31 = vrot.slane %v398_v11, %v414_v16 }
  0xb7   :  { %8311 = vmatmul.mubr.msk.f32.gmra.mrb[6].mxu1 %vm207_vm4, %v182_v62 }
 0x17d   :  { %v286_v10 = vpop.f32.mrb[0].mxu0 }
 0x17e   :  { %v288_v19 = vpop.f32.mrb[1].mxu0  ;;  %v375_v20 = vpop.f32.mrb[0].mxu1  ;;  %v287_v25 = vadd.f32 %v286_v10, %v190_v17 }
 0x17f   :  { %v377_v23 = vpop.f32.mrb[1].mxu1  ;;  %v289_v26 = vadd.f32 %v288_v19, %v190_v17  ;;  %v376_v28 = vadd.f32 %v375_v20, %v190_v17 }
 0x180   :  { %v378_v30 = vadd.f32 %v377_v23, %v190_v17  ;;  %v13225_v9 = vmul.f32 %v13214_v22, %v287_v25 }
 0x181   :  { %v292_v32 = vpop.f32.mrb[2].mxu0  ;;  %v13228_v5 = vmul.f32 %v13218_v27, %v289_v26  ;;  %v13234_v4 = vmul.f32 %v13220_v29, %v376_v28 }
 0x182   :  { %v293_v33 = vadd.f32 %v292_v32, %v195_v21  ;;  %v294_v34 = vpop.f32.mrb[3].mxu0  ;;  %v381_v35 = vpop.f32.mrb[2].mxu1  ;;  %v13237_v12 = vmul.f32 %v13222_v31, %v378_v30 }
 0x183   :  { %v295_v36 = vadd.f32 %v294_v34, %v195_v21  ;;  %v382_v37 = vadd.f32 %v381_v35, %v195_v21  ;;  %v383_v8 = vpop.f32.mrb[3].mxu1  ;;  %v13335_v34 = vld [vmem:[%s18455_s25 + $0x8] sm:$0xff]  ;;  %v436_v35 = vld [vmem:[%s18456_s4] sm:$0xff] }
 0x184   :  { %v13231_v6 = vmul.f32 %v13214_v22, %v293_v33  ;;  %v384_v2 = vadd.f32 %v383_v8, %v195_v21  ;;  %8312 = vmatprep.mubr.msk.f32.mxu0 %vm660_vm5, %v13335_v34  ;;  %8316 = vmatprep.mubr.msk.f32.mxu1 %vm660_vm5, %v13335_v34  ;;  %v439_v8 = vld [vmem:[%s18456_s4 + $0x18] sm:$0xff] }
 0x185   :  { %v13240_v14 = vmul.f32 %v13218_v27, %v295_v36  ;;  %v13243_v38 = vmul.f32 %v13220_v29, %v382_v37  ;;  %v298_v39 = vpop.f32.mrb[4].mxu0  ;;  %v437_v36 = vld [vmem:[%s18456_s4 + $0x8] sm:$0xff]  ;;  %v438_v37 = vld [vmem:[%s18456_s4 + $0x10] sm:$0xff] }
 0x186   :  { %v13246_v40 = vmul.f32 %v13222_v31, %v384_v2  ;;  %v299_v0 = vadd.f32 %v298_v39, %v200_v13  ;;  %v300_v1 = vpop.f32.mrb[5].mxu0  ;;  %v387_v15 = vpop.f32.mrb[4].mxu1  ;;  %v10605_v41 = vpack.i.bf16 %v13231_v6, %v13225_v9  ;;  %v9760_v25 = vpack.c.bf16 %v13231_v6, %v13225_v9 }
 0x187   :  { %v301_v42 = vadd.f32 %v300_v1, %v200_v13  ;;  %v388_v43 = vadd.f32 %v387_v15, %v200_v13  ;;  %v389_v44 = vpop.f32.mrb[5].mxu1  ;;  %v10625_v45 = vpack.i.bf16 %v13243_v38, %v13234_v4  ;;  %v10635_v48 = vpack.i.bf16 %v13240_v14, %v13228_v5 }
 0x188   :  { %v13253_v46 = vmul.f32 %v13214_v22, %v299_v0  ;;  %v390_v47 = vadd.f32 %v389_v44, %v200_v13  ;;  %10606 = vrot.lane.b32.xlu1 %v10605_v41, %s12880_s27  ;;  %v10640_v49 = vpack.i.bf16 %v13246_v40, %v13237_v12  ;;  %v9758_v21 = vpack.c.bf16 %v13240_v14, %v13228_v5 }
 0x189   :  { %v13261_v51 = vmul.f32 %v13218_v27, %v301_v42  ;;  %v13264_v52 = vmul.f32 %v13220_v29, %v388_v43  ;;  %10626 = vrot.lane.b32.xlu0 %v10625_v45, %s12882_s26  ;;  %v304_v53 = vpop.f32.mrb[6].mxu0  ;;  %v9798_v23 = vpack.c.bf16 %v13246_v40, %v13237_v12  ;;  %v9800_v28 = vpack.c.bf16 %v13243_v38, %v13234_v4 }
 0x18a   :  { %v13268_v54 = vmul.f32 %v13222_v31, %v390_v47  ;;  %v305_v55 = vadd.f32 %v304_v53, %v205_v50  ;;  %v306_v56 = vpop.f32.mrb[7].mxu0  ;;  %v393_v57 = vpop.f32.mrb[6].mxu1 }
 0x18b   :  { %v307_v58 = vadd.f32 %v306_v56, %v205_v50  ;;  %v394_v59 = vadd.f32 %v393_v57, %v205_v50  ;;  %v395_v60 = vpop.f32.mrb[7].mxu1 }
 0x18c   :  { %v13271_v61 = vmul.f32 %v13214_v22, %v305_v55  ;;  %v396_v62 = vadd.f32 %v395_v60, %v205_v50  ;;  %10611 = vrot.lane.b32.xlu1 %v10625_v45, %s12880_s27 }
 0x18d   :  { %v13275_v10 = vmul.f32 %v13218_v27, %v307_v58  ;;  %v13278_v11 = vmul.f32 %v13220_v29, %v394_v59  ;;  %10636 = vrot.lane.b32.xlu0 %v10635_v48, %s12880_s27 }
 0x18e   :  { %v13282_v17 = vmul.f32 %v13222_v31, %v396_v62  ;;  %v10665_v18 = vpack.i.bf16 %v13271_v61, %v13253_v46 }
 0x18f   :  { %v10685_v16 = vpack.i.bf16 %v13275_v10, %v13261_v51  ;;  %v10670_v19 = vpack.i.bf16 %v13278_v11, %v13264_v52  ;;  %v9762_v26 = vpack.c.bf16 %v13275_v10, %v13261_v51  ;;  %v18457_v10 = vpack.c.bf16 %v13271_v61, %v13253_v46 }
 0x190   :  { %10616 = vrot.lane.b32.xlu1 %v10605_v41, %s12881_s3  ;;  %v10690_v20 = vpack.i.bf16 %v13282_v17, %v13268_v54  ;;  %v9802_v30 = vpack.c.bf16 %v13282_v17, %v13268_v54 }
 0x191   :  { %10641 = vrot.lane.b32.xlu0 %v10640_v49, %s12880_s27 }
 0x194   :  { %10621 = vrot.lane.b32.xlu1 %v10625_v45, %s12881_s3 }
 0x195   :  { %10646 = vrot.lane.b32.xlu0 %v10635_v48, %s12881_s3 }
 0x198   :  { %10631 = vrot.lane.b32.xlu1 %v10605_v41, %s12882_s26 }
 0x199   :  { %10651 = vrot.lane.b32.xlu0 %v10640_v49, %s12881_s3 }
 0x19c   :  { %10656 = vrot.lane.b32.xlu1 %v10635_v48, %s12882_s26 }
 0x19d   :  { %10661 = vrot.lane.b32.xlu0 %v10640_v49, %s12882_s26 }
 0x1a0   :  { %10666 = vrot.lane.b32.xlu1 %v10665_v18, %s12880_s27 }
 0x1a1   :  { %10686 = vrot.lane.b32.xlu0 %v10685_v16, %s12880_s27 }
 0x1a4   :  { %10671 = vrot.lane.b32.xlu1 %v10670_v19, %s12880_s27 }
 0x1a5   :  { %10691 = vrot.lane.b32.xlu0 %v10690_v20, %s12880_s27 }
 0x1a8   :  { %10676 = vrot.lane.b32.xlu1 %v10665_v18, %s12881_s3 }
 0x1a9   :  { %10696 = vrot.lane.b32.xlu0 %v10685_v16, %s12881_s3 }
 0x1ac   :  { %10681 = vrot.lane.b32.xlu1 %v10670_v19, %s12881_s3 }
 0x1ad   :  { %10701 = vrot.lane.b32.xlu0 %v10690_v20, %s12881_s3 }
 0x1b0   :  { %10711 = vrot.lane.b32.xlu1 %v10665_v18, %s12882_s26 }
 0x1b1   :  { %10706 = vrot.lane.b32.xlu0 %v10670_v19, %s12882_s26 }
 0x1b4   :  { %10716 = vrot.lane.b32.xlu1 %v10635_v48, %s12884_s28 }
 0x1b5   :  { %10721 = vrot.lane.b32.xlu0 %v10625_v45, %s12884_s28 }
 0x1b8   :  { %10726 = vrot.lane.b32.xlu1 %v10685_v16, %s12882_s26 }
 0x1b9   :  { %10736 = vrot.lane.b32.xlu0 %v10640_v49, %s12884_s28 }
 0x1bc   :  { %10731 = vrot.lane.b32.xlu1 %v10605_v41, %s12884_s28 }
 0x1bd   :  { %10741 = vrot.lane.b32.xlu0 %v10690_v20, %s12882_s26 }
 0x1c0   :  { %10751 = vrot.lane.b32.xlu1 %v10685_v16, %s12884_s28 }
 0x1c1   :  { %10746 = vrot.lane.b32.xlu0 %v10670_v19, %s12884_s28 }
 0x1c4   :  { %10756 = vrot.lane.b32.xlu1 %v10665_v18, %s12884_s28 }
 0x1c5   :  { %10761 = vrot.lane.b32.xlu0 %v10690_v20, %s12884_s28 }
 0x1c8   :  { %642 = vperm.xlu1 %10604, %v436_v35  }
 0x1c9   :  { %647 = vperm.xlu0 %10603, %v437_v36  }
 0x1cc   :  { %652 = vperm.xlu1 %10604, %v438_v37  }
 0x1cd   :  { %657 = vperm.xlu0 %10603, %v439_v8  }
 0x1fa   :  { %v10607_v2 = vpop.permute.xlu1 %10606 }
 0x1fb   :  { %v13357_v13 = vpop.permute.xlu0 %10626  ;;  %v10609_v1 = vunpack.i.h.bf16 %v10607_v2  ;;  %v10608_v15 = vunpack.i.l.bf16 %v10607_v2 }
 0x1fe   :  { %v10612_v39 = vpop.permute.xlu1 %10611 }
 0x1ff   :  { %v10637_v0 = vpop.permute.xlu0 %10636  ;;  %v10614_v43 = vunpack.i.h.bf16 %v10612_v39  ;;  %v10613_v44 = vunpack.i.l.bf16 %v10612_v39 }
 0x200   :  { %v10639_v41 = vunpack.i.h.bf16 %v10637_v0  ;;  %v10638_v42 = vunpack.i.l.bf16 %v10637_v0 }
 0x202   :  { %v13359_v45 = vpop.permute.xlu1 %10616  ;;  %v480_v47 = vsel %vm95_vm0, %v10608_v15, %v10638_v42  ;;  %v481_v48 = vsel %vm95_vm0, %v10609_v1, %v10639_v41  ;;  %v476_v56 = vsel %vm95_vm0, %v10638_v42, %v10613_v44  ;;  %v477_v57 = vsel %vm95_vm0, %v10639_v41, %v10614_v43 }
 0x203   :  { %v10642_v49 = vpop.permute.xlu0 %10641  ;;  %v9742_v50 = vpack.c.bf16 %v481_v48, %v480_v47  ;;  %v9784_v35 = vpack.c.bf16 %v477_v57, %v476_v56  ;;  %v10618_v41 = vunpack.i.l.bf16 %v13359_v45 }
 0x204   :  { %v10644_v53 = vunpack.i.h.bf16 %v10642_v49  ;;  %v10643_v55 = vunpack.i.l.bf16 %v10642_v49 }
 0x205   :  { %9743 = vmatprep.subr.bf16.mxu0 %v9742_v50 }
 0x206   :  { %v484_v58 = vsel %vm95_vm0, %v10643_v55, %v10608_v15  ;;  %v485_v59 = vsel %vm95_vm0, %v10644_v53, %v10609_v1  ;;  %v13373_v60 = vpop.permute.xlu1 %10621  ;;  %v472_v62 = vsel %vm95_vm0, %v10613_v44, %v10643_v55  ;;  %v473_v18 = vsel %vm95_vm0, %v10614_v43, %v10644_v53 }
 0x207   :  { %v10647_v16 = vpop.permute.xlu0 %10646  ;;  %v9744_v19 = vpack.c.bf16 %v485_v59, %v484_v58  ;;  %v9782_v20 = vpack.c.bf16 %v473_v18, %v472_v62  ;;  %v10619_v15 = vunpack.i.h.bf16 %v13359_v45  ;;  %v10624_v56 = vunpack.i.h.bf16 %v13373_v60 }
 0x208   :  { %v10649_v39 = vunpack.i.h.bf16 %v10647_v16  ;;  %v10648_v0 = vunpack.i.l.bf16 %v10647_v16  ;;  %v10623_v59 = vunpack.i.l.bf16 %v13373_v60 }
 0x209   :  { %9745 = vmatpush1.bf16.msra.mxu0 %v9744_v19  ;;  %9783 = vmatprep.subr.bf16.mxu1 %v9782_v20 }
 0x20a   :  { %v13379_v36 = vpop.permute.xlu1 %10631  ;;  %9785 = vmatpush1.bf16.msra.mxu1 %v9784_v35  ;;  %v528_v53 = vsel %vm120_vm1, %v10618_v41, %v10648_v0  ;;  %v529_v55 = vsel %vm120_vm1, %v10619_v15, %v10649_v39 }
 0x20b   :  { %v10652_v37 = vpop.permute.xlu0 %10651 }
 0x20c   :  { %v10653_v47 = vunpack.i.l.bf16 %v10652_v37  ;;  %v10654_v50 = vunpack.i.h.bf16 %v10652_v37 }
 0x20e   :  { %v13381_v8 = vpop.permute.xlu1 %10656  ;;  %v532_v20 = vsel %vm120_vm1, %v10653_v47, %v10618_v41  ;;  %v520_v60 = vsel %vm120_vm1, %v10623_v59, %v10653_v47  ;;  %v533_v3 = vsel %vm120_vm1, %v10654_v50, %v10619_v15 }
 0x20f   :  { %v13383_v2 = vpop.permute.xlu0 %10661 }
 0x212   :  { %v10667_v1 = vpop.permute.xlu1 %10666 }
 0x213   :  { %v10669_v42 = vunpack.i.h.bf16 %v10667_v1  ;;  %v10668_v43 = vunpack.i.l.bf16 %v10667_v1  ;;  %v10687_v44 = vpop.permute.xlu0 %10686  ;;  %v9750_v1 = vpack.c.bf16 %v529_v55, %v528_v53 }
 0x214   :  { %v10689_v48 = vunpack.i.h.bf16 %v10687_v44  ;;  %v10688_v49 = vunpack.i.l.bf16 %v10687_v44 }
 0x216   :  { %v10672_v57 = vpop.permute.xlu1 %10671  ;;  %v482_v58 = vsel %vm95_vm0, %v10668_v43, %v10688_v49  ;;  %v483_v45 = vsel %vm95_vm0, %v10669_v42, %v10689_v48 }
 0x217   :  { %v10674_v62 = vunpack.i.h.bf16 %v10672_v57  ;;  %v10673_v18 = vunpack.i.l.bf16 %v10672_v57  ;;  %v10692_v16 = vpop.permute.xlu0 %10691  ;;  %v9746_v19 = vpack.c.bf16 %v483_v45, %v482_v58  ;;  %v521_v57 = vsel %vm120_vm1, %v10624_v56, %v10654_v50 }
 0x218   :  { %v10694_v35 = vunpack.i.h.bf16 %v10692_v16  ;;  %v10693_v37 = vunpack.i.l.bf16 %v10692_v16 }
 0x219   :  { %v479_v44 = vsel %vm95_vm0, %v10689_v48, %v10674_v62  ;;  %v478_v7 = vsel %vm95_vm0, %v10688_v49, %v10673_v18  ;;  %9747 = vmatprep.subr.bf16.mxu0 %v9746_v19 }
 0x21a   :  { %v486_v58 = vsel %vm95_vm0, %v10693_v37, %v10668_v43  ;;  %v487_v41 = vsel %vm95_vm0, %v10694_v35, %v10669_v42  ;;  %v10677_v53 = vpop.permute.xlu1 %10676  ;;  %v474_v48 = vsel %vm95_vm0, %v10673_v18, %v10693_v37  ;;  %v475_v49 = vsel %vm95_vm0, %v10674_v62, %v10694_v35 }
 0x21b   :  { %v10679_v55 = vunpack.i.h.bf16 %v10677_v53  ;;  %v10678_v45 = vunpack.i.l.bf16 %v10677_v53  ;;  %v10697_v16 = vpop.permute.xlu0 %10696  ;;  %v9748_v47 = vpack.c.bf16 %v487_v41, %v486_v58  ;;  %v9786_v19 = vpack.c.bf16 %v475_v49, %v474_v48 }
 0x21c   :  { %v10699_v33 = vunpack.i.h.bf16 %v10697_v16  ;;  %v10698_v43 = vunpack.i.l.bf16 %v10697_v16  ;;  %v9788_v32 = vpack.c.bf16 %v479_v44, %v478_v7  ;;  %v524_v42 = vsel %vm120_vm1, %v10648_v0, %v10623_v59 }
 0x21d   :  { %v525_v18 = vsel %vm120_vm1, %v10649_v39, %v10624_v56  ;;  %9749 = vmatpush1.bf16.msra.mxu0 %v9748_v47  ;;  %9787 = vmatprep.subr.bf16.mxu1 %v9786_v19  ;;  %v9790_v62 = vpack.c.bf16 %v521_v57, %v520_v60  ;;  %v9752_v0 = vpack.c.bf16 %v533_v3, %v532_v20  ;;  %v10659_v48 = vunpack.i.h.bf16 %v13381_v8 }
 0x21e   :  { %v10682_v35 = vpop.permute.xlu1 %10681  ;;  %9751 = vmatprep.subr.bf16.mxu0 %v9750_v1  ;;  %9789 = vmatpush1.bf16.msra.mxu1 %v9788_v32  ;;  %v530_v37 = vsel %vm120_vm1, %v10678_v45, %v10698_v43  ;;  %v531_v15 = vsel %vm120_vm1, %v10679_v55, %v10699_v33  ;;  %v9792_v56 = vpack.c.bf16 %v525_v18, %v524_v42  ;;  %v10658_v49 = vunpack.i.l.bf16 %v13381_v8 }
 0x21f   :  { %v10684_v50 = vunpack.i.h.bf16 %v10682_v35  ;;  %v10683_v7 = vunpack.i.l.bf16 %v10682_v35  ;;  %v10702_v44 = vpop.permute.xlu0 %10701  ;;  %9791 = vmatprep.subr.bf16.mxu1 %v9790_v62  ;;  %v9754_v59 = vpack.c.bf16 %v531_v15, %v530_v37  ;;  %v10663_v16 = vunpack.i.l.bf16 %v13383_v2 }
 0x220   :  { %v10704_v58 = vunpack.i.h.bf16 %v10702_v44  ;;  %v10703_v39 = vunpack.i.l.bf16 %v10702_v44  ;;  %v10628_v19 = vunpack.i.l.bf16 %v13357_v13  ;;  %v10633_v42 = vunpack.i.l.bf16 %v13379_v36 }
 0x221   :  { %v527_v60 = vsel %vm120_vm1, %v10699_v33, %v10684_v50  ;;  %v526_v32 = vsel %vm120_vm1, %v10698_v43, %v10683_v7  ;;  %9753 = vmatpush1.bf16.msra.mxu0 %v9752_v0  ;;  %v10634_v43 = vunpack.i.h.bf16 %v13379_v36  ;;  %v10629_v8 = vunpack.i.h.bf16 %v13357_v13 }
 0x222   :  { %v534_v1 = vsel %vm120_vm1, %v10703_v39, %v10678_v45  ;;  %v535_v57 = vsel %vm120_vm1, %v10704_v58, %v10679_v55  ;;  %v13433_v41 = vpop.permute.xlu1 %10711  ;;  %9755 = vmatprep.subr.bf16.mxu0 %v9754_v59  ;;  %9793 = vmatpush1.bf16.msra.mxu1 %v9792_v56  ;;  %v522_v3 = vsel %vm120_vm1, %v10683_v7, %v10703_v39  ;;  %v10664_v55 = vunpack.i.h.bf16 %v13383_v2 }
 0x223   :  { %v13437_v20 = vpop.permute.xlu0 %10706  ;;  %v9756_v33 = vpack.c.bf16 %v535_v57, %v534_v1  ;;  %v523_v53 = vsel %vm120_vm1, %v10684_v50, %v10704_v58  ;;  %v9796_v47 = vpack.c.bf16 %v527_v60, %v526_v32  ;;  %v576_v2 = vsel %vm145_vm2, %v10633_v42, %v10658_v49 }
 0x224   :  { %v9794_v45 = vpack.c.bf16 %v523_v53, %v522_v3  ;;  %v577_v35 = vsel %vm145_vm2, %v10634_v43, %v10659_v48  ;;  %v572_v36 = vsel %vm145_vm2, %v10658_v49, %v10628_v19  ;;  %v569_v5 = vsel %vm145_vm2, %v10629_v8, %v10664_v55 }
 0x225   :  { %9757 = vmatpush1.bf16.msra.mxu0 %v9756_v33  ;;  %v573_v14 = vsel %vm145_vm2, %v10659_v48, %v10629_v8  ;;  %v581_v12 = vsel %vm145_vm2, %v10664_v55, %v10634_v43  ;;  %v10709_v9 = vunpack.i.h.bf16 %v13437_v20  ;;  %v10708_v6 = vunpack.i.l.bf16 %v13437_v20 }
 0x226   :  { %9795 = vmatprep.subr.bf16.mxu1 %v9794_v45  ;;  %v13448_v18 = vpop.permute.xlu1 %10716  ;;  %9759 = vmatprep.subr.bf16.mxu0 %v9758_v21  ;;  %v580_v21 = vsel %vm145_vm2, %v10663_v16, %v10633_v42  ;;  %v568_v44 = vsel %vm145_vm2, %v10628_v19, %v10663_v16  ;;  %v10714_v0 = vunpack.i.h.bf16 %v13433_v41  ;;  %v10713_v59 = vunpack.i.l.bf16 %v13433_v41 }
 0x227   :  { %9797 = vmatpush1.bf16.msra.mxu1 %v9796_v47  ;;  %v13454_v62 = vpop.permute.xlu0 %10721  ;;  %v10719_v40 = vunpack.i.h.bf16 %v13448_v18  ;;  %v9766_v51 = vpack.c.bf16 %v573_v14, %v572_v36  ;;  %v9768_v4 = vpack.c.bf16 %v577_v35, %v576_v2  ;;  %v18458_v32 = vpack.c.bf16 %v13278_v11, %v13264_v52 }
 0x228   :  { %9799 = vmatprep.subr.bf16.mxu1 %v9798_v23  ;;  %v10718_v23 = vunpack.i.l.bf16 %v13448_v18  ;;  %v10724_v13 = vunpack.i.h.bf16 %v13454_v62  ;;  %v10723_v37 = vunpack.i.l.bf16 %v13454_v62  ;;  %v9808_v20 = vpack.c.bf16 %v569_v5, %v568_v44 }
 0x229   :  { %9761 = vmatpush1.bf16.msra.mxu0 %v9760_v25 }
 0x22a   :  { %v10727_v15 = vpop.permute.xlu1 %10726  ;;  %9763 = vmatprep.subr.bf16.mxu0 %v9762_v26  ;;  %v9806_v26 = vpack.c.bf16 %v581_v12, %v580_v21  ;;  %v620_v46 = vsel %vm170_vm3, %v10718_v23, %v10723_v37  ;;  %v621_v61 = vsel %vm170_vm3, %v10719_v40, %v10724_v13 }
 0x22b   :  { %v10729_v25 = vunpack.i.h.bf16 %v10727_v15  ;;  %v10728_v50 = vunpack.i.l.bf16 %v10727_v15  ;;  %9801 = vmatpush1.bf16.msra.mxu1 %v9800_v28  ;;  %v10737_v7 = vpop.permute.xlu0 %10736  ;;  %v9774_v53 = vpack.c.bf16 %v621_v61, %v620_v46  ;;  %v13581_v46 = vld [vmem:[%s18455_s25 + $0x20] sm:$0xff]  ;;  %v13587_v61 = vld [vmem:[%s18455_s25 + $0x38] sm:$0xff] }
 0x22c   :  { %9803 = vmatprep.subr.bf16.mxu1 %v9802_v30  ;;  %v10739_v30 = vunpack.i.h.bf16 %v10737_v7  ;;  %v10738_v39 = vunpack.i.l.bf16 %v10737_v7 }
 0x22d   :  { %9765 = vmatpush1.bf16.msra.mxu0 %v18457_v10  ;;  %v574_v38 = vsel %vm145_vm2, %v10728_v50, %v10708_v6  ;;  %v575_v28 = vsel %vm145_vm2, %v10729_v25, %v10709_v9  ;;  %v578_v58 = vsel %vm145_vm2, %v10713_v59, %v10728_v50  ;;  %v579_v54 = vsel %vm145_vm2, %v10714_v0, %v10729_v25 }
 0x22e   :  { %v10732_v17 = vpop.permute.xlu1 %10731  ;;  %9767 = vmatprep.subr.bf16.mxu0 %v9766_v51  ;;  %v9770_v3 = vpack.c.bf16 %v575_v28, %v574_v38  ;;  %v9772_v33 = vpack.c.bf16 %v579_v54, %v578_v58  ;;  %v616_v36 = vsel %vm170_vm3, %v10723_v37, %v10738_v39  ;;  %v617_v5 = vsel %vm170_vm3, %v10724_v13, %v10739_v30  ;;  %v13552_v28 = vld [vmem:[%s18455_s25] sm:$0xff]  ;;  %v13557_v58 = vld [vmem:[%s18455_s25 + $0x18] sm:$0xff]  ;;  %v13565_v54 = vld [vmem:[%s18455_s25 + $0x10] sm:$0xff] }
 0x22f   :  { %v10734_v56 = vunpack.i.h.bf16 %v10732_v17  ;;  %v10733_v60 = vunpack.i.l.bf16 %v10732_v17  ;;  %9805 = vmatpush1.bf16.msra.mxu1 %v18458_v32  ;;  %v10742_v1 = vpop.permute.xlu0 %10741  ;;  %v9816_v44 = vpack.c.bf16 %v617_v5, %v616_v36  ;;  %v13571_v17 = vld [vmem:[%s18455_s25 + $0x28] sm:$0xff] }
 0x230   :  { %v10744_v57 = vunpack.i.h.bf16 %v10742_v1  ;;  %v10743_v41 = vunpack.i.l.bf16 %v10742_v1  ;;  %9807 = vmatprep.subr.bf16.mxu1 %v9806_v26 }
 0x231   :  { %9769 = vmatpush1.bf16.msra.mxu0 %v9768_v4  ;;  %v628_v48 = vsel %vm170_vm3, %v10738_v39, %v10733_v60  ;;  %v629_v49 = vsel %vm170_vm3, %v10739_v30, %v10734_v56  ;;  %v624_v8 = vsel %vm170_vm3, %v10733_v60, %v10718_v23  ;;  %v625_v62 = vsel %vm170_vm3, %v10734_v56, %v10719_v40  ;;  %v13597_v30 = vld [vmem:[%s18455_s25 + $0x30] sm:$0xff] }
 0x232   :  { %v570_v45 = vsel %vm145_vm2, %v10708_v6, %v10743_v41  ;;  %v571_v52 = vsel %vm145_vm2, %v10709_v9, %v10744_v57  ;;  %v10752_v11 = vpop.permute.xlu1 %10751  ;;  %9771 = vmatprep.subr.bf16.mxu0 %v9770_v3  ;;  %v582_v55 = vsel %vm145_vm2, %v10743_v41, %v10713_v59  ;;  %v583_v16 = vsel %vm145_vm2, %v10744_v57, %v10714_v0 }
 0x233   :  { %v10754_v47 = vunpack.i.h.bf16 %v10752_v11  ;;  %v10753_v19 = vunpack.i.l.bf16 %v10752_v11  ;;  %9809 = vmatpush1.bf16.msra.mxu1 %v9808_v20  ;;  %v10747_v43 = vpop.permute.xlu0 %10746  ;;  %v9810_v42 = vpack.c.bf16 %v583_v16, %v582_v55  ;;  %v9812_v18 = vpack.c.bf16 %v571_v52, %v570_v45 }
 0x234   :  { %v10749_v2 = vunpack.i.h.bf16 %v10747_v43  ;;  %v10748_v35 = vunpack.i.l.bf16 %v10747_v43  ;;  %v9814_v21 = vpack.c.bf16 %v629_v49, %v628_v48  ;;  %v9776_v6 = vpack.c.bf16 %v625_v62, %v624_v8 }
 0x235   :  { %9773 = vmatpush1.bf16.msra.mxu0 %v9772_v33  ;;  %9811 = vmatprep.subr.bf16.mxu1 %v9810_v42 }
 0x236   :  { %v10757_v14 = vpop.permute.xlu1 %10756  ;;  %9775 = vmatprep.subr.bf16.mxu0 %v9774_v53  ;;  %v622_v12 = vsel %vm170_vm3, %v10753_v19, %v10748_v35  ;;  %v623_v23 = vsel %vm170_vm3, %v10754_v47, %v10749_v2 }
 0x237   :  { %v10759_v40 = vunpack.i.h.bf16 %v10757_v14  ;;  %v10758_v15 = vunpack.i.l.bf16 %v10757_v14  ;;  %9813 = vmatpush1.bf16.msra.mxu1 %v9812_v18  ;;  %v10762_v9 = vpop.permute.xlu0 %10761  ;;  %v9778_v37 = vpack.c.bf16 %v623_v23, %v622_v12 }
 0x238   :  { %v10764_v25 = vunpack.i.h.bf16 %v10762_v9  ;;  %v10763_v50 = vunpack.i.l.bf16 %v10762_v9  ;;  %9815 = vmatprep.subr.bf16.mxu1 %v9814_v21 }
 0x239   :  { %v626_v13 = vsel %vm170_vm3, %v10758_v15, %v10753_v19  ;;  %v627_v7 = vsel %vm170_vm3, %v10759_v40, %v10754_v47  ;;  %9777 = vmatpush1.bf16.msra.mxu0 %v9776_v6 }
 0x23a   :  { %v618_v0 = vsel %vm170_vm3, %v10748_v35, %v10763_v50  ;;  %v619_v59 = vsel %vm170_vm3, %v10749_v2, %v10764_v25  ;;  %9779 = vmatprep.subr.bf16.mxu0 %v9778_v37  ;;  %v9780_v51 = vpack.c.bf16 %v627_v7, %v626_v13  ;;  %v630_v10 = vsel %vm170_vm3, %v10763_v50, %v10758_v15 }
 0x23b   :  { %9817 = vmatpush1.bf16.msra.mxu1 %v9816_v44  ;;  %v631_v26 = vsel %vm170_vm3, %v10764_v25, %v10759_v40  ;;  %v9820_v4 = vpack.c.bf16 %v619_v59, %v618_v0 }
 0x23c   :  { %v9818_v38 = vpack.c.bf16 %v631_v26, %v630_v10 }
 0x23d   :  { %9781 = vmatpush1.bf16.msra.mxu0 %v9780_v51 }
 0x23e   :  { %9819 = vmatprep.subr.bf16.mxu1 %v9818_v38 }
 0x23f   :  { %9821 = vmatpush1.bf16.msra.mxu1 %v9820_v4 }
 0x240   :  { %738 = vmatmul.mubr.f32.vlgmr.msra.gmra.mrb[8].mxu0 %v13552_v28 }
 0x241   :  { %8313 = vmatprep.mubr.msk.f32.mxu0 %vm660_vm5, %v13557_v58 }
 0x242   :  { %827 = vmatmul.mubr.f32.vlgmr.msra.gmra.mrb[8].mxu1 %v13552_v28 }
 0x243   :  { %8317 = vmatprep.mubr.msk.f32.mxu1 %vm660_vm5, %v13557_v58 }
 0x244   :  { %744 = vmatmul.mubr.f32.gmra.mrb[10].mxu0 %v13565_v54 }
 0x245   :  { %8314 = vmatprep.mubr.msk.f32.mxu0 %vm660_vm5, %v13571_v17 }
 0x246   :  { %833 = vmatmul.mubr.f32.gmra.mrb[10].mxu1 %v13565_v54 }
 0x247   :  { %8318 = vmatprep.mubr.msk.f32.mxu1 %vm660_vm5, %v13571_v17  ;;  %v13608_v39 = vpop.permute.xlu1 %642 }
 0x248   :  { %750 = vmatmul.mubr.f32.gmra.mrb[12].mxu0 %v13581_v46  ;;  %v13613_v20 = vpop.permute.xlu0 %647 }
 0x249   :  { %8315 = vmatprep.mubr.msk.f32.mxu0 %vm660_vm5, %v13587_v61 }
 0x24a   :  { %839 = vmatmul.mubr.f32.gmra.mrb[12].mxu1 %v13581_v46 }
 0x24b   :  { %8319 = vmatprep.mubr.msk.f32.mxu1 %vm660_vm5, %v13587_v61  ;;  %v13619_v42 = vpop.permute.xlu1 %652 }
 0x24c   :  { %756 = vmatmul.mubr.f32.gmra.mrb[14].mxu0 %v13597_v30  ;;  %v13650_v44 = vpop.permute.xlu0 %657 }
 0x24d   :  { %8320 = vmatprep.mubr.msk.f32.mxu0 %vm660_vm5, %v13335_v34 }
 0x24e   :  { %845 = vmatmul.mubr.f32.gmra.mrb[14].mxu1 %v13597_v30 }
 0x24f   :  { %8324 = vmatprep.mubr.msk.f32.mxu1 %vm660_vm5, %v13335_v34 }
 0x313   :  { %v739_v56 = vpop.f32.mrb[8].mxu0 }
 0x314   :  { %v740_v60 = vadd.f32 %v739_v56, %v13608_v39  ;;  %v741_v32 = vpop.f32.mrb[9].mxu0 }
 0x315   :  { %v742_v1 = vadd.f32 %v741_v32, %v13608_v39  ;;  %v828_v57 = vpop.f32.mrb[8].mxu1 }
 0x316   :  { %v829_v41 = vadd.f32 %v828_v57, %v13608_v39  ;;  %v830_v3 = vpop.f32.mrb[9].mxu1  ;;  %v851_v33 = vmax.f32 %v740_v60, 0.0 }
 0x317   :  { %v852_v53 = vmax.f32 %v742_v1, 0.0  ;;  %v831_v48 = vadd.f32 %v830_v3, %v13608_v39  ;;  %v745_v49 = vpop.f32.mrb[10].mxu0 }
 0x318   :  { %v853_v34 = vmax.f32 %v829_v41, 0.0  ;;  %v746_v45 = vadd.f32 %v745_v49, %v13613_v20  ;;  %v747_v52 = vpop.f32.mrb[11].mxu0  ;;  %v13622_v18 = vmul.f32 %v851_v33, %v13214_v22 }
 0x319   :  { %v854_v11 = vmax.f32 %v831_v48, 0.0  ;;  %v748_v55 = vadd.f32 %v747_v52, %v13613_v20  ;;  %v834_v16 = vpop.f32.mrb[10].mxu1  ;;  %v13625_v8 = vmul.f32 %v852_v53, %v13218_v27 }
 0x31a   :  { %v855_v47 = vmax.f32 %v746_v45, 0.0  ;;  %v835_v19 = vadd.f32 %v834_v16, %v13613_v20  ;;  %v836_v43 = vpop.f32.mrb[11].mxu1  ;;  %v13629_v36 = vmul.f32 %v853_v34, %v13220_v29 }
 0x31b   :  { %v856_v62 = vmax.f32 %v748_v55, 0.0  ;;  %v837_v2 = vadd.f32 %v836_v43, %v13613_v20  ;;  %v751_v35 = vpop.f32.mrb[12].mxu0  ;;  %v13636_v23 = vmul.f32 %v854_v11, %v13222_v31 }
 0x31c   :  { %v13632_v5 = vmul.f32 %v855_v47, %v13214_v22  ;;  %v857_v14 = vmax.f32 %v835_v19, 0.0  ;;  %v752_v21 = vadd.f32 %v751_v35, %v13619_v42  ;;  %v753_v12 = vpop.f32.mrb[13].mxu0 }
 0x31d   :  { %v13639_v40 = vmul.f32 %v856_v62, %v13218_v27  ;;  %v858_v15 = vmax.f32 %v837_v2, 0.0  ;;  %v754_v9 = vadd.f32 %v753_v12, %v13619_v42  ;;  %v840_v6 = vpop.f32.mrb[12].mxu1 }
 0x31e   :  { %v13643_v37 = vmul.f32 %v857_v14, %v13220_v29  ;;  %v859_v25 = vmax.f32 %v752_v21, 0.0  ;;  %v841_v50 = vadd.f32 %v840_v6, %v13619_v42  ;;  %v842_v13 = vpop.f32.mrb[13].mxu1  ;;  %v13648_v7 = vpack.i.bf16 %v13632_v5, %v13622_v18 }
 0x31f   :  { %v13653_v0 = vmul.f32 %v858_v15, %v13222_v31  ;;  %v860_v59 = vmax.f32 %v754_v9, 0.0  ;;  %v843_v51 = vadd.f32 %v842_v13, %v13619_v42  ;;  %v757_v10 = vpop.f32.mrb[14].mxu0  ;;  %v10795_v26 = vpack.i.bf16 %v13639_v40, %v13625_v8 }
 0x320   :  { %v13659_v4 = vmul.f32 %v859_v25, %v13214_v22  ;;  %v861_v38 = vmax.f32 %v841_v50, 0.0  ;;  %v758_v56 = vadd.f32 %v757_v10, %v13650_v44  ;;  %v759_v60 = vpop.f32.mrb[15].mxu0  ;;  %10766 = vrot.lane.b32.xlu1 %v13648_v7, %s12880_s27  ;;  %v10785_v32 = vpack.i.bf16 %v13643_v37, %v13629_v36 }
 0x321   :  { %v13667_v1 = vmul.f32 %v860_v59, %v13218_v27  ;;  %v862_v57 = vmax.f32 %v843_v51, 0.0  ;;  %v760_v41 = vadd.f32 %v759_v60, %v13650_v44  ;;  %v846_v3 = vpop.f32.mrb[14].mxu1  ;;  %v10800_v11 = vpack.i.bf16 %v13653_v0, %v13636_v23 }
 0x322   :  { %v13671_v33 = vmul.f32 %v861_v38, %v13220_v29  ;;  %v863_v53 = vmax.f32 %v758_v56, 0.0  ;;  %v847_v48 = vadd.f32 %v846_v3, %v13650_v44  ;;  %v848_v49 = vpop.f32.mrb[15].mxu1  ;;  %10786 = vrot.lane.b32.xlu0 %v10785_v32, %s12882_s26 }
 0x323   :  { %v13676_v34 = vmul.f32 %v862_v57, %v13222_v31  ;;  %v864_v45 = vmax.f32 %v760_v41, 0.0  ;;  %v849_v52 = vadd.f32 %v848_v49, %v13650_v44 }
 0x324   :  { %v13682_v55 = vmul.f32 %v863_v53, %v13214_v22  ;;  %v865_v16 = vmax.f32 %v847_v48, 0.0  ;;  %10771 = vrot.lane.b32.xlu1 %v10785_v32, %s12880_s27 }
 0x325   :  { %v13686_v47 = vmul.f32 %v864_v45, %v13218_v27  ;;  %v866_v19 = vmax.f32 %v849_v52, 0.0 }
 0x326   :  { %v13689_v43 = vmul.f32 %v865_v16, %v13220_v29  ;;  %10796 = vrot.lane.b32.xlu0 %v10795_v26, %s12880_s27  ;;  %v10825_v62 = vpack.i.bf16 %v13682_v55, %v13659_v4 }
 0x327   :  { %v13695_v2 = vmul.f32 %v866_v19, %v13222_v31  ;;  %v10845_v22 = vpack.i.bf16 %v13686_v47, %v13667_v1 }
 0x328   :  { %10776 = vrot.lane.b32.xlu1 %v13648_v7, %s12881_s3  ;;  %v10830_v27 = vpack.i.bf16 %v13689_v43, %v13671_v33 }
 0x329   :  { %v10850_v29 = vpack.i.bf16 %v13695_v2, %v13676_v34 }
 0x32a   :  { %10801 = vrot.lane.b32.xlu0 %v10800_v11, %s12880_s27 }
 0x32c   :  { %10781 = vrot.lane.b32.xlu1 %v10785_v32, %s12881_s3 }
 0x32e   :  { %10806 = vrot.lane.b32.xlu0 %v10795_v26, %s12881_s3 }
 0x330   :  { %10791 = vrot.lane.b32.xlu1 %v13648_v7, %s12882_s26 }
 0x332   :  { %10811 = vrot.lane.b32.xlu0 %v10800_v11, %s12881_s3 }
 0x334   :  { %10816 = vrot.lane.b32.xlu1 %v10795_v26, %s12882_s26 }
 0x336   :  { %10821 = vrot.lane.b32.xlu0 %v10800_v11, %s12882_s26 }
 0x338   :  { %10826 = vrot.lane.b32.xlu1 %v10825_v62, %s12880_s27 }
 0x33a   :  { %10846 = vrot.lane.b32.xlu0 %v10845_v22, %s12880_s27 }
 0x33c   :  { %10831 = vrot.lane.b32.xlu1 %v10830_v27, %s12880_s27 }
 0x33e   :  { %10851 = vrot.lane.b32.xlu0 %v10850_v29, %s12880_s27 }
 0x340   :  { %10836 = vrot.lane.b32.xlu1 %v10825_v62, %s12881_s3 }
 0x342   :  { %10856 = vrot.lane.b32.xlu0 %v10845_v22, %s12881_s3 }
 0x344   :  { %10841 = vrot.lane.b32.xlu1 %v10830_v27, %s12881_s3 }
 0x346   :  { %10861 = vrot.lane.b32.xlu0 %v10850_v29, %s12881_s3 }
 0x348   :  { %10871 = vrot.lane.b32.xlu1 %v10825_v62, %s12882_s26 }
 0x34a   :  { %10866 = vrot.lane.b32.xlu0 %v10830_v27, %s12882_s26 }
 0x34c   :  { %10876 = vrot.lane.b32.xlu1 %v10795_v26, %s12884_s28 }
 0x34e   :  { %10881 = vrot.lane.b32.xlu0 %v10785_v32, %s12884_s28 }
 0x350   :  { %10886 = vrot.lane.b32.xlu1 %v10845_v22, %s12882_s26 }
 0x352   :  { %10896 = vrot.lane.b32.xlu0 %v10800_v11, %s12884_s28 }
 0x354   :  { %10891 = vrot.lane.b32.xlu1 %v13648_v7, %s12884_s28 }
 0x356   :  { %10901 = vrot.lane.b32.xlu0 %v10850_v29, %s12882_s26 }
 0x358   :  { %10911 = vrot.lane.b32.xlu1 %v10845_v22, %s12884_s28 }
 0x35a   :  { %10906 = vrot.lane.b32.xlu0 %v10830_v27, %s12884_s28 }
 0x35c   :  { %10916 = vrot.lane.b32.xlu1 %v10825_v62, %s12884_s28 }
 0x35e   :  { %10921 = vrot.lane.b32.xlu0 %v10850_v29, %s12884_s28 }
 0x392   :  { %v10767_v25 = vpop.permute.xlu1 %10766 }
 0x393   :  { %v10769_v26 = vunpack.i.h.bf16 %v10767_v25  ;;  %v10768_v38 = vunpack.i.l.bf16 %v10767_v25 }
 0x394   :  { %v13750_v50 = vpop.permute.xlu0 %10786 }
 0x396   :  { %v10772_v13 = vpop.permute.xlu1 %10771 }
 0x397   :  { %v10774_v56 = vunpack.i.h.bf16 %v10772_v13  ;;  %v10773_v60 = vunpack.i.l.bf16 %v10772_v13 }
 0x398   :  { %v10797_v59 = vpop.permute.xlu0 %10796 }
 0x399   :  { %v10799_v51 = vunpack.i.h.bf16 %v10797_v59  ;;  %v10798_v10 = vunpack.i.l.bf16 %v10797_v59 }
 0x39a   :  { %v13752_v7 = vpop.permute.xlu1 %10776 }
 0x39b   :  { %v923_v57 = vsel %vm95_vm0, %v10768_v38, %v10798_v10  ;;  %v924_v41 = vsel %vm95_vm0, %v10769_v26, %v10799_v51  ;;  %v919_v45 = vsel %vm95_vm0, %v10798_v10, %v10773_v60  ;;  %v920_v52 = vsel %vm95_vm0, %v10799_v51, %v10774_v56 }
 0x39c   :  { %v10802_v32 = vpop.permute.xlu0 %10801  ;;  %v9822_v48 = vpack.c.bf16 %v924_v41, %v923_v57  ;;  %v9864_v13 = vpack.c.bf16 %v920_v52, %v919_v45  ;;  %v10779_v41 = vunpack.i.h.bf16 %v13752_v7 }
 0x39d   :  { %v10804_v3 = vunpack.i.h.bf16 %v10802_v32  ;;  %v10803_v53 = vunpack.i.l.bf16 %v10802_v32 }
 0x39e   :  { %v13758_v49 = vpop.permute.xlu1 %10781  ;;  %9823 = vmatprep.subr.bf16.mxu0 %v9822_v48 }
 0x39f   :  { %v927_v11 = vsel %vm95_vm0, %v10803_v53, %v10768_v38  ;;  %v928_v16 = vsel %vm95_vm0, %v10804_v3, %v10769_v26  ;;  %v915_v22 = vsel %vm95_vm0, %v10773_v60, %v10803_v53  ;;  %v916_v27 = vsel %vm95_vm0, %v10774_v56, %v10804_v3 }
 0x3a0   :  { %v10807_v19 = vpop.permute.xlu0 %10806  ;;  %v9824_v62 = vpack.c.bf16 %v928_v16, %v927_v11  ;;  %v9862_v29 = vpack.c.bf16 %v916_v27, %v915_v22  ;;  %v10778_v56 = vunpack.i.l.bf16 %v13752_v7 }
 0x3a1   :  { %v10809_v26 = vunpack.i.h.bf16 %v10807_v19  ;;  %v10808_v38 = vunpack.i.l.bf16 %v10807_v19 }
 0x3a2   :  { %9825 = vmatpush1.bf16.msra.mxu0 %v9824_v62  ;;  %v13772_v25 = vpop.permute.xlu1 %10791  ;;  %9863 = vmatprep.subr.bf16.mxu1 %v9862_v29  ;;  %v10784_v29 = vunpack.i.h.bf16 %v13758_v49 }
 0x3a3   :  { %9865 = vmatpush1.bf16.msra.mxu1 %v9864_v13  ;;  %v971_v16 = vsel %vm120_vm1, %v10778_v56, %v10808_v38  ;;  %v972_v62 = vsel %vm120_vm1, %v10779_v41, %v10809_v26  ;;  %v10783_v13 = vunpack.i.l.bf16 %v13758_v49 }
 0x3a4   :  { %v10812_v59 = vpop.permute.xlu0 %10811  ;;  %v9830_v9 = vpack.c.bf16 %v972_v62, %v971_v16 }
 0x3a5   :  { %v10814_v45 = vunpack.i.h.bf16 %v10812_v59  ;;  %v10813_v52 = vunpack.i.l.bf16 %v10812_v59 }
 0x3a6   :  { %v13774_v51 = vpop.permute.xlu1 %10816 }
 0x3a7   :  { %v963_v21 = vsel %vm120_vm1, %v10783_v13, %v10813_v52  ;;  %v964_v14 = vsel %vm120_vm1, %v10784_v29, %v10814_v45  ;;  %v976_v35 = vsel %vm120_vm1, %v10814_v45, %v10779_v41 }
 0x3a8   :  { %v13776_v10 = vpop.permute.xlu0 %10821 }
 0x3aa   :  { %v10827_v32 = vpop.permute.xlu1 %10826 }
 0x3ab   :  { %v10829_v57 = vunpack.i.h.bf16 %v10827_v32  ;;  %v10828_v60 = vunpack.i.l.bf16 %v10827_v32 }
 0x3ac   :  { %v10847_v3 = vpop.permute.xlu0 %10846 }
 0x3ad   :  { %v10849_v53 = vunpack.i.h.bf16 %v10847_v3  ;;  %v10848_v48 = vunpack.i.l.bf16 %v10847_v3 }
 0x3ae   :  { %v10832_v11 = vpop.permute.xlu1 %10831 }
 0x3af   :  { %v10834_v19 = vunpack.i.h.bf16 %v10832_v11  ;;  %v10833_v22 = vunpack.i.l.bf16 %v10832_v11  ;;  %v925_v27 = vsel %vm95_vm0, %v10828_v60, %v10848_v48  ;;  %v926_v7 = vsel %vm95_vm0, %v10829_v57, %v10849_v53 }
 0x3b0   :  { %v10852_v59 = vpop.permute.xlu0 %10851  ;;  %v9826_v32 = vpack.c.bf16 %v926_v7, %v925_v27 }
 0x3b1   :  { %v10854_v3 = vunpack.i.h.bf16 %v10852_v59  ;;  %v10853_v6 = vunpack.i.l.bf16 %v10852_v59  ;;  %v922_v15 = vsel %vm95_vm0, %v10849_v53, %v10834_v19  ;;  %v921_v11 = vsel %vm95_vm0, %v10848_v48, %v10833_v22 }
 0x3b2   :  { %9827 = vmatprep.subr.bf16.mxu0 %v9826_v32  ;;  %v10837_v12 = vpop.permute.xlu1 %10836  ;;  %v975_v53 = vsel %vm120_vm1, %v10813_v52, %v10778_v56  ;;  %v9868_v52 = vpack.c.bf16 %v922_v15, %v921_v11 }
 0x3b3   :  { %v929_v49 = vsel %vm95_vm0, %v10853_v6, %v10828_v60  ;;  %v930_v16 = vsel %vm95_vm0, %v10854_v3, %v10829_v57  ;;  %v10839_v62 = vunpack.i.h.bf16 %v10837_v12  ;;  %v10838_v27 = vunpack.i.l.bf16 %v10837_v12 }
 0x3b4   :  { %v10857_v48 = vpop.permute.xlu0 %10856  ;;  %v9828_v7 = vpack.c.bf16 %v930_v16, %v929_v49  ;;  %v917_v59 = vsel %vm95_vm0, %v10833_v22, %v10853_v6  ;;  %v918_v32 = vsel %vm95_vm0, %v10834_v19, %v10854_v3  ;;  %v967_v12 = vsel %vm120_vm1, %v10808_v38, %v10783_v13 }
 0x3b5   :  { %v10859_v60 = vunpack.i.h.bf16 %v10857_v48  ;;  %v10858_v31 = vunpack.i.l.bf16 %v10857_v48  ;;  %v9866_v63 = vpack.c.bf16 %v918_v32, %v917_v59  ;;  %v968_v57 = vsel %vm120_vm1, %v10809_v26, %v10784_v29 }
 0x3b6   :  { %9829 = vmatpush1.bf16.msra.mxu0 %v9828_v7  ;;  %v10842_v56 = vpop.permute.xlu1 %10841  ;;  %v9870_v49 = vpack.c.bf16 %v964_v14, %v963_v21  ;;  %v9832_v38 = vpack.c.bf16 %v976_v35, %v975_v53  ;;  %v10819_v29 = vunpack.i.h.bf16 %v13774_v51  ;;  %v10823_v7 = vunpack.i.l.bf16 %v13776_v10 }
 0x3b7   :  { %9867 = vmatprep.subr.bf16.mxu1 %v9866_v63  ;;  %v10844_v6 = vunpack.i.h.bf16 %v10842_v56  ;;  %v10843_v22 = vunpack.i.l.bf16 %v10842_v56  ;;  %9831 = vmatprep.subr.bf16.mxu0 %v9830_v9  ;;  %v973_v41 = vsel %vm120_vm1, %v10838_v27, %v10858_v31  ;;  %v974_v45 = vsel %vm120_vm1, %v10839_v62, %v10859_v60 }
 0x3b8   :  { %9869 = vmatpush1.bf16.msra.mxu1 %v9868_v52  ;;  %v10862_v19 = vpop.permute.xlu0 %10861  ;;  %v9834_v13 = vpack.c.bf16 %v974_v45, %v973_v41  ;;  %v9872_v63 = vpack.c.bf16 %v968_v57, %v967_v12  ;;  %v10788_v12 = vunpack.i.l.bf16 %v13750_v50  ;;  %v10794_v57 = vunpack.i.h.bf16 %v13772_v25 }
 0x3b9   :  { %v10864_v3 = vunpack.i.h.bf16 %v10862_v19  ;;  %v10863_v26 = vunpack.i.l.bf16 %v10862_v19  ;;  %9871 = vmatprep.subr.bf16.mxu1 %v9870_v49  ;;  %v970_v14 = vsel %vm120_vm1, %v10859_v60, %v10844_v6  ;;  %v969_v21 = vsel %vm120_vm1, %v10858_v31, %v10843_v22 }
 0x3ba   :  { %9833 = vmatpush1.bf16.msra.mxu0 %v9832_v38  ;;  %v13818_v15 = vpop.permute.xlu1 %10871  ;;  %v10818_v31 = vunpack.i.l.bf16 %v13774_v51  ;;  %v9876_v32 = vpack.c.bf16 %v970_v14, %v969_v21  ;;  %v10789_v60 = vunpack.i.h.bf16 %v13750_v50  ;;  %v10793_v56 = vunpack.i.l.bf16 %v13772_v25 }
 0x3bb   :  { %v977_v9 = vsel %vm120_vm1, %v10863_v26, %v10838_v27  ;;  %v978_v35 = vsel %vm120_vm1, %v10864_v3, %v10839_v62  ;;  %9835 = vmatprep.subr.bf16.mxu0 %v9834_v13  ;;  %v965_v53 = vsel %vm120_vm1, %v10843_v22, %v10863_v26  ;;  %v966_v48 = vsel %vm120_vm1, %v10844_v6, %v10864_v3 }
 0x3bc   :  { %9873 = vmatpush1.bf16.msra.mxu1 %v9872_v63  ;;  %v13829_v11 = vpop.permute.xlu0 %10866  ;;  %v9836_v16 = vpack.c.bf16 %v978_v35, %v977_v9  ;;  %v10824_v27 = vunpack.i.h.bf16 %v13776_v10  ;;  %v9874_v62 = vpack.c.bf16 %v966_v48, %v965_v53  ;;  %v18459_v51 = vpack.c.bf16 %v13639_v40, %v13625_v8 }
 0x3bd   :  { %v18460_v52 = vpack.c.bf16 %v13653_v0, %v13636_v23  ;;  %v1015_v49 = vsel %vm145_vm2, %v10818_v31, %v10788_v12  ;;  %v1016_v50 = vsel %vm145_vm2, %v10819_v29, %v10789_v60  ;;  %v1023_v25 = vsel %vm145_vm2, %v10823_v7, %v10793_v56 }
 0x3be   :  { %9837 = vmatpush1.bf16.msra.mxu0 %v9836_v16  ;;  %v13838_v59 = vpop.permute.xlu1 %10876  ;;  %9875 = vmatprep.subr.bf16.mxu1 %v9874_v62  ;;  %v1024_v8 = vsel %vm145_vm2, %v10824_v27, %v10794_v57  ;;  %v18461_v0 = vpack.c.bf16 %v13632_v5, %v13622_v18  ;;  %v1019_v45 = vsel %vm145_vm2, %v10793_v56, %v10818_v31  ;;  %v10869_v5 = vunpack.i.h.bf16 %v13829_v11 }
 0x3bf   :  { %9839 = vmatprep.subr.bf16.mxu0 %v18459_v51  ;;  %v10879_v40 = vunpack.i.h.bf16 %v13838_v59  ;;  %v10878_v6 = vunpack.i.l.bf16 %v13838_v59  ;;  %v1020_v19 = vsel %vm145_vm2, %v10794_v57, %v10819_v29  ;;  %v18462_v3 = vpack.c.bf16 %v13686_v47, %v13667_v1 }
 0x3c0   :  { %9877 = vmatpush1.bf16.msra.mxu1 %v9876_v32  ;;  %v13847_v10 = vpop.permute.xlu0 %10881  ;;  %v1012_v26 = vsel %vm145_vm2, %v10789_v60, %v10824_v27  ;;  %v1011_v18 = vsel %vm145_vm2, %v10788_v12, %v10823_v7  ;;  %v10868_v63 = vunpack.i.l.bf16 %v13829_v11  ;;  %v18463_v14 = vpack.c.bf16 %v13643_v37, %v13629_v36 }
 0x3c1   :  { %9879 = vmatprep.subr.bf16.mxu1 %v18460_v52  ;;  %v10884_v22 = vunpack.i.h.bf16 %v13847_v10  ;;  %v10883_v23 = vunpack.i.l.bf16 %v13847_v10  ;;  %v10874_v9 = vunpack.i.h.bf16 %v13818_v15  ;;  %v10873_v1 = vunpack.i.l.bf16 %v13818_v15 }
 0x3c2   :  { %9841 = vmatpush1.bf16.msra.mxu0 %v18461_v0  ;;  %v10887_v41 = vpop.permute.xlu1 %10886  ;;  %v18464_v47 = vpack.c.bf16 %v13695_v2, %v13676_v34  ;;  %v9846_v35 = vpack.c.bf16 %v1016_v50, %v1015_v49  ;;  %v9886_v29 = vpack.c.bf16 %v1024_v8, %v1023_v25  ;;  %v18465_v16 = vpack.c.bf16 %v13682_v55, %v13659_v4 }
 0x3c3   :  { %v10889_v38 = vunpack.i.h.bf16 %v10887_v41  ;;  %v10888_v13 = vunpack.i.l.bf16 %v10887_v41  ;;  %9843 = vmatprep.subr.bf16.mxu0 %v18462_v3  ;;  %v1063_v15 = vsel %vm170_vm3, %v10878_v6, %v10883_v23  ;;  %v1064_v34 = vsel %vm170_vm3, %v10879_v40, %v10884_v22 }
 0x3c4   :  { %9881 = vmatpush1.bf16.msra.mxu1 %v18463_v14  ;;  %v10897_v21 = vpop.permute.xlu0 %10896  ;;  %v18466_v27 = vpack.c.bf16 %v13689_v43, %v13671_v33  ;;  %v9848_v62 = vpack.c.bf16 %v1020_v19, %v1019_v45  ;;  %v9888_v12 = vpack.c.bf16 %v1012_v26, %v1011_v18  ;;  %v9854_v51 = vpack.c.bf16 %v1064_v34, %v1063_v15 }
 0x3c5   :  { %9883 = vmatprep.subr.bf16.mxu1 %v18464_v47  ;;  %v1017_v36 = vsel %vm145_vm2, %v10888_v13, %v10868_v63  ;;  %v1018_v37 = vsel %vm145_vm2, %v10889_v38, %v10869_v5  ;;  %v1021_v2 = vsel %vm145_vm2, %v10873_v1, %v10888_v13  ;;  %v1022_v4 = vsel %vm145_vm2, %v10874_v9, %v10889_v38 }
 0x3c6   :  { %9845 = vmatpush1.bf16.msra.mxu0 %v18465_v16  ;;  %v10892_v11 = vpop.permute.xlu1 %10891  ;;  %v10899_v48 = vunpack.i.h.bf16 %v10897_v21  ;;  %v10898_v31 = vunpack.i.l.bf16 %v10897_v21  ;;  %v9850_v60 = vpack.c.bf16 %v1018_v37, %v1017_v36  ;;  %v9852_v56 = vpack.c.bf16 %v1022_v4, %v1021_v2 }
 0x3c7   :  { %v10894_v55 = vunpack.i.h.bf16 %v10892_v11  ;;  %v10893_v53 = vunpack.i.l.bf16 %v10892_v11  ;;  %9847 = vmatprep.subr.bf16.mxu0 %v9846_v35 }
 0x3c8   :  { %9885 = vmatpush1.bf16.msra.mxu1 %v18466_v27  ;;  %v10902_v7 = vpop.permute.xlu0 %10901  ;;  %v1059_v18 = vsel %vm170_vm3, %v10883_v23, %v10898_v31  ;;  %v1275_v27 = vld [vmem:[%s18355_s17 + $0x30] sm:$0xff] }
 0x3c9   :  { %v10904_v59 = vunpack.i.h.bf16 %v10902_v7  ;;  %v10903_v32 = vunpack.i.l.bf16 %v10902_v7  ;;  %9887 = vmatprep.subr.bf16.mxu1 %v9886_v29  ;;  %v1071_v52 = vsel %vm170_vm3, %v10898_v31, %v10893_v53  ;;  %v1072_v49 = vsel %vm170_vm3, %v10899_v48, %v10894_v55  ;;  %v1273_v31 = vld [vmem:[%s18355_s17 + $0x20] sm:$0xff]  ;;  %v1278_v7 = vld [vmem:[%s18355_s17 + $0x48] sm:$0xff] }
 0x3ca   :  { %9849 = vmatpush1.bf16.msra.mxu0 %v9848_v62  ;;  %v10912_v57 = vpop.permute.xlu1 %10911  ;;  %v1067_v8 = vsel %vm170_vm3, %v10893_v53, %v10878_v6  ;;  %v1068_v38 = vsel %vm170_vm3, %v10894_v55, %v10879_v40  ;;  %v1060_v6 = vsel %vm170_vm3, %v10884_v22, %v10899_v48  ;;  %v1276_v55 = vld [vmem:[%s18355_s17 + $0x38] sm:$0xff] }
 0x3cb   :  { %v1013_v33 = vsel %vm145_vm2, %v10868_v63, %v10903_v32  ;;  %v1014_v43 = vsel %vm145_vm2, %v10869_v5, %v10904_v59  ;;  %v10914_v50 = vunpack.i.h.bf16 %v10912_v57  ;;  %v10913_v25 = vunpack.i.l.bf16 %v10912_v57  ;;  %9851 = vmatprep.subr.bf16.mxu0 %v9850_v60  ;;  %v1280_v62 = vld [vmem:[%s18355_s17 + $0x58] sm:$0xff]  ;;  %v1277_v60 = vld [vmem:[%s18355_s17 + $0x40] sm:$0xff]  ;;  %v1282_v57 = vld [vmem:[%s18355_s17 + $0x68] sm:$0xff] }
 0x3cc   :  { %9889 = vmatpush1.bf16.msra.mxu1 %v9888_v12  ;;  %v10907_v0 = vpop.permute.xlu0 %10906  ;;  %v1025_v41 = vsel %vm145_vm2, %v10903_v32, %v10873_v1  ;;  %v1026_v45 = vsel %vm145_vm2, %v10904_v59, %v10874_v9  ;;  %v9892_v19 = vpack.c.bf16 %v1014_v43, %v1013_v33  ;;  %v9894_v63 = vpack.c.bf16 %v1072_v49, %v1071_v52  ;;  %v1279_v12 = vld [vmem:[%s18355_s17 + $0x50] sm:$0xff]  ;;  %v1281_v49 = vld [vmem:[%s18355_s17 + $0x60] sm:$0xff]  ;;  %v1286_v43 = vld [vmem:[%s18355_s17 + $0x88] sm:$0xff] }
 0x3cd   :  { %v10909_v13 = vunpack.i.h.bf16 %v10907_v0  ;;  %v10908_v3 = vunpack.i.l.bf16 %v10907_v0  ;;  %v9890_v26 = vpack.c.bf16 %v1026_v45, %v1025_v41  ;;  %v9856_v1 = vpack.c.bf16 %v1068_v38, %v1067_v8  ;;  %v1283_v33 = vld [vmem:[%s18355_s17 + $0x70] sm:$0xff]  ;;  %v1285_v0 = vld [vmem:[%s18355_s17 + $0x80] sm:$0xff]  ;;  %v1290_v45 = vld [vmem:[%s18355_s17 + $0xa8] sm:$0xff] }
 0x3ce   :  { %9853 = vmatpush1.bf16.msra.mxu0 %v9852_v56  ;;  %v10917_v5 = vpop.permute.xlu1 %10916  ;;  %v9896_v16 = vpack.c.bf16 %v1060_v6, %v1059_v18  ;;  %v9908_v59 = vpack.c.bf16 %v1275_v27, %v1273_v31  ;;  %v9910_v32 = vpack.c.bf16 %v1280_v62, %v1278_v7  ;;  %v1284_v56 = vld [vmem:[%s18355_s17 + $0x78] sm:$0xff]  ;;  %v1287_v41 = vld [vmem:[%s18355_s17 + $0x90] sm:$0xff]  ;;  %v1294_v18 = vld [vmem:[%s18355_s17 + $0xc8] sm:$0xff] }
 0x3cf   :  { %9891 = vmatprep.subr.bf16.mxu1 %v9890_v26  ;;  %v10919_v14 = vunpack.i.h.bf16 %v10917_v5  ;;  %v10918_v21 = vunpack.i.l.bf16 %v10917_v5  ;;  %9855 = vmatprep.subr.bf16.mxu0 %v9854_v51  ;;  %v1065_v40 = vsel %vm170_vm3, %v10913_v25, %v10908_v3  ;;  %v1066_v9 = vsel %vm170_vm3, %v10914_v50, %v10909_v13  ;;  %v1291_v26 = vld [vmem:[%s18355_s17 + $0xb0] sm:$0xff]  ;;  %v1296_v6 = vld [vmem:[%s18355_s17 + $0xd8] sm:$0xff]  ;;  %v1313_v31 = vld [vmem:[%s18355_s17 + $0x160] sm:$0xff] }
 0x3d0   :  { %9893 = vmatpush1.bf16.msra.mxu1 %v9892_v19  ;;  %v10922_v23 = vpop.permute.xlu0 %10921  ;;  %v9858_v10 = vpack.c.bf16 %v1066_v9, %v1065_v40  ;;  %v9912_v51 = vpack.c.bf16 %v1279_v12, %v1277_v60  ;;  %v9914_v52 = vpack.c.bf16 %v1284_v56, %v1282_v57  ;;  %v1292_v19 = vld [vmem:[%s18355_s17 + $0xb8] sm:$0xff]  ;;  %v9920_v38 = vpack.c.bf16 %v1287_v41, %v1285_v0  ;;  %v1298_v40 = vld [vmem:[%s18355_s17 + $0xe8] sm:$0xff]  ;;  %v1315_v62 = vld [vmem:[%s18355_s17 + $0x170] sm:$0xff] }
 0x3d1   :  { %v1069_v22 = vsel %vm170_vm3, %v10918_v21, %v10913_v25  ;;  %v1070_v47 = vsel %vm170_vm3, %v10919_v14, %v10914_v50  ;;  %v10924_v35 = vunpack.i.h.bf16 %v10922_v23  ;;  %v10923_v29 = vunpack.i.l.bf16 %v10922_v23  ;;  %9895 = vmatprep.subr.bf16.mxu1 %v9894_v63  ;;  %v1288_v50 = vld [vmem:[%s18355_s17 + $0x98] sm:$0xff]  ;;  %v1318_v57 = vld [vmem:[%s18355_s17 + $0x188] sm:$0xff] }
 0x3d2   :  { %9857 = vmatpush1.bf16.msra.mxu0 %v9856_v1  ;;  %v9860_v11 = vpack.c.bf16 %v1070_v47, %v1069_v22  ;;  %v9916_v25 = vpack.c.bf16 %v1283_v33, %v1281_v49  ;;  %v9918_v8 = vpack.c.bf16 %v1288_v50, %v1286_v43  ;;  %v9926_v63 = vpack.c.bf16 %v1296_v6, %v1294_v18  ;;  %v1300_v9 = vld [vmem:[%s18355_s17 + $0xf8] sm:$0xff]  ;;  %v1299_v22 = vld [vmem:[%s18355_s17 + $0xf0] sm:$0xff]  ;;  %v1302_v47 = vld [vmem:[%s18355_s17 + $0x108] sm:$0xff] }
 0x3d3   :  { %v1061_v36 = vsel %vm170_vm3, %v10908_v3, %v10923_v29  ;;  %v1062_v37 = vsel %vm170_vm3, %v10909_v13, %v10924_v35  ;;  %9859 = vmatprep.subr.bf16.mxu0 %v9858_v10  ;;  %v1073_v15 = vsel %vm170_vm3, %v10923_v29, %v10918_v21  ;;  %v1074_v34 = vsel %vm170_vm3, %v10924_v35, %v10919_v14  ;;  %v1289_v3 = vld [vmem:[%s18355_s17 + $0xa0] sm:$0xff]  ;;  %v1295_v21 = vld [vmem:[%s18355_s17 + $0xd0] sm:$0xff]  ;;  %v1304_v35 = vld [vmem:[%s18355_s17 + $0x118] sm:$0xff] }
 0x3d4   :  { %9897 = vmatpush1.bf16.msra.mxu1 %v9896_v16  ;;  %v9898_v2 = vpack.c.bf16 %v1074_v34, %v1073_v15  ;;  %v9900_v4 = vpack.c.bf16 %v1062_v37, %v1061_v36  ;;  %v9922_v13 = vpack.c.bf16 %v1292_v19, %v1290_v45  ;;  %v9924_v5 = vpack.c.bf16 %v1291_v26, %v1289_v3  ;;  %v1293_v14 = vld [vmem:[%s18355_s17 + $0xc0] sm:$0xff]  ;;  %v1303_v36 = vld [vmem:[%s18355_s17 + $0x110] sm:$0xff]  ;;  %v1306_v37 = vld [vmem:[%s18355_s17 + $0x128] sm:$0xff] }
 0x3d5   :  { %v9928_v23 = vpack.c.bf16 %v1295_v21, %v1293_v14  ;;  %v9930_v1 = vpack.c.bf16 %v1300_v9, %v1298_v40  ;;  %v1297_v10 = vld [vmem:[%s18355_s17 + $0xe0] sm:$0xff]  ;;  %v9934_v16 = vpack.c.bf16 %v1304_v35, %v1302_v47  ;;  %v1308_v15 = vld [vmem:[%s18355_s17 + $0x138] sm:$0xff]  ;;  %v1319_v43 = vld [vmem:[%s18355_s17 + $0x190] sm:$0xff] }
 0x3d6   :  { %9861 = vmatpush1.bf16.msra.mxu0 %v9860_v11  ;;  %9899 = vmatprep.subr.bf16.mxu1 %v9898_v2  ;;  %v9932_v29 = vpack.c.bf16 %v1299_v22, %v1297_v10  ;;  %v1301_v11 = vld [vmem:[%s18355_s17 + $0x100] sm:$0xff]  ;;  %v9938_v2 = vpack.c.bf16 %v1308_v15, %v1306_v37  ;;  %v1320_v56 = vld [vmem:[%s18355_s17 + $0x198] sm:$0xff]  ;;  %v1326_v37 = vld [vmem:[%s18355_s17 + $0x1c8] sm:$0xff] }
 0x3d7   :  { %v9936_v34 = vpack.c.bf16 %v1303_v36, %v1301_v11  ;;  %v9950_v33 = vpack.c.bf16 %v1320_v56, %v1318_v57  ;;  %v1324_v3 = vld [vmem:[%s18355_s17 + $0x1b8] sm:$0xff]  ;;  %v1321_v26 = vld [vmem:[%s18355_s17 + $0x1a0] sm:$0xff] }
 0x3d8   :  { %9901 = vmatpush1.bf16.msra.mxu1 %v9900_v4  ;;  %v1305_v4 = vld [vmem:[%s18355_s17 + $0x120] sm:$0xff]  ;;  %v1328_v15 = vld [vmem:[%s18355_s17 + $0x1d8] sm:$0xff] }
 0x3d9   :  { %1140 = vmatmul.mubr.f32.vlgmr.msra.gmra.mrb[16].mxu0 %v13552_v28 }
 0x3da   :  { %8321 = vmatprep.mubr.msk.f32.mxu0 %vm660_vm5, %v13557_v58 }
 0x3db   :  { %1229 = vmatmul.mubr.f32.vlgmr.msra.gmra.mrb[16].mxu1 %v13552_v28  ;;  %v12674_v28 = vld [vmem:[%s18455_s25 + $0x8] sm:$0xff] }
 0x3dc   :  { %8325 = vmatprep.mubr.msk.f32.mxu1 %vm660_vm5, %v13557_v58  ;;  %v1270_v58 = vld [vmem:[%s18355_s17 + $0x8] sm:$0xff] }
 0x3dd   :  { %1146 = vmatmul.mubr.f32.gmra.mrb[18].mxu0 %v13565_v54 }
 0x3de   :  { %8322 = vmatprep.mubr.msk.f32.mxu0 %vm660_vm5, %v13571_v17 }
 0x3df   :  { %1235 = vmatmul.mubr.f32.gmra.mrb[18].mxu1 %v13565_v54  ;;  %v1272_v54 = vld [vmem:[%s18355_s17 + $0x18] sm:$0xff] }
 0x3e0   :  { %8326 = vmatprep.mubr.msk.f32.mxu1 %vm660_vm5, %v13571_v17  ;;  %v1269_v17 = vld [vmem:[%s18355_s17] sm:$0xff] }
 0x3e1   :  { %1152 = vmatmul.mubr.f32.gmra.mrb[20].mxu0 %v13581_v46 }
 0x3e2   :  { %8323 = vmatprep.mubr.msk.f32.mxu0 %vm660_vm5, %v13587_v61 }
 0x3e3   :  { %1241 = vmatmul.mubr.f32.gmra.mrb[20].mxu1 %v13581_v46  ;;  %v9902_v46 = vpack.c.bf16 %v1272_v54, %v1270_v58  ;;  %v1310_v58 = vld [vmem:[%s18355_s17 + $0x148] sm:$0xff]  ;;  %v1312_v54 = vld [vmem:[%s18355_s17 + $0x158] sm:$0xff] }
 0x3e4   :  { %8327 = vmatprep.mubr.msk.f32.mxu1 %vm660_vm5, %v13587_v61  ;;  %v1271_v61 = vld [vmem:[%s18355_s17 + $0x10] sm:$0xff] }
 0x3e5   :  { %1158 = vmatmul.mubr.f32.gmra.mrb[22].mxu0 %v13597_v30  ;;  %v9904_v53 = vpack.c.bf16 %v1271_v61, %v1269_v17  ;;  %9903 = vmatprep.subr.bf16.mxu0 %v9902_v46  ;;  %v9942_v46 = vpack.c.bf16 %v1312_v54, %v1310_v58  ;;  %v1309_v61 = vld [vmem:[%s18355_s17 + $0x140] sm:$0xff] }
 0x3e7   :  { %1247 = vmatmul.mubr.f32.gmra.mrb[22].mxu1 %v13597_v30  ;;  %v1274_v30 = vld [vmem:[%s18355_s17 + $0x28] sm:$0xff]  ;;  %9905 = vmatpush1.bf16.msra.mxu0 %v9904_v53 }
 0x3e8   :  { %8328 = vmatprep.mubr.msk.f32.mxu1 %vm660_vm5, %v12674_v28  ;;  %v9906_v48 = vpack.c.bf16 %v1276_v55, %v1274_v30  ;;  %v1307_v28 = vld [vmem:[%s18355_s17 + $0x130] sm:$0xff]  ;;  %v1314_v53 = vld [vmem:[%s18355_s17 + $0x168] sm:$0xff] }
 0x3e9   :  { %v9940_v17 = vpack.c.bf16 %v1307_v28, %v1305_v4  ;;  %v1311_v30 = vld [vmem:[%s18355_s17 + $0x150] sm:$0xff]  ;;  %v1330_v4 = vld [vmem:[%s18355_s17 + $0x1e8] sm:$0xff]  ;;  %v1332_v28 = vld [vmem:[%s18355_s17 + $0x1f8] sm:$0xff] }
 0x3ea   :  { %9907 = vmatprep.subr.bf16.mxu0 %v9906_v48  ;;  %v9944_v55 = vpack.c.bf16 %v1311_v30, %v1309_v61  ;;  %v1316_v48 = vld [vmem:[%s18355_s17 + $0x178] sm:$0xff]  ;;  %v1329_v61 = vld [vmem:[%s18355_s17 + $0x1e0] sm:$0xff]  ;;  %v1331_v30 = vld [vmem:[%s18355_s17 + $0x1f0] sm:$0xff] }
 0x3eb   :  { %9909 = vmatpush1.bf16.msra.mxu0 %v9908_v59  ;;  %v9946_v7 = vpack.c.bf16 %v1316_v48, %v1314_v53  ;;  %v1334_v53 = vld [vmem:[%s18355_s17 + $0x208] sm:$0xff]  ;;  %v1336_v48 = vld [vmem:[%s18355_s17 + $0x218] sm:$0xff] }
 0x3ec   :  { %9911 = vmatprep.subr.bf16.mxu0 %v9910_v32  ;;  %v9948_v32 = vpack.c.bf16 %v1315_v62, %v1313_v31  ;;  %v9966_v62 = vpack.c.bf16 %v1336_v48, %v1334_v53 }
 0x3ef   :  { %9913 = vmatpush1.bf16.msra.mxu0 %v9912_v51  ;;  %v1317_v51 = vld [vmem:[%s18355_s17 + $0x180] sm:$0xff] }
 0x3f0   :  { %9915 = vmatprep.subr.bf16.mxu0 %v9914_v52  ;;  %v9952_v0 = vpack.c.bf16 %v1319_v43, %v1317_v51 }
 0x3f3   :  { %9917 = vmatpush1.bf16.msra.mxu0 %v9916_v25 }
 0x3f4   :  { %9919 = vmatprep.subr.bf16.mxu0 %v9918_v8 }
 0x3f7   :  { %9921 = vmatpush1.bf16.msra.mxu0 %v9920_v38 }
 0x3f8   :  { %9923 = vmatprep.subr.bf16.mxu0 %v9922_v13  ;;  %v1322_v13 = vld [vmem:[%s18355_s17 + $0x1a8] sm:$0xff] }
 0x3f9   :  { %v9954_v9 = vpack.c.bf16 %v1324_v3, %v1322_v13 }
 0x3fb   :  { %9925 = vmatpush1.bf16.msra.mxu0 %v9924_v5  ;;  %v1323_v5 = vld [vmem:[%s18355_s17 + $0x1b0] sm:$0xff] }
 0x3fc   :  { %9927 = vmatprep.subr.bf16.mxu0 %v9926_v63 }
 0x3ff   :  { %9929 = vmatpush1.bf16.msra.mxu0 %v9928_v23  ;;  %v9956_v23 = vpack.c.bf16 %v1323_v5, %v1321_v26 }
 0x400   :  { %9931 = vmatprep.subr.bf16.mxu0 %v9930_v1 }
 0x403   :  { %9933 = vmatpush1.bf16.msra.mxu0 %v9932_v29 }
 0x404   :  { %9935 = vmatprep.subr.bf16.mxu0 %v9934_v16 }
 0x407   :  { %9937 = vmatpush1.bf16.msra.mxu0 %v9936_v34  ;;  %v1325_v34 = vld [vmem:[%s18355_s17 + $0x1c0] sm:$0xff] }
 0x408   :  { %9939 = vmatprep.subr.bf16.mxu0 %v9938_v2  ;;  %v1327_v2 = vld [vmem:[%s18355_s17 + $0x1d0] sm:$0xff] }
 0x40b   :  { %9941 = vmatpush1.bf16.msra.mxu0 %v9940_v17  ;;  %v9958_v17 = vpack.c.bf16 %v1328_v15, %v1326_v37 }
 0x40c   :  { %9943 = vmatprep.subr.bf16.mxu0 %v9942_v46  ;;  %v9960_v46 = vpack.c.bf16 %v1327_v2, %v1325_v34 }
 0x40f   :  { %9945 = vmatpush1.bf16.msra.mxu0 %v9944_v55  ;;  %v9962_v55 = vpack.c.bf16 %v1332_v28, %v1330_v4 }
 0x410   :  { %9947 = vmatprep.subr.bf16.mxu0 %v9946_v7  ;;  %v9964_v7 = vpack.c.bf16 %v1331_v30, %v1329_v61 }
 0x413   :  { %9949 = vmatpush1.bf16.msra.mxu0 %v9948_v32 }
 0x414   :  { %9951 = vmatprep.subr.bf16.mxu0 %v9950_v33 }
 0x417   :  { %9953 = vmatpush1.bf16.msra.mxu0 %v9952_v0 }
 0x418   :  { %9955 = vmatprep.subr.bf16.mxu0 %v9954_v9 }
 0x41b   :  { %9957 = vmatpush1.bf16.msra.mxu0 %v9956_v23 }
 0x41c   :  { %9959 = vmatprep.subr.bf16.mxu0 %v9958_v17 }
 0x41f   :  { %9961 = vmatpush1.bf16.msra.mxu0 %v9960_v46 }
 0x420   :  { %9963 = vmatprep.subr.bf16.mxu0 %v9962_v55 }
 0x423   :  { %9965 = vmatpush1.bf16.msra.mxu0 %v9964_v7 }
 0x424   :  { %9967 = vmatprep.subr.bf16.mxu0 %v9966_v62 }
 0x4ac   :  { %v1141_v27 = vpop.f32.mrb[16].mxu0 }
 0x4ad   :  { %v1143_v59 = vpop.f32.mrb[17].mxu0  ;;  %v14135_v50 = vadd.f32 %v1141_v27, %v13608_v39 }
 0x4ae   :  { %v14115_v60 = vadd.f32 %v1143_v59, %v13608_v39  ;;  %v1230_v12 = vpop.f32.mrb[16].mxu1 }
 0x4af   :  { %v14127_v52 = vadd.f32 %v1230_v12, %v13608_v39  ;;  %v14129_v49 = vpop.f32.mrb[17].mxu1  ;;  %v1253_v63 = vmax.f32 %v14135_v50, 0.0  ;;  %v1333_v50 = vld [vmem:[%s18355_s17 + $0x200] sm:$0xff] }
 0x4b0   :  { %v1254_v25 = vmax.f32 %v14115_v60, 0.0  ;;  %v1147_v8 = vpop.f32.mrb[18].mxu0  ;;  %v14225_v59 = vadd.f32 %v14129_v49, %v13608_v39 }
 0x4b1   :  { %v18400_v41 = vmax.f32 %v14127_v52, 0.0  ;;  %v1149_v45 = vpop.f32.mrb[19].mxu0  ;;  %v14172_v16 = vadd.f32 %v1147_v8, %v13613_v20 }
 0x4b2   :  { %v14140_v19 = vadd.f32 %v1149_v45, %v13613_v20  ;;  %v1236_v38 = vpop.f32.mrb[18].mxu1  ;;  %v18382_v56 = vmax.f32 %v14225_v59, 0.0 }
 0x4b3   :  { %v1238_v18 = vpop.f32.mrb[19].mxu1  ;;  %v10925_v6 = vpack.i.bf16 %v18400_v41, %v1254_v25  ;;  %v14175_v11 = vadd.f32 %v1236_v38, %v13613_v20  ;;  %v1257_v58 = vmax.f32 %v14172_v16, 0.0  ;;  %v1347_v16 = vld [vmem:[%s18355_s17 + $0x270] sm:$0xff]  ;;  %v14606_v41 = vld [vmem:[%s18355_s17 + $0x338] sm:$0xff] }
 0x4b4   :  { %v1258_v14 = vmax.f32 %v14140_v19, 0.0  ;;  %v14160_v21 = vpop.f32.mrb[20].mxu0  ;;  %v14216_v31 = vadd.f32 %v1238_v18, %v13613_v20 }
 0x4b5   :  { %10926 = vrot.lane.b32.xlu1 %v10925_v6, %s12882_s26  ;;  %v1155_v40 = vpop.f32.mrb[21].mxu0  ;;  %v18371_v54 = vmax.f32 %v14175_v11, 0.0  ;;  %v14266_v3 = vadd.f32 %v14160_v21, %v13619_v42 }
 0x4b6   :  { %v1242_v1 = vpop.f32.mrb[20].mxu1  ;;  %v10945_v10 = vpack.i.bf16 %v1258_v14, %v1253_v63  ;;  %v14229_v32 = vadd.f32 %v1155_v40, %v13619_v42  ;;  %v18373_v57 = vmax.f32 %v14216_v31, 0.0 }
 0x4b7   :  { %v14167_v22 = vpop.f32.mrb[21].mxu1  ;;  %v10965_v27 = vpack.i.bf16 %v1257_v58, %v18371_v54  ;;  %v14232_v12 = vadd.f32 %v1242_v1, %v13619_v42 }
 0x4b8   :  { %v1159_v47 = vpop.f32.mrb[22].mxu0  ;;  %10946 = vrot.lane.b32.xlu0 %v10945_v10, %s12882_s26  ;;  %v1262_v51 = vmax.f32 %v14229_v32, 0.0  ;;  %v10985_v33 = vpack.i.bf16 %v18373_v57, %v18382_v56  ;;  %v1245_v40 = vadd.f32 %v14167_v22, %v13619_v42 }
 0x4b9   :  { %10931 = vrot.lane.b32.xlu1 %v10925_v6, %s12884_s28  ;;  %v1161_v35 = vpop.f32.mrb[23].mxu0  ;;  %v18372_v49 = vmax.f32 %v14232_v12, 0.0  ;;  %v14247_v43 = vadd.f32 %v1159_v47, %v13650_v44 }
 0x4ba   :  { %v1248_v29 = vpop.f32.mrb[22].mxu1  ;;  %v14261_v13 = vadd.f32 %v1161_v35, %v13650_v44  ;;  %v14294_v23 = vmax.f32 %v1245_v40, 0.0 }
 0x4bb   :  { %v14177_v36 = vpop.f32.mrb[23].mxu1  ;;  %v14250_v8 = vadd.f32 %v1248_v29, %v13650_v44  ;;  %v10995_v0 = vpack.i.bf16 %v18372_v49, %v1262_v51  ;;  %v18399_v45 = vmax.f32 %v14247_v43, 0.0 }
 0x4bc   :  { %10951 = vrot.lane.b32.xlu0 %v10945_v10, %s12884_s28  ;;  %v18398_v18 = vmax.f32 %v14261_v13, 0.0  ;;  %v1251_v21 = vadd.f32 %v14177_v36, %v13650_v44 }
 0x4bd   :  { %10936 = vrot.lane.b32.xlu1 %v10925_v6, %s12886_s1  ;;  %v18370_v38 = vmax.f32 %v14250_v8, 0.0 }
 0x4be   :  { %v14291_v9 = vmax.f32 %v1251_v21, 0.0 }
 0x4bf   :  { %v11015_v26 = vpack.i.bf16 %v18399_v45, %v18370_v38  ;;  %v1337_v38 = vld [vmem:[%s18355_s17 + $0x220] sm:$0xff]  ;;  %v14601_v45 = vld [vmem:[%s18355_s17 + $0x328] sm:$0xff] }
 0x4c0   :  { %10956 = vrot.lane.b32.xlu0 %v10945_v10, %s12886_s1  ;;  %v11065_v1 = vpack.i.bf16 %v14291_v9, %v14294_v23 }
 0x4c1   :  { %10941 = vrot.lane.b32.xlu1 %v10925_v6, %s18389_s0  ;;  %v1261_v6 = vmax.f32 %v14266_v3, 0.0  ;;  %v18469_v3 = vmax.f32 %v14261_v13, 0.0 }
 0x4c3   :  { %v11025_v5 = vpack.i.bf16 %v18398_v18, %v1261_v6 }
 0x4c4   :  { %10961 = vrot.lane.b32.xlu0 %v10945_v10, %s18389_s0 }
 0x4c5   :  { %10966 = vrot.lane.b32.xlu1 %v10965_v27, %s12882_s26 }
 0x4c8   :  { %10971 = vrot.lane.b32.xlu0 %v10965_v27, %s12884_s28 }
 0x4c9   :  { %10981 = vrot.lane.b32.xlu1 %v10965_v27, %s18389_s0 }
 0x4cc   :  { %10976 = vrot.lane.b32.xlu0 %v10965_v27, %s12886_s1 }
 0x4cd   :  { %10986 = vrot.lane.b32.xlu1 %v10985_v33, %s12882_s26 }
 0x4d0   :  { %10996 = vrot.lane.b32.xlu0 %v10995_v0, %s12884_s28 }
 0x4d1   :  { %10991 = vrot.lane.b32.xlu1 %v10995_v0, %s12882_s26 }
 0x4d4   :  { %11001 = vrot.lane.b32.xlu0 %v10995_v0, %s12886_s1 }
 0x4d5   :  { %11006 = vrot.lane.b32.xlu1 %v10995_v0, %s18389_s0 }
 0x4d8   :  { %11016 = vrot.lane.b32.xlu0 %v11015_v26, %s12884_s28 }
 0x4d9   :  { %11011 = vrot.lane.b32.xlu1 %v11015_v26, %s12882_s26 }
 0x4dc   :  { %11021 = vrot.lane.b32.xlu0 %v11015_v26, %s12886_s1 }
 0x4dd   :  { %11026 = vrot.lane.b32.xlu1 %v11025_v5, %s12882_s26 }
 0x4e0   :  { %11031 = vrot.lane.b32.xlu0 %v11025_v5, %s12884_s28 }
 0x4e1   :  { %11036 = vrot.lane.b32.xlu1 %v11025_v5, %s12886_s1 }
 0x4e4   :  { %11046 = vrot.lane.b32.xlu0 %v11025_v5, %s18389_s0 }
 0x4e5   :  { %11041 = vrot.lane.b32.xlu1 %v10985_v33, %s12884_s28 }
 0x4e8   :  { %11051 = vrot.lane.b32.xlu0 %v11015_v26, %s18389_s0 }
 0x4e9   :  { %11056 = vrot.lane.b32.xlu1 %v10985_v33, %s12886_s1 }
 0x4ec   :  { %11061 = vrot.lane.b32.xlu0 %v10985_v33, %s18389_s0 }
 0x4ed   :  { %11066 = vrot.lane.b32.xlu1 %v11065_v1, %s12882_s26 }
 0x4f0   :  { %1489 = vrot.lane.b32.xlu0 %v14294_v23, %s12884_s28 }
 0x4f1   :  { %1553 = vrot.lane.b32.xlu1 %v14294_v23, %s12886_s1 }
 0x4f4   :  { %1491 = vrot.lane.b32.xlu0 %v14291_v9, %s12884_s28 }
 0x4f5   :  { %1618 = vrot.lane.b32.xlu1 %v14294_v23, %s18389_s0 }
 0x4f8   :  { %1555 = vrot.lane.b32.xlu0 %v14291_v9, %s12886_s1 }
 0x4f9   :  { %1620 = vrot.lane.b32.xlu1 %v14291_v9, %s18389_s0 }
 0x527   :  { %v14313_v10 = vpop.permute.xlu1 %10926 }
 0x528   :  { %v10929_v22 = vunpack.i.h.bf16 %v14313_v10  ;;  %v10928_v47 = vunpack.i.l.bf16 %v14313_v10 }
 0x52a   :  { %v14317_v35 = vpop.permute.xlu0 %10946  ;;  %v1433_v34 = vsel %vm145_vm2, %v10928_v47, %v10929_v22 }
 0x52b   :  { %v14319_v29 = vpop.permute.xlu1 %10931  ;;  %v10948_v15 = vunpack.i.l.bf16 %v14317_v35  ;;  %v1446_v30 = vmax.f32 %v1254_v25, %v1433_v34 }
 0x52c   :  { %v18381_v36 = vunpack.i.h.bf16 %v14319_v29  ;;  %v10933_v37 = vunpack.i.l.bf16 %v14319_v29 }
 0x52d   :  { %v1437_v55 = vsel %vm145_vm2, %v10948_v15, %v10928_v47 }
 0x52e   :  { %v14328_v2 = vpop.permute.xlu0 %10951  ;;  %v1497_v17 = vsel %vm170_vm3, %v10933_v37, %v18381_v36  ;;  %v1445_v62 = vmax.f32 %v1253_v63, %v1437_v55  ;;  %v1335_v63 = vld [vmem:[%s18355_s17 + $0x210] sm:$0xff] }
 0x52f   :  { %v14330_v4 = vpop.permute.xlu1 %10936  ;;  %v18380_v28 = vunpack.i.l.bf16 %v14328_v2  ;;  %v1510_v25 = vmax.f32 %v1446_v30, %v1497_v17  ;;  %v1338_v17 = vld [vmem:[%s18355_s17 + $0x228] sm:$0xff] }
 0x530   :  { %v18379_v46 = vunpack.i.h.bf16 %v14330_v4  ;;  %v10938_v61 = vunpack.i.l.bf16 %v14330_v4 }
 0x531   :  { %v1501_v27 = vsel %vm170_vm3, %v18380_v28, %v10933_v37 }
 0x532   :  { %v14346_v53 = vpop.permute.xlu0 %10956  ;;  %v1562_v48 = vsel %vm1557_vm6, %v10938_v61, %v18379_v46  ;;  %v1509_v21 = vmax.f32 %v1445_v62, %v1501_v27 }
 0x533   :  { %v14356_v7 = vpop.permute.xlu1 %10941  ;;  %v18378_v60 = vunpack.i.l.bf16 %v14346_v53  ;;  %v1575_v5 = vmax.f32 %v1510_v25, %v1562_v48  ;;  %v9968_v48 = vpack.c.bf16 %v1335_v63, %v1333_v50  ;;  %v1344_v50 = vld [vmem:[%s18355_s17 + $0x258] sm:$0xff]  ;;  %v10949_v63 = vunpack.i.h.bf16 %v14317_v35 }
 0x534   :  { %v18377_v33 = vunpack.i.h.bf16 %v14356_v7  ;;  %v10943_v0 = vunpack.i.l.bf16 %v14356_v7 }
 0x535   :  { %v1566_v26 = vsel %vm1557_vm6, %v18378_v60, %v10938_v61  ;;  %v1340_v61 = vld [vmem:[%s18355_s17 + $0x238] sm:$0xff] }
 0x536   :  { %v14368_v40 = vpop.permute.xlu0 %10961  ;;  %v1627_v1 = vsel %vm1622_vm7, %v10943_v0, %v18377_v33  ;;  %v1574_v30 = vmax.f32 %v1509_v21, %v1566_v26  ;;  %v1339_v26 = vld [vmem:[%s18355_s17 + $0x230] sm:$0xff] }
 0x537   :  { %v14380_v47 = vpop.permute.xlu1 %10966  ;;  %v18376_v37 = vunpack.i.l.bf16 %v14368_v40  ;;  %v1640_v34 = vmax.f32 %v1575_v5, %v1627_v1  ;;  %v9970_v1 = vpack.c.bf16 %v1340_v61, %v1338_v17  ;;  %v9972_v61 = vpack.c.bf16 %v1339_v26, %v1337_v38  ;;  %v1348_v26 = vld [vmem:[%s18355_s17 + $0x278] sm:$0xff] }
 0x538   :  { %v18375_v27 = vunpack.i.h.bf16 %v14380_v47  ;;  %v18374_v25 = vunpack.i.l.bf16 %v14380_v47 }
 0x539   :  { %v1631_v55 = vsel %vm1622_vm7, %v18376_v37, %v10943_v0  ;;  %1719 = vmatprep.mubr.f32.mxu0 %v1640_v34  ;;  %v1342_v0 = vld [vmem:[%s18355_s17 + $0x248] sm:$0xff] }
 0x53a   :  { %v1639_v62 = vmax.f32 %v1574_v30, %v1631_v55  ;;  %v14395_v5 = vpop.permute.xlu0 %10971  ;;  %v1341_v30 = vld [vmem:[%s18355_s17 + $0x240] sm:$0xff]  ;;  %v10954_v55 = vunpack.i.h.bf16 %v14328_v2  ;;  %v1434_v54 = vsel %vm145_vm2, %v10949_v63, %v18374_v25  ;;  %v1438_v49 = vsel %vm145_vm2, %v18375_v27, %v10949_v63 }
 0x53b   :  { %v14403_v21 = vpop.permute.xlu1 %10981  ;;  %v18393_v34 = vunpack.i.h.bf16 %v14395_v5  ;;  %v18387_v17 = vunpack.i.l.bf16 %v14395_v5  ;;  %v9974_v38 = vpack.c.bf16 %v1344_v50, %v1342_v0  ;;  %v1449_v37 = vmax.f32 %v1257_v58, %v1438_v49 }
 0x53c   :  { %1720 = vmatmul.mubr.f32.vlgmr.msra.gmra.mrb[24].mxu0 %v1639_v62  ;;  %v1346_v62 = vld [vmem:[%s18355_s17 + $0x268] sm:$0xff]  ;;  %v1450_v33 = vmax.f32 %v1258_v14, %v1434_v54  ;;  %v18386_v28 = vunpack.i.h.bf16 %v14403_v21  ;;  %v18385_v36 = vunpack.i.l.bf16 %v14403_v21  ;;  %v1345_v14 = vld [vmem:[%s18355_s17 + $0x260] sm:$0xff]  ;;  %v10964_v58 = vunpack.i.h.bf16 %v14368_v40 }
 0x53d   :  { %9969 = vmatpush1.bf16.msra.mxu0 %v9968_v48  ;;  %v1343_v48 = vld [vmem:[%s18355_s17 + $0x250] sm:$0xff]  ;;  %v1498_v0 = vsel %vm170_vm3, %v10954_v55, %v18387_v17  ;;  %v1502_v50 = vsel %vm170_vm3, %v18393_v34, %v10954_v55  ;;  %v9978_v46 = vpack.c.bf16 %v1348_v26, %v1346_v62 }
 0x53e   :  { %v14426_v57 = vpop.permute.xlu0 %10976  ;;  %9971 = vmatprep.subr.bf16.mxu0 %v9970_v1  ;;  %v10959_v1 = vunpack.i.h.bf16 %v14346_v53  ;;  %v9976_v60 = vpack.c.bf16 %v1343_v48, %v1341_v30  ;;  %v1514_v49 = vmax.f32 %v1450_v33, %v1498_v0  ;;  %v1350_v30 = vld [vmem:[%s18355_s17 + $0x288] sm:$0xff] }
 0x53f   :  { %v14437_v25 = vpop.permute.xlu1 %10986  ;;  %v18384_v63 = vunpack.i.h.bf16 %v14426_v57  ;;  %v18383_v27 = vunpack.i.l.bf16 %v14426_v57 }
 0x541   :  { %9973 = vmatpush1.bf16.msra.mxu0 %v9972_v61  ;;  %v1563_v55 = vsel %vm1557_vm6, %v10959_v1, %v18383_v27  ;;  %v1567_v19 = vsel %vm1557_vm6, %v18384_v63, %v10959_v1  ;;  %v1513_v61 = vmax.f32 %v1449_v37, %v1502_v50  ;;  %v9980_v37 = vpack.c.bf16 %v1347_v16, %v1345_v14  ;;  %v1351_v14 = vld [vmem:[%s18355_s17 + $0x290] sm:$0xff] }
 0x542   :  { %v14456_v56 = vpop.permute.xlu0 %10996  ;;  %9975 = vmatprep.subr.bf16.mxu0 %v9974_v38  ;;  %v1352_v38 = vld [vmem:[%s18355_s17 + $0x298] sm:$0xff]  ;;  %v1579_v27 = vmax.f32 %v1514_v49, %v1563_v55  ;;  %v1628_v63 = vsel %vm1622_vm7, %v10964_v58, %v18385_v36 }
 0x543   :  { %v14473_v54 = vpop.permute.xlu1 %10991  ;;  %v18388_v26 = vunpack.i.h.bf16 %v14456_v56  ;;  %v18397_v1 = vunpack.i.l.bf16 %v14456_v56  ;;  %v1578_v33 = vmax.f32 %v1513_v61, %v1567_v19  ;;  %v9982_v55 = vpack.c.bf16 %v1352_v38, %v1350_v30  ;;  %v1349_v19 = vld [vmem:[%s18355_s17 + $0x280] sm:$0xff]  ;;  %v1356_v30 = vld [vmem:[%s18355_s17 + $0x2b8] sm:$0xff] }
 0x544   :  { %v18394_v48 = vunpack.i.h.bf16 %v14473_v54  ;;  %v10993_v62 = vunpack.i.l.bf16 %v14473_v54 }
 0x545   :  { %9977 = vmatpush1.bf16.msra.mxu0 %v9976_v60  ;;  %v1632_v60 = vsel %vm1622_vm7, %v18386_v28, %v10964_v58  ;;  %v1644_v58 = vmax.f32 %v1579_v27, %v1628_v63  ;;  %v1499_v32 = vsel %vm170_vm3, %v18397_v1, %v18388_v26  ;;  %v9984_v63 = vpack.c.bf16 %v1351_v14, %v1349_v19  ;;  %v1358_v14 = vld [vmem:[%s18355_s17 + $0x2c8] sm:$0xff] }
 0x546   :  { %v1435_v0 = vsel %vm145_vm2, %v10993_v62, %v18394_v48  ;;  %v14491_v50 = vpop.permute.xlu0 %11001  ;;  %9979 = vmatprep.subr.bf16.mxu0 %v9978_v46  ;;  %v1354_v46 = vld [vmem:[%s18355_s17 + $0x2a8] sm:$0xff]  ;;  %v1643_v27 = vmax.f32 %v1578_v33, %v1632_v60  ;;  %v1353_v33 = vld [vmem:[%s18355_s17 + $0x2a0] sm:$0xff] }
 0x547   :  { %v1454_v16 = vmax.f32 %v1262_v51, %v1435_v0  ;;  %v14509_v49 = vpop.permute.xlu1 %11006  ;;  %v18392_v61 = vunpack.i.h.bf16 %v14491_v50  ;;  %v18396_v36 = vunpack.i.l.bf16 %v14491_v50  ;;  %1725 = vmatprep.mubr.f32.mxu0 %v1644_v58  ;;  %v9986_v26 = vpack.c.bf16 %v1356_v30, %v1354_v46  ;;  %v1357_v58 = vld [vmem:[%s18355_s17 + $0x2c0] sm:$0xff] }
 0x548   :  { %v18391_v51 = vunpack.i.h.bf16 %v14509_v49  ;;  %v18395_v38 = vunpack.i.l.bf16 %v14509_v49  ;;  %1726 = vmatmul.mubr.f32.gmra.mrb[26].mxu0 %v1643_v27  ;;  %v1364_v27 = vld [vmem:[%s18355_s17 + $0x2f8] sm:$0xff] }
 0x549   :  { %9981 = vmatpush1.bf16.msra.mxu0 %v9980_v37  ;;  %v1518_v0 = vmax.f32 %v1454_v16, %v1499_v32  ;;  %v1564_v28 = vsel %vm1557_vm6, %v18396_v36, %v18392_v61  ;;  %v1355_v37 = vld [vmem:[%s18355_s17 + $0x2b0] sm:$0xff]  ;;  %v1362_v32 = vld [vmem:[%s18355_s17 + $0x2e8] sm:$0xff] }
 0x54a   :  { %v14533_v17 = vpop.permute.xlu0 %11016  ;;  %9983 = vmatprep.subr.bf16.mxu0 %v9982_v55  ;;  %v1360_v55 = vld [vmem:[%s18355_s17 + $0x2d8] sm:$0xff]  ;;  %v1629_v16 = vsel %vm1622_vm7, %v18395_v38, %v18391_v51  ;;  %v9988_v30 = vpack.c.bf16 %v1355_v37, %v1353_v33  ;;  %v10988_v51 = vunpack.i.l.bf16 %v14437_v25  ;;  %v1363_v33 = vld [vmem:[%s18355_s17 + $0x2f0] sm:$0xff]  ;;  %v1366_v37 = vld [vmem:[%s18355_s17 + $0x308] sm:$0xff]  ;;  %v9994_v38 = vpack.c.bf16 %v1364_v27, %v1362_v32 }
 0x54b   :  { %v14541_v60 = vpop.permute.xlu1 %11011  ;;  %v1583_v19 = vmax.f32 %v1518_v0, %v1564_v28  ;;  %v1359_v28 = vld [vmem:[%s18355_s17 + $0x2d0] sm:$0xff]  ;;  %v1361_v0 = vld [vmem:[%s18355_s17 + $0x2e0] sm:$0xff]  ;;  %v18402_v10 = vunpack.i.l.bf16 %v14533_v17 }
 0x54c   :  { %v9992_v48 = vpack.c.bf16 %v1359_v28, %v1357_v58  ;;  %v18403_v36 = vunpack.i.h.bf16 %v14541_v60  ;;  %v9996_v1 = vpack.c.bf16 %v1363_v33, %v1361_v0  ;;  %v1429_v58 = vsel %vm145_vm2, %v10929_v22, %v10988_v51 }
 0x54d   :  { %9985 = vmatpush1.bf16.msra.mxu0 %v9984_v63  ;;  %v1648_v46 = vmax.f32 %v1583_v19, %v1629_v16  ;;  %v9990_v63 = vpack.c.bf16 %v1360_v55, %v1358_v14  ;;  %v1368_v19 = vld [vmem:[%s18355_s17 + $0x318] sm:$0xff]  ;;  %v14592_v14 = vld [vmem:[%s18355_s17 + $0x310] sm:$0xff]  ;;  %v18404_v28 = vunpack.i.h.bf16 %v14533_v17 }
 0x54e   :  { %v14571_v61 = vpop.permute.xlu0 %11021  ;;  %9987 = vmatprep.subr.bf16.mxu0 %v9986_v26  ;;  %v14587_v26 = vld [vmem:[%s18355_s17 + $0x300] sm:$0xff]  ;;  %v9998_v18 = vpack.c.bf16 %v1368_v19, %v1366_v37 }
 0x54f   :  { %v14582_v16 = vpop.permute.xlu1 %11026  ;;  %1731 = vmatprep.mubr.f32.mxu0 %v1648_v46  ;;  %v18401_v46 = vunpack.i.l.bf16 %v14541_v60  ;;  %v10000_v27 = vpack.c.bf16 %v14592_v14, %v14587_v26  ;;  %v10002_v26 = vpack.c.bf16 %v14606_v41, %v14601_v45  ;;  %v18468_v41 = vmax.f32 %v14247_v43, 0.0 }
 0x550   :  { %v11029_v55 = vunpack.i.h.bf16 %v14582_v16  ;;  %v11028_v34 = vunpack.i.l.bf16 %v14582_v16  ;;  %v1395_v16 = vld [vmem:[%s18355_s17 + $0x3f0] sm:$0xff] }
 0x551   :  { %9989 = vmatpush1.bf16.msra.mxu0 %v9988_v30 }
 0x552   :  { %v1439_v30 = vsel %vm145_vm2, %v11028_v34, %v10993_v62  ;;  %v14619_v32 = vpop.permute.xlu0 %11031  ;;  %9991 = vmatprep.subr.bf16.mxu0 %v9990_v63  ;;  %v1436_v22 = vsel %vm145_vm2, %v11029_v55, %v18401_v46  ;;  %v1440_v0 = vsel %vm145_vm2, %v18403_v36, %v11029_v55  ;;  %v1441_v63 = vsel %vm145_vm2, %v10988_v51, %v10948_v15 }
 0x553   :  { %v14632_v33 = vpop.permute.xlu1 %11036  ;;  %v11034_v62 = vunpack.i.h.bf16 %v14619_v32  ;;  %v11033_v19 = vunpack.i.l.bf16 %v14619_v32  ;;  %v1453_v14 = vmax.f32 %v1261_v6, %v1439_v30  ;;  %v18467_v51 = vmax.f32 %v14127_v52, 0.0 }
 0x554   :  { %v11038_v37 = vunpack.i.l.bf16 %v14632_v33  ;;  %v11039_v55 = vunpack.i.h.bf16 %v14632_v33  ;;  %v1457_v45 = vmax.f32 %v18468_v41, %v1440_v0  ;;  %v1458_v6 = vmax.f32 %v18469_v3, %v1436_v22 }
 0x555   :  { %v1500_v35 = vsel %vm170_vm3, %v11034_v62, %v18402_v10  ;;  %v1504_v15 = vsel %vm170_vm3, %v18404_v28, %v11034_v62  ;;  %9993 = vmatpush1.bf16.msra.mxu0 %v9992_v48  ;;  %v1447_v46 = vmax.f32 %v18467_v51, %v1429_v58  ;;  %v18470_v30 = vunpack.i.l.bf16 %v14456_v56 }
 0x556   :  { %v14666_v36 = vpop.permute.xlu0 %11046  ;;  %9995 = vmatprep.subr.bf16.mxu0 %v9994_v38  ;;  %v11024_v48 = vunpack.i.h.bf16 %v14571_v61  ;;  %v18405_v52 = vunpack.i.l.bf16 %v14571_v61  ;;  %v18471_v0 = vunpack.i.l.bf16 %v14491_v50  ;;  %v1522_v51 = vmax.f32 %v1458_v6, %v1500_v35 }
 0x557   :  { %v1503_v10 = vsel %vm170_vm3, %v11033_v19, %v18470_v30  ;;  %v14670_v58 = vpop.permute.xlu1 %11041  ;;  %v11048_v43 = vunpack.i.l.bf16 %v14666_v36  ;;  %v1521_v38 = vmax.f32 %v1457_v45, %v1504_v15  ;;  %v18472_v41 = vmax.f32 %v14225_v59, 0.0 }
 0x558   :  { %v1517_v13 = vmax.f32 %v1453_v14, %v1503_v10  ;;  %v11043_v22 = vunpack.i.l.bf16 %v14670_v58  ;;  %v1568_v62 = vsel %vm1557_vm6, %v11038_v37, %v18471_v0  ;;  %v18473_v28 = vunpack.i.l.bf16 %v14509_v49 }
 0x559   :  { %v1448_v3 = vmax.f32 %v18472_v41, %v1441_v63  ;;  %9997 = vmatpush1.bf16.msra.mxu0 %v9996_v1  ;;  %v1565_v14 = vsel %vm1557_vm6, %v11039_v55, %v18405_v52  ;;  %v18474_v35 = vunpack.i.h.bf16 %v14319_v29  ;;  %v18475_v1 = vunpack.i.l.bf16 %v14328_v2  ;;  %v1371_v29 = vld [vmem:[%s18355_s17 + $0x330] sm:$0xff] }
 0x55a   :  { %v1582_v30 = vmax.f32 %v1517_v13, %v1568_v62  ;;  %v1633_v10 = vsel %vm1622_vm7, %v11048_v43, %v18473_v28  ;;  %v11049_v15 = vunpack.i.h.bf16 %v14666_v36  ;;  %v14701_v45 = vpop.permute.xlu0 %11051  ;;  %9999 = vmatprep.subr.bf16.mxu0 %v9998_v18  ;;  %v1369_v28 = vld [vmem:[%s18355_s17 + $0x320] sm:$0xff]  ;;  %v1569_v2 = vsel %vm1557_vm6, %v11024_v48, %v11039_v55  ;;  %v1376_v55 = vld [vmem:[%s18355_s17 + $0x358] sm:$0xff] }
 0x55b   :  { %v1493_v59 = vsel %vm170_vm3, %v18474_v35, %v11043_v22  ;;  %v1505_v63 = vsel %vm170_vm3, %v11043_v22, %v18475_v1  ;;  %v14713_v13 = vpop.permute.xlu1 %11056  ;;  %v11054_v22 = vunpack.i.h.bf16 %v14701_v45  ;;  %v11053_v18 = vunpack.i.l.bf16 %v14701_v45  ;;  %v1374_v1 = vld [vmem:[%s18355_s17 + $0x348] sm:$0xff] }
 0x55c   :  { %v1511_v6 = vmax.f32 %v1447_v46, %v1493_v59  ;;  %v1647_v0 = vmax.f32 %v1582_v30, %v1633_v10  ;;  %v11058_v62 = vunpack.i.l.bf16 %v14713_v13  ;;  %v1587_v41 = vmax.f32 %v1522_v51, %v1565_v14 }
 0x55d   :  { %v1586_v35 = vmax.f32 %v1521_v38, %v1569_v2  ;;  %v1630_v46 = vsel %vm1622_vm7, %v11049_v15, %v11053_v18  ;;  %v10004_v59 = vpack.c.bf16 %v1371_v29, %v1369_v28  ;;  %v1634_v51 = vsel %vm1622_vm7, %v11054_v22, %v11049_v15  ;;  %10001 = vmatpush1.bf16.msra.mxu0 %v10000_v27  ;;  %v1375_v27 = vld [vmem:[%s18355_s17 + $0x350] sm:$0xff] }
 0x55e   :  { %1732 = vmatmul.mubr.f32.gmra.mrb[28].mxu0 %v1647_v0  ;;  %v1512_v38 = vmax.f32 %v1448_v3, %v1505_v63  ;;  %v18476_v30 = vunpack.i.h.bf16 %v14330_v4  ;;  %v14736_v14 = vpop.permute.xlu0 %11061  ;;  %v1652_v2 = vmax.f32 %v1587_v41, %v1630_v46  ;;  %v18477_v52 = vunpack.i.l.bf16 %v14346_v53  ;;  %10003 = vmatprep.subr.bf16.mxu0 %v10002_v26  ;;  %v1373_v4 = vld [vmem:[%s18355_s17 + $0x340] sm:$0xff]  ;;  %v1378_v53 = vld [vmem:[%s18355_s17 + $0x368] sm:$0xff] }
 0x55f   :  { %v1651_v0 = vmax.f32 %v1586_v35, %v1634_v51  ;;  %v11063_v15 = vunpack.i.l.bf16 %v14736_v14  ;;  %v10006_v3 = vpack.c.bf16 %v1376_v55, %v1374_v1  ;;  %v18478_v26 = vunpack.i.h.bf16 %v14356_v7  ;;  %v1377_v7 = vld [vmem:[%s18355_s17 + $0x360] sm:$0xff]  ;;  %v1379_v51 = vld [vmem:[%s18355_s17 + $0x370] sm:$0xff] }
 0x560   :  { %v1558_v10 = vsel %vm1557_vm6, %v18476_v30, %v11058_v62  ;;  %v1570_v28 = vsel %vm1557_vm6, %v11058_v62, %v18477_v52  ;;  %1737 = vmatprep.mubr.f32.mxu0 %v1652_v2  ;;  %v1380_v52 = vld [vmem:[%s18355_s17 + $0x378] sm:$0xff]  ;;  %v18479_v62 = vunpack.i.l.bf16 %v14368_v40  ;;  %v10008_v1 = vpack.c.bf16 %v1375_v27, %v1373_v4  ;;  %v1382_v40 = vld [vmem:[%s18355_s17 + $0x388] sm:$0xff]  ;;  %v1383_v2 = vld [vmem:[%s18355_s17 + $0x390] sm:$0xff] }
 0x561   :  { %v14742_v29 = vmax.f32 %v1511_v6, %v1558_v10  ;;  %v1577_v63 = vmax.f32 %v1512_v38, %v1570_v28  ;;  %v14761_v6 = vsel %vm1622_vm7, %v18478_v26, %v11063_v15  ;;  %10005 = vmatpush1.bf16.msra.mxu0 %v10004_v59  ;;  %v10010_v46 = vpack.c.bf16 %v1380_v52, %v1378_v53  ;;  %v1384_v59 = vld [vmem:[%s18355_s17 + $0x398] sm:$0xff]  ;;  %v1381_v10 = vld [vmem:[%s18355_s17 + $0x380] sm:$0xff]  ;;  %v1390_v53 = vld [vmem:[%s18355_s17 + $0x3c8] sm:$0xff] }
 0x562   :  { %1738 = vmatmul.mubr.f32.gmra.mrb[30].mxu0 %v1651_v0  ;;  %v1635_v41 = vsel %vm1622_vm7, %v11063_v15, %v18479_v62  ;;  %10007 = vmatprep.subr.bf16.mxu0 %v10006_v3  ;;  %v10012_v38 = vpack.c.bf16 %v1379_v51, %v1377_v7  ;;  %v10014_v30 = vpack.c.bf16 %v1384_v59, %v1382_v40  ;;  %v1386_v0 = vld [vmem:[%s18355_s17 + $0x3a8] sm:$0xff]  ;;  %v1388_v28 = vld [vmem:[%s18355_s17 + $0x3b8] sm:$0xff]  ;;  %v11067_v15 = vpop.permute.xlu1 %11066  ;;  %v1385_v27 = vld [vmem:[%s18355_s17 + $0x3a0] sm:$0xff]  ;;  %v1490_v62 = vpop.permute.xlu0 %1489  ;;  %v18497_v36 = vunpack.i.l.bf16 %v14533_v17 }
 0x563   :  { %v1641_v35 = vmax.f32 %v14742_v29, %v14761_v6  ;;  %v1642_v55 = vmax.f32 %v1577_v63, %v1635_v41  ;;  %v10016_v3 = vpack.c.bf16 %v1383_v2, %v1381_v10  ;;  %v10018_v4 = vpack.c.bf16 %v1388_v28, %v1386_v0  ;;  %v1387_v63 = vld [vmem:[%s18355_s17 + $0x3b0] sm:$0xff]  ;;  %v1392_v52 = vld [vmem:[%s18355_s17 + $0x3d8] sm:$0xff]  ;;  %v1394_v51 = vld [vmem:[%s18355_s17 + $0x3e8] sm:$0xff] }
 0x564   :  { %v11068_v26 = vunpack.i.l.bf16 %v11067_v15  ;;  %v10020_v41 = vpack.c.bf16 %v1387_v63, %v1385_v27  ;;  %v1391_v7 = vld [vmem:[%s18355_s17 + $0x3d0] sm:$0xff]  ;;  %v1396_v40 = vld [vmem:[%s18355_s17 + $0x3f8] sm:$0xff]  ;;  %v11059_v2 = vunpack.i.h.bf16 %v14713_v13  ;;  %v18499_v29 = vunpack.i.h.bf16 %v14509_v49 }
 0x565   :  { %1808 = vmatprep.mubr.f32.mxu0 %v1642_v55  ;;  %10009 = vmatpush1.bf16.msra.mxu0 %v10008_v1  ;;  %v10989_v1 = vunpack.i.h.bf16 %v14437_v25  ;;  %v10022_v55 = vpack.c.bf16 %v1392_v52, %v1390_v53  ;;  %v11044_v25 = vunpack.i.h.bf16 %v14670_v58  ;;  %v10026_v0 = vpack.c.bf16 %v1396_v40, %v1394_v51  ;;  %v1393_v58 = vld [vmem:[%s18355_s17 + $0x3e0] sm:$0xff] }
 0x566   :  { %10011 = vmatprep.subr.bf16.mxu0 %v10010_v46  ;;  %v1389_v46 = vld [vmem:[%s18355_s17 + $0x3c0] sm:$0xff]  ;;  %v1443_v59 = vsel %vm145_vm2, %v11068_v26, %v11028_v34  ;;  %v18481_v34 = vunpack.i.l.bf16 %v14380_v47  ;;  %v1492_v63 = vpop.permute.xlu0 %1491  ;;  %v18483_v53 = vunpack.i.h.bf16 %v14395_v5  ;;  %v18489_v51 = vunpack.i.h.bf16 %v14456_v56 }
 0x567   :  { %v1456_v27 = vmax.f32 %v14294_v23, %v1443_v59  ;;  %v18485_v23 = vunpack.i.l.bf16 %v14395_v5 }
 0x568   :  { %v1430_v28 = vsel %vm145_vm2, %v18481_v34, %v10989_v1  ;;  %v1506_v52 = vsel %vm170_vm3, %v11044_v25, %v18483_v53  ;;  %v1495_v5 = vsel %vm170_vm3, %v18489_v51, %v1490_v62 }
 0x569   :  { %10013 = vmatpush1.bf16.msra.mxu0 %v10012_v38  ;;  %v10024_v38 = vpack.c.bf16 %v1391_v7, %v1389_v46  ;;  %v1494_v46 = vsel %vm170_vm3, %v18485_v23, %v11044_v25  ;;  %v18486_v7 = vmax.f32 %v14232_v12, 0.0  ;;  %v18490_v25 = vunpack.i.h.bf16 %v14541_v60 }
 0x56a   :  { %10015 = vmatprep.subr.bf16.mxu0 %v10014_v30  ;;  %v18480_v30 = vunpack.i.h.bf16 %v14380_v47  ;;  %v11064_v47 = vunpack.i.h.bf16 %v14736_v14  ;;  %v18487_v14 = vunpack.i.h.bf16 %v14426_v57 }
 0x56c   :  { %v1442_v10 = vsel %vm145_vm2, %v10989_v1, %v18480_v30  ;;  %v1507_v1 = vsel %vm170_vm3, %v1490_v62, %v11033_v19  ;;  %v1571_v32 = vsel %vm1557_vm6, %v11059_v2, %v18487_v14  ;;  %v18488_v19 = vmax.f32 %v14175_v11, 0.0  ;;  %v1556_v11 = vpop.permute.xlu0 %1555 }
 0x56d   :  { %10017 = vmatpush1.bf16.msra.mxu0 %v10016_v3  ;;  %v1554_v3 = vpop.permute.xlu1 %1553  ;;  %v1520_v40 = vmax.f32 %v1456_v27, %v1507_v1  ;;  %v18498_v1 = vmax.f32 %v14250_v8, 0.0 }
 0x56e   :  { %10019 = vmatprep.subr.bf16.mxu0 %v10018_v4  ;;  %v18482_v4 = vunpack.i.h.bf16 %v14473_v54  ;;  %v18484_v54 = vmax.f32 %v14216_v31, 0.0  ;;  %v1451_v31 = vmax.f32 %v18488_v19, %v1430_v28  ;;  %v18493_v28 = vunpack.i.l.bf16 %v14541_v60 }
 0x570   :  { %v1431_v13 = vsel %vm145_vm2, %v18482_v4, %v11068_v26  ;;  %v10028_v26 = vpack.c.bf16 %v1395_v16, %v1393_v58  ;;  %v1515_v56 = vmax.f32 %v1451_v31, %v1494_v46  ;;  %v18492_v58 = vunpack.i.l.bf16 %v14426_v57 }
 0x571   :  { %10021 = vmatpush1.bf16.msra.mxu0 %v10020_v41  ;;  %v11069_v41 = vunpack.i.h.bf16 %v11067_v15  ;;  %v1455_v15 = vmax.f32 %v18486_v7, %v1431_v13  ;;  %v1572_v16 = vsel %vm1557_vm6, %v1554_v3, %v11038_v37  ;;  %v18494_v13 = vunpack.i.h.bf16 %v14533_v17 }
 0x572   :  { %10023 = vmatprep.subr.bf16.mxu0 %v10022_v55  ;;  %v1452_v55 = vmax.f32 %v18484_v54, %v1442_v10  ;;  %v1619_v10 = vpop.permute.xlu1 %1618  ;;  %v1559_v62 = vsel %vm1557_vm6, %v18492_v58, %v11059_v2  ;;  %v18495_v2 = vunpack.i.l.bf16 %v14403_v21  ;;  %v1585_v37 = vmax.f32 %v1520_v40, %v1572_v16 }
 0x573   :  { %v1444_v12 = vsel %vm145_vm2, %v11069_v41, %v18490_v25  ;;  %v1519_v34 = vmax.f32 %v1455_v15, %v1495_v5  ;;  %v1432_v4 = vsel %vm145_vm2, %v18493_v28, %v11069_v41  ;;  %v1508_v27 = vsel %vm170_vm3, %v1492_v63, %v18494_v13  ;;  %v14939_v15 = vld [vmem:[%s18455_s25 + $0x8] sm:$0xff] }
 0x574   :  { %v1516_v59 = vmax.f32 %v1452_v55, %v1506_v52  ;;  %v1460_v57 = vmax.f32 %v14291_v9, %v1444_v12  ;;  %v1624_v33 = vsel %vm1622_vm7, %v18495_v2, %v11064_v47  ;;  %v1637_v60 = vsel %vm1622_vm7, %v1619_v10, %v11048_v43 }
 0x575   :  { %10025 = vmatpush1.bf16.msra.mxu0 %v10024_v38  ;;  %v18491_v38 = vunpack.i.h.bf16 %v14403_v21  ;;  %v1573_v52 = vsel %vm1557_vm6, %v1556_v11, %v11024_v48  ;;  %v1580_v9 = vmax.f32 %v1515_v56, %v1559_v62  ;;  %v18496_v21 = vunpack.i.h.bf16 %v14491_v50 }
 0x576   :  { %10027 = vmatprep.subr.bf16.mxu0 %v10026_v0  ;;  %v1581_v0 = vmax.f32 %v1516_v59, %v1571_v32  ;;  %v1496_v43 = vsel %vm170_vm3, %v18497_v36, %v1492_v63  ;;  %v1459_v48 = vmax.f32 %v18498_v1, %v1432_v4  ;;  %v1625_v50 = vsel %vm1622_vm7, %v18499_v29, %v1619_v10  ;;  %v1621_v6 = vpop.permute.xlu1 %1620 }
 0x577   :  { %v1636_v30 = vsel %vm1622_vm7, %v11064_v47, %v18491_v38  ;;  %v1560_v41 = vsel %vm1557_vm6, %v18496_v21, %v1554_v3  ;;  %v1524_v47 = vmax.f32 %v1460_v57, %v1508_v27  ;;  %v1645_v54 = vmax.f32 %v1580_v9, %v1624_v33 }
 0x578   :  { %v1646_v53 = vmax.f32 %v1581_v0, %v1636_v30  ;;  %v1584_v55 = vmax.f32 %v1519_v34, %v1560_v41  ;;  %v1650_v63 = vmax.f32 %v1585_v37, %v1637_v60  ;;  %v1638_v8 = vsel %vm1622_vm7, %v1621_v6, %v11054_v22 }
 0x579   :  { %10029 = vmatpush1.bf16.msra.mxu0 %v10028_v26  ;;  %v1589_v3 = vmax.f32 %v1524_v47, %v1573_v52  ;;  %v1523_v26 = vmax.f32 %v1459_v48, %v1496_v43 }
 0x57a   :  { %v1649_v23 = vmax.f32 %v1584_v55, %v1625_v50 }
 0x57b   :  { %v1654_v46 = vmax.f32 %v1589_v3, %v1638_v8 }
 0x57c   :  { %1809 = vmatmul.mubr.f32.vlgmr.msra.gmra.mrb[24].mxu0 %v1641_v35  ;;  %v18500_v35 = vunpack.i.l.bf16 %v14571_v61  ;;  %v1626_v61 = vsel %vm1622_vm7, %v11053_v18, %v1621_v6 }
 0x57d   :  { %1814 = vmatprep.mubr.f32.mxu0 %v1646_v53 }
 0x57e   :  { %v1561_v17 = vsel %vm1557_vm6, %v18500_v35, %v1556_v11 }
 0x57f   :  { %v1588_v49 = vmax.f32 %v1523_v26, %v1561_v17 }
 0x580   :  { %1815 = vmatmul.mubr.f32.gmra.mrb[26].mxu0 %v1645_v54 }
 0x581   :  { %1820 = vmatprep.mubr.f32.mxu0 %v1650_v63  ;;  %v1653_v7 = vmax.f32 %v1588_v49, %v1626_v61 }
 0x584   :  { %1821 = vmatmul.mubr.f32.gmra.mrb[28].mxu0 %v1649_v23 }
 0x585   :  { %1826 = vmatprep.mubr.f32.mxu0 %v1654_v46 }
 0x588   :  { %1827 = vmatmul.mubr.f32.gmra.mrb[30].mxu0 %v1653_v7 }
 0x589   :  { %8341 = vmatprep.mubr.msk.f32.mxu0 %vm660_vm5, %v14939_v15 }
 0x64f   :  { %v14943_v22 = vpop.f32.mrb[24].mxu0 }
 0x650   :  { %v14945_v14 = vpop.f32.mrb[25].mxu0 }
 0x653   :  { %v14947_v32 = vpop.f32.mrb[26].mxu0 }
 0x654   :  { %v14949_v45 = vpop.f32.mrb[27].mxu0  ;;  %v11070_v18 = vpack.i.bf16 %v14947_v32, %v14943_v22  ;;  %v10048_v51 = vpack.c.bf16 %v14947_v32, %v14943_v22 }
 0x655   :  { %v11075_v19 = vpack.i.bf16 %v14949_v45, %v14945_v14  ;;  %v10046_v31 = vpack.c.bf16 %v14949_v45, %v14945_v14 }
 0x656   :  { %11071 = vrot.lane.b32.xlu0 %v11070_v18, %s12880_s27 }
 0x657   :  { %11076 = vrot.lane.b32.xlu1 %v11075_v19, %s12880_s27  ;;  %v14961_v5 = vpop.f32.mrb[28].mxu0 }
 0x658   :  { %v14963_v40 = vpop.f32.mrb[29].mxu0 }
 0x65b   :  { %v14965_v59 = vpop.f32.mrb[30].mxu0 }
 0x65c   :  { %v14967_v25 = vpop.f32.mrb[31].mxu0  ;;  %v11080_v12 = vpack.i.bf16 %v14965_v59, %v14961_v5  ;;  %v10052_v10 = vpack.c.bf16 %v14965_v59, %v14961_v5 }
 0x65d   :  { %v11090_v38 = vpack.i.bf16 %v14967_v25, %v14963_v40  ;;  %v10050_v30 = vpack.c.bf16 %v14967_v25, %v14963_v40 }
 0x65e   :  { %11081 = vrot.lane.b32.xlu0 %v11080_v12, %s12880_s27 }
 0x65f   :  { %11091 = vrot.lane.b32.xlu1 %v11090_v38, %s12880_s27 }
 0x662   :  { %11086 = vrot.lane.b32.xlu0 %v11070_v18, %s12881_s3 }
 0x663   :  { %11096 = vrot.lane.b32.xlu1 %v11075_v19, %s12881_s3 }
 0x666   :  { %11101 = vrot.lane.b32.xlu0 %v11080_v12, %s12881_s3 }
 0x667   :  { %11106 = vrot.lane.b32.xlu1 %v11090_v38, %s12881_s3 }
 0x66a   :  { %11111 = vrot.lane.b32.xlu0 %v11070_v18, %s12882_s26 }
 0x66b   :  { %11116 = vrot.lane.b32.xlu1 %v11075_v19, %s12882_s26 }
 0x66e   :  { %11121 = vrot.lane.b32.xlu0 %v11080_v12, %s12882_s26 }
 0x66f   :  { %11131 = vrot.lane.b32.xlu1 %v11090_v38, %s12882_s26 }
 0x672   :  { %11126 = vrot.lane.b32.xlu0 %v11070_v18, %s12884_s28 }
 0x673   :  { %11136 = vrot.lane.b32.xlu1 %v11075_v19, %s12884_s28 }
 0x676   :  { %11141 = vrot.lane.b32.xlu0 %v11080_v12, %s12884_s28 }
 0x677   :  { %11146 = vrot.lane.b32.xlu1 %v11090_v38, %s12884_s28 }
 0x6c8   :  { %v11072_v11 = vpop.permute.xlu0 %11071 }
 0x6c9   :  { %v11074_v0 = vunpack.i.h.bf16 %v11072_v11  ;;  %v11073_v56 = vunpack.i.l.bf16 %v11072_v11  ;;  %v11077_v58 = vpop.permute.xlu1 %11076 }
 0x6ca   :  { %v11079_v62 = vunpack.i.h.bf16 %v11077_v58  ;;  %v11078_v16 = vunpack.i.l.bf16 %v11077_v58 }
 0x6cc   :  { %v1854_v34 = vsel %vm95_vm0, %v11079_v62, %v11074_v0  ;;  %v1853_v28 = vsel %vm95_vm0, %v11078_v16, %v11073_v56  ;;  %v1849_v4 = vsel %vm95_vm0, %v11073_v56, %v11078_v16  ;;  %v1850_v13 = vsel %vm95_vm0, %v11074_v0, %v11079_v62 }
 0x6cd   :  { %v10030_v27 = vpack.c.bf16 %v1850_v13, %v1849_v4  ;;  %v10032_v57 = vpack.c.bf16 %v1854_v34, %v1853_v28 }
 0x6cf   :  { %10031 = vmatprep.subr.bf16.mxu1 %v10030_v27 }
 0x6d0   :  { %10033 = vmatpush1.bf16.msra.mxu1 %v10032_v57  ;;  %v11082_v53 = vpop.permute.xlu0 %11081 }
 0x6d1   :  { %v11084_v2 = vunpack.i.h.bf16 %v11082_v53  ;;  %v11083_v33 = vunpack.i.l.bf16 %v11082_v53  ;;  %v11092_v37 = vpop.permute.xlu1 %11091 }
 0x6d2   :  { %v11094_v60 = vunpack.i.h.bf16 %v11092_v37  ;;  %v11093_v52 = vunpack.i.l.bf16 %v11092_v37 }
 0x6d4   :  { %v1856_v9 = vsel %vm95_vm0, %v11094_v60, %v11084_v2  ;;  %v1855_v21 = vsel %vm95_vm0, %v11093_v52, %v11083_v33  ;;  %v11087_v41 = vpop.permute.xlu0 %11086  ;;  %v1851_v36 = vsel %vm95_vm0, %v11083_v33, %v11093_v52  ;;  %v1852_v43 = vsel %vm95_vm0, %v11084_v2, %v11094_v60 }
 0x6d5   :  { %v11089_v47 = vunpack.i.h.bf16 %v11087_v41  ;;  %v11088_v1 = vunpack.i.l.bf16 %v11087_v41  ;;  %v11097_v48 = vpop.permute.xlu1 %11096  ;;  %v10034_v54 = vpack.c.bf16 %v1852_v43, %v1851_v36  ;;  %v10036_v55 = vpack.c.bf16 %v1856_v9, %v1855_v21 }
 0x6d6   :  { %v11099_v29 = vunpack.i.h.bf16 %v11097_v48  ;;  %v11098_v50 = vunpack.i.l.bf16 %v11097_v48 }
 0x6d7   :  { %10035 = vmatprep.subr.bf16.mxu1 %v10034_v54 }
 0x6d8   :  { %v1878_v6 = vsel %vm120_vm1, %v11099_v29, %v11089_v47  ;;  %v1877_v35 = vsel %vm120_vm1, %v11098_v50, %v11088_v1  ;;  %v11102_v17 = vpop.permute.xlu0 %11101  ;;  %10037 = vmatpush1.bf16.msra.mxu1 %v10036_v55  ;;  %v1873_v3 = vsel %vm120_vm1, %v11088_v1, %v11098_v50  ;;  %v1874_v63 = vsel %vm120_vm1, %v11089_v47, %v11099_v29 }
 0x6d9   :  { %v11104_v26 = vunpack.i.h.bf16 %v11102_v17  ;;  %v11103_v8 = vunpack.i.l.bf16 %v11102_v17  ;;  %v11107_v49 = vpop.permute.xlu1 %11106  ;;  %v10038_v23 = vpack.c.bf16 %v1874_v63, %v1873_v3  ;;  %v10040_v46 = vpack.c.bf16 %v1878_v6, %v1877_v35 }
 0x6da   :  { %v11109_v61 = vunpack.i.h.bf16 %v11107_v49  ;;  %v11108_v7 = vunpack.i.l.bf16 %v11107_v49 }
 0x6db   :  { %10039 = vmatprep.subr.bf16.mxu1 %v10038_v23  ;;  %v15070_v23 = vld [vmem:[%s18455_s25] sm:$0xff] }
 0x6dc   :  { %v1880_v18 = vsel %vm120_vm1, %v11109_v61, %v11104_v26  ;;  %v1879_v19 = vsel %vm120_vm1, %v11108_v7, %v11103_v8  ;;  %v11112_v12 = vpop.permute.xlu0 %11111  ;;  %10041 = vmatpush1.bf16.msra.mxu1 %v10040_v46  ;;  %v1875_v38 = vsel %vm120_vm1, %v11103_v8, %v11108_v7  ;;  %v1876_v11 = vsel %vm120_vm1, %v11104_v26, %v11109_v61  ;;  %v15076_v46 = vld [vmem:[%s18455_s25 + $0x18] sm:$0xff]  ;;  %v15083_v61 = vld [vmem:[%s18455_s25 + $0x10] sm:$0xff]  ;;  %v15089_v7 = vld [vmem:[%s18455_s25 + $0x28] sm:$0xff] }
 0x6dd   :  { %v11117_v0 = vpop.permute.xlu1 %11116  ;;  %v10042_v56 = vpack.c.bf16 %v1876_v11, %v1875_v38  ;;  %v10044_v58 = vpack.c.bf16 %v1880_v18, %v1879_v19  ;;  %v11114_v62 = vunpack.i.h.bf16 %v11112_v12  ;;  %v11113_v16 = vunpack.i.l.bf16 %v11112_v12  ;;  %v15096_v18 = vld [vmem:[%s18455_s25 + $0x20] sm:$0xff]  ;;  %v15102_v19 = vld [vmem:[%s18455_s25 + $0x38] sm:$0xff]  ;;  %v15109_v12 = vld [vmem:[%s18455_s25 + $0x30] sm:$0xff] }
 0x6de   :  { %v11119_v34 = vunpack.i.h.bf16 %v11117_v0  ;;  %v11118_v28 = vunpack.i.l.bf16 %v11117_v0 }
 0x6df   :  { %10043 = vmatprep.subr.bf16.mxu1 %v10042_v56  ;;  %v2026_v56 = vld [vmem:[%s18352_s14] sm:$0x3]  ;;  %s12893_s14 = smov 66  }
 0x6e0   :  { %v11122_v4 = vpop.permute.xlu0 %11121  ;;  %10045 = vmatpush1.bf16.msra.mxu1 %v10044_v58  ;;  %v1901_v27 = vsel %vm145_vm2, %v11118_v28, %v11113_v16  ;;  %v1902_v57 = vsel %vm145_vm2, %v11119_v34, %v11114_v62  ;;  %v1898_v14 = vsel %vm145_vm2, %v11114_v62, %v11119_v34  ;;  %v1897_v45 = vsel %vm145_vm2, %v11113_v16, %v11118_v28  ;;  %v18501_v34 = vld [vmem:[#allocation5_spill] sm:$0xff] }
 0x6e1   :  { %v11132_v13 = vpop.permute.xlu1 %11131  ;;  %10047 = vmatprep.subr.bf16.mxu1 %v10046_v31  ;;  %v11124_v53 = vunpack.i.h.bf16 %v11122_v4  ;;  %v11123_v2 = vunpack.i.l.bf16 %v11122_v4  ;;  %v10054_v31 = vpack.c.bf16 %v1902_v57, %v1901_v27  ;;  %v18502_v28 = vsub.s32 0, %v18501_v34 }
 0x6e2   :  { %v11134_v33 = vunpack.i.h.bf16 %v11132_v13  ;;  %v11133_v37 = vunpack.i.l.bf16 %v11132_v13 }
 0x6e3   :  { %v2031_v4 = vrot.slane %v2026_v56, %v18502_v28 }
 0x6e4   :  { %v11127_v60 = vpop.permute.xlu0 %11126  ;;  %10049 = vmatpush1.bf16.msra.mxu1 %v10048_v51  ;;  %v1903_v22 = vsel %vm145_vm2, %v11133_v37, %v11123_v2  ;;  %v1904_v32 = vsel %vm145_vm2, %v11134_v33, %v11124_v53  ;;  %v1900_v25 = vsel %vm145_vm2, %v11124_v53, %v11134_v33  ;;  %v1899_v43 = vsel %vm145_vm2, %v11123_v2, %v11133_v37 }
 0x6e5   :  { %v11137_v52 = vpop.permute.xlu1 %11136  ;;  %10051 = vmatprep.subr.bf16.mxu1 %v10050_v30  ;;  %v11129_v9 = vunpack.i.h.bf16 %v11127_v60  ;;  %v11128_v21 = vunpack.i.l.bf16 %v11127_v60  ;;  %v10056_v30 = vpack.c.bf16 %v1898_v14, %v1897_v45  ;;  %v10058_v47 = vpack.c.bf16 %v1904_v32, %v1903_v22 }
 0x6e6   :  { %v11139_v41 = vunpack.i.h.bf16 %v11137_v52  ;;  %v11138_v36 = vunpack.i.l.bf16 %v11137_v52  ;;  %v10060_v55 = vpack.c.bf16 %v1900_v25, %v1899_v43 }
 0x6e8   :  { %10053 = vmatpush1.bf16.msra.mxu1 %v10052_v10  ;;  %v11142_v51 = vpop.permute.xlu0 %11141  ;;  %v1925_v5 = vsel %vm170_vm3, %v11138_v36, %v11128_v21  ;;  %v1926_v59 = vsel %vm170_vm3, %v11139_v41, %v11129_v9  ;;  %v1922_v29 = vsel %vm170_vm3, %v11129_v9, %v11139_v41  ;;  %v1921_v50 = vsel %vm170_vm3, %v11128_v21, %v11138_v36 }
 0x6e9   :  { %v11147_v40 = vpop.permute.xlu1 %11146  ;;  %10055 = vmatprep.subr.bf16.mxu1 %v10054_v31  ;;  %v11144_v10 = vunpack.i.h.bf16 %v11142_v51  ;;  %v11143_v1 = vunpack.i.l.bf16 %v11142_v51  ;;  %v10062_v6 = vpack.c.bf16 %v1926_v59, %v1925_v5  ;;  %v10064_v3 = vpack.c.bf16 %v1922_v29, %v1921_v50 }
 0x6ea   :  { %v11149_v48 = vunpack.i.h.bf16 %v11147_v40  ;;  %v11148_v54 = vunpack.i.l.bf16 %v11147_v40 }
 0x6ec   :  { %10057 = vmatpush1.bf16.msra.mxu1 %v10056_v30  ;;  %v1927_v35 = vsel %vm170_vm3, %v11148_v54, %v11143_v1  ;;  %v1928_v17 = vsel %vm170_vm3, %v11149_v48, %v11144_v10  ;;  %v1924_v63 = vsel %vm170_vm3, %v11144_v10, %v11149_v48  ;;  %v1923_v26 = vsel %vm170_vm3, %v11143_v1, %v11148_v54 }
 0x6ed   :  { %10059 = vmatprep.subr.bf16.mxu1 %v10058_v47  ;;  %v10066_v8 = vpack.c.bf16 %v1928_v17, %v1927_v35  ;;  %v10068_v49 = vpack.c.bf16 %v1924_v63, %v1923_v26 }
 0x6f0   :  { %10061 = vmatpush1.bf16.msra.mxu1 %v10060_v55 }
 0x6f1   :  { %10063 = vmatprep.subr.bf16.mxu1 %v10062_v6 }
 0x6f4   :  { %10065 = vmatpush1.bf16.msra.mxu1 %v10064_v3 }
 0x6f5   :  { %10067 = vmatprep.subr.bf16.mxu1 %v10066_v8 }
 0x6f8   :  { %10069 = vmatpush1.bf16.msra.mxu1 %v10068_v49 }
 0x6fb   :  { %1994 = vmatmul.mubr.f32.vlgmr.msra.gmra.mrb[24].mxu1 %v15070_v23 }
 0x6fc   :  { %8329 = vmatprep.mubr.msk.f32.mxu1 %vm660_vm5, %v15076_v46 }
 0x6ff   :  { %2000 = vmatmul.mubr.f32.gmra.mrb[26].mxu1 %v15083_v61 }
 0x700   :  { %8330 = vmatprep.mubr.msk.f32.mxu1 %vm660_vm5, %v15089_v7 }
 0x703   :  { %2006 = vmatmul.mubr.f32.gmra.mrb[28].mxu1 %v15096_v18 }
 0x704   :  { %8331 = vmatprep.mubr.msk.f32.mxu1 %vm660_vm5, %v15102_v19 }
 0x707   :  { %2012 = vmatmul.mubr.f32.gmra.mrb[30].mxu1 %v15109_v12 }
 0x708   :  { %8332 = vmatprep.mubr.msk.f32.mxu1 %vm660_vm5, %v14939_v15  ;;  %v18503_v15 = vsub.s32 1, %v18501_v34 }
 0x70a   :  { %v2035_v53 = vrot.slane %v2026_v56, %v18503_v15 }
 0x7ce   :  { %v1995_v38 = vpop.f32.mrb[24].mxu1 }
 0x7cf   :  { %v1996_v11 = vadd.f32 %v1995_v38, %v13608_v39  ;;  %v1997_v0 = vpop.f32.mrb[25].mxu1 }
 0x7d0   :  { %v1998_v58 = vadd.f32 %v1997_v0, %v13608_v39 }
 0x7d1   :  { %v2018_v16 = vmax.f32 %v1996_v11, 0.0 }
 0x7d2   :  { %v2001_v62 = vpop.f32.mrb[26].mxu1  ;;  %v2019_v57 = vmax.f32 %v1998_v58, 0.0 }
 0x7d3   :  { %v2002_v13 = vadd.f32 %v2001_v62, %v13613_v20  ;;  %v2003_v27 = vpop.f32.mrb[27].mxu1  ;;  %v15125_v52 = vmul.f32 %v2031_v4, %v2018_v16 }
 0x7d4   :  { %v2004_v2 = vadd.f32 %v2003_v27, %v13613_v20  ;;  %v15130_v9 = vmul.f32 %v2035_v53, %v2019_v57 }
 0x7d5   :  { %v2020_v33 = vmax.f32 %v2002_v13, 0.0 }
 0x7d6   :  { %v2021_v37 = vmax.f32 %v2004_v2, 0.0  ;;  %v2007_v60 = vpop.f32.mrb[28].mxu1 }
 0x7d7   :  { %v15127_v14 = vmul.f32 %v2031_v4, %v2020_v33  ;;  %v2008_v45 = vadd.f32 %v2007_v60, %v13619_v42  ;;  %v2009_v31 = vpop.f32.mrb[29].mxu1 }
 0x7d8   :  { %v15132_v21 = vmul.f32 %v2035_v53, %v2021_v37  ;;  %v2010_v41 = vadd.f32 %v2009_v31, %v13619_v42 }
 0x7d9   :  { %v11150_v36 = vpack.i.bf16 %v15127_v14, %v15125_v52  ;;  %v2022_v51 = vmax.f32 %v2008_v45, 0.0  ;;  %v10088_v5 = vpack.c.bf16 %v15127_v14, %v15125_v52 }
 0x7da   :  { %v2013_v22 = vpop.f32.mrb[30].mxu1  ;;  %v11155_v32 = vpack.i.bf16 %v15132_v21, %v15130_v9  ;;  %v2023_v30 = vmax.f32 %v2010_v41, 0.0  ;;  %v10086_v47 = vpack.c.bf16 %v15132_v21, %v15130_v9 }
 0x7db   :  { %v2014_v40 = vadd.f32 %v2013_v22, %v13650_v44  ;;  %v2015_v25 = vpop.f32.mrb[31].mxu1  ;;  %11151 = vrot.lane.b32.xlu0 %v11150_v36, %s12880_s27  ;;  %v15147_v1 = vmul.f32 %v2031_v4, %v2022_v51 }
 0x7dc   :  { %v2016_v43 = vadd.f32 %v2015_v25, %v13650_v44  ;;  %11156 = vrot.lane.b32.xlu1 %v11155_v32, %s12880_s27  ;;  %v15151_v54 = vmul.f32 %v2035_v53, %v2023_v30 }
 0x7dd   :  { %v2024_v59 = vmax.f32 %v2014_v40, 0.0 }
 0x7de   :  { %v2025_v10 = vmax.f32 %v2016_v43, 0.0 }
 0x7df   :  { %v15149_v48 = vmul.f32 %v2031_v4, %v2024_v59 }
 0x7e0   :  { %v15153_v55 = vmul.f32 %v2035_v53, %v2025_v10 }
 0x7e1   :  { %v11160_v29 = vpack.i.bf16 %v15149_v48, %v15147_v1  ;;  %v10092_v35 = vpack.c.bf16 %v15149_v48, %v15147_v1 }
 0x7e2   :  { %v11170_v50 = vpack.i.bf16 %v15153_v55, %v15151_v54  ;;  %v10090_v6 = vpack.c.bf16 %v15153_v55, %v15151_v54 }
 0x7e3   :  { %11161 = vrot.lane.b32.xlu0 %v11160_v29, %s12880_s27 }
 0x7e4   :  { %11171 = vrot.lane.b32.xlu1 %v11170_v50, %s12880_s27 }
 0x7e7   :  { %11166 = vrot.lane.b32.xlu0 %v11150_v36, %s12881_s3 }
 0x7e8   :  { %11176 = vrot.lane.b32.xlu1 %v11155_v32, %s12881_s3 }
 0x7eb   :  { %11181 = vrot.lane.b32.xlu0 %v11160_v29, %s12881_s3 }
 0x7ec   :  { %11186 = vrot.lane.b32.xlu1 %v11170_v50, %s12881_s3 }
 0x7ef   :  { %11191 = vrot.lane.b32.xlu0 %v11150_v36, %s12882_s26 }
 0x7f0   :  { %11196 = vrot.lane.b32.xlu1 %v11155_v32, %s12882_s26 }
 0x7f3   :  { %11201 = vrot.lane.b32.xlu0 %v11160_v29, %s12882_s26 }
 0x7f4   :  { %11211 = vrot.lane.b32.xlu1 %v11170_v50, %s12882_s26 }
 0x7f7   :  { %11206 = vrot.lane.b32.xlu0 %v11150_v36, %s12884_s28 }
 0x7f8   :  { %11216 = vrot.lane.b32.xlu1 %v11155_v32, %s12884_s28 }
 0x7fb   :  { %11221 = vrot.lane.b32.xlu0 %v11160_v29, %s12884_s28 }
 0x7fc   :  { %11226 = vrot.lane.b32.xlu1 %v11170_v50, %s12884_s28 }
 0x84d   :  { %v11152_v17 = vpop.permute.xlu0 %11151 }
 0x84e   :  { %v11154_v3 = vunpack.i.h.bf16 %v11152_v17  ;;  %v11153_v63 = vunpack.i.l.bf16 %v11152_v17  ;;  %v11157_v26 = vpop.permute.xlu1 %11156 }
 0x84f   :  { %v11159_v8 = vunpack.i.h.bf16 %v11157_v26  ;;  %v11158_v49 = vunpack.i.l.bf16 %v11157_v26 }
 0x851   :  { %v2066_v38 = vsel %vm95_vm0, %v11158_v49, %v11153_v63  ;;  %v2067_v11 = vsel %vm95_vm0, %v11159_v8, %v11154_v3  ;;  %v2062_v0 = vsel %vm95_vm0, %v11153_v63, %v11158_v49  ;;  %v2063_v56 = vsel %vm95_vm0, %v11154_v3, %v11159_v8 }
 0x852   :  { %v10070_v58 = vpack.c.bf16 %v2063_v56, %v2062_v0  ;;  %v10072_v62 = vpack.c.bf16 %v2067_v11, %v2066_v38 }
 0x854   :  { %10071 = vmatprep.subr.bf16.mxu1 %v10070_v58 }
 0x855   :  { %v11162_v16 = vpop.permute.xlu0 %11161  ;;  %10073 = vmatpush1.bf16.msra.mxu1 %v10072_v62 }
 0x856   :  { %v11164_v34 = vunpack.i.h.bf16 %v11162_v16  ;;  %v11163_v28 = vunpack.i.l.bf16 %v11162_v16  ;;  %v11172_v4 = vpop.permute.xlu1 %11171 }
 0x857   :  { %v11174_v13 = vunpack.i.h.bf16 %v11172_v4  ;;  %v11173_v27 = vunpack.i.l.bf16 %v11172_v4 }
 0x859   :  { %v2068_v57 = vsel %vm95_vm0, %v11173_v27, %v11163_v28  ;;  %v2069_v15 = vsel %vm95_vm0, %v11174_v13, %v11164_v34  ;;  %v11167_v53 = vpop.permute.xlu0 %11166  ;;  %v2064_v2 = vsel %vm95_vm0, %v11163_v28, %v11173_v27  ;;  %v2065_v33 = vsel %vm95_vm0, %v11164_v34, %v11174_v13 }
 0x85a   :  { %v11169_v37 = vunpack.i.h.bf16 %v11167_v53  ;;  %v11168_v60 = vunpack.i.l.bf16 %v11167_v53  ;;  %v11177_v45 = vpop.permute.xlu1 %11176  ;;  %v10074_v31 = vpack.c.bf16 %v2065_v33, %v2064_v2  ;;  %v10076_v41 = vpack.c.bf16 %v2069_v15, %v2068_v57 }
 0x85b   :  { %v11179_v36 = vunpack.i.h.bf16 %v11177_v45  ;;  %v11178_v22 = vunpack.i.l.bf16 %v11177_v45 }
 0x85c   :  { %10075 = vmatprep.subr.bf16.mxu1 %v10074_v31 }
 0x85d   :  { %v2090_v32 = vsel %vm120_vm1, %v11178_v22, %v11168_v60  ;;  %v2091_v51 = vsel %vm120_vm1, %v11179_v36, %v11169_v37  ;;  %v11182_v40 = vpop.permute.xlu0 %11181  ;;  %10077 = vmatpush1.bf16.msra.mxu1 %v10076_v41  ;;  %v2086_v25 = vsel %vm120_vm1, %v11168_v60, %v11178_v22  ;;  %v2087_v30 = vsel %vm120_vm1, %v11169_v37, %v11179_v36 }
 0x85e   :  { %v11184_v43 = vunpack.i.h.bf16 %v11182_v40  ;;  %v11183_v59 = vunpack.i.l.bf16 %v11182_v40  ;;  %v11187_v10 = vpop.permute.xlu1 %11186  ;;  %v10078_v29 = vpack.c.bf16 %v2087_v30, %v2086_v25  ;;  %v10080_v50 = vpack.c.bf16 %v2091_v51, %v2090_v32 }
 0x85f   :  { %v11189_v17 = vunpack.i.h.bf16 %v11187_v10  ;;  %v11188_v3 = vunpack.i.l.bf16 %v11187_v10 }
 0x860   :  { %10079 = vmatprep.subr.bf16.mxu1 %v10078_v29 }
 0x861   :  { %v2092_v63 = vsel %vm120_vm1, %v11188_v3, %v11183_v59  ;;  %v2093_v26 = vsel %vm120_vm1, %v11189_v17, %v11184_v43  ;;  %v11192_v8 = vpop.permute.xlu0 %11191  ;;  %10081 = vmatpush1.bf16.msra.mxu1 %v10080_v50  ;;  %v2088_v49 = vsel %vm120_vm1, %v11183_v59, %v11188_v3  ;;  %v2089_v38 = vsel %vm120_vm1, %v11184_v43, %v11189_v17 }
 0x862   :  { %v11197_v11 = vpop.permute.xlu1 %11196  ;;  %v10082_v0 = vpack.c.bf16 %v2089_v38, %v2088_v49  ;;  %v10084_v56 = vpack.c.bf16 %v2093_v26, %v2092_v63  ;;  %v11194_v58 = vunpack.i.h.bf16 %v11192_v8  ;;  %v11193_v62 = vunpack.i.l.bf16 %v11192_v8  ;;  %v2255_v8 = vld [vmem:[%s18356_s18 + $0x80] sm:$0xff]  ;;  %v2241_v38 = vld [vmem:[%s18356_s18 + $0x10] sm:$0xff] }
 0x863   :  { %v11199_v16 = vunpack.i.h.bf16 %v11197_v11  ;;  %v11198_v34 = vunpack.i.l.bf16 %v11197_v11  ;;  %v2242_v11 = vld [vmem:[%s18356_s18 + $0x18] sm:$0xff] }
 0x864   :  { %10083 = vmatprep.subr.bf16.mxu1 %v10082_v0  ;;  %v2259_v0 = vld [vmem:[%s18356_s18 + $0xa0] sm:$0xff] }
 0x865   :  { %v11202_v28 = vpop.permute.xlu0 %11201  ;;  %10085 = vmatpush1.bf16.msra.mxu1 %v10084_v56  ;;  %v2114_v13 = vsel %vm145_vm2, %v11198_v34, %v11193_v62  ;;  %v2115_v27 = vsel %vm145_vm2, %v11199_v16, %v11194_v58  ;;  %v2110_v9 = vsel %vm145_vm2, %v11193_v62, %v11198_v34  ;;  %v2111_v21 = vsel %vm145_vm2, %v11194_v58, %v11199_v16  ;;  %v2260_v56 = vld [vmem:[%s18356_s18 + $0xa8] sm:$0xff]  ;;  %v2243_v16 = vld [vmem:[%s18356_s18 + $0x20] sm:$0xff] }
 0x866   :  { %v11212_v4 = vpop.permute.xlu1 %11211  ;;  %10087 = vmatprep.subr.bf16.mxu1 %v10086_v47  ;;  %v11204_v57 = vunpack.i.h.bf16 %v11202_v28  ;;  %v11203_v15 = vunpack.i.l.bf16 %v11202_v28  ;;  %v10094_v47 = vpack.c.bf16 %v2115_v27, %v2114_v13  ;;  %v10116_v58 = vpack.c.bf16 %v2242_v11, %v2241_v38  ;;  %v2244_v34 = vld [vmem:[%s18356_s18 + $0x28] sm:$0xff]  ;;  %v2261_v28 = vld [vmem:[%s18356_s18 + $0xb0] sm:$0xff] }
 0x867   :  { %v11214_v53 = vunpack.i.h.bf16 %v11212_v4  ;;  %v11213_v2 = vunpack.i.l.bf16 %v11212_v4  ;;  %v10118_v62 = vpack.c.bf16 %v2260_v56, %v2259_v0  ;;  %v2262_v4 = vld [vmem:[%s18356_s18 + $0xb8] sm:$0xff]  ;;  %v10120_v13 = vpack.c.bf16 %v2244_v34, %v2243_v16 }
 0x868   :  { %v10122_v27 = vpack.c.bf16 %v2262_v4, %v2261_v28 }
 0x869   :  { %v11207_v33 = vpop.permute.xlu0 %11206  ;;  %10089 = vmatpush1.bf16.msra.mxu1 %v10088_v5  ;;  %v2116_v52 = vsel %vm145_vm2, %v11213_v2, %v11203_v15  ;;  %v2117_v14 = vsel %vm145_vm2, %v11214_v53, %v11204_v57  ;;  %v2112_v55 = vsel %vm145_vm2, %v11203_v15, %v11213_v2  ;;  %v2113_v36 = vsel %vm145_vm2, %v11204_v57, %v11214_v53  ;;  %v2245_v57 = vld [vmem:[%s18356_s18 + $0x30] sm:$0xff]  ;;  %v2246_v15 = vld [vmem:[%s18356_s18 + $0x38] sm:$0xff]  ;;  %v2263_v53 = vld [vmem:[%s18356_s18 + $0xc0] sm:$0xff] }
 0x86a   :  { %v11217_v37 = vpop.permute.xlu1 %11216  ;;  %10091 = vmatprep.subr.bf16.mxu1 %v10090_v6  ;;  %v11209_v60 = vunpack.i.h.bf16 %v11207_v33  ;;  %v11208_v45 = vunpack.i.l.bf16 %v11207_v33  ;;  %v10096_v6 = vpack.c.bf16 %v2111_v21, %v2110_v9  ;;  %v10098_v22 = vpack.c.bf16 %v2117_v14, %v2116_v52  ;;  %v2264_v2 = vld [vmem:[%s18356_s18 + $0xc8] sm:$0xff]  ;;  %v2247_v9 = vld [vmem:[%s18356_s18 + $0x40] sm:$0xff]  ;;  %v2250_v52 = vld [vmem:[%s18356_s18 + $0x58] sm:$0xff] }
 0x86b   :  { %v11219_v31 = vunpack.i.h.bf16 %v11217_v37  ;;  %v11218_v41 = vunpack.i.l.bf16 %v11217_v37  ;;  %v10100_v25 = vpack.c.bf16 %v2113_v36, %v2112_v55  ;;  %v10124_v33 = vpack.c.bf16 %v2246_v15, %v2245_v57  ;;  %v2248_v21 = vld [vmem:[%s18356_s18 + $0x48] sm:$0xff]  ;;  %v2267_v36 = vld [vmem:[%s18356_s18 + $0xe0] sm:$0xff] }
 0x86c   :  { %v10126_v37 = vpack.c.bf16 %v2264_v2, %v2263_v53 }
 0x86d   :  { %10093 = vmatpush1.bf16.msra.mxu1 %v10092_v35  ;;  %v11222_v5 = vpop.permute.xlu0 %11221  ;;  %v2138_v1 = vsel %vm170_vm3, %v11218_v41, %v11208_v45  ;;  %v2139_v48 = vsel %vm170_vm3, %v11219_v31, %v11209_v60  ;;  %v2134_v30 = vsel %vm170_vm3, %v11208_v45, %v11218_v41  ;;  %v2135_v43 = vsel %vm170_vm3, %v11209_v60, %v11219_v31  ;;  %v2265_v60 = vld [vmem:[%s18356_s18 + $0xd0] sm:$0xff]  ;;  %v2266_v45 = vld [vmem:[%s18356_s18 + $0xd8] sm:$0xff] }
 0x86e   :  { %v11227_v54 = vpop.permute.xlu1 %11226  ;;  %10095 = vmatprep.subr.bf16.mxu1 %v10094_v47  ;;  %v11224_v35 = vunpack.i.h.bf16 %v11222_v5  ;;  %v11223_v32 = vunpack.i.l.bf16 %v11222_v5  ;;  %v10102_v59 = vpack.c.bf16 %v2139_v48, %v2138_v1  ;;  %v10104_v50 = vpack.c.bf16 %v2135_v43, %v2134_v30  ;;  %v2249_v31 = vld [vmem:[%s18356_s18 + $0x50] sm:$0xff]  ;;  %v2251_v1 = vld [vmem:[%s18356_s18 + $0x60] sm:$0xff] }
 0x86f   :  { %v11229_v51 = vunpack.i.h.bf16 %v11227_v54  ;;  %v11228_v40 = vunpack.i.l.bf16 %v11227_v54  ;;  %v10128_v47 = vpack.c.bf16 %v2248_v21, %v2247_v9  ;;  %v10130_v41 = vpack.c.bf16 %v2266_v45, %v2265_v60 }
 0x870   :  { %v10132_v5 = vpack.c.bf16 %v2250_v52, %v2249_v31 }
 0x871   :  { %10097 = vmatpush1.bf16.msra.mxu1 %v10096_v6  ;;  %v2140_v10 = vsel %vm170_vm3, %v11228_v40, %v11223_v32  ;;  %v2141_v29 = vsel %vm170_vm3, %v11229_v51, %v11224_v35  ;;  %v2136_v17 = vsel %vm170_vm3, %v11223_v32, %v11228_v40  ;;  %v2137_v3 = vsel %vm170_vm3, %v11224_v35, %v11229_v51  ;;  %v2252_v32 = vld [vmem:[%s18356_s18 + $0x68] sm:$0xff] }
 0x872   :  { %10099 = vmatprep.subr.bf16.mxu1 %v10098_v22  ;;  %v10106_v63 = vpack.c.bf16 %v2141_v29, %v2140_v10  ;;  %v10108_v26 = vpack.c.bf16 %v2137_v3, %v2136_v17  ;;  %v2268_v22 = vld [vmem:[%s18356_s18 + $0xe8] sm:$0xff]  ;;  %v2269_v29 = vld [vmem:[%s18356_s18 + $0xf0] sm:$0xff] }
 0x873   :  { %v10134_v35 = vpack.c.bf16 %v2268_v22, %v2267_v36  ;;  %v2253_v17 = vld [vmem:[%s18356_s18 + $0x70] sm:$0xff] }
 0x875   :  { %10101 = vmatpush1.bf16.msra.mxu1 %v10100_v25  ;;  %v10136_v25 = vpack.c.bf16 %v2252_v32, %v2251_v1 }
 0x876   :  { %10103 = vmatprep.subr.bf16.mxu1 %v10102_v59 }
 0x879   :  { %10105 = vmatpush1.bf16.msra.mxu1 %v10104_v50  ;;  %v2270_v50 = vld [vmem:[%s18356_s18 + $0xf8] sm:$0xff] }
 0x87a   :  { %10107 = vmatprep.subr.bf16.mxu1 %v10106_v63  ;;  %v10138_v63 = vpack.c.bf16 %v2270_v50, %v2269_v29 }
 0x87d   :  { %10109 = vmatpush1.bf16.msra.mxu1 %v10108_v26  ;;  %v2254_v26 = vld [vmem:[%s18356_s18 + $0x78] sm:$0xff] }
 0x880   :  { %2207 = vmatmul.mubr.f32.vlgmr.msra.gmra.mrb[32].mxu1 %v15070_v23  ;;  %v2256_v23 = vld [vmem:[%s18356_s18 + $0x88] sm:$0xff] }
 0x881   :  { %8333 = vmatprep.mubr.msk.f32.mxu1 %vm660_vm5, %v15076_v46  ;;  %v2239_v46 = vld [vmem:[%s18356_s18] sm:$0xff] }
 0x884   :  { %2213 = vmatmul.mubr.f32.gmra.mrb[34].mxu1 %v15083_v61  ;;  %v10110_v61 = vpack.c.bf16 %v2256_v23, %v2255_v8 }
 0x885   :  { %8334 = vmatprep.mubr.msk.f32.mxu1 %vm660_vm5, %v15089_v7  ;;  %v2240_v7 = vld [vmem:[%s18356_s18 + $0x8] sm:$0xff] }
 0x886   :  { %10111 = vmatprep.subr.bf16.mxu1 %v10110_v61 }
 0x888   :  { %2219 = vmatmul.mubr.f32.gmra.mrb[36].mxu1 %v15096_v18  ;;  %v2257_v18 = vld [vmem:[%s18356_s18 + $0x90] sm:$0xff] }
 0x889   :  { %8335 = vmatprep.mubr.msk.f32.mxu1 %vm660_vm5, %v15102_v19  ;;  %v2258_v19 = vld [vmem:[%s18356_s18 + $0x98] sm:$0xff]  ;;  %s18504_s18 = smov 124  }
 0x88a   :  { %v10114_v49 = vpack.c.bf16 %v2258_v19, %v2257_v18 }
 0x88c   :  { %2225 = vmatmul.mubr.f32.gmra.mrb[38].mxu1 %v15109_v12  ;;  %v10112_v12 = vpack.c.bf16 %v2240_v7, %v2239_v46  ;;  %v10140_v46 = vpack.c.bf16 %v2254_v26, %v2253_v17 }
 0x88e   :  { %10113 = vmatpush3.bf16.msra.mxu1 %v10112_v12 }
 0x88f   :  { %10115 = vmatprep.subr.bf16.mxu1 %v10114_v49 }
 0x892   :  { %10117 = vmatpush3.bf16.msra.mxu1 %v10116_v58 }
 0x893   :  { %10119 = vmatprep.subr.bf16.mxu1 %v10118_v62 }
 0x896   :  { %10121 = vmatpush3.bf16.msra.mxu1 %v10120_v13 }
 0x897   :  { %10123 = vmatprep.subr.bf16.mxu1 %v10122_v27 }
 0x89a   :  { %10125 = vmatpush3.bf16.msra.mxu1 %v10124_v33 }
 0x89b   :  { %10127 = vmatprep.subr.bf16.mxu1 %v10126_v37 }
 0x89e   :  { %10129 = vmatpush3.bf16.msra.mxu1 %v10128_v47 }
 0x89f   :  { %10131 = vmatprep.subr.bf16.mxu1 %v10130_v41 }
 0x8a2   :  { %10133 = vmatpush3.bf16.msra.mxu1 %v10132_v5 }
 0x8a3   :  { %10135 = vmatprep.subr.bf16.mxu1 %v10134_v35 }
 0x8a6   :  { %10137 = vmatpush3.bf16.msra.mxu1 %v10136_v25 }
 0x8a7   :  { %10139 = vmatprep.subr.bf16.mxu1 %v10138_v63 }
 0x8aa   :  { %10141 = vmatpush3.bf16.msra.mxu1 %v10140_v46 }
 0x953   :  { %v2208_v14 = vpop.f32.mrb[32].mxu1 }
 0x954   :  { %v15336_v54 = vadd.f32 %v2208_v14, %v13608_v39  ;;  %v2210_v55 = vpop.f32.mrb[33].mxu1 }
 0x955   :  { %v15339_v6 = vadd.f32 %v2210_v55, %v13608_v39 }
 0x956   :  { %v2231_v48 = vmax.f32 %v15336_v54, 0.0 }
 0x957   :  { %v2232_v51 = vmax.f32 %v15339_v6, 0.0  ;;  %v2214_v40 = vpop.f32.mrb[34].mxu1 }
 0x958   :  { %v15356_v30 = vadd.f32 %v2214_v40, %v13613_v20  ;;  %v2216_v43 = vpop.f32.mrb[35].mxu1 }
 0x959   :  { %v15359_v59 = vadd.f32 %v2216_v43, %v13613_v20  ;;  %v11235_v10 = vpack.i.bf16 %v2232_v51, %v2231_v48 }
 0x95a   :  { %v2233_v3 = vmax.f32 %v15356_v30, 0.0 }
 0x95b   :  { %v2234_v8 = vmax.f32 %v15359_v59, 0.0  ;;  %v2220_v23 = vpop.f32.mrb[36].mxu1  ;;  %11236 = vrot.lane.b32.xlu1 %v11235_v10, %s12884_s28  ;;  %11231 = vrot.lane.b32.xlu0 %v11235_v10, %s12882_s26 }
 0x95c   :  { %v2222_v61 = vpop.f32.mrb[37].mxu1  ;;  %v15378_v7 = vadd.f32 %v2220_v23, %v13619_v42 }
 0x95d   :  { %v15381_v18 = vadd.f32 %v2222_v61, %v13619_v42  ;;  %v11250_v19 = vpack.i.bf16 %v2234_v8, %v2233_v3 }
 0x95e   :  { %v2235_v38 = vmax.f32 %v15378_v7, 0.0 }
 0x95f   :  { %v2226_v12 = vpop.f32.mrb[38].mxu1  ;;  %11241 = vrot.lane.b32.xlu1 %v11235_v10, %s12886_s1  ;;  %11251 = vrot.lane.b32.xlu0 %v11250_v19, %s12882_s26  ;;  %v2236_v11 = vmax.f32 %v15381_v18, 0.0 }
 0x960   :  { %v2228_v49 = vpop.f32.mrb[39].mxu1  ;;  %v15394_v0 = vadd.f32 %v2226_v12, %v13650_v44 }
 0x961   :  { %v15397_v56 = vadd.f32 %v2228_v49, %v13650_v44  ;;  %v11270_v58 = vpack.i.bf16 %v2236_v11, %v2235_v38 }
 0x962   :  { %v2237_v62 = vmax.f32 %v15394_v0, 0.0 }
 0x963   :  { %11246 = vrot.lane.b32.xlu1 %v11235_v10, %s18504_s18  ;;  %11256 = vrot.lane.b32.xlu0 %v11250_v19, %s12884_s28  ;;  %v2238_v16 = vmax.f32 %v15397_v56, 0.0 }
 0x965   :  { %v11290_v34 = vpack.i.bf16 %v2238_v16, %v2237_v62 }
 0x967   :  { %11261 = vrot.lane.b32.xlu1 %v11250_v19, %s12886_s1  ;;  %11271 = vrot.lane.b32.xlu0 %v11270_v58, %s12882_s26 }
 0x96b   :  { %11266 = vrot.lane.b32.xlu1 %v11250_v19, %s18504_s18  ;;  %11276 = vrot.lane.b32.xlu0 %v11270_v58, %s12884_s28 }
 0x96f   :  { %11281 = vrot.lane.b32.xlu1 %v11270_v58, %s12886_s1  ;;  %11291 = vrot.lane.b32.xlu0 %v11290_v34, %s12882_s26 }
 0x973   :  { %11286 = vrot.lane.b32.xlu1 %v11270_v58, %s18504_s18  ;;  %11296 = vrot.lane.b32.xlu0 %v11290_v34, %s12884_s28 }
 0x977   :  { %11306 = vrot.lane.b32.xlu1 %v11290_v34, %s18504_s18  ;;  %11301 = vrot.lane.b32.xlu0 %v11290_v34, %s12886_s1 }
 0x9cd   :  { %v11237_v28 = vpop.permute.xlu1 %11236  ;;  %v11232_v4 = vpop.permute.xlu0 %11231 }
 0x9ce   :  { %v11239_v13 = vunpack.i.h.bf16 %v11237_v28  ;;  %v11238_v27 = vunpack.i.l.bf16 %v11237_v28  ;;  %v11234_v57 = vunpack.i.h.bf16 %v11232_v4  ;;  %v11233_v15 = vunpack.i.l.bf16 %v11232_v4 }
 0x9d0   :  { %v2287_v53 = vsel %vm145_vm2, %v11233_v15, %v11234_v57  ;;  %v2291_v2 = vsel %vm145_vm2, %v11234_v57, %v11233_v15  ;;  %v2319_v47 = vsel %vm170_vm3, %v11238_v27, %v11239_v13  ;;  %v2323_v60 = vsel %vm170_vm3, %v11239_v13, %v11238_v27 }
 0x9d1   :  { %v2295_v33 = vmax.f32 %v2231_v48, %v2287_v53  ;;  %v2296_v37 = vmax.f32 %v2232_v51, %v2291_v2  ;;  %v11242_v9 = vpop.permute.xlu1 %11241  ;;  %v11252_v21 = vpop.permute.xlu0 %11251 }
 0x9d2   :  { %v11244_v45 = vunpack.i.h.bf16 %v11242_v9  ;;  %v11243_v31 = vunpack.i.l.bf16 %v11242_v9  ;;  %v11254_v5 = vunpack.i.h.bf16 %v11252_v21  ;;  %v11253_v54 = vunpack.i.l.bf16 %v11252_v21 }
 0x9d3   :  { %v2327_v41 = vmax.f32 %v2295_v33, %v2319_v47  ;;  %v2328_v52 = vmax.f32 %v2296_v37, %v2323_v60 }
 0x9d4   :  { %v2351_v14 = vsel %vm1557_vm6, %v11243_v31, %v11244_v45  ;;  %v2355_v55 = vsel %vm1557_vm6, %v11244_v45, %v11243_v31  ;;  %v2288_v40 = vsel %vm145_vm2, %v11253_v54, %v11254_v5  ;;  %v2292_v25 = vsel %vm145_vm2, %v11254_v5, %v11253_v54 }
 0x9d5   :  { %v11247_v6 = vpop.permute.xlu1 %11246  ;;  %v11257_v36 = vpop.permute.xlu0 %11256  ;;  %v2359_v32 = vmax.f32 %v2327_v41, %v2351_v14  ;;  %v2360_v51 = vmax.f32 %v2328_v52, %v2355_v55  ;;  %v2297_v19 = vmax.f32 %v2233_v3, %v2288_v40  ;;  %v2298_v12 = vmax.f32 %v2234_v8, %v2292_v25 }
 0x9d6   :  { %v11249_v22 = vunpack.i.h.bf16 %v11247_v6  ;;  %v11248_v1 = vunpack.i.l.bf16 %v11247_v6  ;;  %v11259_v48 = vunpack.i.h.bf16 %v11257_v36  ;;  %v11258_v35 = vunpack.i.l.bf16 %v11257_v36 }
 0x9d8   :  { %v2383_v43 = vsel %vm1622_vm7, %v11248_v1, %v11249_v22  ;;  %v2387_v10 = vsel %vm1622_vm7, %v11249_v22, %v11248_v1  ;;  %v2320_v26 = vsel %vm170_vm3, %v11258_v35, %v11259_v48  ;;  %v2324_v23 = vsel %vm170_vm3, %v11259_v48, %v11258_v35 }
 0x9d9   :  { %v2391_v29 = vmax.f32 %v2359_v32, %v2383_v43  ;;  %v11262_v50 = vpop.permute.xlu1 %11261  ;;  %v11272_v17 = vpop.permute.xlu0 %11271  ;;  %v2392_v63 = vmax.f32 %v2360_v51, %v2387_v10  ;;  %v2330_v27 = vmax.f32 %v2298_v12, %v2324_v23  ;;  %v2329_v57 = vmax.f32 %v2297_v19, %v2320_v26 }
 0x9da   :  { %v11264_v46 = vunpack.i.h.bf16 %v11262_v50  ;;  %v11263_v61 = vunpack.i.l.bf16 %v11262_v50  ;;  %v11274_v49 = vunpack.i.h.bf16 %v11272_v17  ;;  %v11273_v58 = vunpack.i.l.bf16 %v11272_v17 }
 0x9db   :  { %2463 = vmatprep.mubr.f32.mxu1 %v2392_v63 }
 0x9dc   :  { %2464 = vmatmul.mubr.f32.vlgmr.msra.gmra.mrb[40].mxu1 %v2391_v29  ;;  %v2356_v34 = vsel %vm1557_vm6, %v11264_v46, %v11263_v61  ;;  %v2352_v28 = vsel %vm1557_vm6, %v11263_v61, %v11264_v46  ;;  %v2289_v2 = vsel %vm145_vm2, %v11273_v58, %v11274_v49  ;;  %v2293_v33 = vsel %vm145_vm2, %v11274_v49, %v11273_v58 }
 0x9dd   :  { %v11267_v4 = vpop.permute.xlu1 %11266  ;;  %v11277_v13 = vpop.permute.xlu0 %11276  ;;  %v2362_v59 = vmax.f32 %v2330_v27, %v2356_v34  ;;  %v2361_v8 = vmax.f32 %v2329_v57, %v2352_v28  ;;  %v2299_v55 = vmax.f32 %v2235_v38, %v2289_v2  ;;  %v2300_v6 = vmax.f32 %v2236_v11, %v2293_v33 }
 0x9de   :  { %v11269_v15 = vunpack.i.h.bf16 %v11267_v4  ;;  %v11268_v30 = vunpack.i.l.bf16 %v11267_v4  ;;  %v11279_v3 = vunpack.i.h.bf16 %v11277_v13  ;;  %v11278_v53 = vunpack.i.l.bf16 %v11277_v13 }
 0x9e0   :  { %v2388_v37 = vsel %vm1622_vm7, %v11269_v15, %v11268_v30  ;;  %v2384_v9 = vsel %vm1622_vm7, %v11268_v30, %v11269_v15  ;;  %v2321_v21 = vsel %vm170_vm3, %v11278_v53, %v11279_v3  ;;  %v2325_v47 = vsel %vm170_vm3, %v11279_v3, %v11278_v53  ;;  %v15498_v30 = vld [vmem:[%s18455_s25 + $0x8] sm:$0xff] }
 0x9e1   :  { %v11282_v60 = vpop.permute.xlu1 %11281  ;;  %v11292_v45 = vpop.permute.xlu0 %11291  ;;  %v2394_v31 = vmax.f32 %v2362_v59, %v2388_v37  ;;  %v2393_v41 = vmax.f32 %v2361_v8, %v2384_v9  ;;  %v2332_v38 = vmax.f32 %v2300_v6, %v2325_v47  ;;  %v2331_v32 = vmax.f32 %v2299_v55, %v2321_v21 }
 0x9e2   :  { %v11284_v52 = vunpack.i.h.bf16 %v11282_v60  ;;  %v11283_v14 = vunpack.i.l.bf16 %v11282_v60  ;;  %v11294_v5 = vunpack.i.h.bf16 %v11292_v45  ;;  %v11293_v54 = vunpack.i.l.bf16 %v11292_v45 }
 0x9e3   :  { %2468 = vmatprep.mubr.f32.mxu1 %v2394_v31  ;;  %v12888_v8 = vmov 0.0|0.0  }
 0x9e4   :  { %2469 = vmatmul.mubr.f32.gmra.mrb[42].mxu1 %v2393_v41  ;;  %v2357_v36 = vsel %vm1557_vm6, %v11284_v52, %v11283_v14  ;;  %v2353_v22 = vsel %vm1557_vm6, %v11283_v14, %v11284_v52  ;;  %v2290_v1 = vsel %vm145_vm2, %v11293_v54, %v11294_v5  ;;  %v2294_v48 = vsel %vm145_vm2, %v11294_v5, %v11293_v54 }
 0x9e5   :  { %v11287_v35 = vpop.permute.xlu1 %11286  ;;  %v11297_v7 = vpop.permute.xlu0 %11296  ;;  %v2364_v25 = vmax.f32 %v2332_v38, %v2357_v36  ;;  %v2363_v43 = vmax.f32 %v2331_v32, %v2353_v22  ;;  %v2301_v63 = vmax.f32 %v2237_v62, %v2290_v1  ;;  %v2302_v26 = vmax.f32 %v2238_v16, %v2294_v48  ;;  %10142 = vmatprep.subr.bf16.mxu1 %v12888_v8 }
 0x9e6   :  { %v11289_v18 = vunpack.i.h.bf16 %v11287_v35  ;;  %v11288_v11 = vunpack.i.l.bf16 %v11287_v35  ;;  %v11299_v51 = vunpack.i.h.bf16 %v11297_v7  ;;  %v11298_v40 = vunpack.i.l.bf16 %v11297_v7  ;;  %10172 = vmatprep.subr.bf16.mxu0 %v12888_v8 }
 0x9e8   :  { %v2322_v10 = vsel %vm170_vm3, %v11298_v40, %v11299_v51  ;;  %v2326_v29 = vsel %vm170_vm3, %v11299_v51, %v11298_v40  ;;  %v2389_v50 = vsel %vm1622_vm7, %v11289_v18, %v11288_v11  ;;  %v2385_v17 = vsel %vm1622_vm7, %v11288_v11, %v11289_v18 }
 0x9e9   :  { %v11307_v23 = vpop.permute.xlu1 %11306  ;;  %v11302_v46 = vpop.permute.xlu0 %11301  ;;  %v2396_v61 = vmax.f32 %v2364_v25, %v2389_v50  ;;  %v2395_v19 = vmax.f32 %v2363_v43, %v2385_v17  ;;  %v2334_v28 = vmax.f32 %v2302_v26, %v2326_v29  ;;  %v2333_v4 = vmax.f32 %v2301_v63, %v2322_v10 }
 0x9ea   :  { %v11309_v12 = vunpack.i.h.bf16 %v11307_v23  ;;  %v11308_v49 = vunpack.i.l.bf16 %v11307_v23  ;;  %v11304_v58 = vunpack.i.h.bf16 %v11302_v46  ;;  %v11303_v34 = vunpack.i.l.bf16 %v11302_v46 }
 0x9eb   :  { %2473 = vmatprep.mubr.f32.mxu1 %v2396_v61 }
 0x9ec   :  { %2474 = vmatmul.mubr.f32.gmra.mrb[44].mxu1 %v2395_v19  ;;  %v2358_v13 = vsel %vm1557_vm6, %v11304_v58, %v11303_v34  ;;  %v2354_v0 = vsel %vm1557_vm6, %v11303_v34, %v11304_v58  ;;  %v2390_v16 = vsel %vm1622_vm7, %v11309_v12, %v11308_v49  ;;  %v2386_v27 = vsel %vm1622_vm7, %v11308_v49, %v11309_v12 }
 0x9ed   :  { %v2366_v56 = vmax.f32 %v2334_v28, %v2358_v13  ;;  %v2365_v62 = vmax.f32 %v2333_v4, %v2354_v0  ;;  %v15524_v28 = vld [vmem:[%s18455_s25] sm:$0xff]  ;;  %v15530_v4 = vld [vmem:[%s18455_s25 + $0x18] sm:$0xff]  ;;  %v15537_v13 = vld [vmem:[%s18455_s25 + $0x10] sm:$0xff] }
 0x9ee   :  { %v15543_v0 = vld [vmem:[%s18455_s25 + $0x28] sm:$0xff] }
 0x9ef   :  { %v2398_v57 = vmax.f32 %v2366_v56, %v2390_v16  ;;  %v2397_v15 = vmax.f32 %v2365_v62, %v2386_v27  ;;  %v15550_v56 = vld [vmem:[%s18455_s25 + $0x20] sm:$0xff]  ;;  %v15556_v62 = vld [vmem:[%s18455_s25 + $0x38] sm:$0xff]  ;;  %v15563_v16 = vld [vmem:[%s18455_s25 + $0x30] sm:$0xff] }
 0x9f1   :  { %2478 = vmatprep.mubr.f32.mxu1 %v2398_v57 }
 0x9f2   :  { %2479 = vmatmul.mubr.f32.gmra.mrb[46].mxu1 %v2397_v15 }
 0x9f3   :  { %8336 = vmatprep.mubr.msk.f32.mxu1 %vm660_vm5, %v15498_v30 }
 0xaaf   :  { %v8615_v3 = vpop.f32.mrb[40].mxu1 }
 0xab0   :  { %v8616_v53 = vpop.f32.mrb[41].mxu1 }
 0xab1   :  { %v8617_v59 = vadd.f32 %v8616_v53, %v8615_v3 }
 0xab7   :  { %v8618_v24 = vpop.f32.mrb[42].mxu1 }
 0xab8   :  { %v8619_v2 = vpop.f32.mrb[43].mxu1 }
 0xab9   :  { %v8620_v33 = vadd.f32 %v8619_v2, %v8618_v24  ;;  %v8340_v2 = vld [vmem:[%s18353_s15] ss:$0 sm:$0xff] }
 0xabb   :  { %v11310_v37 = vpack.i.bf16 %v8620_v33, %v8617_v59  ;;  %v10155_v9 = vpack.c.bf16 %v8620_v33, %v8617_v59 }
 0xabd   :  { %11311 = vrot.lane.b32.xlu0 %v11310_v37, %s12880_s27 }
 0xabf   :  { %v8621_v21 = vpop.f32.mrb[44].mxu1 }
 0xac0   :  { %v8622_v47 = vpop.f32.mrb[45].mxu1 }
 0xac1   :  { %v8623_v60 = vadd.f32 %v8622_v47, %v8621_v21  ;;  %11321 = vrot.lane.b32.xlu0 %v11310_v37, %s12881_s3 }
 0xac5   :  { %v8624_v45 = vpop.f32.mrb[46].mxu1  ;;  %11331 = vrot.lane.b32.xlu0 %v11310_v37, %s12882_s26 }
 0xac6   :  { %v8625_v31 = vpop.f32.mrb[47].mxu1 }
 0xac7   :  { %v8626_v41 = vadd.f32 %v8625_v31, %v8624_v45 }
 0xac9   :  { %11341 = vrot.lane.b32.xlu0 %v11310_v37, %s12884_s28  ;;  %v11315_v52 = vpack.i.bf16 %v8626_v41, %v8623_v60  ;;  %v10158_v14 = vpack.c.bf16 %v8626_v41, %v8623_v60 }
 0xacb   :  { %11316 = vrot.lane.b32.xlu1 %v11315_v52, %s12880_s27 }
 0xacf   :  { %11326 = vrot.lane.b32.xlu1 %v11315_v52, %s12881_s3 }
 0xad3   :  { %11336 = vrot.lane.b32.xlu1 %v11315_v52, %s12882_s26 }
 0xad7   :  { %11346 = vrot.lane.b32.xlu1 %v11315_v52, %s12884_s28 }
 0xb2f   :  { %v11312_v5 = vpop.permute.xlu0 %11311 }
 0xb30   :  { %v11314_v54 = vunpack.i.h.bf16 %v11312_v5  ;;  %v11313_v55 = vunpack.i.l.bf16 %v11312_v5 }
 0xb32   :  { %v10143_v6 = vpack.c.bf16 %v11314_v54, %v11313_v55 }
 0xb33   :  { %v11322_v36 = vpop.permute.xlu0 %11321 }
 0xb34   :  { %10144 = vmatpush1.bf16.msra.mxu1 %v10143_v6  ;;  %v11324_v35 = vunpack.i.h.bf16 %v11322_v36  ;;  %v11323_v7 = vunpack.i.l.bf16 %v11322_v36 }
 0xb35   :  { %10145 = vmatprep.subr.bf16.mxu1 %v12888_v8 }
 0xb36   :  { %v10149_v18 = vpack.c.bf16 %v11324_v35, %v11323_v7 }
 0xb37   :  { %v11332_v25 = vpop.permute.xlu0 %11331 }
 0xb38   :  { %v11334_v43 = vunpack.i.h.bf16 %v11332_v25  ;;  %v11333_v10 = vunpack.i.l.bf16 %v11332_v25 }
 0xb3a   :  { %v10161_v50 = vpack.c.bf16 %v11334_v43, %v11333_v10 }
 0xb3b   :  { %v11342_v26 = vpop.permute.xlu0 %11341 }
 0xb3c   :  { %v11344_v23 = vunpack.i.h.bf16 %v11342_v26  ;;  %v11343_v46 = vunpack.i.l.bf16 %v11342_v26 }
 0xb3d   :  { %v11317_v22 = vpop.permute.xlu1 %11316 }
 0xb3e   :  { %v11319_v1 = vunpack.i.h.bf16 %v11317_v22  ;;  %v11318_v48 = vunpack.i.l.bf16 %v11317_v22  ;;  %v10167_v12 = vpack.c.bf16 %v11344_v23, %v11343_v46 }
 0xb40   :  { %v10146_v38 = vpack.c.bf16 %v11319_v1, %v11318_v48 }
 0xb41   :  { %v11327_v32 = vpop.permute.xlu1 %11326 }
 0xb42   :  { %10147 = vmatpush1.bf16.msra.mxu1 %v10146_v38  ;;  %v11329_v11 = vunpack.i.h.bf16 %v11327_v32  ;;  %v11328_v51 = vunpack.i.l.bf16 %v11327_v32 }
 0xb43   :  { %10148 = vmatprep.subr.bf16.mxu1 %v12888_v8 }
 0xb44   :  { %v10152_v40 = vpack.c.bf16 %v11329_v11, %v11328_v51 }
 0xb45   :  { %v11337_v29 = vpop.permute.xlu1 %11336 }
 0xb46   :  { %10150 = vmatpush1.bf16.msra.mxu1 %v10149_v18  ;;  %v11339_v17 = vunpack.i.h.bf16 %v11337_v29  ;;  %v11338_v63 = vunpack.i.l.bf16 %v11337_v29 }
 0xb47   :  { %10151 = vmatprep.subr.bf16.mxu1 %v12888_v8 }
 0xb48   :  { %v10164_v61 = vpack.c.bf16 %v11339_v17, %v11338_v63 }
 0xb49   :  { %v11347_v19 = vpop.permute.xlu1 %11346 }
 0xb4a   :  { %10153 = vmatpush1.bf16.msra.mxu1 %v10152_v40  ;;  %v11349_v49 = vunpack.i.h.bf16 %v11347_v19  ;;  %v11348_v58 = vunpack.i.l.bf16 %v11347_v19 }
 0xb4b   :  { %10154 = vmatprep.subr.bf16.mxu1 %v12888_v8 }
 0xb4c   :  { %v10170_v34 = vpack.c.bf16 %v11349_v49, %v11348_v58 }
 0xb4e   :  { %10156 = vmatpush1.bf16.msra.mxu1 %v10155_v9 }
 0xb4f   :  { %10157 = vmatprep.subr.bf16.mxu1 %v12888_v8 }
 0xb52   :  { %10159 = vmatpush1.bf16.msra.mxu1 %v10158_v14 }
 0xb53   :  { %10160 = vmatprep.subr.bf16.mxu1 %v12888_v8 }
 0xb56   :  { %10162 = vmatpush1.bf16.msra.mxu1 %v10161_v50 }
 0xb57   :  { %10163 = vmatprep.subr.bf16.mxu1 %v12888_v8 }
 0xb5a   :  { %10165 = vmatpush1.bf16.msra.mxu1 %v10164_v61 }
 0xb5b   :  { %10166 = vmatprep.subr.bf16.mxu1 %v12888_v8 }
 0xb5e   :  { %10168 = vmatpush1.bf16.msra.mxu1 %v10167_v12 }
 0xb5f   :  { %10169 = vmatprep.subr.bf16.mxu1 %v12888_v8 }
 0xb62   :  { %10171 = vmatpush1.bf16.msra.mxu1 %v10170_v34 }
 0xb65   :  { %2581 = vmatmul.mubr.f32.vlgmr.msra.gmra.mrb[48].mxu1 %v15524_v28 }
 0xb66   :  { %8337 = vmatprep.mubr.msk.f32.mxu1 %vm660_vm5, %v15530_v4 }
 0xb69   :  { %2586 = vmatmul.mubr.f32.gmra.mrb[50].mxu1 %v15537_v13 }
 0xb6a   :  { %8338 = vmatprep.mubr.msk.f32.mxu1 %vm660_vm5, %v15543_v0 }
 0xb6d   :  { %2591 = vmatmul.mubr.f32.gmra.mrb[52].mxu1 %v15550_v56 }
 0xb6e   :  { %8339 = vmatprep.mubr.msk.f32.mxu1 %vm660_vm5, %v15556_v62 }
 0xb71   :  { %2596 = vmatmul.mubr.f32.gmra.mrb[54].mxu1 %v15563_v16 }
 0xc38   :  { %v2582_v27 = vpop.f32.mrb[48].mxu1 }
 0xc39   :  { %v2583_v57 = vadd.f32 %v2582_v27, %v13608_v39  ;;  %v2584_v15 = vpop.f32.mrb[49].mxu1 }
 0xc3b   :  { %v2601_v53 = vmax.f32 %v2583_v57, 0.0 }
 0xc3c   :  { %v2587_v3 = vpop.f32.mrb[50].mxu1 }
 0xc3d   :  { %v2588_v59 = vadd.f32 %v2587_v3, %v13613_v20  ;;  %v2589_v24 = vpop.f32.mrb[51].mxu1  ;;  %v2612_v9 = vmul.f32 %v8340_v2, %v2601_v53 }
 0xc3e   :  { %v2737_v24 = vld [vmem:[%s18357_s19] sm:$0xff] }
 0xc3f   :  { %v2602_v33 = vmax.f32 %v2588_v59, 0.0 }
 0xc40   :  { %v2592_v37 = vpop.f32.mrb[52].mxu1 }
 0xc41   :  { %v2613_v21 = vmul.f32 %v8340_v2, %v2602_v33  ;;  %v2593_v47 = vadd.f32 %v2592_v37, %v13619_v42  ;;  %v2594_v60 = vpop.f32.mrb[53].mxu1  ;;  %v2739_v33 = vld [vmem:[%s18357_s19 + $0x10] sm:$0xff] }
 0xc42   :  { %v2742_v60 = vld [vmem:[%s18357_s19 + $0x28] sm:$0xff] }
 0xc43   :  { %v11350_v45 = vpack.i.bf16 %v2613_v21, %v2612_v9  ;;  %v10185_v41 = vpack.c.bf16 %v2613_v21, %v2612_v9  ;;  %v2603_v52 = vmax.f32 %v2593_v47, 0.0  ;;  %v2740_v9 = vld [vmem:[%s18357_s19 + $0x18] sm:$0xff]  ;;  %v2741_v47 = vld [vmem:[%s18357_s19 + $0x20] sm:$0xff] }
 0xc44   :  { %v2597_v31 = vpop.f32.mrb[54].mxu1  ;;  %v10206_v21 = vpack.c.bf16 %v2740_v9, %v2739_v33 }
 0xc45   :  { %v2598_v14 = vadd.f32 %v2597_v31, %v13650_v44  ;;  %v2599_v5 = vpop.f32.mrb[55].mxu1  ;;  %11351 = vrot.lane.b32.xlu0 %v11350_v45, %s12880_s27  ;;  %v2614_v55 = vmul.f32 %v8340_v2, %v2603_v52  ;;  %v2743_v31 = vld [vmem:[%s18357_s19 + $0x30] sm:$0xff] }
 0xc46   :  { %v2746_v5 = vld [vmem:[%s18357_s19 + $0x48] sm:$0xff] }
 0xc47   :  { %v2604_v54 = vmax.f32 %v2598_v14, 0.0  ;;  %v2745_v14 = vld [vmem:[%s18357_s19 + $0x40] sm:$0xff] }
 0xc49   :  { %v2615_v6 = vmul.f32 %v8340_v2, %v2604_v54  ;;  %11361 = vrot.lane.b32.xlu0 %v11350_v45, %s12881_s3  ;;  %v2738_v2 = vld [vmem:[%s18357_s19 + $0x8] sm:$0xff]  ;;  %v10218_v54 = vpack.c.bf16 %v2746_v5, %v2745_v14 }
 0xc4a   :  { %v10202_v37 = vpack.c.bf16 %v2738_v2, %v2737_v24 }
 0xc4b   :  { %v11355_v36 = vpack.i.bf16 %v2615_v6, %v2614_v55  ;;  %v10188_v22 = vpack.c.bf16 %v2615_v6, %v2614_v55  ;;  %v2747_v6 = vld [vmem:[%s18357_s19 + $0x50] sm:$0xff] }
 0xc4c   :  { %10203 = vmatprep.subr.bf16.mxu1 %v10202_v37 }
 0xc4d   :  { %11356 = vrot.lane.b32.xlu1 %v11355_v36, %s12880_s27  ;;  %11371 = vrot.lane.b32.xlu0 %v11350_v45, %s12882_s26 }
 0xc4e   :  { %10205 = vmatpush3.bf16.msra.mxu1 %v10202_v37 }
 0xc4f   :  { %10207 = vmatprep.subr.bf16.mxu1 %v10206_v21 }
 0xc51   :  { %11366 = vrot.lane.b32.xlu1 %v11355_v36, %s12881_s3  ;;  %11381 = vrot.lane.b32.xlu0 %v11350_v45, %s12884_s28  ;;  %v10210_v45 = vpack.c.bf16 %v2742_v60, %v2741_v47  ;;  %s12890_s3 = smov 62  }
 0xc52   :  { %10209 = vmatpush3.bf16.msra.mxu1 %v10206_v21 }
 0xc53   :  { %10211 = vmatprep.subr.bf16.mxu1 %v10210_v45 }
 0xc55   :  { %11376 = vrot.lane.b32.xlu1 %v11355_v36, %s12882_s26 }
 0xc56   :  { %10213 = vmatpush3.bf16.msra.mxu1 %v10210_v45 }
 0xc59   :  { %11386 = vrot.lane.b32.xlu1 %v11355_v36, %s12884_s28  ;;  %v2748_v36 = vld [vmem:[%s18357_s19 + $0x58] sm:$0xff] }
 0xcb7   :  { %v11352_v1 = vpop.permute.xlu0 %11351 }
 0xcb8   :  { %v11354_v48 = vunpack.i.h.bf16 %v11352_v1  ;;  %v11353_v35 = vunpack.i.l.bf16 %v11352_v1  ;;  %v10222_v1 = vpack.c.bf16 %v2748_v36, %v2747_v6 }
 0xcba   :  { %v10173_v7 = vpack.c.bf16 %v11354_v48, %v11353_v35 }
 0xcbb   :  { %v11362_v38 = vpop.permute.xlu0 %11361 }
 0xcbc   :  { %10174 = vmatpush1.bf16.msra.mxu0 %v10173_v7  ;;  %v11364_v51 = vunpack.i.h.bf16 %v11362_v38  ;;  %v11363_v40 = vunpack.i.l.bf16 %v11362_v38  ;;  %v2749_v7 = vld [vmem:[%s18357_s19 + $0x60] sm:$0xff]  ;;  %v2750_v38 = vld [vmem:[%s18357_s19 + $0x68] sm:$0xff] }
 0xcbd   :  { %10175 = vmatprep.subr.bf16.mxu0 %v12888_v8 }
 0xcbe   :  { %v10179_v10 = vpack.c.bf16 %v11364_v51, %v11363_v40 }
 0xcbf   :  { %v11357_v32 = vpop.permute.xlu1 %11356  ;;  %v11372_v63 = vpop.permute.xlu0 %11371 }
 0xcc0   :  { %v11359_v18 = vunpack.i.h.bf16 %v11357_v32  ;;  %v11358_v11 = vunpack.i.l.bf16 %v11357_v32  ;;  %v11374_v26 = vunpack.i.h.bf16 %v11372_v63  ;;  %v11373_v23 = vunpack.i.l.bf16 %v11372_v63 }
 0xcc2   :  { %v10176_v25 = vpack.c.bf16 %v11359_v18, %v11358_v11  ;;  %v10191_v61 = vpack.c.bf16 %v11374_v26, %v11373_v23  ;;  %v10226_v11 = vpack.c.bf16 %v2750_v38, %v2749_v7 }
 0xcc3   :  { %v11367_v43 = vpop.permute.xlu1 %11366  ;;  %v11382_v49 = vpop.permute.xlu0 %11381 }
 0xcc4   :  { %10177 = vmatpush1.bf16.msra.mxu0 %v10176_v25  ;;  %v11369_v29 = vunpack.i.h.bf16 %v11367_v43  ;;  %v11368_v50 = vunpack.i.l.bf16 %v11367_v43  ;;  %v11384_v58 = vunpack.i.h.bf16 %v11382_v49  ;;  %v11383_v34 = vunpack.i.l.bf16 %v11382_v49  ;;  %v2751_v43 = vld [vmem:[%s18357_s19 + $0x70] sm:$0xff] }
 0xcc5   :  { %10178 = vmatprep.subr.bf16.mxu0 %v12888_v8 }
 0xcc6   :  { %v10182_v17 = vpack.c.bf16 %v11369_v29, %v11368_v50  ;;  %v10197_v15 = vpack.c.bf16 %v11384_v58, %v11383_v34 }
 0xcc7   :  { %v11377_v46 = vpop.permute.xlu1 %11376 }
 0xcc8   :  { %10180 = vmatpush1.bf16.msra.mxu0 %v10179_v10  ;;  %v11379_v19 = vunpack.i.h.bf16 %v11377_v46  ;;  %v11378_v12 = vunpack.i.l.bf16 %v11377_v46  ;;  %v2752_v10 = vld [vmem:[%s18357_s19 + $0x78] sm:$0xff] }
 0xcc9   :  { %10181 = vmatprep.subr.bf16.mxu0 %v12888_v8 }
 0xcca   :  { %v10194_v27 = vpack.c.bf16 %v11379_v19, %v11378_v12 }
 0xccb   :  { %v11387_v57 = vpop.permute.xlu1 %11386 }
 0xccc   :  { %10183 = vmatpush1.bf16.msra.mxu0 %v10182_v17  ;;  %v11389_v3 = vunpack.i.h.bf16 %v11387_v57  ;;  %v11388_v53 = vunpack.i.l.bf16 %v11387_v57  ;;  %v10230_v17 = vpack.c.bf16 %v2752_v10, %v2751_v43 }
 0xccd   :  { %10184 = vmatprep.subr.bf16.mxu0 %v12888_v8 }
 0xcce   :  { %v10200_v59 = vpack.c.bf16 %v11389_v3, %v11388_v53 }
 0xcd0   :  { %10186 = vmatpush1.bf16.msra.mxu0 %v10185_v41  ;;  %v2744_v41 = vld [vmem:[%s18357_s19 + $0x38] sm:$0xff]  ;;  %s12889_s19 = smov 64  }
 0xcd1   :  { %10187 = vmatprep.subr.bf16.mxu0 %v12888_v8  ;;  %v10214_v52 = vpack.c.bf16 %v2744_v41, %v2743_v31 }
 0xcd3   :  { %10215 = vmatprep.subr.bf16.mxu1 %v10214_v52 }
 0xcd4   :  { %10189 = vmatpush1.bf16.msra.mxu0 %v10188_v22  ;;  %10217 = vmatpush3.bf16.msra.mxu1 %v10214_v52 }
 0xcd5   :  { %10190 = vmatprep.subr.bf16.mxu0 %v12888_v8  ;;  %10219 = vmatprep.subr.bf16.mxu1 %v10218_v54 }
 0xcd8   :  { %10192 = vmatpush1.bf16.msra.mxu0 %v10191_v61  ;;  %10221 = vmatpush3.bf16.msra.mxu1 %v10218_v54 }
 0xcd9   :  { %10193 = vmatprep.subr.bf16.mxu0 %v12888_v8  ;;  %10223 = vmatprep.subr.bf16.mxu1 %v10222_v1 }
 0xcdc   :  { %10195 = vmatpush1.bf16.msra.mxu0 %v10194_v27  ;;  %10225 = vmatpush3.bf16.msra.mxu1 %v10222_v1 }
 0xcdd   :  { %10196 = vmatprep.subr.bf16.mxu0 %v12888_v8  ;;  %10227 = vmatprep.subr.bf16.mxu1 %v10226_v11 }
 0xce0   :  { %10198 = vmatpush1.bf16.msra.mxu0 %v10197_v15  ;;  %10229 = vmatpush3.bf16.msra.mxu1 %v10226_v11 }
 0xce1   :  { %10199 = vmatprep.subr.bf16.mxu0 %v12888_v8  ;;  %10231 = vmatprep.subr.bf16.mxu1 %v10230_v17 }
 0xce4   :  { %10201 = vmatpush1.bf16.msra.mxu0 %v10200_v59  ;;  %10233 = vmatpush3.bf16.msra.mxu1 %v10230_v17 }
 0xce5   :  { %10234 = vmatprep.subr.bf16.mxu0 %v12888_v8  ;;  %10264 = vmatprep.subr.bf16.mxu1 %v12888_v8 }
 0xce7   :  { %2713 = vmatmul.mubr.f32.vlgmr.msra.gmra.mrb[32].mxu0 %v15524_v28 }
 0xce8   :  { %8342 = vmatprep.mubr.msk.f32.mxu0 %vm660_vm5, %v15530_v4 }
 0xceb   :  { %2718 = vmatmul.mubr.f32.gmra.mrb[34].mxu0 %v15537_v13 }
 0xcec   :  { %8343 = vmatprep.mubr.msk.f32.mxu0 %vm660_vm5, %v15543_v0 }
 0xcef   :  { %2723 = vmatmul.mubr.f32.gmra.mrb[36].mxu0 %v15550_v56 }
 0xcf0   :  { %8344 = vmatprep.mubr.msk.f32.mxu0 %vm660_vm5, %v15556_v62 }
 0xcf3   :  { %2728 = vmatmul.mubr.f32.gmra.mrb[38].mxu0 %v15563_v16 }
 0xcf4   :  { %8345 = vmatprep.mubr.msk.f32.mxu0 %vm660_vm5, %v15498_v30 }
 0xdba   :  { %v2714_v55 = vpop.f32.mrb[32].mxu0 }
 0xdbb   :  { %v2716_v22 = vpop.f32.mrb[33].mxu0  ;;  %v2715_v48 = vadd.f32 %v2714_v55, %v13608_v39 }
 0xdbd   :  { %v2733_v51 = vmax.f32 %v2715_v48, 0.0 }
 0xdbe   :  { %v2719_v35 = vpop.f32.mrb[34].mxu0 }
 0xdbf   :  { %v2720_v32 = vadd.f32 %v2719_v35, %v13613_v20  ;;  %v2721_v18 = vpop.f32.mrb[35].mxu0 }
 0xdc1   :  { %v2734_v40 = vmax.f32 %v2720_v32, 0.0 }
 0xdc2   :  { %v2724_v25 = vpop.f32.mrb[36].mxu0 }
 0xdc3   :  { %v2726_v29 = vpop.f32.mrb[37].mxu0  ;;  %v11395_v50 = vpack.i.bf16 %v2734_v40, %v2733_v51  ;;  %v2725_v63 = vadd.f32 %v2724_v25, %v13619_v42 }
 0xdc5   :  { %11396 = vrot.lane.b32.xlu1 %v11395_v50, %s12884_s28  ;;  %11391 = vrot.lane.b32.xlu0 %v11395_v50, %s12882_s26  ;;  %v2735_v61 = vmax.f32 %v2725_v63, 0.0 }
 0xdc6   :  { %v2729_v26 = vpop.f32.mrb[38].mxu0 }
 0xdc7   :  { %v2730_v23 = vadd.f32 %v2729_v26, %v13650_v44  ;;  %v2731_v46 = vpop.f32.mrb[39].mxu0 }
 0xdc9   :  { %v2736_v19 = vmax.f32 %v2730_v23, 0.0  ;;  %11401 = vrot.lane.b32.xlu1 %v11395_v50, %s12886_s1 }
 0xdcb   :  { %v11410_v12 = vpack.i.bf16 %v2736_v19, %v2735_v61 }
 0xdcd   :  { %11406 = vrot.lane.b32.xlu1 %v11395_v50, %s18504_s18  ;;  %11411 = vrot.lane.b32.xlu0 %v11410_v12, %s12882_s26 }
 0xdd1   :  { %11426 = vrot.lane.b32.xlu1 %v11410_v12, %s18504_s18  ;;  %11416 = vrot.lane.b32.xlu0 %v11410_v12, %s12884_s28 }
 0xdd5   :  { %11421 = vrot.lane.b32.xlu0 %v11410_v12, %s12886_s1 }
 0xe37   :  { %v11397_v49 = vpop.permute.xlu1 %11396  ;;  %v11392_v58 = vpop.permute.xlu0 %11391 }
 0xe38   :  { %v11394_v34 = vunpack.i.h.bf16 %v11392_v58  ;;  %v11393_v27 = vunpack.i.l.bf16 %v11392_v58  ;;  %v11399_v57 = vunpack.i.h.bf16 %v11397_v49  ;;  %v11398_v15 = vunpack.i.l.bf16 %v11397_v49 }
 0xe3a   :  { %v2762_v3 = vmax.f32 %v2734_v40, %v11394_v34  ;;  %v2761_v53 = vmax.f32 %v2733_v51, %v11393_v27 }
 0xe3b   :  { %v11402_v59 = vpop.permute.xlu1 %11401 }
 0xe3c   :  { %v11404_v24 = vunpack.i.h.bf16 %v11402_v59  ;;  %v11403_v2 = vunpack.i.l.bf16 %v11402_v59  ;;  %v2773_v33 = vmax.f32 %v2761_v53, %v11398_v15  ;;  %v2774_v37 = vmax.f32 %v2762_v3, %v11399_v57 }
 0xe3e   :  { %v2785_v47 = vmax.f32 %v2773_v33, %v11403_v2  ;;  %v2786_v60 = vmax.f32 %v2774_v37, %v11404_v24 }
 0xe3f   :  { %v11407_v9 = vpop.permute.xlu1 %11406  ;;  %v11412_v21 = vpop.permute.xlu0 %11411 }
 0xe40   :  { %v11409_v45 = vunpack.i.h.bf16 %v11407_v9  ;;  %v11408_v31 = vunpack.i.l.bf16 %v11407_v9  ;;  %v11414_v52 = vunpack.i.h.bf16 %v11412_v21  ;;  %v11413_v14 = vunpack.i.l.bf16 %v11412_v21 }
 0xe42   :  { %v2798_v41 = vmax.f32 %v2786_v60, %v11409_v45  ;;  %v2797_v5 = vmax.f32 %v2785_v47, %v11408_v31  ;;  %v2764_v36 = vmax.f32 %v2736_v19, %v11414_v52  ;;  %v2763_v22 = vmax.f32 %v2735_v61, %v11413_v14 }
 0xe43   :  { %v11417_v54 = vpop.permute.xlu0 %11416  ;;  %v11427_v1 = vpop.permute.xlu1 %11426 }
 0xe44   :  { %v11419_v55 = vunpack.i.h.bf16 %v11417_v54  ;;  %v11418_v6 = vunpack.i.l.bf16 %v11417_v54  ;;  %9090 = vmatprep.mubr.f32.mxu1 %v2797_v5  ;;  %v11429_v18 = vunpack.i.h.bf16 %v11427_v1  ;;  %v11428_v11 = vunpack.i.l.bf16 %v11427_v1 }
 0xe45   :  { %9091 = vmatmul.mubr.f32.vlgmr.msra.gmra.mrb[56].mxu1 %v2798_v41 }
 0xe46   :  { %v2775_v35 = vmax.f32 %v2763_v22, %v11418_v6  ;;  %v2776_v7 = vmax.f32 %v2764_v36, %v11419_v55 }
 0xe47   :  { %v11422_v48 = vpop.permute.xlu0 %11421 }
 0xe48   :  { %v11424_v38 = vunpack.i.h.bf16 %v11422_v48  ;;  %v11423_v32 = vunpack.i.l.bf16 %v11422_v48 }
 0xe4a   :  { %v2787_v51 = vmax.f32 %v2775_v35, %v11423_v32  ;;  %v2788_v40 = vmax.f32 %v2776_v7, %v11424_v38 }
 0xe4c   :  { %v2799_v25 = vmax.f32 %v2787_v51, %v11428_v11  ;;  %v2800_v43 = vmax.f32 %v2788_v40, %v11429_v18 }
 0xe4e   :  { %9093 = vmatprep.mubr.f32.mxu1 %v2799_v25 }
 0xe4f   :  { %9094 = vmatmul.mubr.f32.gmra.mrb[58].mxu1 %v2800_v43 }
 0xe50   :  { %8350 = vmatprep.mubr.msk.f32.mxu1 %vm660_vm5, %v15498_v30 }
 0xf18   :  { %v9092_v10 = vpop.f32.mrb[56].mxu1 }
 0xf19   :  { %v2867_v29 = vpop.f32.mrb[57].mxu1 }
 0xf1a   :  { %v11460_v50 = vpack.i.bf16 %v9092_v10, %v2867_v29 }
 0xf1c   :  { %11431 = vrot.lane.b32.xlu0 %v11460_v50, %s12889_s19 }
 0xf22   :  { %v9095_v17 = vpop.f32.mrb[58].mxu1 }
 0xf23   :  { %v2877_v63 = vpop.f32.mrb[59].mxu1 }
 0xf24   :  { %v11465_v26 = vpack.i.bf16 %v9095_v17, %v2877_v63 }
 0xf26   :  { %11436 = vrot.lane.b32.xlu1 %v11465_v26, %s12889_s19 }
 0xf8e   :  { %v11432_v23 = vpop.permute.xlu0 %11431 }
 0xf8f   :  { %v11434_v46 = vunpack.i.h.bf16 %v11432_v23  ;;  %v11433_v61 = vunpack.i.l.bf16 %v11432_v23 }
 0xf91   :  { %v2892_v19 = vsel %vm2886_vm8, %v11434_v46, %v9092_v10  ;;  %v2889_v12 = vsel %vm2886_vm8, %v11433_v61, %v2867_v29 }
 0xf92   :  { %v11440_v30 = vpack.i.bf16 %v2892_v19, %v2889_v12 }
 0xf94   :  { %11441 = vrot.lane.b32.xlu0 %v11440_v30, %s12889_s19 }
 0xf98   :  { %v11437_v49 = vpop.permute.xlu1 %11436 }
 0xf99   :  { %v11439_v58 = vunpack.i.h.bf16 %v11437_v49  ;;  %v11438_v34 = vunpack.i.l.bf16 %v11437_v49 }
 0xf9b   :  { %v2898_v27 = vsel %vm2886_vm8, %v11439_v58, %v9095_v17  ;;  %v2895_v57 = vsel %vm2886_vm8, %v11438_v34, %v2877_v63 }
 0xf9c   :  { %v11445_v15 = vpack.i.bf16 %v2898_v27, %v2895_v57 }
 0xf9e   :  { %11446 = vrot.lane.b32.xlu1 %v11445_v15, %s12889_s19 }
0x1006   :  { %v11442_v3 = vpop.permute.xlu0 %11441 }
0x1007   :  { %v11444_v53 = vunpack.i.h.bf16 %v11442_v3  ;;  %v11443_v59 = vunpack.i.l.bf16 %v11442_v3 }
0x1009   :  { %v2908_v24 = vsel %vm2886_vm8, %v11444_v53, %v9092_v10  ;;  %v2907_v2 = vsel %vm2886_vm8, %v11443_v59, %v2867_v29 }
0x100a   :  { %v11450_v33 = vpack.i.bf16 %v2908_v24, %v2907_v2 }
0x100c   :  { %11451 = vrot.lane.b32.xlu0 %v11450_v33, %s12882_s26 }
0x1010   :  { %11461 = vrot.lane.b32.xlu0 %v11460_v50, %s12890_s3  ;;  %v11447_v37 = vpop.permute.xlu1 %11446 }
0x1011   :  { %v11449_v9 = vunpack.i.h.bf16 %v11447_v37  ;;  %v11448_v21 = vunpack.i.l.bf16 %v11447_v37 }
0x1013   :  { %v2910_v47 = vsel %vm2886_vm8, %v11449_v9, %v9095_v17  ;;  %v2909_v60 = vsel %vm2886_vm8, %v11448_v21, %v2877_v63 }
0x1014   :  { %11471 = vrot.lane.b32.xlu0 %v11450_v33, %s12891_s2  ;;  %v11455_v45 = vpack.i.bf16 %v2910_v47, %v2909_v60 }
0x1016   :  { %11456 = vrot.lane.b32.xlu1 %v11455_v45, %s12882_s26 }
0x1018   :  { %11481 = vrot.lane.b32.xlu0 %v11450_v33, %s12892_s29 }
0x101a   :  { %11466 = vrot.lane.b32.xlu1 %v11465_v26, %s12890_s3 }
0x101c   :  { %11491 = vrot.lane.b32.xlu0 %v11450_v33, %s12893_s14 }
0x101e   :  { %11476 = vrot.lane.b32.xlu1 %v11455_v45, %s12891_s2 }
0x1022   :  { %11486 = vrot.lane.b32.xlu1 %v11455_v45, %s12892_s29 }
0x1026   :  { %11496 = vrot.lane.b32.xlu1 %v11455_v45, %s12893_s14 }
0x107e   :  { %v11452_v31 = vpop.permute.xlu0 %11451 }
0x107f   :  { %11501 = vrot.lane.b32.xlu0 %v11452_v31, %s12893_s14 }
0x1082   :  { %v11462_v41 = vpop.permute.xlu0 %11461 }
0x1083   :  { %11511 = vrot.lane.b32.xlu0 %v11462_v41, %s12893_s14 }
0x1086   :  { %v11472_v52 = vpop.permute.xlu0 %11471 }
0x1087   :  { %11521 = vrot.lane.b32.xlu0 %v11472_v52, %s12893_s14 }
0x1088   :  { %v11457_v14 = vpop.permute.xlu1 %11456 }
0x1089   :  { %11506 = vrot.lane.b32.xlu1 %v11457_v14, %s12893_s14 }
0x108a   :  { %v11482_v5 = vpop.permute.xlu0 %11481 }
0x108b   :  { %11531 = vrot.lane.b32.xlu0 %v11482_v5, %s12893_s14 }
0x108c   :  { %v11467_v54 = vpop.permute.xlu1 %11466 }
0x108d   :  { %11516 = vrot.lane.b32.xlu1 %v11467_v54, %s12893_s14 }
0x108e   :  { %v11492_v55 = vpop.permute.xlu0 %11491 }
0x108f   :  { %v11494_v6 = vunpack.i.h.bf16 %v11492_v55  ;;  %v11493_v36 = vunpack.i.l.bf16 %v11492_v55 }
0x1090   :  { %v11477_v22 = vpop.permute.xlu1 %11476 }
0x1091   :  { %v10235_v1 = vpack.c.bf16 %v11494_v6, %v11493_v36  ;;  %11526 = vrot.lane.b32.xlu1 %v11477_v22, %s12893_s14 }
0x1093   :  { %10236 = vmatpush1.bf16.msra.mxu0 %v10235_v1 }
0x1094   :  { %v11487_v48 = vpop.permute.xlu1 %11486  ;;  %10237 = vmatprep.subr.bf16.mxu0 %v12888_v8 }
0x1095   :  { %11536 = vrot.lane.b32.xlu1 %v11487_v48, %s12893_s14 }
0x1098   :  { %v11497_v35 = vpop.permute.xlu1 %11496 }
0x1099   :  { %v11499_v7 = vunpack.i.h.bf16 %v11497_v35  ;;  %v11498_v38 = vunpack.i.l.bf16 %v11497_v35 }
0x109b   :  { %v10238_v32 = vpack.c.bf16 %v11499_v7, %v11498_v38 }
0x109d   :  { %10239 = vmatpush1.bf16.msra.mxu0 %v10238_v32 }
0x109e   :  { %10240 = vmatprep.subr.bf16.mxu0 %v12888_v8 }
0x10f1   :  { %v11502_v18 = vpop.permute.xlu0 %11501 }
0x10f2   :  { %v11504_v11 = vunpack.i.h.bf16 %v11502_v18  ;;  %v11503_v51 = vunpack.i.l.bf16 %v11502_v18 }
0x10f4   :  { %v10241_v40 = vpack.c.bf16 %v11504_v11, %v11503_v51 }
0x10f5   :  { %v11512_v25 = vpop.permute.xlu0 %11511 }
0x10f6   :  { %10242 = vmatpush1.bf16.msra.mxu0 %v10241_v40  ;;  %v11514_v50 = vunpack.i.h.bf16 %v11512_v25  ;;  %v11513_v17 = vunpack.i.l.bf16 %v11512_v25 }
0x10f7   :  { %10243 = vmatprep.subr.bf16.mxu0 %v12888_v8 }
0x10f8   :  { %v10247_v23 = vpack.c.bf16 %v11514_v50, %v11513_v17 }
0x10f9   :  { %v11522_v19 = vpop.permute.xlu0 %11521 }
0x10fa   :  { %v11524_v12 = vunpack.i.h.bf16 %v11522_v19  ;;  %v11523_v30 = vunpack.i.l.bf16 %v11522_v19 }
0x10fb   :  { %v11507_v43 = vpop.permute.xlu1 %11506 }
0x10fc   :  { %v11509_v10 = vunpack.i.h.bf16 %v11507_v43  ;;  %v11508_v29 = vunpack.i.l.bf16 %v11507_v43  ;;  %v10253_v34 = vpack.c.bf16 %v11524_v12, %v11523_v30 }
0x10fd   :  { %v11532_v15 = vpop.permute.xlu0 %11531 }
0x10fe   :  { %v10244_v63 = vpack.c.bf16 %v11509_v10, %v11508_v29  ;;  %v11534_v3 = vunpack.i.h.bf16 %v11532_v15  ;;  %v11533_v53 = vunpack.i.l.bf16 %v11532_v15 }
0x10ff   :  { %v11517_v26 = vpop.permute.xlu1 %11516 }
0x1100   :  { %10245 = vmatpush1.bf16.msra.mxu0 %v10244_v63  ;;  %v11519_v46 = vunpack.i.h.bf16 %v11517_v26  ;;  %v11518_v61 = vunpack.i.l.bf16 %v11517_v26  ;;  %v10259_v2 = vpack.c.bf16 %v11534_v3, %v11533_v53 }
0x1101   :  { %10246 = vmatprep.subr.bf16.mxu0 %v12888_v8 }
0x1102   :  { %v10250_v49 = vpack.c.bf16 %v11519_v46, %v11518_v61 }
0x1103   :  { %v11527_v58 = vpop.permute.xlu1 %11526 }
0x1104   :  { %10248 = vmatpush1.bf16.msra.mxu0 %v10247_v23  ;;  %v11529_v27 = vunpack.i.h.bf16 %v11527_v58  ;;  %v11528_v57 = vunpack.i.l.bf16 %v11527_v58 }
0x1105   :  { %10249 = vmatprep.subr.bf16.mxu0 %v12888_v8 }
0x1106   :  { %v10256_v59 = vpack.c.bf16 %v11529_v27, %v11528_v57 }
0x1107   :  { %v11537_v24 = vpop.permute.xlu1 %11536 }
0x1108   :  { %10251 = vmatpush1.bf16.msra.mxu0 %v10250_v49  ;;  %v11539_v33 = vunpack.i.h.bf16 %v11537_v24  ;;  %v11538_v37 = vunpack.i.l.bf16 %v11537_v24 }
0x1109   :  { %10252 = vmatprep.subr.bf16.mxu0 %v12888_v8 }
0x110a   :  { %v10262_v9 = vpack.c.bf16 %v11539_v33, %v11538_v37 }
0x110c   :  { %10254 = vmatpush1.bf16.msra.mxu0 %v10253_v34 }
0x110d   :  { %10255 = vmatprep.subr.bf16.mxu0 %v12888_v8 }
0x1110   :  { %10257 = vmatpush1.bf16.msra.mxu0 %v10256_v59 }
0x1111   :  { %10258 = vmatprep.subr.bf16.mxu0 %v12888_v8 }
0x1114   :  { %10260 = vmatpush1.bf16.msra.mxu0 %v10259_v2 }
0x1115   :  { %10261 = vmatprep.subr.bf16.mxu0 %v12888_v8 }
0x1118   :  { %10263 = vmatpush1.bf16.msra.mxu0 %v10262_v9 }
0x111b   :  { %3076 = vmatmul.mubr.f32.vlgmr.msra.gmra.mrb[40].mxu0 %v15524_v28 }
0x111c   :  { %8346 = vmatprep.mubr.msk.f32.mxu0 %vm660_vm5, %v15530_v4 }
0x111f   :  { %3081 = vmatmul.mubr.f32.gmra.mrb[42].mxu0 %v15537_v13  ;;  %v8349_v13 = vld [vmem:[%s18354_s16] ss:$0 sm:$0xff] }
0x1120   :  { %8347 = vmatprep.mubr.msk.f32.mxu0 %vm660_vm5, %v15543_v0 }
0x1123   :  { %3086 = vmatmul.mubr.f32.gmra.mrb[44].mxu0 %v15550_v56 }
0x1124   :  { %8348 = vmatprep.mubr.msk.f32.mxu0 %vm660_vm5, %v15556_v62 }
0x1127   :  { %3091 = vmatmul.mubr.f32.gmra.mrb[46].mxu0 %v15563_v16 }
0x11ee   :  { %v3077_v21 = vpop.f32.mrb[40].mxu0 }
0x11ef   :  { %v3078_v47 = vadd.f32 %v3077_v21, %v13608_v39  ;;  %v3079_v60 = vpop.f32.mrb[41].mxu0 }
0x11f1   :  { %v3096_v45 = vmax.f32 %v3078_v47, 0.0 }
0x11f2   :  { %v3082_v28 = vpop.f32.mrb[42].mxu0 }
0x11f3   :  { %v3083_v4 = vadd.f32 %v3082_v28, %v13613_v20  ;;  %v3084_v31 = vpop.f32.mrb[43].mxu0  ;;  %v3107_v41 = vmul.f32 %v8349_v13, %v3096_v45 }
0x11f5   :  { %v3097_v0 = vmax.f32 %v3083_v4, 0.0 }
0x11f6   :  { %v3087_v56 = vpop.f32.mrb[44].mxu0 }
0x11f7   :  { %v3108_v52 = vmul.f32 %v8349_v13, %v3097_v0  ;;  %v3088_v62 = vadd.f32 %v3087_v56, %v13619_v42  ;;  %v3089_v16 = vpop.f32.mrb[45].mxu0 }
0x11f9   :  { %v11540_v14 = vpack.i.bf16 %v3108_v52, %v3107_v41  ;;  %v3098_v54 = vmax.f32 %v3088_v62, 0.0 }
0x11fa   :  { %v3092_v5 = vpop.f32.mrb[46].mxu0 }
0x11fb   :  { %v3093_v55 = vadd.f32 %v3092_v5, %v13650_v44  ;;  %v3094_v6 = vpop.f32.mrb[47].mxu0  ;;  %11541 = vrot.lane.b32.xlu0 %v11540_v14, %s12889_s19  ;;  %v3109_v22 = vmul.f32 %v8349_v13, %v3098_v54 }
0x11fd   :  { %v3099_v36 = vmax.f32 %v3093_v55, 0.0 }
0x11ff   :  { %v3110_v1 = vmul.f32 %v8349_v13, %v3099_v36 }
0x1201   :  { %v11545_v48 = vpack.i.bf16 %v3110_v1, %v3109_v22 }
0x1203   :  { %11546 = vrot.lane.b32.xlu1 %v11545_v48, %s12889_s19 }
0x126d   :  { %v11542_v35 = vpop.permute.xlu0 %11541 }
0x126e   :  { %v11544_v7 = vunpack.i.h.bf16 %v11542_v35  ;;  %v11543_v38 = vunpack.i.l.bf16 %v11542_v35 }
0x1270   :  { %v3116_v32 = vsel %vm2886_vm8, %v11544_v7, %v3108_v52  ;;  %v3113_v18 = vsel %vm2886_vm8, %v11543_v38, %v3107_v41 }
0x1271   :  { %v11550_v11 = vpack.i.bf16 %v3116_v32, %v3113_v18 }
0x1273   :  { %11551 = vrot.lane.b32.xlu0 %v11550_v11, %s12889_s19 }
0x1275   :  { %v11547_v51 = vpop.permute.xlu1 %11546 }
0x1276   :  { %v11549_v40 = vunpack.i.h.bf16 %v11547_v51  ;;  %v11548_v25 = vunpack.i.l.bf16 %v11547_v51 }
0x1278   :  { %v3122_v43 = vsel %vm2886_vm8, %v11549_v40, %v3110_v1  ;;  %v3119_v10 = vsel %vm2886_vm8, %v11548_v25, %v3109_v22 }
0x1279   :  { %v11555_v29 = vpack.i.bf16 %v3122_v43, %v3119_v10 }
0x127b   :  { %11556 = vrot.lane.b32.xlu1 %v11555_v29, %s12889_s19 }
0x12e5   :  { %v11552_v50 = vpop.permute.xlu0 %11551 }
0x12e6   :  { %v11554_v17 = vunpack.i.h.bf16 %v11552_v50  ;;  %v11553_v63 = vunpack.i.l.bf16 %v11552_v50 }
0x12e8   :  { %v3132_v26 = vsel %vm2886_vm8, %v11554_v17, %v3108_v52  ;;  %v3131_v23 = vsel %vm2886_vm8, %v11553_v63, %v3107_v41  ;;  %v12691_v17 = vld [vmem:[%s18455_s25] sm:$0xff]  ;;  %v12692_v63 = vld [vmem:[%s18455_s25 + $0x18] sm:$0xff] }
0x12e9   :  { %v11560_v46 = vpack.i.bf16 %v3132_v26, %v3131_v23  ;;  %v12693_v26 = vld [vmem:[%s18455_s25 + $0x10] sm:$0xff]  ;;  %v12695_v23 = vld [vmem:[%s18455_s25 + $0x20] sm:$0xff] }
0x12eb   :  { %11561 = vrot.lane.b32.xlu0 %v11560_v46, %s12882_s26 }
0x12ed   :  { %v11557_v61 = vpop.permute.xlu1 %11556 }
0x12ee   :  { %v11559_v19 = vunpack.i.h.bf16 %v11557_v61  ;;  %v11558_v12 = vunpack.i.l.bf16 %v11557_v61  ;;  %v12697_v61 = vld [vmem:[%s18455_s25 + $0x30] sm:$0xff] }
0x12ef   :  { %11571 = vrot.lane.b32.xlu0 %v11540_v14, %s12890_s3 }
0x12f0   :  { %v3134_v30 = vsel %vm2886_vm8, %v11559_v19, %v3110_v1  ;;  %v3133_v49 = vsel %vm2886_vm8, %v11558_v12, %v3109_v22 }
0x12f1   :  { %v11565_v58 = vpack.i.bf16 %v3134_v30, %v3133_v49 }
0x12f3   :  { %11566 = vrot.lane.b32.xlu1 %v11565_v58, %s12882_s26  ;;  %11581 = vrot.lane.b32.xlu0 %v11560_v46, %s12891_s2 }
0x12f7   :  { %11576 = vrot.lane.b32.xlu1 %v11545_v48, %s12890_s3  ;;  %11591 = vrot.lane.b32.xlu0 %v11560_v46, %s12892_s29  ;;  %s18505_s3 = sld [smem:[#allocation31_spill]] }
0x12fb   :  { %11586 = vrot.lane.b32.xlu1 %v11565_v58, %s12891_s2  ;;  %11601 = vrot.lane.b32.xlu0 %v11560_v46, %s12893_s14  ;;  %v12696_v46 = vld [vmem:[%s18455_s25 + $0x38] sm:$0xff] }
0x12ff   :  { %11596 = vrot.lane.b32.xlu1 %v11565_v58, %s12892_s29 }
0x1303   :  { %11606 = vrot.lane.b32.xlu1 %v11565_v58, %s12893_s14 }
0x135d   :  { %v11562_v34 = vpop.permute.xlu0 %11561 }
0x135e   :  { %11611 = vrot.lane.b32.xlu0 %v11562_v34, %s12893_s14 }
0x1361   :  { %v11572_v27 = vpop.permute.xlu0 %11571 }
0x1362   :  { %11621 = vrot.lane.b32.xlu0 %v11572_v27, %s12893_s14 }
0x1365   :  { %v11567_v57 = vpop.permute.xlu1 %11566  ;;  %v11582_v15 = vpop.permute.xlu0 %11581 }
0x1366   :  { %11616 = vrot.lane.b32.xlu1 %v11567_v57, %s12893_s14  ;;  %11631 = vrot.lane.b32.xlu0 %v11582_v15, %s12893_s14 }
0x1369   :  { %v11577_v3 = vpop.permute.xlu1 %11576  ;;  %v11592_v53 = vpop.permute.xlu0 %11591 }
0x136a   :  { %11626 = vrot.lane.b32.xlu1 %v11577_v3, %s12893_s14  ;;  %11641 = vrot.lane.b32.xlu0 %v11592_v53, %s12893_s14 }
0x136d   :  { %v11587_v59 = vpop.permute.xlu1 %11586  ;;  %v11602_v24 = vpop.permute.xlu0 %11601 }
0x136e   :  { %v11604_v2 = vunpack.i.h.bf16 %v11602_v24  ;;  %v11603_v33 = vunpack.i.l.bf16 %v11602_v24  ;;  %11636 = vrot.lane.b32.xlu1 %v11587_v59, %s12893_s14 }
0x1370   :  { %v10265_v37 = vpack.c.bf16 %v11604_v2, %v11603_v33 }
0x1371   :  { %v11597_v9 = vpop.permute.xlu1 %11596 }
0x1372   :  { %10266 = vmatpush1.bf16.msra.mxu1 %v10265_v37  ;;  %11646 = vrot.lane.b32.xlu1 %v11597_v9, %s12893_s14 }
0x1373   :  { %10267 = vmatprep.subr.bf16.mxu1 %v12888_v8 }
0x1375   :  { %v11607_v21 = vpop.permute.xlu1 %11606 }
0x1376   :  { %v11609_v47 = vunpack.i.h.bf16 %v11607_v21  ;;  %v11608_v60 = vunpack.i.l.bf16 %v11607_v21 }
0x1378   :  { %v10268_v28 = vpack.c.bf16 %v11609_v47, %v11608_v60 }
0x137a   :  { %10269 = vmatpush1.bf16.msra.mxu1 %v10268_v28  ;;  %v3324_v28 = vld [vmem:[%s18358_s20] sm:$0xff] }
0x137b   :  { %10270 = vmatprep.subr.bf16.mxu1 %v12888_v8 }
0x13d0   :  { %v11612_v45 = vpop.permute.xlu0 %11611 }
0x13d1   :  { %v11614_v4 = vunpack.i.h.bf16 %v11612_v45  ;;  %v11613_v31 = vunpack.i.l.bf16 %v11612_v45  ;;  %v3325_v45 = vld [vmem:[%s18358_s20 + $0x8] sm:$0xff] }
0x13d3   :  { %v10271_v13 = vpack.c.bf16 %v11614_v4, %v11613_v31  ;;  %v10294_v4 = vpack.c.bf16 %v3325_v45, %v3324_v28  ;;  %v3326_v31 = vld [vmem:[%s18358_s20 + $0x10] sm:$0xff]  ;;  %v4136_v28 = vld [vmem:[%s18346_s8 + $0x28] sm:$0xff]  ;;  %v4135_v45 = vld [vmem:[%s18346_s8 + $0x20] sm:$0xff] }
0x13d4   :  { %v11622_v0 = vpop.permute.xlu0 %11621 }
0x13d5   :  { %10272 = vmatpush1.bf16.msra.mxu1 %v10271_v13  ;;  %v11624_v62 = vunpack.i.h.bf16 %v11622_v0  ;;  %v11623_v16 = vunpack.i.l.bf16 %v11622_v0  ;;  %v3327_v13 = vld [vmem:[%s18358_s20 + $0x18] sm:$0xff]  ;;  %10295 = vmatprep.subr.bf16.mxu0 %v10294_v4 }
0x13d6   :  { %10273 = vmatprep.subr.bf16.mxu1 %v12888_v8  ;;  %10297 = vmatpush3.bf16.msra.mxu0 %v10294_v4  ;;  %v4144_v4 = vld [vmem:[%s18346_s8 + $0x68] sm:$0xff] }
0x13d7   :  { %v10277_v54 = vpack.c.bf16 %v11624_v62, %v11623_v16  ;;  %v3329_v62 = vld [vmem:[%s18358_s20 + $0x28] sm:$0xff] }
0x13d8   :  { %v11617_v56 = vpop.permute.xlu1 %11616  ;;  %v11632_v36 = vpop.permute.xlu0 %11631 }
0x13d9   :  { %v11619_v41 = vunpack.i.h.bf16 %v11617_v56  ;;  %v11618_v52 = vunpack.i.l.bf16 %v11617_v56  ;;  %v11634_v22 = vunpack.i.h.bf16 %v11632_v36  ;;  %v11633_v1 = vunpack.i.l.bf16 %v11632_v36 }
0x13da   :  { %v10298_v56 = vpack.c.bf16 %v3327_v13, %v3326_v31  ;;  %v4143_v31 = vld [vmem:[%s18346_s8 + $0x60] sm:$0xff] }
0x13db   :  { %v10274_v14 = vpack.c.bf16 %v11619_v41, %v11618_v52  ;;  %v10283_v7 = vpack.c.bf16 %v11634_v22, %v11633_v1  ;;  %v3328_v52 = vld [vmem:[%s18358_s20 + $0x20] sm:$0xff] }
0x13dc   :  { %v11627_v5 = vpop.permute.xlu1 %11626  ;;  %v11642_v18 = vpop.permute.xlu0 %11641  ;;  %10299 = vmatprep.subr.bf16.mxu0 %v10298_v56  ;;  %v10302_v16 = vpack.c.bf16 %v3329_v62, %v3328_v52  ;;  %v4137_v52 = vld [vmem:[%s18346_s8 + $0x30] sm:$0xff] }
0x13dd   :  { %10275 = vmatpush1.bf16.msra.mxu1 %v10274_v14  ;;  %v11629_v55 = vunpack.i.h.bf16 %v11627_v5  ;;  %v11628_v6 = vunpack.i.l.bf16 %v11627_v5  ;;  %v11644_v11 = vunpack.i.h.bf16 %v11642_v18  ;;  %v11643_v51 = vunpack.i.l.bf16 %v11642_v18  ;;  %v3330_v5 = vld [vmem:[%s18358_s20 + $0x30] sm:$0xff]  ;;  %10301 = vmatpush3.bf16.msra.mxu0 %v10298_v56  ;;  %v3557_v18 = vld [vmem:[%s18344_s6 + $0x18] sm:$0xff] }
0x13de   :  { %10276 = vmatprep.subr.bf16.mxu1 %v12888_v8  ;;  %10303 = vmatprep.subr.bf16.mxu0 %v10302_v16 }
0x13df   :  { %v10280_v48 = vpack.c.bf16 %v11629_v55, %v11628_v6  ;;  %v10289_v43 = vpack.c.bf16 %v11644_v11, %v11643_v51  ;;  %v3556_v11 = vld [vmem:[%s18344_s6 + $0x10] sm:$0xff]  ;;  %v3565_v51 = vld [vmem:[%s18344_s6 + $0x58] sm:$0xff] }
0x13e0   :  { %v11637_v35 = vpop.permute.xlu1 %11636 }
0x13e1   :  { %10278 = vmatpush1.bf16.msra.mxu1 %v10277_v54  ;;  %v11639_v38 = vunpack.i.h.bf16 %v11637_v35  ;;  %v11638_v32 = vunpack.i.l.bf16 %v11637_v35  ;;  %v3331_v54 = vld [vmem:[%s18358_s20 + $0x38] sm:$0xff]  ;;  %10305 = vmatpush3.bf16.msra.mxu0 %v10302_v16  ;;  %v3555_v35 = vld [vmem:[%s18344_s6 + $0x8] sm:$0xff] }
0x13e2   :  { %10279 = vmatprep.subr.bf16.mxu1 %v12888_v8  ;;  %v10306_v6 = vpack.c.bf16 %v3331_v54, %v3330_v5  ;;  %v4146_v54 = vld [vmem:[%s18346_s8 + $0x78] sm:$0xff] }
0x13e3   :  { %v10286_v40 = vpack.c.bf16 %v11639_v38, %v11638_v32  ;;  %v3563_v38 = vld [vmem:[%s18344_s6 + $0x48] sm:$0xff]  ;;  %v3562_v32 = vld [vmem:[%s18344_s6 + $0x40] sm:$0xff] }
0x13e4   :  { %v11647_v25 = vpop.permute.xlu1 %11646  ;;  %10307 = vmatprep.subr.bf16.mxu0 %v10306_v6 }
0x13e5   :  { %10281 = vmatpush1.bf16.msra.mxu1 %v10280_v48  ;;  %v11649_v10 = vunpack.i.h.bf16 %v11647_v25  ;;  %v11648_v29 = vunpack.i.l.bf16 %v11647_v25  ;;  %10309 = vmatpush3.bf16.msra.mxu0 %v10306_v6  ;;  %v3559_v25 = vld [vmem:[%s18344_s6 + $0x28] sm:$0xff] }
0x13e6   :  { %10282 = vmatprep.subr.bf16.mxu1 %v12888_v8 }
0x13e7   :  { %v10292_v50 = vpack.c.bf16 %v11649_v10, %v11648_v29  ;;  %v3567_v10 = vld [vmem:[%s18344_s6 + $0x68] sm:$0xff]  ;;  %v3566_v29 = vld [vmem:[%s18344_s6 + $0x60] sm:$0xff] }
0x13e9   :  { %10284 = vmatpush1.bf16.msra.mxu1 %v10283_v7  ;;  %v3554_v7 = vld [vmem:[%s18344_s6] sm:$0xff] }
0x13ea   :  { %10285 = vmatprep.subr.bf16.mxu1 %v12888_v8 }
0x13ed   :  { %10287 = vmatpush1.bf16.msra.mxu1 %v10286_v40  ;;  %v3564_v40 = vld [vmem:[%s18344_s6 + $0x50] sm:$0xff] }
0x13ee   :  { %10288 = vmatprep.subr.bf16.mxu1 %v12888_v8 }
0x13f1   :  { %10290 = vmatpush1.bf16.msra.mxu1 %v10289_v43  ;;  %v3558_v43 = vld [vmem:[%s18344_s6 + $0x20] sm:$0xff] }
0x13f2   :  { %10291 = vmatprep.subr.bf16.mxu1 %v12888_v8  ;;  %v12694_v8 = vld [vmem:[%s18455_s25 + $0x28] sm:$0xff] }
0x13f5   :  { %10293 = vmatpush1.bf16.msra.mxu1 %v10292_v50  ;;  %v3561_v50 = vld [vmem:[%s18344_s6 + $0x38] sm:$0xff] }
0x13f8   :  { %3300 = vmatmul.mubr.f32.vlgmr.msra.gmra.mrb[60].mxu1 %v12691_v17  ;;  %v3560_v17 = vld [vmem:[%s18344_s6 + $0x30] sm:$0xff] }
0x13f9   :  { %8351 = vmatprep.mubr.msk.f32.mxu1 %vm660_vm5, %v12692_v63  ;;  %v3569_v63 = vld [vmem:[%s18344_s6 + $0x78] sm:$0xff] }
0x13fc   :  { %3305 = vmatmul.mubr.f32.gmra.mrb[62].mxu1 %v12693_v26  ;;  %v3568_v26 = vld [vmem:[%s18344_s6 + $0x70] sm:$0xff] }
0x13fd   :  { %8352 = vmatprep.mubr.msk.f32.mxu1 %vm660_vm5, %v12694_v8  ;;  %v3571_v8 = vld [vmem:[%s18344_s6 + $0x88] sm:$0xff] }
0x1400   :  { %3310 = vmatmul.mubr.f32.gmra.mrb[64].mxu1 %v12695_v23  ;;  %v3570_v23 = vld [vmem:[%s18344_s6 + $0x80] sm:$0xff] }
0x1401   :  { %8353 = vmatprep.mubr.msk.f32.mxu1 %vm660_vm5, %v12696_v46  ;;  %v3579_v46 = vld [vmem:[%s18344_s6 + $0xc8] sm:$0xff] }
0x1404   :  { %3315 = vmatmul.mubr.f32.gmra.mrb[66].mxu1 %v12697_v61  ;;  %v3578_v61 = vld [vmem:[%s18344_s6 + $0xc0] sm:$0xff] }
0x14cb   :  { %v3301_v19 = vpop.f32.mrb[60].mxu1 }
0x14cc   :  { %v3302_v12 = vadd.f32 %v3301_v19, %v13608_v39  ;;  %v3303_v30 = vpop.f32.mrb[61].mxu1  ;;  %v3573_v19 = vld [vmem:[%s18344_s6 + $0x98] sm:$0xff] }
0x14cd   :  { %v3581_v30 = vld [vmem:[%s18344_s6 + $0xd8] sm:$0xff] }
0x14ce   :  { %v15786_v49 = vmax.f32 %v3302_v12, 0.0  ;;  %v3572_v12 = vld [vmem:[%s18344_s6 + $0x90] sm:$0xff] }
0x14cf   :  { %v3306_v58 = vpop.f32.mrb[62].mxu1 }
0x14d0   :  { %v3307_v34 = vadd.f32 %v3306_v58, %v13613_v20  ;;  %v3308_v27 = vpop.f32.mrb[63].mxu1  ;;  %3332 = vrot.lane.b32.xlu0 %v15786_v49, %s12889_s19  ;;  %v3580_v58 = vld [vmem:[%s18344_s6 + $0xd0] sm:$0xff] }
0x14d1   :  { %v3574_v27 = vld [vmem:[%s18344_s6 + $0xa0] sm:$0xff] }
0x14d2   :  { %v15791_v57 = vmax.f32 %v3307_v34, 0.0  ;;  %v3575_v34 = vld [vmem:[%s18344_s6 + $0xa8] sm:$0xff] }
0x14d3   :  { %v3311_v15 = vpop.f32.mrb[64].mxu1 }
0x14d4   :  { %v3312_v3 = vadd.f32 %v3311_v15, %v13619_v42  ;;  %v3313_v53 = vpop.f32.mrb[65].mxu1  ;;  %3335 = vrot.lane.b32.xlu1 %v15791_v57, %s12889_s19  ;;  %v3583_v15 = vld [vmem:[%s18344_s6 + $0xe8] sm:$0xff] }
0x14d5   :  { %v3577_v53 = vld [vmem:[%s18344_s6 + $0xb8] sm:$0xff] }
0x14d6   :  { %v15796_v39 = vmax.f32 %v3312_v3, 0.0  ;;  %v3582_v3 = vld [vmem:[%s18344_s6 + $0xe0] sm:$0xff] }
0x14d7   :  { %v3316_v59 = vpop.f32.mrb[66].mxu1 }
0x14d8   :  { %v3317_v24 = vadd.f32 %v3316_v59, %v13650_v44  ;;  %3338 = vrot.lane.b32.xlu0 %v15796_v39, %s12889_s19  ;;  %v3318_v20 = vpop.f32.mrb[67].mxu1  ;;  %v3576_v59 = vld [vmem:[%s18344_s6 + $0xb0] sm:$0xff] }
0x14d9   :  { %v3584_v20 = vld [vmem:[%s18344_s6 + $0xf0] sm:$0xff] }
0x14da   :  { %v15801_v2 = vmax.f32 %v3317_v24, 0.0  ;;  %v3585_v24 = vld [vmem:[%s18344_s6 + $0xf8] sm:$0xff] }
0x14dc   :  { %3341 = vrot.lane.b32.xlu1 %v15801_v2, %s12889_s19 }
0x1542   :  { %v3333_v33 = vpop.permute.xlu0 %3332 }
0x1543   :  { %v3334_v42 = vsel %vm2886_vm8, %v3333_v33, %v15786_v49  ;;  %v4132_v33 = vld [vmem:[%s18346_s8 + $0x8] sm:$0xff] }
0x1544   :  { %3344 = vrot.lane.b32.xlu0 %v3334_v42, %s12889_s19  ;;  %v4131_v42 = vld [vmem:[%s18346_s8] sm:$0xff] }
0x1546   :  { %v3336_v37 = vpop.permute.xlu1 %3335 }
0x1547   :  { %v3337_v9 = vsel %vm2886_vm8, %v3336_v37, %v15791_v57  ;;  %v4140_v37 = vld [vmem:[%s18346_s8 + $0x48] sm:$0xff] }
0x1548   :  { %3346 = vrot.lane.b32.xlu1 %v3337_v9, %s12889_s19  ;;  %v4139_v9 = vld [vmem:[%s18346_s8 + $0x40] sm:$0xff] }
0x154a   :  { %v3339_v44 = vpop.permute.xlu0 %3338 }
0x154b   :  { %v3340_v21 = vsel %vm2886_vm8, %v3339_v44, %v15796_v39  ;;  %v4134_v44 = vld [vmem:[%s18346_s8 + $0x18] sm:$0xff] }
0x154c   :  { %3348 = vrot.lane.b32.xlu0 %v3340_v21, %s12889_s19  ;;  %v4133_v21 = vld [vmem:[%s18346_s8 + $0x10] sm:$0xff] }
0x154e   :  { %v3342_v47 = vpop.permute.xlu1 %3341 }
0x154f   :  { %v3343_v60 = vsel %vm2886_vm8, %v3342_v47, %v15801_v2  ;;  %v4142_v47 = vld [vmem:[%s18346_s8 + $0x58] sm:$0xff] }
0x1550   :  { %3350 = vrot.lane.b32.xlu1 %v3343_v60, %s12889_s19  ;;  %v4141_v60 = vld [vmem:[%s18346_s8 + $0x50] sm:$0xff]  ;;  %s12894_s19 = smov 120  }
0x15b6   :  { %v3345_v0 = vpop.permute.xlu0 %3344 }
0x15b7   :  { %v3352_v41 = vsel %vm2886_vm8, %v3345_v0, %v15786_v49 }
0x15b8   :  { %3392 = vrot.lane.b32.xlu1 %v3352_v41, %s12886_s1  ;;  %3360 = vrot.lane.b32.xlu0 %v3352_v41, %s12882_s26 }
0x15ba   :  { %v3347_v14 = vpop.permute.xlu1 %3346 }
0x15bb   :  { %v3353_v36 = vsel %vm2886_vm8, %v3347_v14, %v15791_v57 }
0x15bc   :  { %3408 = vrot.lane.b32.xlu1 %v3352_v41, %s18504_s18  ;;  %3376 = vrot.lane.b32.xlu0 %v3352_v41, %s12884_s28  ;;  %v4138_v41 = vld [vmem:[%s18346_s8 + $0x38] sm:$0xff] }
0x15be   :  { %v3349_v55 = vpop.permute.xlu0 %3348 }
0x15bf   :  { %v3354_v22 = vsel %vm2886_vm8, %v3349_v55, %v15796_v39 }
0x15c0   :  { %3362 = vrot.lane.b32.xlu1 %v3353_v36, %s12882_s26  ;;  %3364 = vrot.lane.b32.xlu0 %v3354_v22, %s12882_s26 }
0x15c2   :  { %v3351_v1 = vpop.permute.xlu1 %3350 }
0x15c3   :  { %v3355_v48 = vsel %vm2886_vm8, %v3351_v1, %v15801_v2  ;;  %v4147_v1 = vld [vmem:[%s18346_s8 + $0x80] sm:$0xff] }
0x15c4   :  { %3378 = vrot.lane.b32.xlu1 %v3353_v36, %s12884_s28  ;;  %3380 = vrot.lane.b32.xlu0 %v3354_v22, %s12884_s28 }
0x15c8   :  { %3394 = vrot.lane.b32.xlu1 %v3353_v36, %s12886_s1  ;;  %3396 = vrot.lane.b32.xlu0 %v3354_v22, %s12886_s1 }
0x15cc   :  { %3410 = vrot.lane.b32.xlu1 %v3353_v36, %s18504_s18  ;;  %3366 = vrot.lane.b32.xlu0 %v3355_v48, %s12882_s26 }
0x15d0   :  { %3398 = vrot.lane.b32.xlu1 %v3355_v48, %s12886_s1  ;;  %3382 = vrot.lane.b32.xlu0 %v3355_v48, %s12884_s28 }
0x15d4   :  { %3414 = vrot.lane.b32.xlu1 %v3355_v48, %s18504_s18  ;;  %3412 = vrot.lane.b32.xlu0 %v3354_v22, %s18504_s18  ;;  %v4148_v22 = vld [vmem:[%s18346_s8 + $0x88] sm:$0xff] }
0x15d8   :  { %3593 = vperm.xlu1 %10604, %v3555_v35   ;;  %3588 = vperm.xlu0 %10603, %v3554_v7  }
0x15dc   :  { %3633 = vperm.xlu1 %10604, %v3563_v38   ;;  %3628 = vperm.xlu0 %10603, %v3562_v32   ;;  %v4156_v38 = vld [vmem:[%s18346_s8 + $0xc8] sm:$0xff]  ;;  %v4155_v32 = vld [vmem:[%s18346_s8 + $0xc0] sm:$0xff] }
0x15e0   :  { %3603 = vperm.xlu1 %10604, %v3557_v18   ;;  %3598 = vperm.xlu0 %10603, %v3556_v11  }
0x15e4   :  { %3643 = vperm.xlu1 %10604, %v3565_v51   ;;  %3638 = vperm.xlu0 %10603, %v3564_v40  }
0x15e8   :  { %3613 = vperm.xlu1 %10604, %v3559_v25   ;;  %3608 = vperm.xlu0 %10603, %v3558_v43   ;;  %v4150_v25 = vld [vmem:[%s18346_s8 + $0x98] sm:$0xff] }
0x15ec   :  { %3653 = vperm.xlu1 %10604, %v3567_v10   ;;  %3648 = vperm.xlu0 %10603, %v3566_v29  }
0x15f0   :  { %3623 = vperm.xlu1 %10604, %v3561_v50   ;;  %3618 = vperm.xlu0 %10603, %v3560_v17  }
0x15f4   :  { %3663 = vperm.xlu1 %10604, %v3569_v63   ;;  %3658 = vperm.xlu0 %10603, %v3568_v26  }
0x15f8   :  { %3673 = vperm.xlu1 %10604, %v3571_v8   ;;  %3668 = vperm.xlu0 %10603, %v3570_v23  }
0x15fc   :  { %3713 = vperm.xlu1 %10604, %v3579_v46   ;;  %3708 = vperm.xlu0 %10603, %v3578_v61  }
0x1600   :  { %3683 = vperm.xlu1 %10604, %v3573_v19   ;;  %3678 = vperm.xlu0 %10603, %v3572_v12  }
0x1604   :  { %3723 = vperm.xlu1 %10604, %v3581_v30   ;;  %3718 = vperm.xlu0 %10603, %v3580_v58  }
0x1608   :  { %3693 = vperm.xlu1 %10604, %v3575_v34   ;;  %3688 = vperm.xlu0 %10603, %v3574_v27  }
0x160c   :  { %3733 = vperm.xlu1 %10604, %v3583_v15   ;;  %3728 = vperm.xlu0 %10603, %v3582_v3  }
0x1610   :  { %3703 = vperm.xlu1 %10604, %v3577_v53   ;;  %3698 = vperm.xlu0 %10603, %v3576_v59  }
0x1614   :  { %3743 = vperm.xlu1 %10604, %v3585_v24   ;;  %3738 = vperm.xlu0 %10603, %v3584_v20   ;;  %v3523_v24 = vld [vmem:[%s18505_s3 + $0x8] sm:$0xff] }
0x1615   :  { %v3543_v20 = vld [vmem:[%s18505_s3 + $0xa8] sm:$0xff] }
0x1618   :  { %5099 = vperm.xlu1 %10604, %v4132_v33   ;;  %5094 = vperm.xlu0 %10603, %v4131_v42   ;;  %v3524_v33 = vld [vmem:[%s18505_s3 + $0x10] sm:$0xff] }
0x1619   :  { %v3544_v42 = vld [vmem:[%s18505_s3 + $0xb0] sm:$0xff] }
0x161c   :  { %5139 = vperm.xlu1 %10604, %v4140_v37   ;;  %5134 = vperm.xlu0 %10603, %v4139_v9   ;;  %v3525_v37 = vld [vmem:[%s18505_s3 + $0x18] sm:$0xff] }
0x161d   :  { %v3545_v9 = vld [vmem:[%s18505_s3 + $0xb8] sm:$0xff] }
0x1620   :  { %5109 = vperm.xlu1 %10604, %v4134_v44   ;;  %5104 = vperm.xlu0 %10603, %v4133_v21   ;;  %v3526_v44 = vld [vmem:[%s18505_s3 + $0x20] sm:$0xff] }
0x1621   :  { %v3546_v21 = vld [vmem:[%s18505_s3 + $0xc0] sm:$0xff] }
0x1624   :  { %5149 = vperm.xlu1 %10604, %v4142_v47   ;;  %5144 = vperm.xlu0 %10603, %v4141_v60   ;;  %v3527_v47 = vld [vmem:[%s18505_s3 + $0x28] sm:$0xff] }
0x1625   :  { %v3547_v60 = vld [vmem:[%s18505_s3 + $0xc8] sm:$0xff] }
0x1628   :  { %5119 = vperm.xlu1 %10604, %v4136_v28   ;;  %5114 = vperm.xlu0 %10603, %v4135_v45   ;;  %v3528_v28 = vld [vmem:[%s18505_s3 + $0x30] sm:$0xff] }
0x1629   :  { %v3548_v45 = vld [vmem:[%s18505_s3 + $0xd0] sm:$0xff] }
0x162a   :  { %v3393_v13 = vpop.permute.xlu1 %3392  ;;  %v3361_v0 = vpop.permute.xlu0 %3360 }
0x162b   :  { %v3372_v56 = vmax.f32 %v15786_v49, %v3361_v0  ;;  %v4145_v49 = vld [vmem:[%s18346_s8 + $0x70] sm:$0xff]  ;;  %v3550_v0 = vld [vmem:[%s18505_s3 + $0xe0] sm:$0xff] }
0x162c   :  { %5159 = vperm.xlu1 %10604, %v4144_v4   ;;  %5154 = vperm.xlu0 %10603, %v4143_v31   ;;  %v3529_v4 = vld [vmem:[%s18505_s3 + $0x38] sm:$0xff] }
0x162d   :  { %v3549_v31 = vld [vmem:[%s18505_s3 + $0xd8] sm:$0xff] }
0x162e   :  { %v3409_v62 = vpop.permute.xlu1 %3408  ;;  %v3377_v16 = vpop.permute.xlu0 %3376 }
0x162f   :  { %v3388_v14 = vmax.f32 %v3372_v56, %v3377_v16  ;;  %v3531_v56 = vld [vmem:[%s18505_s3 + $0x48] sm:$0xff]  ;;  %v3533_v16 = vld [vmem:[%s18505_s3 + $0x58] sm:$0xff] }
0x1630   :  { %5129 = vperm.xlu1 %10604, %v4138_v41   ;;  %5124 = vperm.xlu0 %10603, %v4137_v52   ;;  %v3551_v41 = vld [vmem:[%s18505_s3 + $0xe8] sm:$0xff]  ;;  %v3532_v52 = vld [vmem:[%s18505_s3 + $0x50] sm:$0xff] }
0x1631   :  { %v3404_v5 = vmax.f32 %v3388_v14, %v3393_v13  ;;  %v3530_v13 = vld [vmem:[%s18505_s3 + $0x40] sm:$0xff]  ;;  %v3553_v14 = vld [vmem:[%s18505_s3 + $0xf8] sm:$0xff] }
0x1632   :  { %v3363_v55 = vpop.permute.xlu1 %3362  ;;  %v3365_v6 = vpop.permute.xlu0 %3364 }
0x1633   :  { %v3420_v36 = vmax.f32 %v3404_v5, %v3409_v62  ;;  %v3373_v7 = vmax.f32 %v15791_v57, %v3363_v55  ;;  %v4149_v57 = vld [vmem:[%s18346_s8 + $0x90] sm:$0xff]  ;;  %v3374_v50 = vmax.f32 %v15796_v39, %v3365_v6  ;;  %v3522_v39 = vld [vmem:[%s18505_s3] sm:$0xff]  ;;  %v3537_v55 = vld [vmem:[%s18505_s3 + $0x78] sm:$0xff] }
0x1634   :  { %5169 = vperm.xlu1 %10604, %v4146_v54   ;;  %5164 = vperm.xlu0 %10603, %v4145_v49   ;;  %v3552_v62 = vld [vmem:[%s18505_s3 + $0xf0] sm:$0xff]  ;;  %v3534_v5 = vld [vmem:[%s18505_s3 + $0x60] sm:$0xff]  ;;  %v3535_v54 = vld [vmem:[%s18505_s3 + $0x68] sm:$0xff] }
0x1635   :  { %9112 = vmatprep.mubr.msk.f32.mxu0 %vm3424_vm9, %v3420_v36  ;;  %v3536_v49 = vld [vmem:[%s18505_s3 + $0x70] sm:$0xff]  ;;  %v3538_v6 = vld [vmem:[%s18505_s3 + $0x80] sm:$0xff]  ;;  %v3539_v36 = vld [vmem:[%s18505_s3 + $0x88] sm:$0xff] }
0x1636   :  { %v3379_v48 = vpop.permute.xlu1 %3378  ;;  %v3381_v35 = vpop.permute.xlu0 %3380 }
0x1637   :  { %v3389_v51 = vmax.f32 %v3373_v7, %v3379_v48  ;;  %v3390_v8 = vmax.f32 %v3374_v50, %v3381_v35 }
0x1638   :  { %5179 = vperm.xlu1 %10604, %v4148_v22   ;;  %5174 = vperm.xlu0 %10603, %v4147_v1   ;;  %v3540_v22 = vld [vmem:[%s18505_s3 + $0x90] sm:$0xff]  ;;  %v3541_v1 = vld [vmem:[%s18505_s3 + $0x98] sm:$0xff] }
0x163a   :  { %v3395_v18 = vpop.permute.xlu1 %3394  ;;  %v3397_v11 = vpop.permute.xlu0 %3396 }
0x163b   :  { %v3405_v40 = vmax.f32 %v3389_v51, %v3395_v18  ;;  %v3406_v46 = vmax.f32 %v3390_v8, %v3397_v11 }
0x163c   :  { %5219 = vperm.xlu1 %10604, %v4156_v38   ;;  %5214 = vperm.xlu0 %10603, %v4155_v32  }
0x163e   :  { %v3411_v43 = vpop.permute.xlu1 %3410  ;;  %v3367_v10 = vpop.permute.xlu0 %3366 }
0x163f   :  { %v3421_v29 = vmax.f32 %v3405_v40, %v3411_v43  ;;  %v3375_v17 = vmax.f32 %v15801_v2, %v3367_v10  ;;  %v3542_v2 = vld [vmem:[%s18505_s3 + $0xa0] sm:$0xff] }
0x1640   :  { %5189 = vperm.xlu1 %10604, %v4150_v25   ;;  %5184 = vperm.xlu0 %10603, %v4149_v57  }
0x1641   :  { %9113 = vmatmul.mubr.msk.f32.vlgmr.msra.gmra.mrb[48].mxu0 %vm3424_vm9, %v3421_v29  ;;  %9156 = vmatprep.mubr.msk.f32.mxu1 %vm660_vm5, %v3542_v2 }
0x1642   :  { %v3399_v63 = vpop.permute.xlu1 %3398  ;;  %v3383_v26 = vpop.permute.xlu0 %3382 }
0x1643   :  { %v3391_v23 = vmax.f32 %v3375_v17, %v3383_v26 }
0x1645   :  { %v3407_v61 = vmax.f32 %v3391_v23, %v3399_v63  ;;  %v4067_v63 = vld [vmem:[%s18345_s7] sm:$0xff] }
0x1646   :  { %v3415_v19 = vpop.permute.xlu1 %3414  ;;  %v3413_v12 = vpop.permute.xlu0 %3412 }
0x1647   :  { %v3423_v30 = vmax.f32 %v3407_v61, %v3415_v19  ;;  %v3422_v58 = vmax.f32 %v3406_v46, %v3413_v12 }
0x1649   :  { %9115 = vmatprep.mubr.msk.f32.mxu0 %vm3424_vm9, %v3422_v58 }
0x164a   :  { %9116 = vmatmul.mubr.msk.f32.gmra.mrb[50].mxu0 %vm3424_vm9, %v3423_v30 }
0x164b   :  { %9126 = vmatprep.mubr.msk.f32.mxu0 %vm660_vm5, %v3522_v39 }
0x1657   :  { %v3594_v48 = vpop.permute.xlu1 %3593  ;;  %v3589_v35 = vpop.permute.xlu0 %3588 }
0x165b   :  { %v16163_v7 = vpop.permute.xlu1 %3633  ;;  %v16165_v38 = vpop.permute.xlu0 %3628 }
0x165f   :  { %v3604_v32 = vpop.permute.xlu1 %3603  ;;  %v3599_v18 = vpop.permute.xlu0 %3598 }
0x1663   :  { %v16167_v11 = vpop.permute.xlu1 %3643  ;;  %v16169_v51 = vpop.permute.xlu0 %3638 }
0x1667   :  { %v3614_v40 = vpop.permute.xlu1 %3613  ;;  %v3609_v25 = vpop.permute.xlu0 %3608 }
0x166b   :  { %v16171_v57 = vpop.permute.xlu1 %3653  ;;  %v16173_v43 = vpop.permute.xlu0 %3648 }
0x166f   :  { %v3624_v10 = vpop.permute.xlu1 %3623  ;;  %v16175_v29 = vpop.permute.xlu0 %3618 }
0x1673   :  { %v16177_v50 = vpop.permute.xlu1 %3663  ;;  %v16179_v17 = vpop.permute.xlu0 %3658 }
0x1677   :  { %v16184_v26 = vpop.permute.xlu1 %3673  ;;  %v16186_v8 = vpop.permute.xlu0 %3668 }
0x167b   :  { %v3714_v23 = vpop.permute.xlu1 %3713  ;;  %v3709_v46 = vpop.permute.xlu0 %3708 }
0x167f   :  { %v16188_v61 = vpop.permute.xlu1 %3683  ;;  %v16190_v19 = vpop.permute.xlu0 %3678 }
0x1683   :  { %v16192_v12 = vpop.permute.xlu1 %3723  ;;  %v16194_v30 = vpop.permute.xlu0 %3718 }
0x1687   :  { %v3694_v58 = vpop.permute.xlu1 %3693  ;;  %v3689_v39 = vpop.permute.xlu0 %3688 }
0x1714   :  { %v9114_v34 = vpop.f32.mrb[48].mxu0 }
0x1715   :  { %v3503_v27 = vpop.f32.mrb[49].mxu0 }
0x1716   :  { %v10310_v15 = vpack.c.bf16 %v9114_v34, %v3503_v27 }
0x1718   :  { %10311 = vmatprep.subr.bf16.mxu0 %v10310_v15  ;;  %10494 = vmatprep.subr.bf16.mxu1 %v10310_v15 }
0x1719   :  { %10313 = vmatpush3.bf16.msra.mxu0 %v10310_v15  ;;  %10496 = vmatpush3.bf16.msra.mxu1 %v10310_v15 }
0x171d   :  { %v9117_v3 = vpop.f32.mrb[50].mxu0 }
0x171e   :  { %v3513_v53 = vpop.f32.mrb[51].mxu0 }
0x171f   :  { %v10314_v59 = vpack.c.bf16 %v9117_v3, %v3513_v53 }
0x1721   :  { %10315 = vmatprep.subr.bf16.mxu0 %v10314_v59  ;;  %10495 = vmatprep.subr.bf16.mxu1 %v10314_v59 }
0x1722   :  { %10317 = vmatpush3.bf16.msra.mxu0 %v10314_v59  ;;  %10497 = vmatpush3.bf16.msra.mxu1 %v10314_v59  ;;  %v16200_v59 = vpop.permute.xlu1 %3733 }
0x1725   :  { %9127 = vmatmul.mubr.msk.f32.vlgmr.msra.gmra.mrb[52].mxu0 %vm660_vm5, %v3523_v24  ;;  %9157 = vmatmul.mubr.msk.f32.vlgmr.msra.gmra.mrb[68].mxu1 %vm660_vm5, %v3543_v20  ;;  %v16202_v24 = vpop.permute.xlu0 %3728 }
0x1726   :  { %9129 = vmatprep.mubr.msk.f32.mxu0 %vm660_vm5, %v3524_v33  ;;  %9159 = vmatprep.mubr.msk.f32.mxu1 %vm660_vm5, %v3544_v42 }
0x1729   :  { %9130 = vmatmul.mubr.msk.f32.gmra.mrb[54].mxu0 %vm660_vm5, %v3525_v37  ;;  %9160 = vmatmul.mubr.msk.f32.gmra.mrb[70].mxu1 %vm660_vm5, %v3545_v9 }
0x172a   :  { %9132 = vmatprep.mubr.msk.f32.mxu0 %vm660_vm5, %v3526_v44  ;;  %9162 = vmatprep.mubr.msk.f32.mxu1 %vm660_vm5, %v3546_v21 }
0x172d   :  { %9133 = vmatmul.mubr.msk.f32.gmra.mrb[56].mxu0 %vm660_vm5, %v3527_v47  ;;  %9163 = vmatmul.mubr.msk.f32.gmra.mrb[72].mxu1 %vm660_vm5, %v3547_v60 }
0x172e   :  { %9135 = vmatprep.mubr.msk.f32.mxu0 %vm660_vm5, %v3528_v28  ;;  %9165 = vmatprep.mubr.msk.f32.mxu1 %vm660_vm5, %v3548_v45 }
0x1731   :  { %9136 = vmatmul.mubr.msk.f32.gmra.mrb[58].mxu0 %vm660_vm5, %v3529_v4  ;;  %9166 = vmatmul.mubr.msk.f32.gmra.mrb[74].mxu1 %vm660_vm5, %v3549_v31 }
0x1732   :  { %9138 = vmatprep.mubr.msk.f32.mxu0 %vm660_vm5, %v3530_v13  ;;  %9168 = vmatprep.mubr.msk.f32.mxu1 %vm660_vm5, %v3550_v0 }
0x1735   :  { %9139 = vmatmul.mubr.msk.f32.gmra.mrb[60].mxu0 %vm660_vm5, %v3531_v56  ;;  %9169 = vmatmul.mubr.msk.f32.gmra.mrb[76].mxu1 %vm660_vm5, %v3551_v41 }
0x1736   :  { %9141 = vmatprep.mubr.msk.f32.mxu0 %vm660_vm5, %v3532_v52  ;;  %9171 = vmatprep.mubr.msk.f32.mxu1 %vm660_vm5, %v3552_v62  ;;  %v3704_v62 = vpop.permute.xlu1 %3703 }
0x1739   :  { %9142 = vmatmul.mubr.msk.f32.gmra.mrb[62].mxu0 %vm660_vm5, %v3533_v16  ;;  %9172 = vmatmul.mubr.msk.f32.gmra.mrb[78].mxu1 %vm660_vm5, %v3553_v14  ;;  %v3699_v16 = vpop.permute.xlu0 %3698 }
0x173a   :  { %9144 = vmatprep.mubr.msk.f32.mxu0 %vm660_vm5, %v3534_v5  ;;  %9190 = vmatprep.mubr.f32.mxu1 %v4067_v63 }
0x173d   :  { %9145 = vmatmul.mubr.msk.f32.gmra.mrb[64].mxu0 %vm660_vm5, %v3535_v54 }
0x173e   :  { %9147 = vmatprep.mubr.msk.f32.mxu0 %vm660_vm5, %v3536_v49 }
0x1741   :  { %9148 = vmatmul.mubr.msk.f32.gmra.mrb[66].mxu0 %vm660_vm5, %v3537_v55 }
0x1742   :  { %9150 = vmatprep.mubr.msk.f32.mxu0 %vm660_vm5, %v3538_v6 }
0x1745   :  { %9151 = vmatmul.mubr.msk.f32.gmra.mrb[68].mxu0 %vm660_vm5, %v3539_v36 }
0x1746   :  { %9153 = vmatprep.mubr.msk.f32.mxu0 %vm660_vm5, %v3540_v22 }
0x1749   :  { %9154 = vmatmul.mubr.msk.f32.gmra.mrb[70].mxu0 %vm660_vm5, %v3541_v1 }
0x174a   :  { %9318 = vmatprep.mubr.f32.mxu0 %v4067_v63 }
0x17f8   :  { %v9128_v2 = vpop.f32.mrb[52].mxu0  ;;  %v9158_v34 = vpop.f32.mrb[68].mxu1 }
0x17f9   :  { %v16196_v27 = vadd.f32 %v9128_v2, %v3594_v48  ;;  %v3908_v15 = vpop.f32.mrb[53].mxu0  ;;  %v4008_v3 = vpop.f32.mrb[69].mxu1  ;;  %v16209_v37 = vadd.f32 %v9158_v34, %v3694_v58 }
0x17fa   :  { %v16198_v53 = vadd.f32 %v3908_v15, %v3589_v35  ;;  %v16213_v47 = vadd.f32 %v4008_v3, %v3689_v39 }
0x17fb   :  { %4774 = vrot.lane.b32.xlu1 %v16196_v27, %s18504_s18  ;;  %v8391_v42 = vmul.f32 -1.442695, %v16196_v27 }
0x17fc   :  { %v9131_v20 = vpop.f32.mrb[54].mxu0  ;;  %v9161_v33 = vpop.f32.mrb[70].mxu1  ;;  %4772 = vrot.lane.b32.xlu0 %v16198_v53, %s18504_s18  ;;  %v8390_v28 = vmul.f32 -1.442695, %v16198_v53 }
0x17fd   :  { %v16211_v9 = vadd.f32 %v9131_v20, %v3604_v32  ;;  %v3918_v44 = vpop.f32.mrb[55].mxu0  ;;  %v4018_v21 = vpop.f32.mrb[71].mxu1  ;;  %11650 = vpow2.f32 %v8391_v42  ;;  %v16234_v49 = vadd.f32 %v9161_v33, %v3704_v62 }
0x17fe   :  { %v16215_v60 = vadd.f32 %v3918_v44, %v3599_v18  ;;  %11652 = vpow2.f32 %v8390_v28  ;;  %v16239_v1 = vadd.f32 %v4018_v21, %v3699_v16 }
0x17ff   :  { %4814 = vrot.lane.b32.xlu1 %v16209_v37, %s18504_s18  ;;  %v8393_v31 = vmul.f32 -1.442695, %v16211_v9 }
0x1800   :  { %v9134_v45 = vpop.f32.mrb[56].mxu0  ;;  %v9164_v4 = vpop.f32.mrb[72].mxu1  ;;  %4812 = vrot.lane.b32.xlu0 %v16213_v47, %s18504_s18  ;;  %v8392_v41 = vmul.f32 -1.442695, %v16215_v60 }
0x1801   :  { %v16223_v13 = vadd.f32 %v9134_v45, %v3614_v40  ;;  %v3928_v0 = vpop.f32.mrb[57].mxu0  ;;  %v4028_v56 = vpop.f32.mrb[73].mxu1  ;;  %v16226_v52 = vadd.f32 %v9164_v4, %v3714_v23  ;;  %11654 = vpow2.f32 %v8393_v31 }
0x1802   :  { %v16230_v14 = vadd.f32 %v3928_v0, %v3609_v25  ;;  %11656 = vpow2.f32 %v8392_v41  ;;  %v16251_v40 = vadd.f32 %v4028_v56, %v3709_v46 }
0x1803   :  { %4778 = vrot.lane.b32.xlu1 %v16211_v9, %s18504_s18  ;;  %v8395_v55 = vmul.f32 -1.442695, %v16223_v13  ;;  %v8407_v48 = vmul.f32 -1.442695, %v16226_v52  ;;  %11658 = vtanh.f32 %v16209_v37 }
0x1804   :  { %v9137_v5 = vpop.f32.mrb[58].mxu0  ;;  %v9167_v54 = vpop.f32.mrb[74].mxu1  ;;  %4776 = vrot.lane.b32.xlu0 %v16215_v60, %s18504_s18  ;;  %v8394_v35 = vmul.f32 -1.442695, %v16230_v14  ;;  %v8406_v34 = vmul.f32 -1.442695, %v16251_v40 }
0x1805   :  { %v16237_v6 = vadd.f32 %v9137_v5, %v3624_v10  ;;  %v3938_v36 = vpop.f32.mrb[59].mxu0  ;;  %v4038_v22 = vpop.f32.mrb[75].mxu1  ;;  %11660 = vpow2.f32 %v8395_v55  ;;  %v16267_v15 = vadd.f32 %v9167_v54, %v16192_v12 }
0x1806   :  { %v16247_v32 = vadd.f32 %v3938_v36, %v16175_v29  ;;  %11662 = vpow2.f32 %v8407_v48  ;;  %v16285_v31 = vadd.f32 %v4038_v22, %v16194_v30 }
0x1807   :  { %4818 = vrot.lane.b32.xlu1 %v16234_v49, %s18504_s18  ;;  %v8397_v25 = vmul.f32 -1.442695, %v16237_v6  ;;  %v11651_v58 = vpop.eup %11650  ;;  %11664 = vtanh.f32 %v16213_v47  ;;  %v8409_v4 = vmul.f32 -1.442695, %v16267_v15 }
0x1808   :  { %v9140_v18 = vpop.f32.mrb[60].mxu0  ;;  %4816 = vrot.lane.b32.xlu0 %v16239_v1, %s18504_s18  ;;  %v9170_v10 = vpop.f32.mrb[76].mxu1  ;;  %11666 = vpow2.f32 %v8394_v35  ;;  %v8396_v46 = vmul.f32 -1.442695, %v16247_v32  ;;  %v4188_v20 = vadd.f32 1.0, %v11651_v58 }
0x1809   :  { %v3948_v63 = vpop.f32.mrb[61].mxu0  ;;  %v16254_v23 = vpop.f32.mrb[77].mxu1  ;;  %v16258_v29 = vadd.f32 %v9140_v18, %v16163_v7  ;;  %11668 = vpow2.f32 %v8397_v25  ;;  %v8408_v36 = vmul.f32 -1.442695, %v16285_v31 }
0x180a   :  { %v11653_v2 = vpop.eup %11652  ;;  %11670 = vtanh.f32 %v16234_v49  ;;  %v16279_v12 = vadd.f32 %v3948_v63, %v16165_v38  ;;  %v16301_v63 = vadd.f32 %v9170_v10, %v16200_v59 }
0x180b   :  { %4782 = vrot.lane.b32.xlu1 %v16223_v13, %s18504_s18  ;;  %v11655_v42 = vpop.eup %11654  ;;  %11672 = vtanh.f32 %v16239_v1  ;;  %v8399_v44 = vmul.f32 -1.442695, %v16258_v29  ;;  %v4187_v28 = vadd.f32 1.0, %v11653_v2 }
0x180c   :  { %v9143_v39 = vpop.f32.mrb[62].mxu0  ;;  %4780 = vrot.lane.b32.xlu0 %v16230_v14, %s18504_s18  ;;  %v16269_v3 = vpop.f32.mrb[78].mxu1  ;;  %11674 = vpow2.f32 %v8396_v46  ;;  %v4190_v41 = vadd.f32 1.0, %v11655_v42  ;;  %v8398_v5 = vmul.f32 -1.442695, %v16279_v12 }
0x180d   :  { %v3958_v7 = vpop.f32.mrb[63].mxu0  ;;  %v16272_v33 = vpop.f32.mrb[79].mxu1  ;;  %11676 = vpow2.f32 %v8406_v34  ;;  %v16293_v54 = vadd.f32 %v9143_v39, %v16167_v11 }
0x180e   :  { %v11657_v21 = vpop.eup %11656  ;;  %11678 = vrcp.f32 %v4188_v20  ;;  %v16309_v46 = vadd.f32 %v3958_v7, %v16169_v51  ;;  %v8411_v51 = vmul.f32 -1.442695, %v16301_v63 }
0x180f   :  { %4822 = vrot.lane.b32.xlu1 %v16226_v52, %s18504_s18  ;;  %v16287_v56 = vpop.eup %11658  ;;  %v4189_v16 = vadd.f32 1.0, %v11657_v21  ;;  %11680 = vpow2.f32 %v8399_v44  ;;  %v8401_v58 = vmul.f32 -1.442695, %v16293_v54 }
0x1810   :  { %v9146_v45 = vpop.f32.mrb[64].mxu0  ;;  %4820 = vrot.lane.b32.xlu0 %v16251_v40, %s18504_s18  ;;  %v11661_v62 = vpop.eup %11660  ;;  %11682 = vrcp.f32 %v4187_v28  ;;  %v8400_v28 = vmul.f32 -1.442695, %v16309_v46 }
0x1811   :  { %v3968_v0 = vpop.f32.mrb[65].mxu0  ;;  %v11663_v38 = vpop.eup %11662  ;;  %11684 = vpow2.f32 %v8409_v4  ;;  %v4192_v35 = vadd.f32 1.0, %v11661_v62  ;;  %v16316_v42 = vadd.f32 %v9146_v45, %v16171_v57 }
0x1812   :  { %v16297_v55 = vpop.eup %11664  ;;  %11686 = vrcp.f32 %v4190_v41  ;;  %v4292_v25 = vadd.f32 1.0, %v11663_v38  ;;  %v16322_v7 = vadd.f32 %v3968_v0, %v16173_v43  ;;  %v16339_v0 = vadd.f32 %v16254_v23, %v16202_v24  ;;  %v3744_v24 = vpop.permute.xlu1 %3743 }
0x1813   :  { %4786 = vrot.lane.b32.xlu1 %v16237_v6, %s18504_s18  ;;  %v11667_v48 = vpop.eup %11666  ;;  %11688 = vrcp.f32 %v4189_v16  ;;  %v8403_v62 = vmul.f32 -1.442695, %v16316_v42 }
0x1814   :  { %v9149_v30 = vpop.f32.mrb[66].mxu0  ;;  %4784 = vrot.lane.b32.xlu0 %v16247_v32, %s18504_s18  ;;  %v11669_v18 = vpop.eup %11668  ;;  %11690 = vpow2.f32 %v8398_v5  ;;  %v4191_v34 = vadd.f32 1.0, %v11667_v48  ;;  %v8402_v5 = vmul.f32 -1.442695, %v16322_v7 }
0x1815   :  { %v3978_v22 = vpop.f32.mrb[67].mxu0  ;;  %v16305_v11 = vpop.eup %11670  ;;  %11692 = vpow2.f32 %v8408_v36  ;;  %v4194_v20 = vadd.f32 1.0, %v11669_v18  ;;  %v16343_v16 = vadd.f32 %v9149_v30, %v16177_v50  ;;  %v16360_v30 = vadd.f32 %v16269_v3, %v3744_v24 }
0x1816   :  { %v16313_v2 = vpop.eup %11672  ;;  %11694 = vrcp.f32 %v4192_v35  ;;  %v16349_v36 = vadd.f32 %v3978_v22, %v16179_v17  ;;  %v3739_v18 = vpop.permute.xlu0 %3738 }
0x1817   :  { %4826 = vrot.lane.b32.xlu1 %v16267_v15, %s18504_s18  ;;  %v11675_v10 = vpop.eup %11674  ;;  %11696 = vrcp.f32 %v4292_v25  ;;  %v8405_v17 = vmul.f32 -1.442695, %v16343_v16  ;;  %v16370_v3 = vadd.f32 %v16272_v33, %v3739_v18 }
0x1818   :  { %v9152_v39 = vpop.f32.mrb[68].mxu0  ;;  %4824 = vrot.lane.b32.xlu0 %v16285_v31, %s18504_s18  ;;  %v16318_v44 = vpop.eup %11676  ;;  %11698 = vpow2.f32 %v8401_v58  ;;  %v4193_v45 = vadd.f32 1.0, %v11675_v10  ;;  %v8404_v58 = vmul.f32 -1.442695, %v16349_v36  ;;  %v8410_v10 = vmul.f32 -1.442695, %v16339_v0 }
0x1819   :  { %v3988_v59 = vpop.f32.mrb[69].mxu0  ;;  %v16326_v21 = vpop.eup %11678  ;;  %11700 = vrcp.f32 %v4191_v34 }
0x181a   :  { %v11681_v57 = vpop.eup %11680  ;;  %11702 = vrcp.f32 %v4194_v20 }
0x181b   :  { %4790 = vrot.lane.b32.xlu1 %v16258_v29, %s18504_s18  ;;  %v16335_v43 = vpop.eup %11682  ;;  %11704 = vpow2.f32 %v8411_v51  ;;  %v4236_v23 = vadd.f32 1.0, %v11681_v57  ;;  %v8413_v51 = vmul.f32 -1.442695, %v16360_v30  ;;  %v16378_v57 = vadd.f32 %v9152_v39, %v16184_v26 }
0x181c   :  { %v16329_v4 = vpop.f32.mrb[70].mxu0  ;;  %4788 = vrot.lane.b32.xlu0 %v16279_v12, %s18504_s18  ;;  %v16345_v38 = vpop.eup %11684  ;;  %11706 = vpow2.f32 %v8400_v28 }
0x181d   :  { %v16333_v41 = vpop.f32.mrb[71].mxu0  ;;  %v16353_v48 = vpop.eup %11686  ;;  %11708 = vrcp.f32 %v4193_v45  ;;  %v16402_v18 = vadd.f32 %v16329_v4, %v16188_v61  ;;  %v4291_v61 = vadd.f32 1.0, %v16318_v44 }
0x181e   :  { %v16357_v50 = vpop.eup %11688  ;;  %11710 = vpow2.f32 %v8403_v62  ;;  %v16383_v62 = vadd.f32 %v3988_v59, %v16186_v8 }
0x181f   :  { %4830 = vrot.lane.b32.xlu1 %v16301_v63, %s18504_s18  ;;  %v11691_v35 = vpop.eup %11690  ;;  %11712 = vpow2.f32 %v8402_v5  ;;  %v8412_v5 = vmul.f32 -1.442695, %v16370_v3 }
0x1820   :  { %4828 = vrot.lane.b32.xlu0 %v16339_v0, %s18504_s18  ;;  %v11693_v22 = vpop.eup %11692  ;;  %v4235_v25 = vadd.f32 1.0, %v11691_v35  ;;  %11714 = vrcp.f32 %v4236_v23 }
0x1821   :  { %v16366_v34 = vpop.eup %11694 }
0x1822   :  { %v16374_v20 = vpop.eup %11696  ;;  %11716 = vrcp.f32 %v4235_v25 }
0x1823   :  { %4794 = vrot.lane.b32.xlu1 %v16293_v54, %s18504_s18  ;;  %v11699_v28 = vpop.eup %11698  ;;  %11718 = vpow2.f32 %v8405_v17 }
0x1824   :  { %4792 = vrot.lane.b32.xlu0 %v16309_v46, %s18504_s18  ;;  %v16380_v45 = vpop.eup %11700  ;;  %11720 = vpow2.f32 %v8404_v58  ;;  %v4238_v26 = vadd.f32 1.0, %v11699_v28 }
0x1825   :  { %v16387_v33 = vpop.eup %11702  ;;  %11722 = vpow2.f32 %v8410_v10  ;;  %v16406_v10 = vadd.f32 %v16333_v41, %v16190_v19  ;;  %v4294_v19 = vadd.f32 1.0, %v16345_v38 }
0x1826   :  { %v11705_v24 = vpop.eup %11704  ;;  %11724 = vpow2.f32 %v8413_v51 }
0x1827   :  { %4834 = vrot.lane.b32.xlu1 %v16360_v30, %s18504_s18  ;;  %v11707_v39 = vpop.eup %11706  ;;  %11726 = vtanh.f32 %v16378_v57 }
0x1828   :  { %4832 = vrot.lane.b32.xlu0 %v16370_v3, %s18504_s18  ;;  %v16393_v23 = vpop.eup %11708  ;;  %v4237_v8 = vadd.f32 1.0, %v11707_v39  ;;  %11728 = vtanh.f32 %v16383_v62 }
0x1829   :  { %v11711_v59 = vpop.eup %11710  ;;  %11730 = vpow2.f32 %v8412_v5 }
0x182a   :  { %v11713_v35 = vpop.eup %11712  ;;  %11732 = vrcp.f32 %v4238_v26  ;;  %v4240_v17 = vadd.f32 1.0, %v11711_v59 }
0x182b   :  { %4798 = vrot.lane.b32.xlu1 %v16316_v42, %s18504_s18  ;;  %v11715_v25 = vpop.eup %11714  ;;  %11734 = vrcp.f32 %v4237_v8  ;;  %v4239_v58 = vadd.f32 1.0, %v11713_v35  ;;  %v4293_v8 = vadd.f32 1.0, %v11693_v22 }
0x182c   :  { %4796 = vrot.lane.b32.xlu0 %v16322_v7, %s18504_s18  ;;  %v11717_v51 = vpop.eup %11716  ;;  %11736 = vrcp.f32 %v4240_v17  ;;  %v4316_v59 = vmul.f32 0.0, %v11715_v25  ;;  %v4296_v17 = vadd.f32 1.0, %v11705_v24 }
0x182d   :  { %v11719_v28 = vpop.eup %11718  ;;  %11738 = vrcp.f32 %v4239_v58  ;;  %v4315_v58 = vmul.f32 0.0, %v11717_v51 }
0x182e   :  { %v11721_v5 = vpop.eup %11720  ;;  %v4242_v4 = vadd.f32 1.0, %v11719_v28  ;;  %11740 = vtanh.f32 %v16402_v18 }
0x182f   :  { %4802 = vrot.lane.b32.xlu1 %v16343_v16, %s18504_s18  ;;  %v11723_v26 = vpop.eup %11722  ;;  %v4241_v41 = vadd.f32 1.0, %v11721_v5  ;;  %11742 = vtanh.f32 %v16406_v10 }
0x1830   :  { %4800 = vrot.lane.b32.xlu0 %v16349_v36, %s18504_s18  ;;  %v11725_v39 = vpop.eup %11724  ;;  %11744 = vrcp.f32 %v4242_v4  ;;  %v4295_v5 = vadd.f32 1.0, %v11723_v26  ;;  %v4157_v26 = vld [vmem:[%s18346_s8 + $0xd0] sm:$0xff] }
0x1831   :  { %v11727_v35 = vpop.eup %11726  ;;  %11746 = vrcp.f32 %v4241_v41  ;;  %v4298_v4 = vadd.f32 1.0, %v11725_v39 }
0x1832   :  { %v11729_v44 = vpop.eup %11728  ;;  %11748 = vrcp.f32 %v4291_v61  ;;  %v4324_v38 = vmul.f32 %v11727_v35, %v16326_v21  ;;  %v4158_v21 = vld [vmem:[%s18346_s8 + $0xd8] sm:$0xff] }
0x1833   :  { %4806 = vrot.lane.b32.xlu1 %v16378_v57, %s18504_s18  ;;  %v11731_v28 = vpop.eup %11730  ;;  %11750 = vrcp.f32 %v4294_v19  ;;  %v4323_v22 = vmul.f32 %v11729_v44, %v16335_v43  ;;  %v4327_v44 = vmul.f32 %v16380_v45, %v16297_v55  ;;  %v4151_v55 = vld [vmem:[%s18346_s8 + $0xa0] sm:$0xff] }
0x1834   :  { %4804 = vrot.lane.b32.xlu0 %v16383_v62, %s18504_s18  ;;  %v11733_v25 = vpop.eup %11732  ;;  %11752 = vrcp.f32 %v4293_v8  ;;  %v16424_v24 = vadd.f32 %v4324_v38, %v4316_v59  ;;  %v4297_v19 = vadd.f32 1.0, %v11731_v28  ;;  %v4328_v59 = vmul.f32 %v16366_v34, %v16287_v56  ;;  %v4152_v56 = vld [vmem:[%s18346_s8 + $0xa8] sm:$0xff] }
0x1835   :  { %v11735_v51 = vpop.eup %11734  ;;  %11754 = vrcp.f32 %v4296_v17  ;;  %v16428_v61 = vadd.f32 %v4323_v22, %v4315_v58  ;;  %v4318_v8 = vmul.f32 0.0, %v11733_v25 }
0x1836   :  { %v11737_v43 = vpop.eup %11736  ;;  %11756 = vtanh.f32 %v16424_v24  ;;  %v4317_v17 = vmul.f32 0.0, %v11735_v51 }
0x1837   :  { %4810 = vrot.lane.b32.xlu1 %v16402_v18, %s18504_s18  ;;  %v11739_v41 = vpop.eup %11738  ;;  %v4320_v39 = vmul.f32 0.0, %v11737_v43  ;;  %11758 = vtanh.f32 %v16428_v61 }
0x1838   :  { %4808 = vrot.lane.b32.xlu0 %v16406_v10, %s18504_s18  ;;  %v11741_v35 = vpop.eup %11740  ;;  %11760 = vrcp.f32 %v4295_v5  ;;  %v4319_v58 = vmul.f32 0.0, %v11739_v41  ;;  %s12895_s18 = smov 116  }
0x1839   :  { %v11743_v38 = vpop.eup %11742  ;;  %11762 = vrcp.f32 %v4298_v4  ;;  %v16442_v28 = vadd.f32 %v4328_v59, %v4320_v39  ;;  %v4326_v22 = vmul.f32 %v11741_v35, %v16353_v48  ;;  %v4330_v48 = vmul.f32 %v16387_v33, %v16305_v11  ;;  %v4160_v11 = vld [vmem:[%s18346_s8 + $0xe8] sm:$0xff] }
0x183a   :  { %v11745_v34 = vpop.eup %11744  ;;  %11764 = vrcp.f32 %v4297_v19  ;;  %v16448_v25 = vadd.f32 %v4327_v44, %v4319_v58  ;;  %v4325_v5 = vmul.f32 %v11743_v38, %v16357_v50  ;;  %v4329_v19 = vmul.f32 %v16393_v23, %v16313_v2  ;;  %v4159_v2 = vld [vmem:[%s18346_s8 + $0xe0] sm:$0xff]  ;;  %v4153_v38 = vld [vmem:[%s18346_s8 + $0xb0] sm:$0xff] }
0x183b   :  { %5229 = vperm.xlu1 %10604, %v4158_v21   ;;  %v11747_v45 = vpop.eup %11746  ;;  %v4322_v51 = vmul.f32 0.0, %v11745_v34  ;;  %v16456_v4 = vadd.f32 %v4326_v22, %v4318_v8  ;;  %11766 = vtanh.f32 %v16442_v28 }
0x183c   :  { %5224 = vperm.xlu0 %10603, %v4157_v26   ;;  %v11749_v21 = vpop.eup %11748  ;;  %v4321_v43 = vmul.f32 0.0, %v11747_v45  ;;  %v16461_v26 = vadd.f32 %v4325_v5, %v4317_v17  ;;  %11768 = vtanh.f32 %v16448_v25  ;;  %v4154_v17 = vld [vmem:[%s18346_s8 + $0xb8] sm:$0xff]  ;;  %v4161_v45 = vld [vmem:[%s18346_s8 + $0xf0] sm:$0xff] }
0x183d   :  { %v11751_v50 = vpop.eup %11750  ;;  %v16464_v41 = vadd.f32 %v4330_v48, %v4322_v51  ;;  %11770 = vtanh.f32 %v16456_v4 }
0x183e   :  { %v11753_v33 = vpop.eup %11752  ;;  %v16470_v8 = vadd.f32 %v4329_v19, %v4321_v43  ;;  %11772 = vtanh.f32 %v16461_v26 }
0x183f   :  { %5199 = vperm.xlu1 %10604, %v4152_v56   ;;  %v11755_v23 = vpop.eup %11754  ;;  %11774 = vtanh.f32 %v16464_v41 }
0x1840   :  { %5194 = vperm.xlu0 %10603, %v4151_v55   ;;  %v11757_v39 = vpop.eup %11756  ;;  %11776 = vtanh.f32 %v16470_v8 }
0x1841   :  { %v11759_v59 = vpop.eup %11758  ;;  %v4348_v35 = vmul.f32 %v11757_v39, %v16374_v20  ;;  %v4162_v20 = vld [vmem:[%s18346_s8 + $0xf8] sm:$0xff] }
0x1842   :  { %v11761_v58 = vpop.eup %11760  ;;  %v4347_v44 = vmul.f32 %v11759_v59, %v11749_v21 }
0x1843   :  { %5239 = vperm.xlu1 %10604, %v4160_v11   ;;  %v11763_v22 = vpop.eup %11762 }
0x1844   :  { %5234 = vperm.xlu0 %10603, %v4159_v2   ;;  %v11765_v56 = vpop.eup %11764  ;;  %v10318_v34 = vpack.c.bf16 %v4348_v35, %v4347_v44 }
0x1845   :  { %v11767_v5 = vpop.eup %11766 }
0x1846   :  { %v11769_v55 = vpop.eup %11768  ;;  %10319 = vmatprep.subr.bf16.mxu1 %v10318_v34  ;;  %v4352_v21 = vmul.f32 %v11767_v5, %v11755_v23  ;;  %v16506_v23 = vpop.permute.xlu0 %5094 }
0x1847   :  { %5209 = vperm.xlu1 %10604, %v4154_v17   ;;  %v11771_v51 = vpop.eup %11770  ;;  %10321 = vmatpush3.bf16.msra.mxu1 %v10318_v34  ;;  %v4351_v48 = vmul.f32 %v11769_v55, %v11761_v58  ;;  %v4069_v58 = vld [vmem:[%s18345_s7 + $0x10] sm:$0xff] }
0x1848   :  { %5204 = vperm.xlu0 %10603, %v4153_v38   ;;  %v11773_v43 = vpop.eup %11772  ;;  %v4350_v19 = vmul.f32 %v11771_v51, %v11751_v50  ;;  %v16511_v38 = vpop.permute.xlu1 %5099  ;;  %v4073_v55 = vld [vmem:[%s18345_s7 + $0x30] sm:$0xff] }
0x1849   :  { %v11775_v11 = vpop.eup %11774  ;;  %v4349_v2 = vmul.f32 %v11773_v43, %v11753_v33  ;;  %v10326_v35 = vpack.c.bf16 %v4352_v21, %v4351_v48  ;;  %v4068_v33 = vld [vmem:[%s18345_s7 + $0x8] sm:$0xff]  ;;  %v4075_v48 = vld [vmem:[%s18345_s7 + $0x40] sm:$0xff] }
0x184a   :  { %v11777_v39 = vpop.eup %11776  ;;  %v4354_v44 = vmul.f32 %v11775_v11, %v11763_v22  ;;  %v4070_v22 = vld [vmem:[%s18345_s7 + $0x18] sm:$0xff]  ;;  %v16525_v34 = vpop.permute.xlu0 %5134  ;;  %v4076_v43 = vld [vmem:[%s18345_s7 + $0x48] sm:$0xff] }
0x184b   :  { %5249 = vperm.xlu1 %10604, %v4162_v20   ;;  %v10322_v59 = vpack.c.bf16 %v4350_v19, %v4349_v2  ;;  %v4353_v17 = vmul.f32 %v11777_v39, %v11765_v56  ;;  %v4071_v56 = vld [vmem:[%s18345_s7 + $0x20] sm:$0xff]  ;;  %v4072_v20 = vld [vmem:[%s18345_s7 + $0x28] sm:$0xff]  ;;  %v4077_v19 = vld [vmem:[%s18345_s7 + $0x50] sm:$0xff] }
0x184c   :  { %5244 = vperm.xlu0 %10603, %v4161_v45   ;;  %v16529_v5 = vpop.permute.xlu1 %5139  ;;  %v4074_v45 = vld [vmem:[%s18345_s7 + $0x38] sm:$0xff] }
0x184d   :  { %10323 = vmatprep.subr.bf16.mxu1 %v10322_v59  ;;  %v10330_v50 = vpack.c.bf16 %v4354_v44, %v4353_v17  ;;  %v4078_v39 = vld [vmem:[%s18345_s7 + $0x58] sm:$0xff]  ;;  %v4081_v44 = vld [vmem:[%s18345_s7 + $0x70] sm:$0xff] }
0x184e   :  { %10325 = vmatpush3.bf16.msra.mxu1 %v10322_v59  ;;  %v16544_v51 = vpop.permute.xlu0 %5104  ;;  %v4079_v59 = vld [vmem:[%s18345_s7 + $0x60] sm:$0xff] }
0x184f   :  { %5863 = vrot.lane.b32.xlu1 %v16196_v27, %s12894_s19  ;;  %10327 = vmatprep.subr.bf16.mxu1 %v10326_v35 }
0x1850   :  { %5861 = vrot.lane.b32.xlu0 %v16198_v53, %s12894_s19  ;;  %v16549_v21 = vpop.permute.xlu1 %5109 }
0x1852   :  { %10329 = vmatpush3.bf16.msra.mxu1 %v10326_v35  ;;  %v16563_v11 = vpop.permute.xlu0 %5144  ;;  %v4080_v35 = vld [vmem:[%s18345_s7 + $0x68] sm:$0xff] }
0x1853   :  { %5879 = vrot.lane.b32.xlu1 %v16258_v29, %s12894_s19  ;;  %10331 = vmatprep.subr.bf16.mxu1 %v10330_v50  ;;  %18506 = vst [vmem:[#allocation5_spill] sm:$0xff] %v16563_v11 }
0x1854   :  { %5877 = vrot.lane.b32.xlu0 %v16279_v12, %s12894_s19  ;;  %v16567_v2 = vpop.permute.xlu1 %5149 }
0x1855   :  { %18507 = vst [vmem:[#allocation6_spill] sm:$0xff] %v16567_v2 }
0x1856   :  { %10333 = vmatpush3.bf16.msra.mxu1 %v10330_v50  ;;  %v16582_v17 = vpop.permute.xlu0 %5114 }
0x1857   :  { %5867 = vrot.lane.b32.xlu1 %v16211_v9, %s12894_s19 }
0x1858   :  { %5865 = vrot.lane.b32.xlu0 %v16215_v60, %s12894_s19  ;;  %v16587_v50 = vpop.permute.xlu1 %5119 }
0x1859   :  { %9191 = vmatmul.mubr.f32.vlgmr.msra.gmra.mrb[80].mxu1 %v4068_v33  ;;  %v4082_v33 = vld [vmem:[%s18345_s7 + $0x78] sm:$0xff] }
0x185a   :  { %9193 = vmatprep.mubr.f32.mxu1 %v4069_v58  ;;  %v4083_v58 = vld [vmem:[%s18345_s7 + $0x80] sm:$0xff] }
0x185b   :  { %5883 = vrot.lane.b32.xlu1 %v16293_v54, %s12894_s19 }
0x185c   :  { %5881 = vrot.lane.b32.xlu0 %v16309_v46, %s12894_s19 }
0x185d   :  { %9194 = vmatmul.mubr.f32.gmra.mrb[82].mxu1 %v4070_v22  ;;  %v16601_v22 = vpop.permute.xlu0 %5154 }
0x185e   :  { %9196 = vmatprep.mubr.f32.mxu1 %v4071_v56  ;;  %18508 = vst [vmem:[#allocation7_spill] sm:$0xff] %v16601_v22  ;;  %v16605_v56 = vpop.permute.xlu1 %5159 }
0x185f   :  { %5871 = vrot.lane.b32.xlu1 %v16223_v13, %s12894_s19  ;;  %18509 = vst [vmem:[#allocation8_spill] sm:$0xff] %v16605_v56 }
0x1860   :  { %5869 = vrot.lane.b32.xlu0 %v16230_v14, %s12894_s19 }
0x1861   :  { %9197 = vmatmul.mubr.f32.gmra.mrb[84].mxu1 %v4072_v20  ;;  %v4084_v20 = vld [vmem:[%s18345_s7 + $0x88] sm:$0xff] }
0x1862   :  { %9199 = vmatprep.mubr.f32.mxu1 %v4073_v55  ;;  %v4085_v55 = vld [vmem:[%s18345_s7 + $0x90] sm:$0xff] }
0x1863   :  { %5887 = vrot.lane.b32.xlu1 %v16316_v42, %s12894_s19 }
0x1864   :  { %5885 = vrot.lane.b32.xlu0 %v16322_v7, %s12894_s19 }
0x1865   :  { %9200 = vmatmul.mubr.f32.gmra.mrb[86].mxu1 %v4074_v45  ;;  %v4086_v45 = vld [vmem:[%s18345_s7 + $0x98] sm:$0xff] }
0x1866   :  { %9202 = vmatprep.mubr.f32.mxu1 %v4075_v48  ;;  %v16620_v48 = vpop.permute.xlu0 %5124 }
0x1867   :  { %5875 = vrot.lane.b32.xlu1 %v16237_v6, %s12894_s19 }
0x1868   :  { %5873 = vrot.lane.b32.xlu0 %v16247_v32, %s12894_s19 }
0x1869   :  { %9203 = vmatmul.mubr.f32.gmra.mrb[88].mxu1 %v4076_v43  ;;  %v4087_v43 = vld [vmem:[%s18345_s7 + $0xa0] sm:$0xff] }
0x186a   :  { %9205 = vmatprep.mubr.f32.mxu1 %v4077_v19  ;;  %v16625_v19 = vpop.permute.xlu1 %5129 }
0x186b   :  { %5891 = vrot.lane.b32.xlu1 %v16343_v16, %s12894_s19 }
0x186c   :  { %5889 = vrot.lane.b32.xlu0 %v16349_v36, %s12894_s19 }
0x186d   :  { %9206 = vmatmul.mubr.f32.gmra.mrb[90].mxu1 %v4078_v39  ;;  %v4088_v39 = vld [vmem:[%s18345_s7 + $0xa8] sm:$0xff] }
0x186e   :  { %9208 = vmatprep.mubr.f32.mxu1 %v4079_v59  ;;  %v4089_v59 = vld [vmem:[%s18345_s7 + $0xb0] sm:$0xff] }
0x186f   :  { %5895 = vrot.lane.b32.xlu1 %v16378_v57, %s12894_s19 }
0x1870   :  { %5893 = vrot.lane.b32.xlu0 %v16383_v62, %s12894_s19 }
0x1871   :  { %9209 = vmatmul.mubr.f32.gmra.mrb[92].mxu1 %v4080_v35  ;;  %v16639_v35 = vpop.permute.xlu0 %5164 }
0x1872   :  { %9211 = vmatprep.mubr.f32.mxu1 %v4081_v44  ;;  %18510 = vst [vmem:[#allocation9_spill] sm:$0xff] %v16639_v35  ;;  %v16643_v44 = vpop.permute.xlu1 %5169 }
0x1873   :  { %5911 = vrot.lane.b32.xlu1 %v16226_v52, %s12894_s19  ;;  %18511 = vst [vmem:[#allocation10_spill] sm:$0xff] %v16643_v44 }
0x1874   :  { %5909 = vrot.lane.b32.xlu0 %v16251_v40, %s12894_s19 }
0x1875   :  { %9212 = vmatmul.mubr.f32.gmra.mrb[94].mxu1 %v4082_v33  ;;  %v4090_v33 = vld [vmem:[%s18345_s7 + $0xb8] sm:$0xff] }
0x1876   :  { %9214 = vmatprep.mubr.f32.mxu1 %v4083_v58  ;;  %v4091_v58 = vld [vmem:[%s18345_s7 + $0xc0] sm:$0xff] }
0x1877   :  { %5899 = vrot.lane.b32.xlu1 %v16402_v18, %s12894_s19 }
0x1878   :  { %5913 = vrot.lane.b32.xlu0 %v16285_v31, %s12894_s19 }
0x1879   :  { %9215 = vmatmul.mubr.f32.gmra.mrb[96].mxu1 %v4084_v20  ;;  %v4092_v20 = vld [vmem:[%s18345_s7 + $0xc8] sm:$0xff] }
0x187a   :  { %9217 = vmatprep.mubr.f32.mxu1 %v4085_v55  ;;  %v16658_v55 = vpop.permute.xlu0 %5174 }
0x187b   :  { %5915 = vrot.lane.b32.xlu1 %v16267_v15, %s12894_s19  ;;  %18512 = vst [vmem:[#allocation11_spill] sm:$0xff] %v16658_v55  ;;  %v7812_v55 = vld [vmem:[%s18348_s10 + $0xe8] sm:$0xff] }
0x187c   :  { %5901 = vrot.lane.b32.xlu0 %v16213_v47, %s12894_s19 }
0x187d   :  { %9218 = vmatmul.mubr.f32.gmra.mrb[98].mxu1 %v4086_v45  ;;  %v4093_v45 = vld [vmem:[%s18345_s7 + $0xd0] sm:$0xff] }
0x187e   :  { %9220 = vmatprep.mubr.f32.mxu1 %v4087_v43  ;;  %v16663_v43 = vpop.permute.xlu1 %5179 }
0x187f   :  { %5903 = vrot.lane.b32.xlu1 %v16209_v37, %s12894_s19  ;;  %18513 = vst [vmem:[#allocation12_spill] sm:$0xff] %v16663_v43 }
0x1880   :  { %5917 = vrot.lane.b32.xlu0 %v16339_v0, %s12894_s19 }
0x1881   :  { %9221 = vmatmul.mubr.f32.gmra.mrb[100].mxu1 %v4088_v39  ;;  %v4094_v39 = vld [vmem:[%s18345_s7 + $0xd8] sm:$0xff] }
0x1882   :  { %9223 = vmatprep.mubr.f32.mxu1 %v4089_v59  ;;  %v4095_v59 = vld [vmem:[%s18345_s7 + $0xe0] sm:$0xff] }
0x1883   :  { %5919 = vrot.lane.b32.xlu1 %v16301_v63, %s12894_s19 }
0x1884   :  { %5897 = vrot.lane.b32.xlu0 %v16406_v10, %s12894_s19 }
0x1885   :  { %9224 = vmatmul.mubr.f32.gmra.mrb[102].mxu1 %v4090_v33  ;;  %v16677_v33 = vpop.permute.xlu0 %5214 }
0x1886   :  { %9226 = vmatprep.mubr.f32.mxu1 %v4091_v58  ;;  %18514 = vst [vmem:[#allocation13_spill] sm:$0xff] %v16677_v33  ;;  %v16681_v58 = vpop.permute.xlu1 %5219  ;;  %v7792_v33 = vld [vmem:[%s18348_s10 + $0x48] sm:$0xff] }
0x1887   :  { %5907 = vrot.lane.b32.xlu1 %v16234_v49, %s12894_s19  ;;  %18515 = vst [vmem:[#allocation14_spill] sm:$0xff] %v16681_v58  ;;  %v7810_v58 = vld [vmem:[%s18348_s10 + $0xd8] sm:$0xff] }
0x1888   :  { %5905 = vrot.lane.b32.xlu0 %v16239_v1, %s12894_s19 }
0x1889   :  { %9227 = vmatmul.mubr.f32.gmra.mrb[104].mxu1 %v4092_v20  ;;  %v4096_v20 = vld [vmem:[%s18345_s7 + $0xe8] sm:$0xff] }
0x188a   :  { %9229 = vmatprep.mubr.f32.mxu1 %v4093_v45  ;;  %v4097_v45 = vld [vmem:[%s18345_s7 + $0xf0] sm:$0xff] }
0x188b   :  { %5923 = vrot.lane.b32.xlu1 %v16360_v30, %s12894_s19 }
0x188c   :  { %5921 = vrot.lane.b32.xlu0 %v16370_v3, %s12894_s19 }
0x188d   :  { %9230 = vmatmul.mubr.f32.gmra.mrb[106].mxu1 %v4094_v39  ;;  %v4099_v39 = vld [vmem:[%s18345_s7 + $0x100] sm:$0xff] }
0x188e   :  { %9232 = vmatprep.mubr.f32.mxu1 %v4095_v59  ;;  %v16701_v59 = vpop.permute.xlu1 %5189 }
0x188f   :  { %6792 = vrot.lane.b32.xlu1 %v16196_v27, %s12895_s18  ;;  %v4098_v27 = vld [vmem:[%s18345_s7 + $0xf8] sm:$0xff]  ;;  %18517 = vst [vmem:[#allocation16_spill] sm:$0xff] %v16701_v59 }
0x1890   :  { %6790 = vrot.lane.b32.xlu0 %v16198_v53, %s12895_s18  ;;  %v16696_v53 = vpop.permute.xlu0 %5184 }
0x1891   :  { %9233 = vmatmul.mubr.f32.gmra.mrb[108].mxu1 %v4096_v20  ;;  %18516 = vst [vmem:[#allocation15_spill] sm:$0xff] %v16696_v53  ;;  %v4101_v20 = vld [vmem:[%s18345_s7 + $0x110] sm:$0xff] }
0x1892   :  { %9235 = vmatprep.mubr.f32.mxu1 %v4097_v45  ;;  %v16715_v45 = vpop.permute.xlu1 %4774 }
0x1893   :  { %6808 = vrot.lane.b32.xlu1 %v16258_v29, %s12895_s18  ;;  %v4100_v29 = vld [vmem:[%s18345_s7 + $0x108] sm:$0xff] }
0x1894   :  { %6806 = vrot.lane.b32.xlu0 %v16279_v12, %s12895_s18  ;;  %v16710_v12 = vpop.permute.xlu0 %4772 }
0x1895   :  { %9236 = vmatmul.mubr.f32.gmra.mrb[110].mxu1 %v4098_v27 }
0x1896   :  { %9238 = vmatprep.mubr.f32.mxu1 %v4099_v39  ;;  %v4105_v39 = vld [vmem:[%s18345_s7 + $0x130] sm:$0xff] }
0x1897   :  { %6796 = vrot.lane.b32.xlu1 %v16211_v9, %s12895_s18  ;;  %v4102_v9 = vld [vmem:[%s18345_s7 + $0x118] sm:$0xff] }
0x1898   :  { %6794 = vrot.lane.b32.xlu0 %v16215_v60, %s12895_s18  ;;  %v4103_v60 = vld [vmem:[%s18345_s7 + $0x120] sm:$0xff]  ;;  %v16729_v27 = vpop.permute.xlu0 %4812 }
0x1899   :  { %9239 = vmatmul.mubr.f32.gmra.mrb[112].mxu1 %v4100_v29  ;;  %v4107_v29 = vld [vmem:[%s18345_s7 + $0x140] sm:$0xff] }
0x189a   :  { %9241 = vmatprep.mubr.f32.mxu1 %v4101_v20 }
0x189b   :  { %6812 = vrot.lane.b32.xlu1 %v16293_v54, %s12895_s18  ;;  %v16733_v54 = vpop.permute.xlu1 %4814 }
0x189c   :  { %6810 = vrot.lane.b32.xlu0 %v16309_v46, %s12895_s18  ;;  %v4104_v46 = vld [vmem:[%s18345_s7 + $0x128] sm:$0xff] }
0x189d   :  { %9242 = vmatmul.mubr.f32.gmra.mrb[114].mxu1 %v4102_v9 }
0x189e   :  { %9244 = vmatprep.mubr.f32.mxu1 %v4103_v60  ;;  %v4111_v60 = vld [vmem:[%s18345_s7 + $0x160] sm:$0xff] }
0x189f   :  { %6800 = vrot.lane.b32.xlu1 %v16223_v13, %s12895_s18  ;;  %v4106_v13 = vld [vmem:[%s18345_s7 + $0x138] sm:$0xff]  ;;  %v16753_v20 = vpop.permute.xlu1 %4778 }
0x18a0   :  { %6798 = vrot.lane.b32.xlu0 %v16230_v14, %s12895_s18  ;;  %v16748_v14 = vpop.permute.xlu0 %4776 }
0x18a1   :  { %9245 = vmatmul.mubr.f32.gmra.mrb[116].mxu1 %v4104_v46  ;;  %v4113_v46 = vld [vmem:[%s18345_s7 + $0x170] sm:$0xff] }
0x18a2   :  { %9247 = vmatprep.mubr.f32.mxu1 %v4105_v39 }
0x18a3   :  { %6816 = vrot.lane.b32.xlu1 %v16316_v42, %s12895_s18  ;;  %v4108_v42 = vld [vmem:[%s18345_s7 + $0x148] sm:$0xff] }
0x18a4   :  { %6814 = vrot.lane.b32.xlu0 %v16322_v7, %s12895_s18  ;;  %v4109_v7 = vld [vmem:[%s18345_s7 + $0x150] sm:$0xff]  ;;  %v16767_v9 = vpop.permute.xlu0 %4816 }
0x18a5   :  { %9248 = vmatmul.mubr.f32.gmra.mrb[118].mxu1 %v4106_v13 }
0x18a6   :  { %9250 = vmatprep.mubr.f32.mxu1 %v4107_v29  ;;  %v4117_v29 = vld [vmem:[%s18345_s7 + $0x190] sm:$0xff] }
0x18a7   :  { %6804 = vrot.lane.b32.xlu1 %v16237_v6, %s12895_s18  ;;  %v16771_v6 = vpop.permute.xlu1 %4818 }
0x18a8   :  { %6802 = vrot.lane.b32.xlu0 %v16247_v32, %s12895_s18  ;;  %v4110_v32 = vld [vmem:[%s18345_s7 + $0x158] sm:$0xff] }
0x18a9   :  { %9251 = vmatmul.mubr.f32.gmra.mrb[120].mxu1 %v4108_v42  ;;  %v4119_v42 = vld [vmem:[%s18345_s7 + $0x1a0] sm:$0xff] }
0x18aa   :  { %9253 = vmatprep.mubr.f32.mxu1 %v4109_v7 }
0x18ab   :  { %6820 = vrot.lane.b32.xlu1 %v16343_v16, %s12895_s18  ;;  %v4112_v16 = vld [vmem:[%s18345_s7 + $0x168] sm:$0xff]  ;;  %v16791_v39 = vpop.permute.xlu1 %4782 }
0x18ac   :  { %6818 = vrot.lane.b32.xlu0 %v16349_v36, %s12895_s18  ;;  %v16786_v36 = vpop.permute.xlu0 %4780 }
0x18ad   :  { %9254 = vmatmul.mubr.f32.gmra.mrb[122].mxu1 %v4110_v32 }
0x18ae   :  { %9256 = vmatprep.mubr.f32.mxu1 %v4111_v60  ;;  %v4123_v60 = vld [vmem:[%s18345_s7 + $0x1c0] sm:$0xff] }
0x18af   :  { %6824 = vrot.lane.b32.xlu1 %v16378_v57, %s12895_s18  ;;  %v4114_v57 = vld [vmem:[%s18345_s7 + $0x178] sm:$0xff] }
0x18b0   :  { %6822 = vrot.lane.b32.xlu0 %v16383_v62, %s12895_s18  ;;  %v4115_v62 = vld [vmem:[%s18345_s7 + $0x180] sm:$0xff]  ;;  %v16805_v13 = vpop.permute.xlu0 %4820 }
0x18b1   :  { %9257 = vmatmul.mubr.f32.gmra.mrb[124].mxu1 %v4112_v16  ;;  %v4125_v16 = vld [vmem:[%s18345_s7 + $0x1d0] sm:$0xff] }
0x18b2   :  { %9259 = vmatprep.mubr.f32.mxu1 %v4113_v46 }
0x18b3   :  { %6840 = vrot.lane.b32.xlu1 %v16226_v52, %s12895_s18  ;;  %v16809_v52 = vpop.permute.xlu1 %4822 }
0x18b4   :  { %6838 = vrot.lane.b32.xlu0 %v16251_v40, %s12895_s18  ;;  %v4116_v40 = vld [vmem:[%s18345_s7 + $0x188] sm:$0xff] }
0x18b5   :  { %9260 = vmatmul.mubr.f32.gmra.mrb[126].mxu1 %v4114_v57  ;;  %v7799_v57 = vld [vmem:[%s18348_s10 + $0x80] sm:$0xff] }
0x18b6   :  { %9262 = vmatprep.mubr.f32.mxu1 %v4115_v62 }
0x18b7   :  { %6828 = vrot.lane.b32.xlu1 %v16402_v18, %s12895_s18  ;;  %v16824_v18 = vpop.permute.xlu0 %4784  ;;  %v16829_v7 = vpop.permute.xlu1 %4786 }
0x18b8   :  { %6842 = vrot.lane.b32.xlu0 %v16285_v31, %s12895_s18  ;;  %v4118_v31 = vld [vmem:[%s18345_s7 + $0x198] sm:$0xff] }
0x18b9   :  { %9263 = vmatmul.mubr.f32.gmra.mrb[128].mxu1 %v4116_v40 }
0x18ba   :  { %9265 = vmatprep.mubr.f32.mxu1 %v4117_v29  ;;  %v4128_v29 = vld [vmem:[%s18345_s7 + $0x1e8] sm:$0xff] }
0x18bb   :  { %6844 = vrot.lane.b32.xlu1 %v16267_v15, %s12895_s18  ;;  %v4121_v15 = vld [vmem:[%s18345_s7 + $0x1b0] sm:$0xff]  ;;  %v16843_v32 = vpop.permute.xlu0 %4824 }
0x18bc   :  { %6830 = vrot.lane.b32.xlu0 %v16213_v47, %s12895_s18  ;;  %v4120_v47 = vld [vmem:[%s18345_s7 + $0x1a8] sm:$0xff] }
0x18bd   :  { %9266 = vmatmul.mubr.f32.gmra.mrb[130].mxu1 %v4118_v31  ;;  %v7783_v31 = vld [vmem:[%s18348_s10] sm:$0xff] }
0x18be   :  { %9268 = vmatprep.mubr.f32.mxu1 %v4119_v42  ;;  %v4129_v42 = vld [vmem:[%s18345_s7 + $0x1f0] sm:$0xff] }
0x18bf   :  { %6832 = vrot.lane.b32.xlu1 %v16209_v37, %s12895_s18  ;;  %v16847_v37 = vpop.permute.xlu1 %4826 }
0x18c0   :  { %6846 = vrot.lane.b32.xlu0 %v16339_v0, %s12895_s18  ;;  %v4122_v0 = vld [vmem:[%s18345_s7 + $0x1b8] sm:$0xff] }
0x18c1   :  { %9269 = vmatmul.mubr.f32.gmra.mrb[132].mxu1 %v4120_v47  ;;  %v7802_v47 = vld [vmem:[%s18348_s10 + $0x98] sm:$0xff] }
0x18c2   :  { %9271 = vmatprep.mubr.f32.mxu1 %v4121_v15  ;;  %v4130_v15 = vld [vmem:[%s18345_s7 + $0x1f8] sm:$0xff] }
0x18c3   :  { %6848 = vrot.lane.b32.xlu1 %v16301_v63, %s12895_s18  ;;  %v4124_v63 = vld [vmem:[%s18345_s7 + $0x1c8] sm:$0xff]  ;;  %v16867_v46 = vpop.permute.xlu1 %4790 }
0x18c4   :  { %6826 = vrot.lane.b32.xlu0 %v16406_v10, %s12895_s18  ;;  %v16862_v10 = vpop.permute.xlu0 %4788 }
0x18c5   :  { %9272 = vmatmul.mubr.f32.gmra.mrb[134].mxu1 %v4122_v0  ;;  %v7801_v0 = vld [vmem:[%s18348_s10 + $0x90] sm:$0xff] }
0x18c6   :  { %9274 = vmatprep.mubr.f32.mxu1 %v4123_v60 }
0x18c7   :  { %6836 = vrot.lane.b32.xlu1 %v16234_v49, %s12895_s18  ;;  %v7800_v49 = vld [vmem:[%s18348_s10 + $0x88] sm:$0xff]  ;;  %v16890_v40 = vpop.permute.xlu1 %4830 }
0x18c8   :  { %6834 = vrot.lane.b32.xlu0 %v16239_v1, %s12895_s18  ;;  %v4126_v1 = vld [vmem:[%s18345_s7 + $0x1d8] sm:$0xff]  ;;  %v16885_v62 = vpop.permute.xlu0 %4828 }
0x18c9   :  { %9275 = vmatmul.mubr.f32.gmra.mrb[136].mxu1 %v4124_v63 }
0x18ca   :  { %9277 = vmatprep.mubr.f32.mxu1 %v4125_v16  ;;  %v7786_v16 = vld [vmem:[%s18348_s10 + $0x18] sm:$0xff] }
0x18cb   :  { %6852 = vrot.lane.b32.xlu1 %v16360_v30, %s12895_s18  ;;  %v4127_v30 = vld [vmem:[%s18345_s7 + $0x1e0] sm:$0xff]  ;;  %v16912_v63 = vpop.permute.xlu1 %4794 }
0x18cc   :  { %6850 = vrot.lane.b32.xlu0 %v16370_v3, %s12895_s18  ;;  %v7784_v3 = vld [vmem:[%s18348_s10 + $0x8] sm:$0xff]  ;;  %v16910_v60 = vpop.permute.xlu0 %4792 }
0x18cd   :  { %9278 = vmatmul.mubr.f32.gmra.mrb[138].mxu1 %v4126_v1  ;;  %v12698_v1 = vld [vmem:[%s18345_s7] sm:$0xff] }
0x18ce   :  { %9280 = vmatprep.mubr.f32.mxu1 %v4127_v30  ;;  %v7804_v30 = vld [vmem:[%s18348_s10 + $0xa8] sm:$0xff] }
0x18cf   :  { %7902 = vperm.xlu1 %10604, %v7800_v49   ;;  %v7785_v49 = vld [vmem:[%s18348_s10 + $0x10] sm:$0xff] }
0x18d0   :  { %7897 = vperm.xlu0 %10603, %v7799_v57   ;;  %v16923_v57 = vpop.permute.xlu0 %4832 }
0x18d1   :  { %9281 = vmatmul.mubr.f32.gmra.mrb[140].mxu1 %v4128_v29  ;;  %v7803_v29 = vld [vmem:[%s18348_s10 + $0xa0] sm:$0xff] }
0x18d2   :  { %9283 = vmatprep.mubr.f32.mxu1 %v4129_v42  ;;  %v7787_v42 = vld [vmem:[%s18348_s10 + $0x20] sm:$0xff] }
0x18d3   :  { %7822 = vperm.xlu1 %10604, %v7784_v3   ;;  %v16928_v3 = vpop.permute.xlu1 %4834 }
0x18d4   :  { %7817 = vperm.xlu0 %10603, %v7783_v31   ;;  %v7788_v31 = vld [vmem:[%s18348_s10 + $0x28] sm:$0xff] }
0x18d5   :  { %9284 = vmatmul.mubr.f32.gmra.mrb[142].mxu1 %v4130_v15 }
0x18d6   :  { %9446 = vmatprep.mubr.f32.mxu1 %v12698_v1  ;;  %v7790_v1 = vld [vmem:[%s18348_s10 + $0x38] sm:$0xff] }
0x18d7   :  { %7912 = vperm.xlu1 %10604, %v7802_v47   ;;  %v16939_v47 = vpop.permute.xlu0 %4796  ;;  %v16941_v15 = vpop.permute.xlu1 %4798 }
0x18d8   :  { %7907 = vperm.xlu0 %10603, %v7801_v0   ;;  %v7806_v0 = vld [vmem:[%s18348_s10 + $0xb8] sm:$0xff] }
0x18db   :  { %7832 = vperm.xlu1 %10604, %v7786_v16   ;;  %v7805_v16 = vld [vmem:[%s18348_s10 + $0xb0] sm:$0xff] }
0x18dc   :  { %7827 = vperm.xlu0 %10603, %v7785_v49   ;;  %v16949_v49 = vpop.permute.xlu0 %4800 }
0x18df   :  { %7922 = vperm.xlu1 %10604, %v7804_v30   ;;  %v16954_v30 = vpop.permute.xlu1 %4802 }
0x18e0   :  { %7917 = vperm.xlu0 %10603, %v7803_v29   ;;  %v7789_v29 = vld [vmem:[%s18348_s10 + $0x30] sm:$0xff] }
0x18e3   :  { %7842 = vperm.xlu1 %10604, %v7788_v31   ;;  %v7808_v31 = vld [vmem:[%s18348_s10 + $0xc8] sm:$0xff] }
0x18e4   :  { %7837 = vperm.xlu0 %10603, %v7787_v42   ;;  %v7807_v42 = vld [vmem:[%s18348_s10 + $0xc0] sm:$0xff] }
0x18e7   :  { %7932 = vperm.xlu1 %10604, %v7806_v0   ;;  %v16965_v0 = vpop.permute.xlu0 %4804 }
0x18e8   :  { %7927 = vperm.xlu0 %10603, %v7805_v16   ;;  %v16967_v16 = vpop.permute.xlu1 %4806 }
0x18eb   :  { %7852 = vperm.xlu1 %10604, %v7790_v1   ;;  %v7791_v1 = vld [vmem:[%s18348_s10 + $0x40] sm:$0xff] }
0x18ec   :  { %7847 = vperm.xlu0 %10603, %v7789_v29   ;;  %v16975_v29 = vpop.permute.xlu0 %4808  ;;  %v16980_v53 = vpop.permute.xlu1 %4810 }
0x18ef   :  { %7942 = vperm.xlu1 %10604, %v7808_v31   ;;  %v7809_v31 = vld [vmem:[%s18348_s10 + $0xd0] sm:$0xff] }
0x18f0   :  { %7937 = vperm.xlu0 %10603, %v7807_v42   ;;  %v16985_v42 = vpop.permute.xlu0 %5224  ;;  %v16990_v59 = vpop.permute.xlu1 %5229 }
0x18f1   :  { %18518 = vst [vmem:[#allocation17_spill] sm:$0xff] %v16985_v42  ;;  %18519 = vst [vmem:[#allocation18_spill] sm:$0xff] %v16990_v59  ;;  %v7796_v59 = vld [vmem:[%s18348_s10 + $0x68] sm:$0xff] }
0x18f3   :  { %7862 = vperm.xlu1 %10604, %v7792_v33   ;;  %v7794_v33 = vld [vmem:[%s18348_s10 + $0x58] sm:$0xff] }
0x18f4   :  { %7857 = vperm.xlu0 %10603, %v7791_v1   ;;  %v7793_v1 = vld [vmem:[%s18348_s10 + $0x50] sm:$0xff]  ;;  %v17003_v42 = vpop.permute.xlu1 %5199 }
0x18f5   :  { %18521 = vst [vmem:[#allocation20_spill] sm:$0xff] %v17003_v42 }
0x18f7   :  { %7952 = vperm.xlu1 %10604, %v7810_v58   ;;  %v7811_v58 = vld [vmem:[%s18348_s10 + $0xe0] sm:$0xff] }
0x18f8   :  { %7947 = vperm.xlu0 %10603, %v7809_v31   ;;  %v17001_v31 = vpop.permute.xlu0 %5194  ;;  %v17016_v43 = vpop.permute.xlu1 %5239 }
0x18f9   :  { %18520 = vst [vmem:[#allocation19_spill] sm:$0xff] %v17001_v31  ;;  %v7814_v31 = vld [vmem:[%s18348_s10 + $0xf8] sm:$0xff]  ;;  %18523 = vst [vmem:[#allocation22_spill] sm:$0xff] %v17016_v43  ;;  %v8201_v43 = vld [vmem:[%s18350_s12] sm:$0x3] }
0x18fb   :  { %7872 = vperm.xlu1 %10604, %v7794_v33   ;;  %v7795_v33 = vld [vmem:[%s18348_s10 + $0x60] sm:$0xff] }
0x18fc   :  { %7867 = vperm.xlu0 %10603, %v7793_v1   ;;  %v17011_v1 = vpop.permute.xlu0 %5234 }
0x18fd   :  { %18522 = vst [vmem:[#allocation21_spill] sm:$0xff] %v17011_v1  ;;  %v17029_v1 = vpop.permute.xlu1 %5209 }
0x18fe   :  { %18525 = vst [vmem:[#allocation24_spill] sm:$0xff] %v17029_v1 }
0x18ff   :  { %7962 = vperm.xlu1 %10604, %v7812_v55   ;;  %v7813_v55 = vld [vmem:[%s18348_s10 + $0xf0] sm:$0xff] }
0x1900   :  { %7957 = vperm.xlu0 %10603, %v7811_v58   ;;  %v7798_v58 = vld [vmem:[%s18348_s10 + $0x78] sm:$0xff] }
0x1903   :  { %7882 = vperm.xlu1 %10604, %v7796_v59   ;;  %v7797_v59 = vld [vmem:[%s18348_s10 + $0x70] sm:$0xff] }
0x1904   :  { %7877 = vperm.xlu0 %10603, %v7795_v33   ;;  %v17027_v33 = vpop.permute.xlu0 %5204 }
0x1905   :  { %18524 = vst [vmem:[#allocation23_spill] sm:$0xff] %v17027_v33 }
0x1907   :  { %7972 = vperm.xlu1 %10604, %v7814_v31  }
0x1908   :  { %7967 = vperm.xlu0 %10603, %v7813_v55   ;;  %v17034_v31 = vpop.permute.xlu0 %5244 }
0x1909   :  { %18526 = vst [vmem:[#allocation25_spill] sm:$0xff] %v17034_v31 }
0x190b   :  { %7892 = vperm.xlu1 %10604, %v7798_v58  }
0x190c   :  { %7887 = vperm.xlu0 %10603, %v7797_v59  }
0x1910   :  { %8204 = vperm.xlu0 %10603, %v8201_v43  }
0x192c   :  { %v9192_v55 = vpop.f32.mrb[80].mxu1 }
0x192d   :  { %v4869_v42 = vadd.f32 %v9192_v55, %v16715_v45  ;;  %v4421_v35 = vpop.f32.mrb[81].mxu1 }
0x192e   :  { %v4868_v44 = vadd.f32 %v16710_v12, %v4421_v35 }
0x192f   :  { %v8415_v22 = vmul.f32 -1.442695, %v4869_v42 }
0x1930   :  { %v8414_v56 = vmul.f32 -1.442695, %v4868_v44  ;;  %v9195_v33 = vpop.f32.mrb[82].mxu1 }
0x1931   :  { %11778 = vpow2.f32 %v8415_v22  ;;  %v4871_v58 = vadd.f32 %v9195_v33, %v16753_v20  ;;  %v4431_v59 = vpop.f32.mrb[83].mxu1 }
0x1932   :  { %11780 = vpow2.f32 %v8414_v56  ;;  %v4870_v1 = vadd.f32 %v16748_v14, %v4431_v59 }
0x1933   :  { %v8417_v11 = vmul.f32 -1.442695, %v4871_v58 }
0x1934   :  { %v8416_v2 = vmul.f32 -1.442695, %v4870_v1  ;;  %v9198_v31 = vpop.f32.mrb[84].mxu1 }
0x1935   :  { %11782 = vpow2.f32 %v8417_v11  ;;  %v4873_v43 = vadd.f32 %v9198_v31, %v16791_v39  ;;  %v4441_v45 = vpop.f32.mrb[85].mxu1 }
0x1936   :  { %11784 = vpow2.f32 %v8416_v2  ;;  %v4872_v35 = vadd.f32 %v16786_v36, %v4441_v45 }
0x1937   :  { %v8419_v12 = vmul.f32 -1.442695, %v4873_v43 }
0x1938   :  { %v8418_v44 = vmul.f32 -1.442695, %v4872_v35  ;;  %v9201_v42 = vpop.f32.mrb[86].mxu1 }
0x1939   :  { %11786 = vpow2.f32 %v8419_v12  ;;  %v4875_v22 = vadd.f32 %v9201_v42, %v16829_v7  ;;  %v4451_v20 = vpop.f32.mrb[87].mxu1 }
0x193a   :  { %11788 = vpow2.f32 %v8418_v44  ;;  %v4874_v56 = vadd.f32 %v16824_v18, %v4451_v20 }
0x193b   :  { %v11779_v14 = vpop.eup %11778  ;;  %v8421_v1 = vmul.f32 -1.442695, %v4875_v22 }
0x193c   :  { %v11781_v33 = vpop.eup %11780  ;;  %v4925_v11 = vadd.f32 1.0, %v11779_v14  ;;  %v8420_v55 = vmul.f32 -1.442695, %v4874_v56  ;;  %v9204_v39 = vpop.f32.mrb[88].mxu1 }
0x193d   :  { %11790 = vpow2.f32 %v8421_v1  ;;  %v4877_v2 = vadd.f32 %v9204_v39, %v16867_v46  ;;  %v4461_v36 = vpop.f32.mrb[89].mxu1  ;;  %v4924_v31 = vadd.f32 1.0, %v11781_v33 }
0x193e   :  { %v4876_v58 = vadd.f32 %v16862_v10, %v4461_v36  ;;  %11792 = vrcp.f32 %v4925_v11 }
0x193f   :  { %v11783_v59 = vpop.eup %11782  ;;  %v8423_v7 = vmul.f32 -1.442695, %v4877_v2  ;;  %11794 = vpow2.f32 %v8420_v55 }
0x1940   :  { %v11785_v43 = vpop.eup %11784  ;;  %v4927_v45 = vadd.f32 1.0, %v11783_v59  ;;  %v8422_v18 = vmul.f32 -1.442695, %v4876_v58  ;;  %v9207_v35 = vpop.f32.mrb[90].mxu1 }
0x1941   :  { %11796 = vpow2.f32 %v8423_v7  ;;  %v4879_v12 = vadd.f32 %v9207_v35, %v16912_v63  ;;  %v4471_v44 = vpop.f32.mrb[91].mxu1  ;;  %v4926_v42 = vadd.f32 1.0, %v11785_v43 }
0x1942   :  { %11798 = vrcp.f32 %v4924_v31  ;;  %v4878_v46 = vadd.f32 %v16910_v60, %v4471_v44 }
0x1943   :  { %v11787_v22 = vpop.eup %11786  ;;  %11800 = vrcp.f32 %v4927_v45  ;;  %v8425_v20 = vmul.f32 -1.442695, %v4879_v12 }
0x1944   :  { %v11789_v10 = vpop.eup %11788  ;;  %v4929_v56 = vadd.f32 1.0, %v11787_v22  ;;  %11802 = vpow2.f32 %v8422_v18  ;;  %v8424_v14 = vmul.f32 -1.442695, %v4878_v46  ;;  %v9210_v1 = vpop.f32.mrb[92].mxu1 }
0x1945   :  { %11804 = vpow2.f32 %v8425_v20  ;;  %v4881_v33 = vadd.f32 %v9210_v1, %v16941_v15  ;;  %v4481_v11 = vpop.f32.mrb[93].mxu1  ;;  %v4928_v55 = vadd.f32 1.0, %v11789_v10 }
0x1946   :  { %11806 = vrcp.f32 %v4926_v42  ;;  %v4880_v63 = vadd.f32 %v16939_v47, %v4481_v11 }
0x1947   :  { %v11791_v39 = vpop.eup %11790  ;;  %11808 = vrcp.f32 %v4929_v56  ;;  %v8427_v2 = vmul.f32 -1.442695, %v4881_v33 }
0x1948   :  { %v4931_v60 = vadd.f32 1.0, %v11791_v39  ;;  %11810 = vpow2.f32 %v8424_v14  ;;  %v8426_v36 = vmul.f32 -1.442695, %v4880_v63  ;;  %v9213_v31 = vpop.f32.mrb[94].mxu1  ;;  %v17050_v58 = vpop.eup %11792 }
0x1949   :  { %11812 = vpow2.f32 %v8427_v2  ;;  %v4883_v59 = vadd.f32 %v9213_v31, %v16954_v30  ;;  %v4491_v7 = vpop.f32.mrb[95].mxu1  ;;  %v11795_v43 = vpop.eup %11794 }
0x194a   :  { %11814 = vrcp.f32 %v4928_v55  ;;  %v4882_v15 = vadd.f32 %v16949_v49, %v4491_v7  ;;  %v4930_v18 = vadd.f32 1.0, %v11795_v43 }
0x194b   :  { %v11797_v45 = vpop.eup %11796  ;;  %11816 = vpow2.f32 %v8426_v36  ;;  %v8429_v47 = vmul.f32 -1.442695, %v4883_v59 }
0x194c   :  { %v17054_v35 = vpop.eup %11798  ;;  %11818 = vrcp.f32 %v4931_v60  ;;  %v4973_v12 = vadd.f32 1.0, %v11797_v45  ;;  %v8428_v44 = vmul.f32 -1.442695, %v4882_v15  ;;  %v9216_v42 = vpop.f32.mrb[96].mxu1 }
0x194d   :  { %v17056_v46 = vpop.eup %11800  ;;  %11820 = vrcp.f32 %v4930_v18  ;;  %v4501_v22 = vpop.f32.mrb[97].mxu1  ;;  %v4885_v49 = vadd.f32 %v9216_v42, %v16967_v16 }
0x194e   :  { %v11803_v30 = vpop.eup %11802  ;;  %11822 = vrcp.f32 %v4973_v12  ;;  %v4884_v1 = vadd.f32 %v16965_v0, %v4501_v22 }
0x194f   :  { %v11805_v20 = vpop.eup %11804  ;;  %v4972_v10 = vadd.f32 1.0, %v11803_v30  ;;  %11824 = vpow2.f32 %v8429_v47 }
0x1950   :  { %v17059_v56 = vpop.eup %11806  ;;  %v4975_v14 = vadd.f32 1.0, %v11805_v20  ;;  %11826 = vpow2.f32 %v8428_v44  ;;  %v9219_v33 = vpop.f32.mrb[98].mxu1 }
0x1951   :  { %v17062_v11 = vpop.eup %11808  ;;  %11828 = vrcp.f32 %v4972_v10  ;;  %v4511_v55 = vpop.f32.mrb[99].mxu1  ;;  %v4887_v60 = vadd.f32 %v9219_v33, %v16980_v53 }
0x1952   :  { %v11811_v63 = vpop.eup %11810  ;;  %11830 = vrcp.f32 %v4975_v14  ;;  %v4886_v0 = vadd.f32 %v16975_v29, %v4511_v55 }
0x1953   :  { %v11813_v39 = vpop.eup %11812  ;;  %v4974_v2 = vadd.f32 1.0, %v11811_v63  ;;  %11832 = vtanh.f32 %v4885_v49 }
0x1954   :  { %v17065_v36 = vpop.eup %11814  ;;  %v4977_v16 = vadd.f32 1.0, %v11813_v39  ;;  %11834 = vtanh.f32 %v4884_v1  ;;  %v9222_v31 = vpop.f32.mrb[100].mxu1 }
0x1955   :  { %v11817_v59 = vpop.eup %11816  ;;  %11836 = vrcp.f32 %v4974_v2  ;;  %v4521_v7 = vpop.f32.mrb[101].mxu1  ;;  %v4889_v45 = vadd.f32 %v9222_v31, %v16733_v54 }
0x1956   :  { %v17068_v43 = vpop.eup %11818  ;;  %11838 = vrcp.f32 %v4977_v16  ;;  %v4976_v15 = vadd.f32 1.0, %v11817_v59  ;;  %v4888_v53 = vadd.f32 %v16729_v27, %v4521_v7 }
0x1957   :  { %v17071_v18 = vpop.eup %11820  ;;  %11840 = vtanh.f32 %v4887_v60 }
0x1958   :  { %v11823_v47 = vpop.eup %11822  ;;  %11842 = vrcp.f32 %v4976_v15  ;;  %v9225_v12 = vpop.f32.mrb[102].mxu1 }
0x1959   :  { %v11825_v44 = vpop.eup %11824  ;;  %11844 = vtanh.f32 %v4886_v0  ;;  %v4531_v42 = vpop.f32.mrb[103].mxu1  ;;  %v4891_v30 = vadd.f32 %v9225_v12, %v16771_v6  ;;  %v5053_v14 = vmul.f32 %v11823_v47, %v16424_v24 }
0x195a   :  { %v11827_v22 = vpop.eup %11826  ;;  %v4979_v29 = vadd.f32 1.0, %v11825_v44  ;;  %11846 = vtanh.f32 %v4889_v45  ;;  %v4890_v54 = vadd.f32 %v16767_v9, %v4531_v42 }
0x195b   :  { %v11829_v20 = vpop.eup %11828  ;;  %v4978_v10 = vadd.f32 1.0, %v11827_v22  ;;  %11848 = vtanh.f32 %v4888_v53 }
0x195c   :  { %v11831_v49 = vpop.eup %11830  ;;  %11850 = vrcp.f32 %v4979_v29  ;;  %v9228_v27 = vpop.f32.mrb[104].mxu1  ;;  %v5052_v33 = vmul.f32 %v11829_v20, %v16428_v61 }
0x195d   :  { %v11833_v1 = vpop.eup %11832  ;;  %11852 = vrcp.f32 %v4978_v10  ;;  %v4893_v55 = vadd.f32 %v9228_v27, %v16809_v52  ;;  %v4541_v63 = vpop.f32.mrb[105].mxu1  ;;  %v5055_v31 = vmul.f32 %v11831_v49, %v16456_v4 }
0x195e   :  { %v11835_v39 = vpop.eup %11834  ;;  %v5061_v6 = vmul.f32 %v11833_v1, %v17050_v58  ;;  %11854 = vtanh.f32 %v4891_v30  ;;  %v4892_v2 = vadd.f32 %v16805_v13, %v4541_v63 }
0x195f   :  { %v11837_v60 = vpop.eup %11836  ;;  %v5060_v9 = vmul.f32 %v11835_v39, %v17054_v35  ;;  %11856 = vtanh.f32 %v4890_v54  ;;  %v8431_v24 = vmul.f32 -1.442695, %v4893_v55 }
0x1960   :  { %v11839_v16 = vpop.eup %11838  ;;  %v17083_v59 = vadd.f32 %v5061_v6, %v5053_v14  ;;  %v8430_v61 = vmul.f32 -1.442695, %v4892_v2  ;;  %v9231_v0 = vpop.f32.mrb[106].mxu1  ;;  %v5054_v45 = vmul.f32 %v11837_v60, %v16461_v26 }
0x1961   :  { %v11841_v52 = vpop.eup %11840  ;;  %v17085_v7 = vadd.f32 %v5060_v9, %v5052_v33  ;;  %11858 = vpow2.f32 %v8431_v24  ;;  %v4895_v58 = vadd.f32 %v9231_v0, %v16847_v37  ;;  %v4551_v15 = vpop.f32.mrb[107].mxu1  ;;  %v5057_v47 = vmul.f32 %v11839_v16, %v16442_v28 }
0x1962   :  { %v11843_v13 = vpop.eup %11842  ;;  %11860 = vtanh.f32 %v17083_v59  ;;  %v5063_v35 = vmul.f32 %v11841_v52, %v17056_v46  ;;  %v4894_v4 = vadd.f32 %v16843_v32, %v4551_v15 }
0x1963   :  { %v11845_v53 = vpop.eup %11844  ;;  %v5056_v12 = vmul.f32 %v11843_v13, %v16448_v25  ;;  %11862 = vtanh.f32 %v17085_v7  ;;  %v8433_v44 = vmul.f32 -1.442695, %v4895_v58 }
0x1964   :  { %v11847_v42 = vpop.eup %11846  ;;  %v17095_v37 = vadd.f32 %v5063_v35, %v5055_v31  ;;  %v5062_v22 = vmul.f32 %v11845_v53, %v17059_v56  ;;  %11864 = vpow2.f32 %v8430_v61  ;;  %v8432_v26 = vmul.f32 -1.442695, %v4894_v4  ;;  %v9234_v29 = vpop.f32.mrb[108].mxu1 }
0x1965   :  { %v11849_v30 = vpop.eup %11848  ;;  %v5065_v46 = vmul.f32 %v11847_v42, %v17062_v11  ;;  %11866 = vpow2.f32 %v8433_v44  ;;  %v4897_v32 = vadd.f32 %v9234_v29, %v16890_v40  ;;  %v4561_v28 = vpop.f32.mrb[109].mxu1 }
0x1966   :  { %v11851_v20 = vpop.eup %11850  ;;  %11868 = vtanh.f32 %v17095_v37  ;;  %v17101_v25 = vadd.f32 %v5062_v22, %v5054_v45  ;;  %v5064_v10 = vmul.f32 %v11849_v30, %v17065_v36  ;;  %v4896_v54 = vadd.f32 %v16885_v62, %v4561_v28 }
0x1967   :  { %v11853_v56 = vpop.eup %11852  ;;  %v5059_v49 = vmul.f32 %v11851_v20, %v16464_v41  ;;  %v17106_v14 = vadd.f32 %v5065_v46, %v5057_v47  ;;  %11870 = vpow2.f32 %v8432_v26  ;;  %v8435_v11 = vmul.f32 -1.442695, %v4897_v32 }
0x1968   :  { %v11855_v27 = vpop.eup %11854  ;;  %v5058_v40 = vmul.f32 %v11853_v56, %v16470_v8  ;;  %11872 = vtanh.f32 %v17101_v25  ;;  %v17110_v1 = vadd.f32 %v5064_v10, %v5056_v12  ;;  %v8434_v33 = vmul.f32 -1.442695, %v4896_v54  ;;  %v9237_v55 = vpop.f32.mrb[110].mxu1 }
0x1969   :  { %v11857_v63 = vpop.eup %11856  ;;  %11874 = vtanh.f32 %v17106_v14  ;;  %v5067_v62 = vmul.f32 %v11855_v27, %v17068_v43  ;;  %v4899_v41 = vadd.f32 %v9237_v55, %v16928_v3  ;;  %v4571_v36 = vpop.f32.mrb[111].mxu1 }
0x196a   :  { %11876 = vtanh.f32 %v17110_v1  ;;  %v5066_v39 = vmul.f32 %v11857_v63, %v17071_v18  ;;  %v4898_v2 = vadd.f32 %v16923_v57, %v4571_v36 }
0x196b   :  { %v11859_v6 = vpop.eup %11858  ;;  %v17117_v8 = vadd.f32 %v5067_v62, %v5059_v49  ;;  %11878 = vpow2.f32 %v8435_v11  ;;  %v8437_v16 = vmul.f32 -1.442695, %v4899_v41 }
0x196c   :  { %v11861_v60 = vpop.eup %11860  ;;  %v17120_v9 = vadd.f32 %v5066_v39, %v5058_v40  ;;  %v5029_v24 = vadd.f32 1.0, %v11859_v6  ;;  %11880 = vpow2.f32 %v8434_v33  ;;  %v9240_v43 = vpop.f32.mrb[112].mxu1  ;;  %v8436_v58 = vmul.f32 -1.442695, %v4898_v2 }
0x196d   :  { %v17122_v31 = vpop.eup %11862  ;;  %11882 = vtanh.f32 %v17117_v8  ;;  %v5253_v3 = vadd.f32 %v9240_v43, %v16511_v38  ;;  %v4581_v18 = vpop.f32.mrb[113].mxu1 }
0x196e   :  { %v11865_v61 = vpop.eup %11864  ;;  %11884 = vtanh.f32 %v17120_v9  ;;  %v5252_v0 = vadd.f32 %v16506_v23, %v4581_v18 }
0x196f   :  { %v11867_v57 = vpop.eup %11866  ;;  %11886 = vrcp.f32 %v5029_v24  ;;  %v5028_v52 = vadd.f32 1.0, %v11865_v61  ;;  %v8439_v4 = vmul.f32 -1.442695, %v5253_v3 }
0x1970   :  { %v11869_v15 = vpop.eup %11868  ;;  %v5031_v13 = vadd.f32 1.0, %v11867_v57  ;;  %11888 = vpow2.f32 %v8437_v16  ;;  %v9243_v45 = vpop.f32.mrb[114].mxu1  ;;  %v8438_v42 = vmul.f32 -1.442695, %v5252_v0 }
0x1971   :  { %v11871_v35 = vpop.eup %11870  ;;  %11890 = vrcp.f32 %v5028_v52  ;;  %v5255_v53 = vadd.f32 %v9243_v45, %v16549_v21  ;;  %v4591_v47 = vpop.f32.mrb[115].mxu1 }
0x1972   :  { %v11873_v12 = vpop.eup %11872  ;;  %11892 = vrcp.f32 %v5031_v13  ;;  %v5030_v44 = vadd.f32 1.0, %v11871_v35  ;;  %v5254_v22 = vadd.f32 %v16544_v51, %v4591_v47 }
0x1973   :  { %v17130_v26 = vpop.eup %11874  ;;  %11894 = vpow2.f32 %v8436_v58  ;;  %v8441_v29 = vmul.f32 -1.442695, %v5255_v53 }
0x1974   :  { %v17132_v30 = vpop.eup %11876  ;;  %11896 = vrcp.f32 %v5030_v44  ;;  %v9246_v46 = vpop.f32.mrb[116].mxu1  ;;  %v8440_v56 = vmul.f32 -1.442695, %v5254_v22 }
0x1975   :  { %v11879_v32 = vpop.eup %11878  ;;  %11898 = vpow2.f32 %v8439_v4  ;;  %v5257_v28 = vadd.f32 %v9246_v46, %v16587_v50  ;;  %v4601_v20 = vpop.f32.mrb[117].mxu1 }
0x1976   :  { %v11881_v10 = vpop.eup %11880  ;;  %v5033_v54 = vadd.f32 1.0, %v11879_v32  ;;  %11900 = vpow2.f32 %v8438_v42  ;;  %v5256_v49 = vadd.f32 %v16582_v17, %v4601_v20 }
0x1977   :  { %v17136_v11 = vpop.eup %11882  ;;  %v5032_v27 = vadd.f32 1.0, %v11881_v10  ;;  %11902 = vpow2.f32 %v8441_v29  ;;  %v8443_v40 = vmul.f32 -1.442695, %v5257_v28 }
0x1978   :  { %v17138_v33 = vpop.eup %11884  ;;  %11904 = vrcp.f32 %v5033_v54  ;;  %v8442_v55 = vmul.f32 -1.442695, %v5256_v49  ;;  %v9249_v63 = vpop.f32.mrb[118].mxu1  ;;  %v18528_v49 = vld [vmem:[#allocation5_spill] sm:$0xff] }
0x1979   :  { %v11887_v62 = vpop.eup %11886  ;;  %11906 = vrcp.f32 %v5032_v27  ;;  %v5259_v41 = vadd.f32 %v9249_v63, %v16625_v19  ;;  %v4611_v36 = vpop.f32.mrb[119].mxu1 }
0x197a   :  { %v11889_v39 = vpop.eup %11888  ;;  %11908 = vpow2.f32 %v8440_v56  ;;  %v5258_v6 = vadd.f32 %v16620_v48, %v4611_v36  ;;  %v5085_v2 = vmul.f32 %v11887_v62, %v11861_v60 }
0x197b   :  { %v11891_v24 = vpop.eup %11890  ;;  %v5035_v16 = vadd.f32 1.0, %v11889_v39  ;;  %11910 = vpow2.f32 %v8443_v40  ;;  %v8445_v43 = vmul.f32 -1.442695, %v5259_v41 }
0x197c   :  { %v11893_v3 = vpop.eup %11892  ;;  %11912 = vpow2.f32 %v8442_v55  ;;  %v8444_v18 = vmul.f32 -1.442695, %v5258_v6  ;;  %v9252_v61 = vpop.f32.mrb[120].mxu1  ;;  %v5084_v0 = vmul.f32 %v11891_v24, %v17122_v31  ;;  %v18529_v6 = vld [vmem:[#allocation8_spill] sm:$0xff] }
0x197d   :  { %v11895_v57 = vpop.eup %11894  ;;  %11914 = vrcp.f32 %v5035_v16  ;;  %v5261_v52 = vadd.f32 %v9252_v61, %v16529_v5  ;;  %v4621_v58 = vpop.f32.mrb[121].mxu1  ;;  %v5087_v13 = vmul.f32 %v11893_v3, %v11869_v15  ;;  %v18527_v15 = vld [vmem:[#allocation6_spill] sm:$0xff] }
0x197e   :  { %v11897_v45 = vpop.eup %11896  ;;  %v5034_v35 = vadd.f32 1.0, %v11895_v57  ;;  %11916 = vpow2.f32 %v8445_v43  ;;  %v5260_v60 = vadd.f32 %v16525_v34, %v4621_v58  ;;  %v10334_v4 = vpack.c.bf16 %v5085_v2, %v5084_v0  ;;  %v18530_v0 = vld [vmem:[#allocation7_spill] sm:$0xff] }
0x197f   :  { %v11899_v53 = vpop.eup %11898  ;;  %11918 = vpow2.f32 %v8444_v18  ;;  %v8447_v47 = vmul.f32 -1.442695, %v5261_v52  ;;  %v5086_v44 = vmul.f32 %v11897_v45, %v11873_v12 }
0x1980   :  { %v11901_v42 = vpop.eup %11900  ;;  %11920 = vrcp.f32 %v5034_v35  ;;  %v5309_v22 = vadd.f32 1.0, %v11899_v53  ;;  %v8446_v31 = vmul.f32 -1.442695, %v5260_v60  ;;  %10335 = vmatprep.subr.bf16.mxu0 %v10334_v4  ;;  %v9255_v29 = vpop.f32.mrb[122].mxu1  ;;  %v18531_v35 = vld [vmem:[#allocation10_spill] sm:$0xff] }
0x1981   :  { %v11903_v46 = vpop.eup %11902  ;;  %v5308_v32 = vadd.f32 1.0, %v11901_v42  ;;  %11922 = vpow2.f32 %v8447_v47  ;;  %10337 = vmatpush3.bf16.msra.mxu0 %v10334_v4  ;;  %v5263_v28 = vadd.f32 %v9255_v29, %v18527_v15  ;;  %v4631_v20 = vpop.f32.mrb[123].mxu1  ;;  %v10338_v10 = vpack.c.bf16 %v5087_v13, %v5086_v44  ;;  %v18532_v42 = vld [vmem:[#allocation9_spill] sm:$0xff] }
0x1982   :  { %v11905_v54 = vpop.eup %11904  ;;  %11924 = vrcp.f32 %v5309_v22  ;;  %v5311_v56 = vadd.f32 1.0, %v11903_v46  ;;  %v5262_v27 = vadd.f32 %v18528_v49, %v4631_v20 }
0x1983   :  { %v11907_v12 = vpop.eup %11906  ;;  %11926 = vrcp.f32 %v5308_v32  ;;  %v8449_v40 = vmul.f32 -1.442695, %v5263_v28  ;;  %10339 = vmatprep.subr.bf16.mxu0 %v10338_v10  ;;  %v5089_v55 = vmul.f32 %v11905_v54, %v17130_v26 }
0x1984   :  { %v11909_v63 = vpop.eup %11908  ;;  %11928 = vrcp.f32 %v5311_v56  ;;  %v9258_v62 = vpop.f32.mrb[124].mxu1  ;;  %v5088_v41 = vmul.f32 %v11907_v12, %v17132_v30  ;;  %v8448_v3 = vmul.f32 -1.442695, %v5262_v27 }
0x1985   :  { %v11911_v36 = vpop.eup %11910  ;;  %v5310_v39 = vadd.f32 1.0, %v11909_v63  ;;  %11930 = vpow2.f32 %v8446_v31  ;;  %10341 = vmatpush3.bf16.msra.mxu0 %v10338_v10  ;;  %v5265_v2 = vadd.f32 %v9258_v62, %v18529_v6  ;;  %v4641_v24 = vpop.f32.mrb[125].mxu1  ;;  %v18533_v63 = vld [vmem:[#allocation12_spill] sm:$0xff] }
0x1986   :  { %v11913_v16 = vpop.eup %11912  ;;  %v5313_v43 = vadd.f32 1.0, %v11911_v36  ;;  %11932 = vpow2.f32 %v8449_v40  ;;  %v10342_v18 = vpack.c.bf16 %v5089_v55, %v5088_v41  ;;  %v5264_v57 = vadd.f32 %v18530_v0, %v4641_v24 }
0x1987   :  { %v11915_v61 = vpop.eup %11914  ;;  %11934 = vrcp.f32 %v5310_v39  ;;  %v5312_v26 = vadd.f32 1.0, %v11913_v16  ;;  %v8451_v30 = vmul.f32 -1.442695, %v5265_v2  ;;  %v18534_v2 = vld [vmem:[#allocation11_spill] sm:$0xff] }
0x1988   :  { %v11917_v52 = vpop.eup %11916  ;;  %11936 = vrcp.f32 %v5313_v43  ;;  %10343 = vmatprep.subr.bf16.mxu0 %v10342_v18  ;;  %v9261_v58 = vpop.f32.mrb[126].mxu1  ;;  %v5091_v53 = vmul.f32 %v11915_v61, %v17136_v11  ;;  %v8450_v29 = vmul.f32 -1.442695, %v5264_v57  ;;  %v18536_v57 = vld [vmem:[#allocation15_spill] sm:$0xff] }
0x1989   :  { %v11919_v13 = vpop.eup %11918  ;;  %11938 = vrcp.f32 %v5312_v26  ;;  %v5315_v45 = vadd.f32 1.0, %v11917_v52  ;;  %10345 = vmatpush3.bf16.msra.mxu0 %v10342_v18  ;;  %v5267_v60 = vadd.f32 %v9261_v58, %v18531_v35  ;;  %v4651_v4 = vpop.f32.mrb[127].mxu1 }
0x198a   :  { %v11921_v47 = vpop.eup %11920  ;;  %v5314_v44 = vadd.f32 1.0, %v11919_v13  ;;  %11940 = vpow2.f32 %v8448_v3  ;;  %v5266_v22 = vadd.f32 %v18532_v42, %v4651_v4  ;;  %v18535_v3 = vld [vmem:[#allocation16_spill] sm:$0xff] }
0x198b   :  { %v11923_v31 = vpop.eup %11922  ;;  %11942 = vrcp.f32 %v5315_v45  ;;  %v5090_v46 = vmul.f32 %v11921_v47, %v17138_v33  ;;  %v8453_v20 = vmul.f32 -1.442695, %v5267_v60  ;;  %v18537_v45 = vld [vmem:[#allocation20_spill] sm:$0xff] }
0x198c   :  { %v17155_v32 = vpop.eup %11924  ;;  %11944 = vrcp.f32 %v5314_v44  ;;  %v5357_v28 = vadd.f32 1.0, %v11923_v31  ;;  %v9264_v10 = vpop.f32.mrb[128].mxu1  ;;  %v8452_v11 = vmul.f32 -1.442695, %v5266_v22  ;;  %v18538_v44 = vld [vmem:[#allocation19_spill] sm:$0xff] }
0x198d   :  { %v17157_v54 = vpop.eup %11926  ;;  %11946 = vpow2.f32 %v8451_v30  ;;  %v10346_v56 = vpack.c.bf16 %v5091_v53, %v5090_v46  ;;  %v4661_v27 = vpop.f32.mrb[129].mxu1  ;;  %v5269_v62 = vadd.f32 %v9264_v10, %v18533_v63 }
0x198e   :  { %v17159_v12 = vpop.eup %11928  ;;  %11948 = vrcp.f32 %v5357_v28  ;;  %v5268_v24 = vadd.f32 %v18534_v2, %v4661_v27 }
0x198f   :  { %v11931_v40 = vpop.eup %11930  ;;  %11950 = vpow2.f32 %v8450_v29  ;;  %10347 = vmatprep.subr.bf16.mxu0 %v10346_v56 }
0x1990   :  { %v11933_v55 = vpop.eup %11932  ;;  %v5356_v33 = vadd.f32 1.0, %v11931_v40  ;;  %11952 = vpow2.f32 %v8453_v20  ;;  %10349 = vmatpush3.bf16.msra.mxu0 %v10346_v56  ;;  %v9267_v41 = vpop.f32.mrb[130].mxu1  ;;  %v18539_v40 = vld [vmem:[#allocation24_spill] sm:$0xff] }
0x1991   :  { %v17162_v36 = vpop.eup %11934  ;;  %v5359_v39 = vadd.f32 1.0, %v11933_v55  ;;  %11954 = vpow2.f32 %v8452_v11  ;;  %v4671_v16 = vpop.f32.mrb[131].mxu1  ;;  %v5271_v18 = vadd.f32 %v9267_v41, %v18535_v3  ;;  %v18540_v41 = vld [vmem:[#allocation23_spill] sm:$0xff] }
0x1992   :  { %v17165_v43 = vpop.eup %11936  ;;  %11956 = vrcp.f32 %v5356_v33  ;;  %v5270_v52 = vadd.f32 %v18536_v57, %v4671_v16 }
0x1993   :  { %v17168_v61 = vpop.eup %11938  ;;  %11958 = vrcp.f32 %v5359_v39 }
0x1994   :  { %v11941_v26 = vpop.eup %11940  ;;  %11960 = vtanh.f32 %v5269_v62  ;;  %v9270_v30 = vpop.f32.mrb[132].mxu1 }
0x1995   :  { %v17171_v58 = vpop.eup %11942  ;;  %v5358_v13 = vadd.f32 1.0, %v11941_v26  ;;  %11962 = vtanh.f32 %v5268_v24  ;;  %v5273_v60 = vadd.f32 %v9270_v30, %v18537_v45  ;;  %v4681_v4 = vpop.f32.mrb[133].mxu1  ;;  %v18541_v26 = vld [vmem:[#allocation14_spill] sm:$0xff] }
0x1996   :  { %v17174_v53 = vpop.eup %11944  ;;  %11964 = vtanh.f32 %v5271_v18  ;;  %v5272_v22 = vadd.f32 %v18538_v44, %v4681_v4  ;;  %v18542_v4 = vld [vmem:[#allocation13_spill] sm:$0xff] }
0x1997   :  { %v11947_v47 = vpop.eup %11946  ;;  %11966 = vrcp.f32 %v5358_v13 }
0x1998   :  { %v11949_v31 = vpop.eup %11948  ;;  %v5361_v29 = vadd.f32 1.0, %v11947_v47  ;;  %11968 = vtanh.f32 %v5270_v52  ;;  %v9273_v46 = vpop.f32.mrb[134].mxu1 }
0x1999   :  { %v11951_v28 = vpop.eup %11950  ;;  %11970 = vtanh.f32 %v5273_v60  ;;  %v4691_v20 = vpop.f32.mrb[135].mxu1  ;;  %v5275_v55 = vadd.f32 %v9273_v46, %v18539_v40  ;;  %v5437_v18 = vmul.f32 0.0, %v11949_v31 }
0x199a   :  { %v11953_v10 = vpop.eup %11952  ;;  %11972 = vrcp.f32 %v5361_v29  ;;  %v5360_v11 = vadd.f32 1.0, %v11951_v28  ;;  %v5274_v39 = vadd.f32 %v18540_v41, %v4691_v20 }
0x199b   :  { %v11955_v56 = vpop.eup %11954  ;;  %v5363_v27 = vadd.f32 1.0, %v11953_v10  ;;  %11974 = vtanh.f32 %v5272_v22 }
0x199c   :  { %v11957_v33 = vpop.eup %11956  ;;  %11976 = vrcp.f32 %v5360_v11  ;;  %v5362_v62 = vadd.f32 1.0, %v11955_v56  ;;  %v9276_v24 = vpop.f32.mrb[136].mxu1 }
0x199d   :  { %v11959_v16 = vpop.eup %11958  ;;  %11978 = vrcp.f32 %v5363_v27  ;;  %v5277_v52 = vadd.f32 %v9276_v24, %v18541_v26  ;;  %v4701_v30 = vpop.f32.mrb[137].mxu1  ;;  %v5436_v60 = vmul.f32 0.0, %v11957_v33 }
0x199e   :  { %v11961_v13 = vpop.eup %11960  ;;  %11980 = vrcp.f32 %v5362_v62  ;;  %v5276_v47 = vadd.f32 %v18542_v4, %v4701_v30  ;;  %v5439_v29 = vmul.f32 0.0, %v11959_v16  ;;  %v18544_v62 = vld [vmem:[#allocation18_spill] sm:$0xff] }
0x199f   :  { %v11963_v22 = vpop.eup %11962  ;;  %v5445_v46 = vmul.f32 %v11961_v13, %v17155_v32  ;;  %11982 = vtanh.f32 %v5275_v55  ;;  %v8455_v28 = vmul.f32 -1.442695, %v5277_v52  ;;  %v18546_v55 = vld [vmem:[#allocation17_spill] sm:$0xff] }
0x19a0   :  { %v11965_v10 = vpop.eup %11964  ;;  %v5444_v20 = vmul.f32 %v11963_v22, %v17157_v54  ;;  %11984 = vtanh.f32 %v5274_v39  ;;  %v8454_v31 = vmul.f32 -1.442695, %v5276_v47  ;;  %v9279_v11 = vpop.f32.mrb[138].mxu1 }
0x19a1   :  { %v11967_v56 = vpop.eup %11966  ;;  %v17183_v27 = vadd.f32 %v5445_v46, %v5437_v18  ;;  %v5447_v33 = vmul.f32 %v11965_v10, %v17159_v12  ;;  %11986 = vpow2.f32 %v8455_v28  ;;  %v5279_v24 = vadd.f32 %v9279_v11, %v18544_v62  ;;  %v4711_v30 = vpop.f32.mrb[139].mxu1 }
0x19a2   :  { %v11969_v16 = vpop.eup %11968  ;;  %v5438_v4 = vmul.f32 0.0, %v11967_v56  ;;  %v17187_v32 = vadd.f32 %v5444_v20, %v5436_v60  ;;  %11988 = vpow2.f32 %v8454_v31  ;;  %v5278_v52 = vadd.f32 %v18546_v55, %v4711_v30  ;;  %v18549_v60 = vld [vmem:[#allocation22_spill] sm:$0xff] }
0x19a3   :  { %18543 = vst [vmem:[#allocation6_spill] sm:$0xff] %v17183_v27  ;;  %v11971_v54 = vpop.eup %11970  ;;  %v17190_v39 = vadd.f32 %v5447_v33, %v5439_v29  ;;  %v5446_v13 = vmul.f32 %v11969_v16, %v17162_v36  ;;  %v8457_v18 = vmul.f32 -1.442695, %v5279_v24  ;;  %v18550_v29 = vld [vmem:[#allocation21_spill] sm:$0xff] }
0x19a4   :  { %18545 = vst [vmem:[#allocation5_spill] sm:$0xff] %v17187_v32  ;;  %v11973_v47 = vpop.eup %11972  ;;  %v5449_v12 = vmul.f32 %v11971_v54, %v17165_v43  ;;  %v8456_v22 = vmul.f32 -1.442695, %v5278_v52  ;;  %v9282_v46 = vpop.f32.mrb[140].mxu1 }
0x19a5   :  { %18547 = vst [vmem:[#allocation8_spill] sm:$0xff] %v17190_v39  ;;  %v11975_v28 = vpop.eup %11974  ;;  %v5441_v10 = vmul.f32 0.0, %v11973_v47  ;;  %v17194_v11 = vadd.f32 %v5446_v13, %v5438_v4  ;;  %v5281_v20 = vadd.f32 %v9282_v46, %v18549_v60  ;;  %v4721_v31 = vpop.f32.mrb[141].mxu1  ;;  %11990 = vpow2.f32 %v8457_v18 }
0x19a6   :  { %v11977_v56 = vpop.eup %11976  ;;  %v5448_v30 = vmul.f32 %v11975_v28, %v17168_v61  ;;  %v5280_v33 = vadd.f32 %v18550_v29, %v4721_v31  ;;  %v17201_v54 = vpop.permute.xlu1 %5249  ;;  %11992 = vpow2.f32 %v8456_v22 }
0x19a7   :  { %18548 = vst [vmem:[#allocation7_spill] sm:$0xff] %v17194_v11  ;;  %v11979_v36 = vpop.eup %11978  ;;  %v5440_v24 = vmul.f32 0.0, %v11977_v56  ;;  %v17199_v16 = vadd.f32 %v5449_v12, %v5441_v10  ;;  %v8459_v43 = vmul.f32 -1.442695, %v5281_v20  ;;  %18552 = vst [vmem:[#allocation9_spill] sm:$0xff] %v17201_v54  ;;  %v18554_v12 = vld [vmem:[#allocation25_spill] sm:$0xff] }
0x19a8   :  { %v11981_v52 = vpop.eup %11980  ;;  %v5443_v47 = vmul.f32 0.0, %v11979_v36  ;;  %v8458_v4 = vmul.f32 -1.442695, %v5280_v33  ;;  %v9285_v13 = vpop.f32.mrb[142].mxu1 }
0x19a9   :  { %18551 = vst [vmem:[#allocation10_spill] sm:$0xff] %v17199_v16  ;;  %v11983_v46 = vpop.eup %11982  ;;  %v5442_v60 = vmul.f32 0.0, %v11981_v52  ;;  %v17203_v55 = vadd.f32 %v5448_v30, %v5440_v24  ;;  %v5283_v61 = vadd.f32 %v9285_v13, %v17201_v54  ;;  %v4731_v18 = vpop.f32.mrb[143].mxu1  ;;  %11994 = vpow2.f32 %v8459_v43 }
0x19aa   :  { %v11985_v28 = vpop.eup %11984  ;;  %v5451_v31 = vmul.f32 %v11983_v46, %v17171_v58  ;;  %v5282_v10 = vadd.f32 %v18554_v12, %v4731_v18  ;;  %11996 = vtanh.f32 %v17183_v27 }
0x19ab   :  { %18553 = vst [vmem:[#allocation12_spill] sm:$0xff] %v17203_v55  ;;  %v11987_v20 = vpop.eup %11986  ;;  %v5450_v22 = vmul.f32 %v11985_v28, %v17174_v53  ;;  %v8461_v56 = vmul.f32 -1.442695, %v5283_v61  ;;  %11998 = vpow2.f32 %v8458_v4 }
0x19ac   :  { %v11989_v33 = vpop.eup %11988  ;;  %v17210_v36 = vadd.f32 %v5451_v31, %v5443_v47  ;;  %v5413_v30 = vadd.f32 1.0, %v11987_v20  ;;  %v8460_v58 = vmul.f32 -1.442695, %v5282_v10 }
0x19ad   :  { %v17212_v24 = vadd.f32 %v5450_v22, %v5442_v60  ;;  %v5412_v52 = vadd.f32 1.0, %v11989_v33  ;;  %12000 = vpow2.f32 %v8461_v56 }
0x19ae   :  { %18555 = vst [vmem:[#allocation11_spill] sm:$0xff] %v17210_v36  ;;  %12002 = vtanh.f32 %v17187_v32 }
0x19af   :  { %18556 = vst [vmem:[#allocation16_spill] sm:$0xff] %v17212_v24  ;;  %12004 = vtanh.f32 %v17190_v39  ;;  %v11991_v43 = vpop.eup %11990 }
0x19b0   :  { %12006 = vrcp.f32 %v5413_v30  ;;  %v5415_v13 = vadd.f32 1.0, %v11991_v43  ;;  %v11993_v53 = vpop.eup %11992 }
0x19b1   :  { %12008 = vrcp.f32 %v5412_v52  ;;  %v5414_v47 = vadd.f32 1.0, %v11993_v53 }
0x19b2   :  { %12010 = vpow2.f32 %v8460_v58 }
0x19b3   :  { %12012 = vrcp.f32 %v5415_v13  ;;  %v11995_v46 = vpop.eup %11994 }
0x19b4   :  { %12014 = vtanh.f32 %v17194_v11  ;;  %v11997_v60 = vpop.eup %11996  ;;  %v5417_v4 = vadd.f32 1.0, %v11995_v46 }
0x19b5   :  { %12016 = vrcp.f32 %v5414_v47  ;;  %v11999_v61 = vpop.eup %11998 }
0x19b6   :  { %12018 = vtanh.f32 %v17199_v16  ;;  %v5416_v28 = vadd.f32 1.0, %v11999_v61 }
0x19b7   :  { %v12001_v18 = vpop.eup %12000  ;;  %12020 = vrcp.f32 %v5417_v4 }
0x19b8   :  { %v12003_v31 = vpop.eup %12002  ;;  %12022 = vtanh.f32 %v17203_v55  ;;  %v5419_v10 = vadd.f32 1.0, %v12001_v18 }
0x19b9   :  { %v12005_v20 = vpop.eup %12004  ;;  %12024 = vrcp.f32 %v5416_v28 }
0x19ba   :  { %v12007_v22 = vpop.eup %12006  ;;  %12026 = vrcp.f32 %v5419_v10 }
0x19bb   :  { %v12009_v56 = vpop.eup %12008  ;;  %v5469_v33 = vmul.f32 %v12007_v22, %v11997_v60  ;;  %12028 = vtanh.f32 %v17210_v36 }
0x19bc   :  { %v12011_v30 = vpop.eup %12010  ;;  %v5468_v52 = vmul.f32 %v12009_v56, %v12003_v31  ;;  %12030 = vtanh.f32 %v17212_v24 }
0x19bd   :  { %v12013_v58 = vpop.eup %12012  ;;  %v5418_v43 = vadd.f32 1.0, %v12011_v30 }
0x19be   :  { %v12015_v13 = vpop.eup %12014  ;;  %v10350_v53 = vpack.c.bf16 %v5469_v33, %v5468_v52  ;;  %v5471_v47 = vmul.f32 %v12013_v58, %v12005_v20 }
0x19bf   :  { %v12017_v46 = vpop.eup %12016  ;;  %12032 = vrcp.f32 %v5418_v43  ;;  %v12699_v43 = vld [vmem:[%s18345_s7 + $0x8] sm:$0xff] }
0x19c0   :  { %v12019_v4 = vpop.eup %12018  ;;  %10351 = vmatprep.subr.bf16.mxu0 %v10350_v53  ;;  %v5470_v61 = vmul.f32 %v12017_v46, %v12015_v13  ;;  %v12700_v13 = vld [vmem:[%s18345_s7 + $0x10] sm:$0xff]  ;;  %v12705_v46 = vld [vmem:[%s18345_s7 + $0x38] sm:$0xff] }
0x19c1   :  { %v12021_v18 = vpop.eup %12020  ;;  %10353 = vmatpush3.bf16.msra.mxu0 %v10350_v53  ;;  %v12703_v53 = vld [vmem:[%s18345_s7 + $0x28] sm:$0xff] }
0x19c2   :  { %v12023_v28 = vpop.eup %12022  ;;  %v10354_v60 = vpack.c.bf16 %v5471_v47, %v5470_v61  ;;  %v5473_v10 = vmul.f32 %v12021_v18, %v12019_v4  ;;  %v12704_v47 = vld [vmem:[%s18345_s7 + $0x30] sm:$0xff]  ;;  %v12706_v4 = vld [vmem:[%s18345_s7 + $0x40] sm:$0xff]  ;;  %v12707_v61 = vld [vmem:[%s18345_s7 + $0x48] sm:$0xff] }
0x19c3   :  { %v12025_v31 = vpop.eup %12024  ;;  %v12708_v18 = vld [vmem:[%s18345_s7 + $0x50] sm:$0xff] }
0x19c4   :  { %10355 = vmatprep.subr.bf16.mxu0 %v10354_v60  ;;  %v5472_v22 = vmul.f32 %v12025_v31, %v12023_v28  ;;  %v12027_v56 = vpop.eup %12026  ;;  %v12709_v28 = vld [vmem:[%s18345_s7 + $0x58] sm:$0xff]  ;;  %v12712_v31 = vld [vmem:[%s18345_s7 + $0x70] sm:$0xff] }
0x19c5   :  { %10357 = vmatpush3.bf16.msra.mxu0 %v10354_v60  ;;  %v12029_v12 = vpop.eup %12028  ;;  %v12710_v60 = vld [vmem:[%s18345_s7 + $0x60] sm:$0xff] }
0x19c6   :  { %v10358_v30 = vpack.c.bf16 %v5473_v10, %v5472_v22  ;;  %v12031_v54 = vpop.eup %12030  ;;  %v5475_v20 = vmul.f32 %v12029_v12, %v12027_v56  ;;  %v12701_v12 = vld [vmem:[%s18345_s7 + $0x18] sm:$0xff]  ;;  %v12711_v10 = vld [vmem:[%s18345_s7 + $0x68] sm:$0xff]  ;;  %v12714_v56 = vld [vmem:[%s18345_s7 + $0x80] sm:$0xff] }
0x19c7   :  { %v12713_v22 = vld [vmem:[%s18345_s7 + $0x78] sm:$0xff] }
0x19c8   :  { %10359 = vmatprep.subr.bf16.mxu0 %v10358_v30 }
0x19c9   :  { %v12033_v33 = vpop.eup %12032  ;;  %10361 = vmatpush3.bf16.msra.mxu0 %v10358_v30  ;;  %v12715_v30 = vld [vmem:[%s18345_s7 + $0x88] sm:$0xff] }
0x19ca   :  { %v5474_v52 = vmul.f32 %v12033_v33, %v12031_v54  ;;  %v12702_v54 = vld [vmem:[%s18345_s7 + $0x20] sm:$0xff]  ;;  %v12717_v33 = vld [vmem:[%s18345_s7 + $0x98] sm:$0xff] }
0x19cc   :  { %v10362_v58 = vpack.c.bf16 %v5475_v20, %v5474_v52  ;;  %v12716_v20 = vld [vmem:[%s18345_s7 + $0x90] sm:$0xff]  ;;  %v12718_v52 = vld [vmem:[%s18345_s7 + $0xa0] sm:$0xff] }
0x19ce   :  { %10363 = vmatprep.subr.bf16.mxu0 %v10362_v58 }
0x19cf   :  { %10365 = vmatpush3.bf16.msra.mxu0 %v10362_v58  ;;  %v12719_v58 = vld [vmem:[%s18345_s7 + $0xa8] sm:$0xff] }
0x19d2   :  { %9319 = vmatmul.mubr.f32.vlgmr.msra.gmra.mrb[72].mxu0 %v12699_v43  ;;  %v12720_v43 = vld [vmem:[%s18345_s7 + $0xb0] sm:$0xff] }
0x19d3   :  { %9321 = vmatprep.mubr.f32.mxu0 %v12700_v13  ;;  %v12721_v13 = vld [vmem:[%s18345_s7 + $0xb8] sm:$0xff] }
0x19d6   :  { %9322 = vmatmul.mubr.f32.gmra.mrb[74].mxu0 %v12701_v12  ;;  %v12722_v12 = vld [vmem:[%s18345_s7 + $0xc0] sm:$0xff] }
0x19d7   :  { %9324 = vmatprep.mubr.f32.mxu0 %v12702_v54  ;;  %v12723_v54 = vld [vmem:[%s18345_s7 + $0xc8] sm:$0xff] }
0x19da   :  { %9325 = vmatmul.mubr.f32.gmra.mrb[76].mxu0 %v12703_v53  ;;  %v12724_v53 = vld [vmem:[%s18345_s7 + $0xd0] sm:$0xff] }
0x19db   :  { %9327 = vmatprep.mubr.f32.mxu0 %v12704_v47  ;;  %v12725_v47 = vld [vmem:[%s18345_s7 + $0xd8] sm:$0xff] }
0x19de   :  { %9328 = vmatmul.mubr.f32.gmra.mrb[78].mxu0 %v12705_v46  ;;  %v12726_v46 = vld [vmem:[%s18345_s7 + $0xe0] sm:$0xff] }
0x19df   :  { %9330 = vmatprep.mubr.f32.mxu0 %v12706_v4  ;;  %v12727_v4 = vld [vmem:[%s18345_s7 + $0xe8] sm:$0xff] }
0x19e2   :  { %9331 = vmatmul.mubr.f32.gmra.mrb[80].mxu0 %v12707_v61  ;;  %v12728_v61 = vld [vmem:[%s18345_s7 + $0xf0] sm:$0xff] }
0x19e3   :  { %9333 = vmatprep.mubr.f32.mxu0 %v12708_v18  ;;  %v12729_v18 = vld [vmem:[%s18345_s7 + $0xf8] sm:$0xff] }
0x19e6   :  { %9334 = vmatmul.mubr.f32.gmra.mrb[82].mxu0 %v12709_v28  ;;  %v17317_v28 = vld [vmem:[%s18345_s7 + $0x100] sm:$0xff] }
0x19e7   :  { %9336 = vmatprep.mubr.f32.mxu0 %v12710_v60  ;;  %v12731_v60 = vld [vmem:[%s18345_s7 + $0x108] sm:$0xff] }
0x19ea   :  { %9337 = vmatmul.mubr.f32.gmra.mrb[84].mxu0 %v12711_v10  ;;  %v12732_v10 = vld [vmem:[%s18345_s7 + $0x110] sm:$0xff] }
0x19eb   :  { %9339 = vmatprep.mubr.f32.mxu0 %v12712_v31  ;;  %v12733_v31 = vld [vmem:[%s18345_s7 + $0x118] sm:$0xff] }
0x19ee   :  { %9340 = vmatmul.mubr.f32.gmra.mrb[86].mxu0 %v12713_v22  ;;  %v12734_v22 = vld [vmem:[%s18345_s7 + $0x120] sm:$0xff] }
0x19ef   :  { %9342 = vmatprep.mubr.f32.mxu0 %v12714_v56  ;;  %v12735_v56 = vld [vmem:[%s18345_s7 + $0x128] sm:$0xff] }
0x19f2   :  { %9343 = vmatmul.mubr.f32.gmra.mrb[88].mxu0 %v12715_v30  ;;  %v12736_v30 = vld [vmem:[%s18345_s7 + $0x130] sm:$0xff] }
0x19f3   :  { %9345 = vmatprep.mubr.f32.mxu0 %v12716_v20  ;;  %v12737_v20 = vld [vmem:[%s18345_s7 + $0x138] sm:$0xff] }
0x19f6   :  { %9346 = vmatmul.mubr.f32.gmra.mrb[90].mxu0 %v12717_v33  ;;  %v12738_v33 = vld [vmem:[%s18345_s7 + $0x140] sm:$0xff] }
0x19f7   :  { %9348 = vmatprep.mubr.f32.mxu0 %v12718_v52  ;;  %v12739_v52 = vld [vmem:[%s18345_s7 + $0x148] sm:$0xff] }
0x19fa   :  { %9349 = vmatmul.mubr.f32.gmra.mrb[92].mxu0 %v12719_v58  ;;  %v12740_v58 = vld [vmem:[%s18345_s7 + $0x150] sm:$0xff] }
0x19fb   :  { %9351 = vmatprep.mubr.f32.mxu0 %v12720_v43  ;;  %v12741_v43 = vld [vmem:[%s18345_s7 + $0x158] sm:$0xff] }
0x19fe   :  { %9352 = vmatmul.mubr.f32.gmra.mrb[94].mxu0 %v12721_v13  ;;  %v12742_v13 = vld [vmem:[%s18345_s7 + $0x160] sm:$0xff] }
0x19ff   :  { %9354 = vmatprep.mubr.f32.mxu0 %v12722_v12  ;;  %v12743_v12 = vld [vmem:[%s18345_s7 + $0x168] sm:$0xff] }
0x1a02   :  { %9355 = vmatmul.mubr.f32.gmra.mrb[96].mxu0 %v12723_v54  ;;  %v12744_v54 = vld [vmem:[%s18345_s7 + $0x170] sm:$0xff] }
0x1a03   :  { %9357 = vmatprep.mubr.f32.mxu0 %v12724_v53  ;;  %v12745_v53 = vld [vmem:[%s18345_s7 + $0x178] sm:$0xff] }
0x1a06   :  { %9358 = vmatmul.mubr.f32.gmra.mrb[98].mxu0 %v12725_v47  ;;  %v12746_v47 = vld [vmem:[%s18345_s7 + $0x180] sm:$0xff] }
0x1a07   :  { %9360 = vmatprep.mubr.f32.mxu0 %v12726_v46  ;;  %v12747_v46 = vld [vmem:[%s18345_s7 + $0x188] sm:$0xff] }
0x1a0a   :  { %9361 = vmatmul.mubr.f32.gmra.mrb[100].mxu0 %v12727_v4  ;;  %v12748_v4 = vld [vmem:[%s18345_s7 + $0x190] sm:$0xff] }
0x1a0b   :  { %9363 = vmatprep.mubr.f32.mxu0 %v12728_v61  ;;  %v12749_v61 = vld [vmem:[%s18345_s7 + $0x198] sm:$0xff] }
0x1a0e   :  { %9364 = vmatmul.mubr.f32.gmra.mrb[102].mxu0 %v12729_v18  ;;  %v12750_v18 = vld [vmem:[%s18345_s7 + $0x1a0] sm:$0xff] }
0x1a0f   :  { %9366 = vmatprep.mubr.f32.mxu0 %v17317_v28 }
0x1a12   :  { %9367 = vmatmul.mubr.f32.gmra.mrb[104].mxu0 %v12731_v60  ;;  %v12751_v60 = vld [vmem:[%s18345_s7 + $0x1a8] sm:$0xff] }
0x1a13   :  { %9369 = vmatprep.mubr.f32.mxu0 %v12732_v10  ;;  %v12752_v10 = vld [vmem:[%s18345_s7 + $0x1b0] sm:$0xff] }
0x1a16   :  { %9370 = vmatmul.mubr.f32.gmra.mrb[106].mxu0 %v12733_v31  ;;  %v12753_v31 = vld [vmem:[%s18345_s7 + $0x1b8] sm:$0xff] }
0x1a17   :  { %9372 = vmatprep.mubr.f32.mxu0 %v12734_v22  ;;  %v12754_v22 = vld [vmem:[%s18345_s7 + $0x1c0] sm:$0xff] }
0x1a1a   :  { %9373 = vmatmul.mubr.f32.gmra.mrb[108].mxu0 %v12735_v56  ;;  %v12755_v56 = vld [vmem:[%s18345_s7 + $0x1c8] sm:$0xff] }
0x1a1b   :  { %9375 = vmatprep.mubr.f32.mxu0 %v12736_v30  ;;  %v12756_v30 = vld [vmem:[%s18345_s7 + $0x1d0] sm:$0xff] }
0x1a1e   :  { %9376 = vmatmul.mubr.f32.gmra.mrb[110].mxu0 %v12737_v20  ;;  %v12757_v20 = vld [vmem:[%s18345_s7 + $0x1d8] sm:$0xff] }
0x1a1f   :  { %9378 = vmatprep.mubr.f32.mxu0 %v12738_v33  ;;  %v12758_v33 = vld [vmem:[%s18345_s7 + $0x1e0] sm:$0xff] }
0x1a22   :  { %9379 = vmatmul.mubr.f32.gmra.mrb[112].mxu0 %v12739_v52  ;;  %v12759_v52 = vld [vmem:[%s18345_s7 + $0x1e8] sm:$0xff] }
0x1a23   :  { %9381 = vmatprep.mubr.f32.mxu0 %v12740_v58  ;;  %v12760_v58 = vld [vmem:[%s18345_s7 + $0x1f0] sm:$0xff] }
0x1a26   :  { %9382 = vmatmul.mubr.f32.gmra.mrb[114].mxu0 %v12741_v43  ;;  %v12761_v43 = vld [vmem:[%s18345_s7 + $0x1f8] sm:$0xff] }
0x1a27   :  { %9384 = vmatprep.mubr.f32.mxu0 %v12742_v13  ;;  %v5864_v13 = vpop.permute.xlu1 %5863 }
0x1a2a   :  { %9385 = vmatmul.mubr.f32.gmra.mrb[116].mxu0 %v12743_v12  ;;  %v5862_v12 = vpop.permute.xlu0 %5861 }
0x1a2b   :  { %9387 = vmatprep.mubr.f32.mxu0 %v12744_v54  ;;  %v5880_v54 = vpop.permute.xlu1 %5879 }
0x1a2e   :  { %9388 = vmatmul.mubr.f32.gmra.mrb[118].mxu0 %v12745_v53  ;;  %v5878_v53 = vpop.permute.xlu0 %5877 }
0x1a2f   :  { %9390 = vmatprep.mubr.f32.mxu0 %v12746_v47  ;;  %v5868_v47 = vpop.permute.xlu1 %5867 }
0x1a32   :  { %9391 = vmatmul.mubr.f32.gmra.mrb[120].mxu0 %v12747_v46  ;;  %v5866_v46 = vpop.permute.xlu0 %5865 }
0x1a33   :  { %9393 = vmatprep.mubr.f32.mxu0 %v12748_v4  ;;  %v17414_v4 = vpop.permute.xlu1 %5883 }
0x1a36   :  { %9394 = vmatmul.mubr.f32.gmra.mrb[122].mxu0 %v12749_v61  ;;  %v17416_v61 = vpop.permute.xlu0 %5881 }
0x1a37   :  { %9396 = vmatprep.mubr.f32.mxu0 %v12750_v18  ;;  %v5872_v18 = vpop.permute.xlu1 %5871 }
0x1a3a   :  { %9397 = vmatmul.mubr.f32.gmra.mrb[124].mxu0 %v12751_v60  ;;  %v5870_v60 = vpop.permute.xlu0 %5869 }
0x1a3b   :  { %9399 = vmatprep.mubr.f32.mxu0 %v12752_v10  ;;  %v17418_v10 = vpop.permute.xlu1 %5887 }
0x1a3e   :  { %9400 = vmatmul.mubr.f32.gmra.mrb[126].mxu0 %v12753_v31  ;;  %v17420_v31 = vpop.permute.xlu0 %5885 }
0x1a3f   :  { %9402 = vmatprep.mubr.f32.mxu0 %v12754_v22  ;;  %v5876_v22 = vpop.permute.xlu1 %5875 }
0x1a42   :  { %9403 = vmatmul.mubr.f32.gmra.mrb[128].mxu0 %v12755_v56  ;;  %v5874_v56 = vpop.permute.xlu0 %5873 }
0x1a43   :  { %9405 = vmatprep.mubr.f32.mxu0 %v12756_v30 }
0x1a46   :  { %9406 = vmatmul.mubr.f32.gmra.mrb[130].mxu0 %v12757_v20 }
0x1a47   :  { %9408 = vmatprep.mubr.f32.mxu0 %v12758_v33 }
0x1a4a   :  { %9409 = vmatmul.mubr.f32.gmra.mrb[132].mxu0 %v12759_v52  ;;  %v17422_v52 = vpop.permute.xlu1 %5891 }
0x1a4b   :  { %9411 = vmatprep.mubr.f32.mxu0 %v12760_v58 }
0x1a4e   :  { %9412 = vmatmul.mubr.f32.gmra.mrb[134].mxu0 %v12761_v43  ;;  %v17424_v43 = vpop.permute.xlu0 %5889  ;;  %v17426_v32 = vpop.permute.xlu1 %5895 }
0x1a4f   :  { %9574 = vmatprep.mubr.f32.mxu0 %v17317_v28 }
0x1aa5   :  { %v9320_v30 = vpop.f32.mrb[72].mxu0 }
0x1aa6   :  { %v5958_v28 = vadd.f32 %v9320_v30, %v5864_v13  ;;  %v5542_v20 = vpop.f32.mrb[73].mxu0  ;;  %v17428_v30 = vpop.permute.xlu0 %5893 }
0x1aa7   :  { %v5957_v33 = vadd.f32 %v5862_v12, %v5542_v20 }
0x1aa8   :  { %v8463_v58 = vmul.f32 -1.442695, %v5958_v28 }
0x1aa9   :  { %v8462_v24 = vmul.f32 -1.442695, %v5957_v33  ;;  %v9323_v36 = vpop.f32.mrb[74].mxu0 }
0x1aaa   :  { %12034 = vpow2.f32 %v8463_v58  ;;  %v5960_v55 = vadd.f32 %v9323_v36, %v5868_v47  ;;  %v5552_v29 = vpop.f32.mrb[75].mxu0 }
0x1aab   :  { %12036 = vpow2.f32 %v8462_v24  ;;  %v5959_v16 = vadd.f32 %v5866_v46, %v5552_v29 }
0x1aac   :  { %v8465_v11 = vmul.f32 -1.442695, %v5960_v55 }
0x1aad   :  { %v8464_v62 = vmul.f32 -1.442695, %v5959_v16  ;;  %v9326_v39 = vpop.f32.mrb[76].mxu0  ;;  %v17430_v16 = vpop.permute.xlu1 %5911 }
0x1aae   :  { %12038 = vpow2.f32 %v8465_v11  ;;  %v5962_v13 = vadd.f32 %v9326_v39, %v5872_v18  ;;  %v5562_v12 = vpop.f32.mrb[77].mxu0  ;;  %v17432_v11 = vpop.permute.xlu0 %5909 }
0x1aaf   :  { %12040 = vpow2.f32 %v8464_v62  ;;  %v5961_v28 = vadd.f32 %v5870_v60, %v5562_v12 }
0x1ab0   :  { %v8467_v20 = vmul.f32 -1.442695, %v5962_v13 }
0x1ab1   :  { %v8466_v33 = vmul.f32 -1.442695, %v5961_v28  ;;  %v9329_v26 = vpop.f32.mrb[78].mxu0 }
0x1ab2   :  { %12042 = vpow2.f32 %v8467_v20  ;;  %v5964_v36 = vadd.f32 %v9329_v26, %v5876_v22  ;;  %v5572_v47 = vpop.f32.mrb[79].mxu0 }
0x1ab3   :  { %12044 = vpow2.f32 %v8466_v33  ;;  %v5963_v29 = vadd.f32 %v5874_v56, %v5572_v47 }
0x1ab4   :  { %v12035_v55 = vpop.eup %12034  ;;  %v8469_v24 = vmul.f32 -1.442695, %v5964_v36  ;;  %v17434_v36 = vpop.permute.xlu1 %5899 }
0x1ab5   :  { %v12037_v46 = vpop.eup %12036  ;;  %v6014_v39 = vadd.f32 1.0, %v12035_v55  ;;  %v8468_v18 = vmul.f32 -1.442695, %v5963_v29  ;;  %v9332_v58 = vpop.f32.mrb[80].mxu0 }
0x1ab6   :  { %12046 = vpow2.f32 %v8469_v24  ;;  %v5966_v62 = vadd.f32 %v9332_v58, %v5880_v54  ;;  %v5582_v60 = vpop.f32.mrb[81].mxu0  ;;  %v6013_v13 = vadd.f32 1.0, %v12037_v46  ;;  %v17437_v55 = vpop.permute.xlu0 %5913 }
0x1ab7   :  { %v5965_v12 = vadd.f32 %v5878_v53, %v5582_v60  ;;  %12048 = vrcp.f32 %v6014_v39 }
0x1ab8   :  { %v12039_v28 = vpop.eup %12038  ;;  %v8471_v26 = vmul.f32 -1.442695, %v5966_v62  ;;  %12050 = vpow2.f32 %v8468_v18 }
0x1ab9   :  { %v12041_v22 = vpop.eup %12040  ;;  %v6016_v56 = vadd.f32 1.0, %v12039_v28  ;;  %v8470_v20 = vmul.f32 -1.442695, %v5965_v12  ;;  %v9335_v33 = vpop.f32.mrb[82].mxu0 }
0x1aba   :  { %12052 = vpow2.f32 %v8471_v26  ;;  %v5968_v47 = vadd.f32 %v9335_v33, %v17414_v4  ;;  %v5592_v29 = vpop.f32.mrb[83].mxu0  ;;  %v6015_v54 = vadd.f32 1.0, %v12041_v22  ;;  %v17442_v26 = vpop.permute.xlu1 %5915 }
0x1abb   :  { %12054 = vrcp.f32 %v6013_v13  ;;  %v5967_v53 = vadd.f32 %v17416_v61, %v5592_v29  ;;  %v5902_v22 = vpop.permute.xlu0 %5901 }
0x1abc   :  { %v12043_v24 = vpop.eup %12042  ;;  %12056 = vrcp.f32 %v6016_v56  ;;  %v8473_v46 = vmul.f32 -1.442695, %v5968_v47 }
0x1abd   :  { %v12045_v39 = vpop.eup %12044  ;;  %v6018_v58 = vadd.f32 1.0, %v12043_v24  ;;  %12058 = vpow2.f32 %v8470_v20  ;;  %v8472_v18 = vmul.f32 -1.442695, %v5967_v53  ;;  %v9338_v62 = vpop.f32.mrb[84].mxu0 }
0x1abe   :  { %12060 = vpow2.f32 %v8473_v46  ;;  %v5970_v60 = vadd.f32 %v9338_v62, %v17418_v10  ;;  %v5602_v12 = vpop.f32.mrb[85].mxu0  ;;  %v6017_v4 = vadd.f32 1.0, %v12045_v39 }
0x1abf   :  { %12062 = vrcp.f32 %v6015_v54  ;;  %v5969_v28 = vadd.f32 %v17420_v31, %v5602_v12  ;;  %v5904_v12 = vpop.permute.xlu1 %5903 }
0x1ac0   :  { %v12047_v13 = vpop.eup %12046  ;;  %12064 = vrcp.f32 %v6018_v58  ;;  %v8475_v61 = vmul.f32 -1.442695, %v5970_v60 }
0x1ac1   :  { %v6020_v56 = vadd.f32 1.0, %v12047_v13  ;;  %12066 = vpow2.f32 %v8472_v18  ;;  %v8474_v33 = vmul.f32 -1.442695, %v5969_v28  ;;  %v9341_v20 = vpop.f32.mrb[86].mxu0  ;;  %v17444_v47 = vpop.eup %12048 }
0x1ac2   :  { %12068 = vpow2.f32 %v8475_v61  ;;  %v5972_v10 = vadd.f32 %v9341_v20, %v17422_v52  ;;  %v5612_v29 = vpop.f32.mrb[87].mxu0  ;;  %v12051_v54 = vpop.eup %12050 }
0x1ac3   :  { %12070 = vrcp.f32 %v6017_v4  ;;  %v5971_v31 = vadd.f32 %v17424_v43, %v5612_v29  ;;  %v6019_v24 = vadd.f32 1.0, %v12051_v54  ;;  %v17452_v13 = vpop.permute.xlu0 %5917 }
0x1ac4   :  { %v12053_v53 = vpop.eup %12052  ;;  %12072 = vpow2.f32 %v8474_v33  ;;  %v8477_v46 = vmul.f32 -1.442695, %v5972_v10 }
0x1ac5   :  { %v17448_v39 = vpop.eup %12054  ;;  %12074 = vrcp.f32 %v6020_v56  ;;  %v6062_v58 = vadd.f32 1.0, %v12053_v53  ;;  %v8476_v18 = vmul.f32 -1.442695, %v5971_v31  ;;  %v9344_v62 = vpop.f32.mrb[88].mxu0 }
0x1ac6   :  { %v17450_v60 = vpop.eup %12056  ;;  %12076 = vrcp.f32 %v6019_v24  ;;  %v5622_v52 = vpop.f32.mrb[89].mxu0  ;;  %v5974_v61 = vadd.f32 %v9344_v62, %v17426_v32 }
0x1ac7   :  { %v12059_v28 = vpop.eup %12058  ;;  %12078 = vrcp.f32 %v6062_v58  ;;  %v5973_v20 = vadd.f32 %v17428_v30, %v5622_v52  ;;  %v17460_v24 = vpop.permute.xlu1 %5919 }
0x1ac8   :  { %v12061_v43 = vpop.eup %12060  ;;  %v6061_v4 = vadd.f32 1.0, %v12059_v28  ;;  %12080 = vpow2.f32 %v8477_v46  ;;  %v5898_v62 = vpop.permute.xlu0 %5897 }
0x1ac9   :  { %v17455_v33 = vpop.eup %12062  ;;  %v6064_v56 = vadd.f32 1.0, %v12061_v43  ;;  %12082 = vpow2.f32 %v8476_v18  ;;  %v9347_v10 = vpop.f32.mrb[90].mxu0 }
0x1aca   :  { %v17458_v29 = vpop.eup %12064  ;;  %12084 = vrcp.f32 %v6061_v4  ;;  %v5632_v54 = vpop.f32.mrb[91].mxu0  ;;  %v5976_v32 = vadd.f32 %v9347_v10, %v17434_v36 }
0x1acb   :  { %v12067_v31 = vpop.eup %12066  ;;  %12086 = vrcp.f32 %v6064_v56  ;;  %v5975_v28 = vadd.f32 %v5898_v62, %v5632_v54 }
0x1acc   :  { %v12069_v53 = vpop.eup %12068  ;;  %v6063_v58 = vadd.f32 1.0, %v12067_v31  ;;  %12088 = vtanh.f32 %v5974_v61 }
0x1acd   :  { %v17463_v46 = vpop.eup %12070  ;;  %v6066_v18 = vadd.f32 1.0, %v12069_v53  ;;  %12090 = vtanh.f32 %v5973_v20  ;;  %v9350_v30 = vpop.f32.mrb[92].mxu0 }
0x1ace   :  { %v12073_v52 = vpop.eup %12072  ;;  %12092 = vrcp.f32 %v6063_v58  ;;  %v5642_v43 = vpop.f32.mrb[93].mxu0  ;;  %v5978_v27 = vadd.f32 %v9350_v30, %v5904_v12 }
0x1acf   :  { %v17465_v4 = vpop.eup %12074  ;;  %12094 = vrcp.f32 %v6066_v18  ;;  %v6065_v56 = vadd.f32 1.0, %v12073_v52  ;;  %v5977_v61 = vadd.f32 %v5902_v22, %v5642_v43  ;;  %v5908_v53 = vpop.permute.xlu1 %5907 }
0x1ad0   :  { %v17467_v41 = vpop.eup %12076  ;;  %12096 = vtanh.f32 %v5976_v32  ;;  %v5906_v58 = vpop.permute.xlu0 %5905 }
0x1ad1   :  { %v12079_v36 = vpop.eup %12078  ;;  %12098 = vrcp.f32 %v6065_v56  ;;  %v9353_v10 = vpop.f32.mrb[94].mxu0 }
0x1ad2   :  { %v12081_v31 = vpop.eup %12080  ;;  %12100 = vtanh.f32 %v5975_v28  ;;  %v5652_v20 = vpop.f32.mrb[95].mxu0  ;;  %v5980_v62 = vadd.f32 %v9353_v10, %v5908_v53  ;;  %v6142_v32 = vmul.f32 %v12079_v36, %v17083_v59 }
0x1ad3   :  { %v12083_v40 = vpop.eup %12082  ;;  %v6068_v54 = vadd.f32 1.0, %v12081_v31  ;;  %12102 = vtanh.f32 %v5978_v27  ;;  %v5979_v12 = vadd.f32 %v5906_v58, %v5652_v20 }
0x1ad4   :  { %v12085_v44 = vpop.eup %12084  ;;  %v6067_v18 = vadd.f32 1.0, %v12083_v40  ;;  %12104 = vtanh.f32 %v5977_v61 }
0x1ad5   :  { %v12087_v30 = vpop.eup %12086  ;;  %12106 = vrcp.f32 %v6068_v54  ;;  %v9356_v22 = vpop.f32.mrb[96].mxu0  ;;  %v6141_v43 = vmul.f32 %v12085_v44, %v17085_v7 }
0x1ad6   :  { %v12089_v52 = vpop.eup %12088  ;;  %12108 = vrcp.f32 %v6067_v18  ;;  %v5982_v28 = vadd.f32 %v9356_v22, %v17430_v16  ;;  %v5662_v56 = vpop.f32.mrb[97].mxu0  ;;  %v6144_v31 = vmul.f32 %v12087_v30, %v17095_v37 }
0x1ad7   :  { %v12091_v45 = vpop.eup %12090  ;;  %v6150_v27 = vmul.f32 %v12089_v52, %v17444_v47  ;;  %12110 = vtanh.f32 %v5980_v62  ;;  %v5981_v40 = vadd.f32 %v17432_v11, %v5662_v56 }
0x1ad8   :  { %v12093_v61 = vpop.eup %12092  ;;  %v6149_v10 = vmul.f32 %v12091_v45, %v17448_v39  ;;  %12112 = vtanh.f32 %v5979_v12  ;;  %v8479_v59 = vmul.f32 -1.442695, %v5982_v28 }
0x1ad9   :  { %v12095_v36 = vpop.eup %12094  ;;  %v17476_v53 = vadd.f32 %v6150_v27, %v6142_v32  ;;  %v8478_v7 = vmul.f32 -1.442695, %v5981_v40  ;;  %v9359_v44 = vpop.f32.mrb[98].mxu0  ;;  %v6143_v54 = vmul.f32 %v12093_v61, %v17101_v25 }
0x1ada   :  { %v12097_v16 = vpop.eup %12096  ;;  %v17478_v20 = vadd.f32 %v6149_v10, %v6141_v43  ;;  %12114 = vpow2.f32 %v8479_v59  ;;  %v5984_v47 = vadd.f32 %v9359_v44, %v17442_v26  ;;  %v5672_v58 = vpop.f32.mrb[99].mxu0  ;;  %v6146_v62 = vmul.f32 %v12095_v36, %v17106_v14 }
0x1adb   :  { %v12099_v11 = vpop.eup %12098  ;;  %12116 = vtanh.f32 %v17476_v53  ;;  %v6152_v45 = vmul.f32 %v12097_v16, %v17450_v60  ;;  %v5983_v37 = vadd.f32 %v17437_v55, %v5672_v58  ;;  %v5924_v10 = vpop.permute.xlu1 %5923 }
0x1adc   :  { %v12101_v39 = vpop.eup %12100  ;;  %v6145_v18 = vmul.f32 %v12099_v11, %v17110_v1  ;;  %12118 = vtanh.f32 %v17478_v20  ;;  %v8481_v12 = vmul.f32 -1.442695, %v5984_v47  ;;  %v5922_v44 = vpop.permute.xlu0 %5921 }
0x1add   :  { %v12103_v30 = vpop.eup %12102  ;;  %v17488_v26 = vadd.f32 %v6152_v45, %v6144_v31  ;;  %v6151_v32 = vmul.f32 %v12101_v39, %v17455_v33  ;;  %12120 = vpow2.f32 %v8478_v7  ;;  %v8480_v25 = vmul.f32 -1.442695, %v5983_v37  ;;  %v9362_v22 = vpop.f32.mrb[100].mxu0 }
0x1ade   :  { %v12105_v52 = vpop.eup %12104  ;;  %v6154_v60 = vmul.f32 %v12103_v30, %v17458_v29  ;;  %12122 = vpow2.f32 %v8481_v12  ;;  %v5986_v55 = vadd.f32 %v9362_v22, %v17460_v24  ;;  %v5682_v14 = vpop.f32.mrb[101].mxu0 }
0x1adf   :  { %v12107_v43 = vpop.eup %12106  ;;  %12124 = vtanh.f32 %v17488_v26  ;;  %v17494_v1 = vadd.f32 %v6151_v32, %v6143_v54  ;;  %v6153_v28 = vmul.f32 %v12105_v52, %v17463_v46  ;;  %v5985_v56 = vadd.f32 %v17452_v13, %v5682_v14 }
0x1ae0   :  { %v12109_v33 = vpop.eup %12108  ;;  %v6148_v27 = vmul.f32 %v12107_v43, %v17117_v8  ;;  %v17499_v40 = vadd.f32 %v6154_v60, %v6146_v62  ;;  %12126 = vpow2.f32 %v8480_v25  ;;  %v8483_v29 = vmul.f32 -1.442695, %v5986_v55 }
0x1ae1   :  { %v12111_v61 = vpop.eup %12110  ;;  %v6147_v24 = vmul.f32 %v12109_v33, %v17120_v9  ;;  %12128 = vtanh.f32 %v17494_v1  ;;  %v17503_v59 = vadd.f32 %v6153_v28, %v6145_v18  ;;  %v8482_v36 = vmul.f32 -1.442695, %v5985_v56  ;;  %v9365_v31 = vpop.f32.mrb[102].mxu0 }
0x1ae2   :  { %v12113_v46 = vpop.eup %12112  ;;  %12130 = vtanh.f32 %v17499_v40  ;;  %v6156_v13 = vmul.f32 %v12111_v61, %v17465_v4  ;;  %v5988_v8 = vadd.f32 %v9365_v31, %v5924_v10  ;;  %v5692_v7 = vpop.f32.mrb[103].mxu0 }
0x1ae3   :  { %12132 = vtanh.f32 %v17503_v59  ;;  %v6155_v16 = vmul.f32 %v12113_v46, %v17467_v41  ;;  %v5987_v58 = vadd.f32 %v5922_v44, %v5692_v7 }
0x1ae4   :  { %v12115_v47 = vpop.eup %12114  ;;  %v17509_v9 = vadd.f32 %v6156_v13, %v6148_v27  ;;  %12134 = vpow2.f32 %v8483_v29  ;;  %v8485_v37 = vmul.f32 -1.442695, %v5988_v8 }
0x1ae5   :  { %v12117_v11 = vpop.eup %12116  ;;  %v17511_v54 = vadd.f32 %v6155_v16, %v6147_v24  ;;  %v6118_v45 = vadd.f32 1.0, %v12115_v47  ;;  %12136 = vpow2.f32 %v8482_v36  ;;  %v9368_v39 = vpop.f32.mrb[104].mxu0  ;;  %v8484_v25 = vmul.f32 -1.442695, %v5987_v58 }
0x1ae6   :  { %v17513_v4 = vpop.eup %12118  ;;  %12138 = vtanh.f32 %v17509_v9  ;;  %v6182_v62 = vadd.f32 %v9368_v39, %v16511_v38  ;;  %v5702_v18 = vpop.f32.mrb[105].mxu0 }
0x1ae7   :  { %v12121_v41 = vpop.eup %12120  ;;  %12140 = vtanh.f32 %v17511_v54  ;;  %v6181_v12 = vadd.f32 %v5702_v18, %v16506_v23 }
0x1ae8   :  { %v12123_v30 = vpop.eup %12122  ;;  %12142 = vrcp.f32 %v6118_v45  ;;  %v6117_v32 = vadd.f32 1.0, %v12121_v41  ;;  %v8487_v14 = vmul.f32 -1.442695, %v6182_v62 }
0x1ae9   :  { %v12125_v22 = vpop.eup %12124  ;;  %v6120_v52 = vadd.f32 1.0, %v12123_v30  ;;  %12144 = vpow2.f32 %v8485_v37  ;;  %v9371_v60 = vpop.f32.mrb[106].mxu0  ;;  %v8486_v27 = vmul.f32 -1.442695, %v6181_v12 }
0x1aea   :  { %v12127_v55 = vpop.eup %12126  ;;  %12146 = vrcp.f32 %v6117_v32  ;;  %v6184_v43 = vadd.f32 %v9371_v60, %v16549_v21  ;;  %v5712_v28 = vpop.f32.mrb[107].mxu0 }
0x1aeb   :  { %v12129_v56 = vpop.eup %12128  ;;  %12148 = vrcp.f32 %v6120_v52  ;;  %v6119_v33 = vadd.f32 1.0, %v12127_v55  ;;  %v6183_v29 = vadd.f32 %v5712_v28, %v16544_v51 }
0x1aec   :  { %v17521_v61 = vpop.eup %12130  ;;  %12150 = vpow2.f32 %v8484_v25  ;;  %v8489_v10 = vmul.f32 -1.442695, %v6184_v43 }
0x1aed   :  { %v17523_v24 = vpop.eup %12132  ;;  %12152 = vrcp.f32 %v6119_v33  ;;  %v9374_v36 = vpop.f32.mrb[108].mxu0  ;;  %v8488_v44 = vmul.f32 -1.442695, %v6183_v29 }
0x1aee   :  { %v12135_v31 = vpop.eup %12134  ;;  %12154 = vpow2.f32 %v8487_v14  ;;  %v6186_v46 = vadd.f32 %v9374_v36, %v16587_v50  ;;  %v5722_v13 = vpop.f32.mrb[109].mxu0 }
0x1aef   :  { %v12137_v8 = vpop.eup %12136  ;;  %v6122_v7 = vadd.f32 1.0, %v12135_v31  ;;  %12156 = vpow2.f32 %v8486_v27  ;;  %v6185_v16 = vadd.f32 %v5722_v13, %v16582_v17 }
0x1af0   :  { %v17527_v47 = vpop.eup %12138  ;;  %v6121_v58 = vadd.f32 1.0, %v12137_v8  ;;  %12158 = vpow2.f32 %v8489_v10  ;;  %v8491_v45 = vmul.f32 -1.442695, %v6186_v46 }
0x1af1   :  { %v17529_v37 = vpop.eup %12140  ;;  %12160 = vrcp.f32 %v6122_v7  ;;  %v8490_v39 = vmul.f32 -1.442695, %v6185_v16  ;;  %v9377_v62 = vpop.f32.mrb[110].mxu0 }
0x1af2   :  { %v12143_v18 = vpop.eup %12142  ;;  %12162 = vrcp.f32 %v6121_v58  ;;  %v6188_v41 = vadd.f32 %v9377_v62, %v16625_v19  ;;  %v5732_v12 = vpop.f32.mrb[111].mxu0 }
0x1af3   :  { %v12145_v30 = vpop.eup %12144  ;;  %12164 = vpow2.f32 %v8488_v44  ;;  %v6187_v32 = vadd.f32 %v5732_v12, %v16620_v48  ;;  %v6174_v25 = vmul.f32 %v12143_v18, %v12117_v11 }
0x1af4   :  { %v12147_v52 = vpop.eup %12146  ;;  %v6124_v60 = vadd.f32 1.0, %v12145_v30  ;;  %12166 = vpow2.f32 %v8491_v45  ;;  %v8493_v55 = vmul.f32 -1.442695, %v6188_v41 }
0x1af5   :  { %v12149_v14 = vpop.eup %12148  ;;  %12168 = vpow2.f32 %v8490_v39  ;;  %v8492_v43 = vmul.f32 -1.442695, %v6187_v32  ;;  %v9380_v28 = vpop.f32.mrb[112].mxu0  ;;  %v6173_v33 = vmul.f32 %v12147_v52, %v17513_v4 }
0x1af6   :  { %v12151_v27 = vpop.eup %12150  ;;  %12170 = vrcp.f32 %v6124_v60  ;;  %v6190_v29 = vadd.f32 %v9380_v28, %v16529_v5  ;;  %v5742_v10 = vpop.f32.mrb[113].mxu0  ;;  %v6176_v36 = vmul.f32 %v12149_v14, %v12125_v22 }
0x1af7   :  { %v12153_v31 = vpop.eup %12152  ;;  %v6123_v46 = vadd.f32 1.0, %v12151_v27  ;;  %12172 = vpow2.f32 %v8493_v55  ;;  %v6189_v11 = vadd.f32 %v5742_v10, %v16525_v34  ;;  %v10366_v13 = vpack.c.bf16 %v6174_v25, %v6173_v33 }
0x1af8   :  { %v12155_v8 = vpop.eup %12154  ;;  %12174 = vpow2.f32 %v8492_v43  ;;  %v8495_v7 = vmul.f32 -1.442695, %v6190_v29  ;;  %v6175_v44 = vmul.f32 %v12153_v31, %v12129_v56 }
0x1af9   :  { %v12157_v16 = vpop.eup %12156  ;;  %12176 = vrcp.f32 %v6123_v46  ;;  %v6238_v58 = vadd.f32 1.0, %v12155_v8  ;;  %v8494_v4 = vmul.f32 -1.442695, %v6189_v11  ;;  %10367 = vmatprep.subr.bf16.mxu1 %v10366_v13  ;;  %v9383_v45 = vpop.f32.mrb[114].mxu0 }
0x1afa   :  { %v12159_v39 = vpop.eup %12158  ;;  %v6237_v62 = vadd.f32 1.0, %v12157_v16  ;;  %12178 = vpow2.f32 %v8495_v7  ;;  %10369 = vmatpush3.bf16.msra.mxu1 %v10366_v13  ;;  %v6192_v22 = vadd.f32 %v9383_v45, %v18527_v15  ;;  %v5752_v18 = vpop.f32.mrb[115].mxu0  ;;  %v10370_v41 = vpack.c.bf16 %v6176_v36, %v6175_v44 }
0x1afb   :  { %v12161_v12 = vpop.eup %12160  ;;  %12180 = vrcp.f32 %v6238_v58  ;;  %v6240_v30 = vadd.f32 1.0, %v12159_v39  ;;  %v6191_v32 = vadd.f32 %v5752_v18, %v18528_v49 }
0x1afc   :  { %v12163_v56 = vpop.eup %12162  ;;  %12182 = vrcp.f32 %v6237_v62  ;;  %v8497_v25 = vmul.f32 -1.442695, %v6192_v22  ;;  %10371 = vmatprep.subr.bf16.mxu1 %v10370_v41  ;;  %v6178_v52 = vmul.f32 %v12161_v12, %v17521_v61 }
0x1afd   :  { %v12165_v60 = vpop.eup %12164  ;;  %12184 = vrcp.f32 %v6240_v30  ;;  %v9386_v55 = vpop.f32.mrb[116].mxu0  ;;  %v6177_v14 = vmul.f32 %v12163_v56, %v17523_v24  ;;  %v8496_v36 = vmul.f32 -1.442695, %v6191_v32 }
0x1afe   :  { %v12167_v43 = vpop.eup %12166  ;;  %v6239_v28 = vadd.f32 1.0, %v12165_v60  ;;  %12186 = vpow2.f32 %v8494_v4  ;;  %10373 = vmatpush3.bf16.msra.mxu1 %v10370_v41  ;;  %v6194_v33 = vadd.f32 %v9386_v55, %v18529_v6  ;;  %v5762_v27 = vpop.f32.mrb[117].mxu0 }
0x1aff   :  { %v12169_v29 = vpop.eup %12168  ;;  %v6242_v10 = vadd.f32 1.0, %v12167_v43  ;;  %12188 = vpow2.f32 %v8497_v25  ;;  %v10374_v31 = vpack.c.bf16 %v6178_v52, %v6177_v14  ;;  %v6193_v11 = vadd.f32 %v5762_v27, %v18530_v0 }
0x1b00   :  { %v12171_v46 = vpop.eup %12170  ;;  %12190 = vrcp.f32 %v6239_v28  ;;  %v6241_v61 = vadd.f32 1.0, %v12169_v29  ;;  %v8499_v24 = vmul.f32 -1.442695, %v6194_v33 }
0x1b01   :  { %v12173_v13 = vpop.eup %12172  ;;  %12192 = vrcp.f32 %v6242_v10  ;;  %10375 = vmatprep.subr.bf16.mxu1 %v10374_v31  ;;  %v9389_v8 = vpop.f32.mrb[118].mxu0  ;;  %v6180_v4 = vmul.f32 %v12171_v46, %v17527_v47  ;;  %v8498_v18 = vmul.f32 -1.442695, %v6193_v11 }
0x1b02   :  { %v12175_v7 = vpop.eup %12174  ;;  %12194 = vrcp.f32 %v6241_v61  ;;  %v6244_v44 = vadd.f32 1.0, %v12173_v13  ;;  %10377 = vmatpush3.bf16.msra.mxu1 %v10374_v31  ;;  %v6196_v16 = vadd.f32 %v9389_v8, %v18531_v35  ;;  %v5772_v58 = vpop.f32.mrb[119].mxu0 }
0x1b03   :  { %v12177_v45 = vpop.eup %12176  ;;  %v6243_v39 = vadd.f32 1.0, %v12175_v7  ;;  %12196 = vpow2.f32 %v8496_v36  ;;  %v6195_v62 = vadd.f32 %v5772_v58, %v18532_v42 }
0x1b04   :  { %v12179_v22 = vpop.eup %12178  ;;  %12198 = vrcp.f32 %v6244_v44  ;;  %v6179_v41 = vmul.f32 %v12177_v45, %v17529_v37  ;;  %v8501_v32 = vmul.f32 -1.442695, %v6196_v16  ;;  %v18557_v44 = vld [vmem:[#allocation20_spill] sm:$0xff] }
0x1b05   :  { %v17546_v12 = vpop.eup %12180  ;;  %12200 = vrcp.f32 %v6243_v39  ;;  %v6286_v30 = vadd.f32 1.0, %v12179_v22  ;;  %v9392_v56 = vpop.f32.mrb[120].mxu0  ;;  %v8500_v47 = vmul.f32 -1.442695, %v6195_v62  ;;  %v18558_v39 = vld [vmem:[#allocation19_spill] sm:$0xff] }
0x1b06   :  { %v17548_v25 = vpop.eup %12182  ;;  %12202 = vpow2.f32 %v8499_v24  ;;  %v10378_v52 = vpack.c.bf16 %v6180_v4, %v6179_v41  ;;  %v5782_v60 = vpop.f32.mrb[121].mxu0  ;;  %v6198_v28 = vadd.f32 %v9392_v56, %v18533_v63 }
0x1b07   :  { %v17550_v55 = vpop.eup %12184  ;;  %12204 = vrcp.f32 %v6286_v30  ;;  %v6197_v10 = vadd.f32 %v5782_v60, %v18534_v2 }
0x1b08   :  { %v12187_v14 = vpop.eup %12186  ;;  %12206 = vpow2.f32 %v8498_v18  ;;  %10379 = vmatprep.subr.bf16.mxu1 %v10378_v52 }
0x1b09   :  { %v12189_v43 = vpop.eup %12188  ;;  %v6285_v37 = vadd.f32 1.0, %v12187_v14  ;;  %12208 = vpow2.f32 %v8501_v32  ;;  %10381 = vmatpush3.bf16.msra.mxu1 %v10378_v52  ;;  %v9395_v33 = vpop.f32.mrb[122].mxu0  ;;  %v18559_v14 = vld [vmem:[#allocation24_spill] sm:$0xff] }
0x1b0a   :  { %v17553_v27 = vpop.eup %12190  ;;  %v6288_v29 = vadd.f32 1.0, %v12189_v43  ;;  %12210 = vpow2.f32 %v8500_v47  ;;  %v5792_v36 = vpop.f32.mrb[123].mxu0  ;;  %v6200_v46 = vadd.f32 %v9395_v33, %v18535_v3  ;;  %v18560_v33 = vld [vmem:[#allocation23_spill] sm:$0xff] }
0x1b0b   :  { %v17556_v31 = vpop.eup %12192  ;;  %12212 = vrcp.f32 %v6285_v37  ;;  %v6199_v13 = vadd.f32 %v5792_v36, %v18536_v57 }
0x1b0c   :  { %v17559_v61 = vpop.eup %12194  ;;  %12214 = vrcp.f32 %v6288_v29 }
0x1b0d   :  { %v12197_v11 = vpop.eup %12196  ;;  %12216 = vtanh.f32 %v6198_v28  ;;  %v9398_v24 = vpop.f32.mrb[124].mxu0 }
0x1b0e   :  { %v17562_v8 = vpop.eup %12198  ;;  %v6287_v7 = vadd.f32 1.0, %v12197_v11  ;;  %12218 = vtanh.f32 %v6197_v10  ;;  %v6202_v16 = vadd.f32 %v9398_v24, %v18557_v44  ;;  %v5802_v58 = vpop.f32.mrb[125].mxu0 }
0x1b0f   :  { %v17565_v4 = vpop.eup %12200  ;;  %12220 = vtanh.f32 %v6200_v46  ;;  %v6201_v62 = vadd.f32 %v5802_v58, %v18558_v39  ;;  %v18561_v46 = vld [vmem:[#allocation6_spill] sm:$0xff]  ;;  %v18563_v58 = vld [vmem:[#allocation5_spill] sm:$0xff] }
0x1b10   :  { %v12203_v45 = vpop.eup %12202  ;;  %12222 = vrcp.f32 %v6287_v7 }
0x1b11   :  { %v12205_v22 = vpop.eup %12204  ;;  %v6290_v18 = vadd.f32 1.0, %v12203_v45  ;;  %12224 = vtanh.f32 %v6199_v13  ;;  %v9401_v41 = vpop.f32.mrb[126].mxu0  ;;  %v18562_v13 = vld [vmem:[#allocation14_spill] sm:$0xff] }
0x1b12   :  { %v12207_v30 = vpop.eup %12206  ;;  %12226 = vtanh.f32 %v6202_v16  ;;  %v5812_v32 = vpop.f32.mrb[127].mxu0  ;;  %v6204_v43 = vadd.f32 %v9401_v41, %v18559_v14  ;;  %v6366_v11 = vmul.f32 %v12205_v22, %v18561_v46 }
0x1b13   :  { %v12209_v56 = vpop.eup %12208  ;;  %12228 = vrcp.f32 %v6290_v18  ;;  %v6289_v47 = vadd.f32 1.0, %v12207_v30  ;;  %v6203_v29 = vadd.f32 %v5812_v32, %v18560_v33  ;;  %v18565_v30 = vld [vmem:[#allocation8_spill] sm:$0xff] }
0x1b14   :  { %v12211_v52 = vpop.eup %12210  ;;  %v6292_v60 = vadd.f32 1.0, %v12209_v56  ;;  %12230 = vtanh.f32 %v6201_v62  ;;  %v18564_v62 = vld [vmem:[#allocation13_spill] sm:$0xff] }
0x1b15   :  { %v12213_v37 = vpop.eup %12212  ;;  %12232 = vrcp.f32 %v6289_v47  ;;  %v6291_v28 = vadd.f32 1.0, %v12211_v52  ;;  %v9404_v10 = vpop.f32.mrb[128].mxu0 }
0x1b16   :  { %v12215_v36 = vpop.eup %12214  ;;  %12234 = vrcp.f32 %v6292_v60  ;;  %v6206_v24 = vadd.f32 %v9404_v10, %v18562_v13  ;;  %v5822_v7 = vpop.f32.mrb[129].mxu0  ;;  %v6365_v45 = vmul.f32 %v12213_v37, %v18563_v58 }
0x1b17   :  { %v12217_v16 = vpop.eup %12216  ;;  %12236 = vrcp.f32 %v6291_v28  ;;  %v6205_v18 = vadd.f32 %v5822_v7, %v18564_v62  ;;  %v6368_v56 = vmul.f32 %v12215_v36, %v18565_v30  ;;  %v18567_v28 = vld [vmem:[#allocation18_spill] sm:$0xff]  ;;  %v18568_v30 = vld [vmem:[#allocation7_spill] sm:$0xff] }
0x1b18   :  { %v12219_v41 = vpop.eup %12218  ;;  %v6374_v47 = vmul.f32 %v12217_v16, %v17546_v12  ;;  %12238 = vtanh.f32 %v6204_v43  ;;  %v8503_v32 = vmul.f32 -1.442695, %v6206_v24  ;;  %v18570_v24 = vld [vmem:[#allocation17_spill] sm:$0xff] }
0x1b19   :  { %v12221_v52 = vpop.eup %12220  ;;  %v6373_v22 = vmul.f32 %v12219_v41, %v17548_v25  ;;  %12240 = vtanh.f32 %v6203_v29  ;;  %v8502_v60 = vmul.f32 -1.442695, %v6205_v18  ;;  %v9407_v10 = vpop.f32.mrb[130].mxu0 }
0x1b1a   :  { %v12223_v46 = vpop.eup %12222  ;;  %v17577_v13 = vadd.f32 %v6374_v47, %v6366_v11  ;;  %v6376_v37 = vmul.f32 %v12221_v52, %v17550_v55  ;;  %12242 = vpow2.f32 %v8503_v32  ;;  %v6208_v7 = vadd.f32 %v9407_v10, %v18567_v28  ;;  %v5832_v58 = vpop.f32.mrb[131].mxu0  ;;  %v18572_v10 = vld [vmem:[#allocation10_spill] sm:$0xff] }
0x1b1b   :  { %v12225_v36 = vpop.eup %12224  ;;  %v6367_v12 = vmul.f32 %v12223_v46, %v18568_v30  ;;  %v17582_v43 = vadd.f32 %v6373_v22, %v6365_v45  ;;  %12244 = vpow2.f32 %v8502_v60  ;;  %v6207_v25 = vadd.f32 %v5832_v58, %v18570_v24  ;;  %v18574_v45 = vld [vmem:[#allocation22_spill] sm:$0xff]  ;;  %v18578_v24 = vld [vmem:[#allocation11_spill] sm:$0xff] }
0x1b1c   :  { %18566 = vst [vmem:[#allocation15_spill] sm:$0xff] %v17577_v13  ;;  %v12227_v29 = vpop.eup %12226  ;;  %v17585_v16 = vadd.f32 %v6376_v37, %v6368_v56  ;;  %v6375_v11 = vmul.f32 %v12225_v36, %v17553_v27  ;;  %v8505_v18 = vmul.f32 -1.442695, %v6208_v7  ;;  %v18575_v37 = vld [vmem:[#allocation21_spill] sm:$0xff]  ;;  %v18576_v36 = vld [vmem:[#allocation12_spill] sm:$0xff] }
0x1b1d   :  { %18569 = vst [vmem:[#allocation6_spill] sm:$0xff] %v17582_v43  ;;  %v12229_v41 = vpop.eup %12228  ;;  %v6378_v55 = vmul.f32 %v12227_v29, %v17556_v31  ;;  %v8504_v47 = vmul.f32 -1.442695, %v6207_v25  ;;  %v9410_v32 = vpop.f32.mrb[132].mxu0 }
0x1b1e   :  { %18571 = vst [vmem:[#allocation5_spill] sm:$0xff] %v17585_v16  ;;  %v12231_v52 = vpop.eup %12230  ;;  %v6370_v28 = vmul.f32 %v12229_v41, %v18572_v10  ;;  %v17590_v46 = vadd.f32 %v6375_v11, %v6367_v12  ;;  %v6210_v22 = vadd.f32 %v9410_v32, %v18574_v45  ;;  %v5842_v60 = vpop.f32.mrb[133].mxu0  ;;  %12246 = vpow2.f32 %v8505_v18  ;;  %v18579_v10 = vld [vmem:[#allocation16_spill] sm:$0xff] }
0x1b1f   :  { %v12233_v58 = vpop.eup %12232  ;;  %v6377_v56 = vmul.f32 %v12231_v52, %v17559_v61  ;;  %v6209_v27 = vadd.f32 %v5842_v60, %v18575_v37  ;;  %12248 = vpow2.f32 %v8504_v47  ;;  %v18581_v61 = vld [vmem:[#allocation9_spill] sm:$0xff] }
0x1b20   :  { %18573 = vst [vmem:[#allocation8_spill] sm:$0xff] %v17590_v46  ;;  %v12235_v7 = vpop.eup %12234  ;;  %v6369_v30 = vmul.f32 %v12233_v58, %v18576_v36  ;;  %v17596_v31 = vadd.f32 %v6378_v55, %v6370_v28  ;;  %v8507_v25 = vmul.f32 -1.442695, %v6210_v22  ;;  %v18582_v28 = vld [vmem:[#allocation25_spill] sm:$0xff] }
0x1b21   :  { %v12237_v29 = vpop.eup %12236  ;;  %v6372_v41 = vmul.f32 %v12235_v7, %v18578_v24  ;;  %v8506_v12 = vmul.f32 -1.442695, %v6209_v27  ;;  %v9413_v11 = vpop.f32.mrb[134].mxu0 }
0x1b22   :  { %18577 = vst [vmem:[#allocation7_spill] sm:$0xff] %v17596_v31  ;;  %v12239_v32 = vpop.eup %12238  ;;  %v6371_v45 = vmul.f32 %v12237_v29, %v18579_v10  ;;  %v17600_v62 = vadd.f32 %v6377_v56, %v6369_v30  ;;  %v6212_v18 = vadd.f32 %v9413_v11, %v18581_v61  ;;  %v5852_v52 = vpop.f32.mrb[135].mxu0  ;;  %12250 = vpow2.f32 %v8507_v25 }
0x1b23   :  { %v12241_v60 = vpop.eup %12240  ;;  %v6380_v58 = vmul.f32 %v12239_v32, %v17562_v8  ;;  %v6211_v55 = vadd.f32 %v5852_v52, %v18582_v28  ;;  %12252 = vtanh.f32 %v17577_v13 }
0x1b24   :  { %18580 = vst [vmem:[#allocation10_spill] sm:$0xff] %v17600_v62  ;;  %v12243_v22 = vpop.eup %12242  ;;  %v6379_v24 = vmul.f32 %v12241_v60, %v17565_v4  ;;  %v8509_v47 = vmul.f32 -1.442695, %v6212_v18  ;;  %12254 = vpow2.f32 %v8506_v12 }
0x1b25   :  { %v12245_v27 = vpop.eup %12244  ;;  %v17607_v7 = vadd.f32 %v6380_v58, %v6372_v41  ;;  %v6342_v56 = vadd.f32 1.0, %v12243_v22  ;;  %v8508_v8 = vmul.f32 -1.442695, %v6211_v55 }
0x1b26   :  { %v17609_v36 = vadd.f32 %v6379_v24, %v6371_v45  ;;  %v6341_v30 = vadd.f32 1.0, %v12245_v27  ;;  %12256 = vpow2.f32 %v8509_v47 }
0x1b27   :  { %18583 = vst [vmem:[#allocation12_spill] sm:$0xff] %v17607_v7  ;;  %12258 = vtanh.f32 %v17582_v43 }
0x1b28   :  { %18584 = vst [vmem:[#allocation11_spill] sm:$0xff] %v17609_v36  ;;  %12260 = vtanh.f32 %v17585_v16  ;;  %v12247_v25 = vpop.eup %12246 }
0x1b29   :  { %12262 = vrcp.f32 %v6342_v56  ;;  %v6344_v29 = vadd.f32 1.0, %v12247_v25  ;;  %v12249_v4 = vpop.eup %12248 }
0x1b2a   :  { %12264 = vrcp.f32 %v6341_v30  ;;  %v6343_v41 = vadd.f32 1.0, %v12249_v4 }
0x1b2b   :  { %12266 = vpow2.f32 %v8508_v8 }
0x1b2c   :  { %12268 = vrcp.f32 %v6344_v29  ;;  %v12251_v11 = vpop.eup %12250 }
0x1b2d   :  { %12270 = vtanh.f32 %v17590_v46  ;;  %v12253_v45 = vpop.eup %12252  ;;  %v6346_v12 = vadd.f32 1.0, %v12251_v11 }
0x1b2e   :  { %12272 = vrcp.f32 %v6343_v41  ;;  %v12255_v32 = vpop.eup %12254 }
0x1b2f   :  { %12274 = vtanh.f32 %v17596_v31  ;;  %v6345_v18 = vadd.f32 1.0, %v12255_v32 }
0x1b30   :  { %v12257_v10 = vpop.eup %12256  ;;  %12276 = vrcp.f32 %v6346_v12 }
0x1b31   :  { %v12259_v52 = vpop.eup %12258  ;;  %12278 = vtanh.f32 %v17600_v62  ;;  %v6348_v60 = vadd.f32 1.0, %v12257_v10 }
0x1b32   :  { %v12261_v58 = vpop.eup %12260  ;;  %12280 = vrcp.f32 %v6345_v18 }
0x1b33   :  { %v12263_v55 = vpop.eup %12262  ;;  %12282 = vrcp.f32 %v6348_v60 }
0x1b34   :  { %v12265_v22 = vpop.eup %12264  ;;  %v6398_v24 = vmul.f32 %v12263_v55, %v12253_v45  ;;  %12284 = vtanh.f32 %v17607_v7 }
0x1b35   :  { %v12267_v47 = vpop.eup %12266  ;;  %v6397_v27 = vmul.f32 %v12265_v22, %v12259_v52  ;;  %12286 = vtanh.f32 %v17609_v36 }
0x1b36   :  { %v12269_v56 = vpop.eup %12268  ;;  %v6347_v30 = vadd.f32 1.0, %v12267_v47 }
0x1b37   :  { %v12271_v8 = vpop.eup %12270  ;;  %v10382_v25 = vpack.c.bf16 %v6398_v24, %v6397_v27  ;;  %v6400_v29 = vmul.f32 %v12269_v56, %v12261_v58 }
0x1b38   :  { %v12273_v4 = vpop.eup %12272  ;;  %12288 = vrcp.f32 %v6347_v30  ;;  %v12762_v30 = vld [vmem:[%s18345_s7 + $0x8] sm:$0xff] }
0x1b39   :  { %v12275_v41 = vpop.eup %12274  ;;  %10383 = vmatprep.subr.bf16.mxu1 %v10382_v25  ;;  %v6399_v11 = vmul.f32 %v12273_v4, %v12271_v8  ;;  %v12763_v8 = vld [vmem:[%s18345_s7 + $0x10] sm:$0xff]  ;;  %v12766_v4 = vld [vmem:[%s18345_s7 + $0x28] sm:$0xff] }
0x1b3a   :  { %v12277_v12 = vpop.eup %12276  ;;  %10385 = vmatpush3.bf16.msra.mxu1 %v10382_v25  ;;  %v12764_v25 = vld [vmem:[%s18345_s7 + $0x18] sm:$0xff] }
0x1b3b   :  { %v12279_v32 = vpop.eup %12278  ;;  %v10386_v45 = vpack.c.bf16 %v6400_v29, %v6399_v11  ;;  %v6402_v10 = vmul.f32 %v12277_v12, %v12275_v41  ;;  %v12765_v29 = vld [vmem:[%s18345_s7 + $0x20] sm:$0xff]  ;;  %v12767_v41 = vld [vmem:[%s18345_s7 + $0x30] sm:$0xff]  ;;  %v12768_v11 = vld [vmem:[%s18345_s7 + $0x38] sm:$0xff] }
0x1b3c   :  { %v12281_v18 = vpop.eup %12280  ;;  %v12769_v12 = vld [vmem:[%s18345_s7 + $0x40] sm:$0xff] }
0x1b3d   :  { %10387 = vmatprep.subr.bf16.mxu1 %v10386_v45  ;;  %v6401_v52 = vmul.f32 %v12281_v18, %v12279_v32  ;;  %v12283_v60 = vpop.eup %12282  ;;  %v12770_v32 = vld [vmem:[%s18345_s7 + $0x48] sm:$0xff]  ;;  %v12773_v18 = vld [vmem:[%s18345_s7 + $0x60] sm:$0xff] }
0x1b3e   :  { %10389 = vmatpush3.bf16.msra.mxu1 %v10386_v45  ;;  %v12285_v22 = vpop.eup %12284  ;;  %v12771_v45 = vld [vmem:[%s18345_s7 + $0x50] sm:$0xff] }
0x1b3f   :  { %v10390_v55 = vpack.c.bf16 %v6402_v10, %v6401_v52  ;;  %v12287_v47 = vpop.eup %12286  ;;  %v6404_v58 = vmul.f32 %v12285_v22, %v12283_v60  ;;  %v12772_v10 = vld [vmem:[%s18345_s7 + $0x58] sm:$0xff]  ;;  %v12774_v52 = vld [vmem:[%s18345_s7 + $0x68] sm:$0xff]  ;;  %v12775_v60 = vld [vmem:[%s18345_s7 + $0x70] sm:$0xff] }
0x1b40   :  { %v12777_v22 = vld [vmem:[%s18345_s7 + $0x80] sm:$0xff] }
0x1b41   :  { %10391 = vmatprep.subr.bf16.mxu1 %v10390_v55 }
0x1b42   :  { %v12289_v24 = vpop.eup %12288  ;;  %10393 = vmatpush3.bf16.msra.mxu1 %v10390_v55  ;;  %v12776_v55 = vld [vmem:[%s18345_s7 + $0x78] sm:$0xff] }
0x1b43   :  { %v6403_v27 = vmul.f32 %v12289_v24, %v12287_v47  ;;  %v12778_v47 = vld [vmem:[%s18345_s7 + $0x88] sm:$0xff]  ;;  %v12780_v24 = vld [vmem:[%s18345_s7 + $0x98] sm:$0xff] }
0x1b45   :  { %v10394_v56 = vpack.c.bf16 %v6404_v58, %v6403_v27  ;;  %v12779_v58 = vld [vmem:[%s18345_s7 + $0x90] sm:$0xff]  ;;  %v12781_v27 = vld [vmem:[%s18345_s7 + $0xa0] sm:$0xff] }
0x1b47   :  { %10395 = vmatprep.subr.bf16.mxu1 %v10394_v56 }
0x1b48   :  { %10397 = vmatpush3.bf16.msra.mxu1 %v10394_v56  ;;  %v12782_v56 = vld [vmem:[%s18345_s7 + $0xa8] sm:$0xff] }
0x1b4b   :  { %9447 = vmatmul.mubr.f32.vlgmr.msra.gmra.mrb[144].mxu1 %v12762_v30  ;;  %v12783_v30 = vld [vmem:[%s18345_s7 + $0xb0] sm:$0xff] }
0x1b4c   :  { %9449 = vmatprep.mubr.f32.mxu1 %v12763_v8  ;;  %v12784_v8 = vld [vmem:[%s18345_s7 + $0xb8] sm:$0xff] }
0x1b4f   :  { %9450 = vmatmul.mubr.f32.gmra.mrb[146].mxu1 %v12764_v25  ;;  %v12785_v25 = vld [vmem:[%s18345_s7 + $0xc0] sm:$0xff] }
0x1b50   :  { %9452 = vmatprep.mubr.f32.mxu1 %v12765_v29  ;;  %v12786_v29 = vld [vmem:[%s18345_s7 + $0xc8] sm:$0xff] }
0x1b53   :  { %9453 = vmatmul.mubr.f32.gmra.mrb[148].mxu1 %v12766_v4  ;;  %v12787_v4 = vld [vmem:[%s18345_s7 + $0xd0] sm:$0xff] }
0x1b54   :  { %9455 = vmatprep.mubr.f32.mxu1 %v12767_v41  ;;  %v12788_v41 = vld [vmem:[%s18345_s7 + $0xd8] sm:$0xff] }
0x1b57   :  { %9456 = vmatmul.mubr.f32.gmra.mrb[150].mxu1 %v12768_v11  ;;  %v12789_v11 = vld [vmem:[%s18345_s7 + $0xe0] sm:$0xff] }
0x1b58   :  { %9458 = vmatprep.mubr.f32.mxu1 %v12769_v12  ;;  %v12790_v12 = vld [vmem:[%s18345_s7 + $0xe8] sm:$0xff] }
0x1b5b   :  { %9459 = vmatmul.mubr.f32.gmra.mrb[152].mxu1 %v12770_v32  ;;  %v12791_v32 = vld [vmem:[%s18345_s7 + $0xf0] sm:$0xff] }
0x1b5c   :  { %9461 = vmatprep.mubr.f32.mxu1 %v12771_v45  ;;  %v12792_v45 = vld [vmem:[%s18345_s7 + $0xf8] sm:$0xff] }
0x1b5f   :  { %9462 = vmatmul.mubr.f32.gmra.mrb[154].mxu1 %v12772_v10  ;;  %v12793_v10 = vld [vmem:[%s18345_s7 + $0x100] sm:$0xff] }
0x1b60   :  { %9464 = vmatprep.mubr.f32.mxu1 %v12773_v18  ;;  %v12794_v18 = vld [vmem:[%s18345_s7 + $0x108] sm:$0xff] }
0x1b63   :  { %9465 = vmatmul.mubr.f32.gmra.mrb[156].mxu1 %v12774_v52  ;;  %v12795_v52 = vld [vmem:[%s18345_s7 + $0x110] sm:$0xff] }
0x1b64   :  { %9467 = vmatprep.mubr.f32.mxu1 %v12775_v60  ;;  %v12796_v60 = vld [vmem:[%s18345_s7 + $0x118] sm:$0xff] }
0x1b67   :  { %9468 = vmatmul.mubr.f32.gmra.mrb[158].mxu1 %v12776_v55  ;;  %v12797_v55 = vld [vmem:[%s18345_s7 + $0x120] sm:$0xff] }
0x1b68   :  { %9470 = vmatprep.mubr.f32.mxu1 %v12777_v22  ;;  %v12798_v22 = vld [vmem:[%s18345_s7 + $0x128] sm:$0xff] }
0x1b6b   :  { %9471 = vmatmul.mubr.f32.gmra.mrb[160].mxu1 %v12778_v47  ;;  %v12799_v47 = vld [vmem:[%s18345_s7 + $0x130] sm:$0xff] }
0x1b6c   :  { %9473 = vmatprep.mubr.f32.mxu1 %v12779_v58  ;;  %v12800_v58 = vld [vmem:[%s18345_s7 + $0x138] sm:$0xff] }
0x1b6f   :  { %9474 = vmatmul.mubr.f32.gmra.mrb[162].mxu1 %v12780_v24  ;;  %v12801_v24 = vld [vmem:[%s18345_s7 + $0x140] sm:$0xff] }
0x1b70   :  { %9476 = vmatprep.mubr.f32.mxu1 %v12781_v27  ;;  %v12802_v27 = vld [vmem:[%s18345_s7 + $0x148] sm:$0xff] }
0x1b73   :  { %9477 = vmatmul.mubr.f32.gmra.mrb[164].mxu1 %v12782_v56  ;;  %v12803_v56 = vld [vmem:[%s18345_s7 + $0x150] sm:$0xff] }
0x1b74   :  { %9479 = vmatprep.mubr.f32.mxu1 %v12783_v30  ;;  %v12804_v30 = vld [vmem:[%s18345_s7 + $0x158] sm:$0xff] }
0x1b77   :  { %9480 = vmatmul.mubr.f32.gmra.mrb[166].mxu1 %v12784_v8  ;;  %v12805_v8 = vld [vmem:[%s18345_s7 + $0x160] sm:$0xff] }
0x1b78   :  { %9482 = vmatprep.mubr.f32.mxu1 %v12785_v25  ;;  %v12806_v25 = vld [vmem:[%s18345_s7 + $0x168] sm:$0xff] }
0x1b7b   :  { %9483 = vmatmul.mubr.f32.gmra.mrb[168].mxu1 %v12786_v29  ;;  %v12807_v29 = vld [vmem:[%s18345_s7 + $0x170] sm:$0xff] }
0x1b7c   :  { %9485 = vmatprep.mubr.f32.mxu1 %v12787_v4  ;;  %v12808_v4 = vld [vmem:[%s18345_s7 + $0x178] sm:$0xff] }
0x1b7f   :  { %9486 = vmatmul.mubr.f32.gmra.mrb[170].mxu1 %v12788_v41  ;;  %v12809_v41 = vld [vmem:[%s18345_s7 + $0x180] sm:$0xff] }
0x1b80   :  { %9488 = vmatprep.mubr.f32.mxu1 %v12789_v11  ;;  %v12810_v11 = vld [vmem:[%s18345_s7 + $0x188] sm:$0xff] }
0x1b83   :  { %9489 = vmatmul.mubr.f32.gmra.mrb[172].mxu1 %v12790_v12  ;;  %v12811_v12 = vld [vmem:[%s18345_s7 + $0x190] sm:$0xff] }
0x1b84   :  { %9491 = vmatprep.mubr.f32.mxu1 %v12791_v32  ;;  %v12812_v32 = vld [vmem:[%s18345_s7 + $0x198] sm:$0xff] }
0x1b87   :  { %9492 = vmatmul.mubr.f32.gmra.mrb[174].mxu1 %v12792_v45  ;;  %v12813_v45 = vld [vmem:[%s18345_s7 + $0x1a0] sm:$0xff] }
0x1b88   :  { %9494 = vmatprep.mubr.f32.mxu1 %v12793_v10  ;;  %v12814_v10 = vld [vmem:[%s18345_s7 + $0x1a8] sm:$0xff] }
0x1b8b   :  { %9495 = vmatmul.mubr.f32.gmra.mrb[176].mxu1 %v12794_v18  ;;  %v12815_v18 = vld [vmem:[%s18345_s7 + $0x1b0] sm:$0xff] }
0x1b8c   :  { %9497 = vmatprep.mubr.f32.mxu1 %v12795_v52  ;;  %v12816_v52 = vld [vmem:[%s18345_s7 + $0x1b8] sm:$0xff] }
0x1b8f   :  { %9498 = vmatmul.mubr.f32.gmra.mrb[178].mxu1 %v12796_v60  ;;  %v12817_v60 = vld [vmem:[%s18345_s7 + $0x1c0] sm:$0xff] }
0x1b90   :  { %9500 = vmatprep.mubr.f32.mxu1 %v12797_v55  ;;  %v12818_v55 = vld [vmem:[%s18345_s7 + $0x1c8] sm:$0xff] }
0x1b93   :  { %9501 = vmatmul.mubr.f32.gmra.mrb[180].mxu1 %v12798_v22  ;;  %v12819_v22 = vld [vmem:[%s18345_s7 + $0x1d0] sm:$0xff] }
0x1b94   :  { %9503 = vmatprep.mubr.f32.mxu1 %v12799_v47  ;;  %v12820_v47 = vld [vmem:[%s18345_s7 + $0x1d8] sm:$0xff] }
0x1b97   :  { %9504 = vmatmul.mubr.f32.gmra.mrb[182].mxu1 %v12800_v58  ;;  %v12821_v58 = vld [vmem:[%s18345_s7 + $0x1e0] sm:$0xff] }
0x1b98   :  { %9506 = vmatprep.mubr.f32.mxu1 %v12801_v24  ;;  %v12822_v24 = vld [vmem:[%s18345_s7 + $0x1e8] sm:$0xff] }
0x1b9b   :  { %9507 = vmatmul.mubr.f32.gmra.mrb[184].mxu1 %v12802_v27  ;;  %v12823_v27 = vld [vmem:[%s18345_s7 + $0x1f0] sm:$0xff] }
0x1b9c   :  { %9509 = vmatprep.mubr.f32.mxu1 %v12803_v56  ;;  %v12824_v56 = vld [vmem:[%s18345_s7 + $0x1f8] sm:$0xff] }
0x1b9f   :  { %9510 = vmatmul.mubr.f32.gmra.mrb[186].mxu1 %v12804_v30  ;;  %v6793_v30 = vpop.permute.xlu1 %6792 }
0x1ba0   :  { %9512 = vmatprep.mubr.f32.mxu1 %v12805_v8  ;;  %v6791_v8 = vpop.permute.xlu0 %6790 }
0x1ba3   :  { %9513 = vmatmul.mubr.f32.gmra.mrb[188].mxu1 %v12806_v25  ;;  %v6809_v25 = vpop.permute.xlu1 %6808 }
0x1ba4   :  { %9515 = vmatprep.mubr.f32.mxu1 %v12807_v29  ;;  %v6807_v29 = vpop.permute.xlu0 %6806 }
0x1ba7   :  { %9516 = vmatmul.mubr.f32.gmra.mrb[190].mxu1 %v12808_v4  ;;  %v6797_v4 = vpop.permute.xlu1 %6796 }
0x1ba8   :  { %9518 = vmatprep.mubr.f32.mxu1 %v12809_v41  ;;  %v6795_v41 = vpop.permute.xlu0 %6794 }
0x1bab   :  { %9519 = vmatmul.mubr.f32.gmra.mrb[192].mxu1 %v12810_v11  ;;  %v17807_v11 = vpop.permute.xlu1 %6812 }
0x1bac   :  { %9521 = vmatprep.mubr.f32.mxu1 %v12811_v12  ;;  %v17809_v12 = vpop.permute.xlu0 %6810 }
0x1baf   :  { %9522 = vmatmul.mubr.f32.gmra.mrb[194].mxu1 %v12812_v32  ;;  %v6801_v32 = vpop.permute.xlu1 %6800 }
0x1bb0   :  { %9524 = vmatprep.mubr.f32.mxu1 %v12813_v45  ;;  %v6799_v45 = vpop.permute.xlu0 %6798 }
0x1bb3   :  { %9525 = vmatmul.mubr.f32.gmra.mrb[196].mxu1 %v12814_v10  ;;  %v17811_v10 = vpop.permute.xlu1 %6816 }
0x1bb4   :  { %9527 = vmatprep.mubr.f32.mxu1 %v12815_v18  ;;  %v17813_v18 = vpop.permute.xlu0 %6814 }
0x1bb7   :  { %9528 = vmatmul.mubr.f32.gmra.mrb[198].mxu1 %v12816_v52  ;;  %v6805_v52 = vpop.permute.xlu1 %6804 }
0x1bb8   :  { %9530 = vmatprep.mubr.f32.mxu1 %v12817_v60  ;;  %v6803_v60 = vpop.permute.xlu0 %6802 }
0x1bbb   :  { %9531 = vmatmul.mubr.f32.gmra.mrb[200].mxu1 %v12818_v55 }
0x1bbc   :  { %9533 = vmatprep.mubr.f32.mxu1 %v12819_v22 }
0x1bbf   :  { %9534 = vmatmul.mubr.f32.gmra.mrb[202].mxu1 %v12820_v47 }
0x1bc0   :  { %9536 = vmatprep.mubr.f32.mxu1 %v12821_v58 }
0x1bc3   :  { %9537 = vmatmul.mubr.f32.gmra.mrb[204].mxu1 %v12822_v24  ;;  %v17815_v24 = vpop.permute.xlu1 %6820 }
0x1bc4   :  { %9539 = vmatprep.mubr.f32.mxu1 %v12823_v27 }
0x1bc7   :  { %9540 = vmatmul.mubr.f32.gmra.mrb[206].mxu1 %v12824_v56  ;;  %v17817_v56 = vpop.permute.xlu0 %6818  ;;  %v17819_v16 = vpop.permute.xlu1 %6824 }
0x1c1e   :  { %v9448_v55 = vpop.f32.mrb[144].mxu1 }
0x1c1f   :  { %v6887_v22 = vadd.f32 %v9448_v55, %v6793_v30  ;;  %v6471_v47 = vpop.f32.mrb[145].mxu1  ;;  %v17821_v55 = vpop.permute.xlu0 %6822 }
0x1c20   :  { %v6886_v58 = vadd.f32 %v6791_v8, %v6471_v47 }
0x1c21   :  { %v8511_v27 = vmul.f32 -1.442695, %v6887_v22 }
0x1c22   :  { %v8510_v28 = vmul.f32 -1.442695, %v6886_v58  ;;  %v9451_v61 = vpop.f32.mrb[146].mxu1 }
0x1c23   :  { %12290 = vpow2.f32 %v8511_v27  ;;  %v6889_v36 = vadd.f32 %v9451_v61, %v6797_v4  ;;  %v6481_v7 = vpop.f32.mrb[147].mxu1 }
0x1c24   :  { %12292 = vpow2.f32 %v8510_v28  ;;  %v6888_v62 = vadd.f32 %v6795_v41, %v6481_v7 }
0x1c25   :  { %v8513_v37 = vmul.f32 -1.442695, %v6889_v36 }
0x1c26   :  { %v8512_v31 = vmul.f32 -1.442695, %v6888_v62  ;;  %v9454_v46 = vpop.f32.mrb[148].mxu1  ;;  %v17823_v62 = vpop.permute.xlu1 %6840 }
0x1c27   :  { %12294 = vpow2.f32 %v8513_v37  ;;  %v6891_v30 = vadd.f32 %v9454_v46, %v6801_v32  ;;  %v6491_v8 = vpop.f32.mrb[149].mxu1  ;;  %v17825_v37 = vpop.permute.xlu0 %6838 }
0x1c28   :  { %12296 = vpow2.f32 %v8512_v31  ;;  %v6890_v22 = vadd.f32 %v6799_v45, %v6491_v8 }
0x1c29   :  { %v8515_v47 = vmul.f32 -1.442695, %v6891_v30 }
0x1c2a   :  { %v8514_v58 = vmul.f32 -1.442695, %v6890_v22  ;;  %v9457_v43 = vpop.f32.mrb[150].mxu1 }
0x1c2b   :  { %12298 = vpow2.f32 %v8515_v47  ;;  %v6893_v61 = vadd.f32 %v9457_v43, %v6805_v52  ;;  %v6501_v4 = vpop.f32.mrb[151].mxu1 }
0x1c2c   :  { %12300 = vpow2.f32 %v8514_v58  ;;  %v6892_v28 = vadd.f32 %v6803_v60, %v6501_v4 }
0x1c2d   :  { %v12291_v7 = vpop.eup %12290  ;;  %v8517_v36 = vmul.f32 -1.442695, %v6893_v61  ;;  %v17827_v61 = vpop.permute.xlu1 %6828 }
0x1c2e   :  { %v12293_v41 = vpop.eup %12292  ;;  %v6943_v46 = vadd.f32 1.0, %v12291_v7  ;;  %v8516_v32 = vmul.f32 -1.442695, %v6892_v28  ;;  %v9460_v27 = vpop.f32.mrb[152].mxu1 }
0x1c2f   :  { %12302 = vpow2.f32 %v8517_v36  ;;  %v6895_v31 = vadd.f32 %v9460_v27, %v6809_v25  ;;  %v6511_v45 = vpop.f32.mrb[153].mxu1  ;;  %v6942_v30 = vadd.f32 1.0, %v12293_v41  ;;  %v17830_v7 = vpop.permute.xlu0 %6842 }
0x1c30   :  { %v6894_v8 = vadd.f32 %v6807_v29, %v6511_v45  ;;  %12304 = vrcp.f32 %v6943_v46 }
0x1c31   :  { %v12295_v22 = vpop.eup %12294  ;;  %v8519_v43 = vmul.f32 -1.442695, %v6895_v31  ;;  %12306 = vpow2.f32 %v8516_v32 }
0x1c32   :  { %v12297_v52 = vpop.eup %12296  ;;  %v6945_v60 = vadd.f32 1.0, %v12295_v22  ;;  %v8518_v47 = vmul.f32 -1.442695, %v6894_v8  ;;  %v9463_v58 = vpop.f32.mrb[154].mxu1 }
0x1c33   :  { %12308 = vpow2.f32 %v8519_v43  ;;  %v6897_v4 = vadd.f32 %v9463_v58, %v17807_v11  ;;  %v6521_v28 = vpop.f32.mrb[155].mxu1  ;;  %v6944_v25 = vadd.f32 1.0, %v12297_v52  ;;  %v17835_v43 = vpop.permute.xlu1 %6844 }
0x1c34   :  { %12310 = vrcp.f32 %v6942_v30  ;;  %v6896_v29 = vadd.f32 %v17809_v12, %v6521_v28  ;;  %v6831_v52 = vpop.permute.xlu0 %6830 }
0x1c35   :  { %v12299_v36 = vpop.eup %12298  ;;  %12312 = vrcp.f32 %v6945_v60  ;;  %v8521_v41 = vmul.f32 -1.442695, %v6897_v4 }
0x1c36   :  { %v12301_v46 = vpop.eup %12300  ;;  %v6947_v27 = vadd.f32 1.0, %v12299_v36  ;;  %12314 = vpow2.f32 %v8518_v47  ;;  %v8520_v32 = vmul.f32 -1.442695, %v6896_v29  ;;  %v9466_v31 = vpop.f32.mrb[156].mxu1 }
0x1c37   :  { %12316 = vpow2.f32 %v8521_v41  ;;  %v6899_v45 = vadd.f32 %v9466_v31, %v17811_v10  ;;  %v6531_v8 = vpop.f32.mrb[157].mxu1  ;;  %v6946_v11 = vadd.f32 1.0, %v12301_v46 }
0x1c38   :  { %12318 = vrcp.f32 %v6944_v25  ;;  %v6898_v22 = vadd.f32 %v17813_v18, %v6531_v8  ;;  %v6833_v8 = vpop.permute.xlu1 %6832 }
0x1c39   :  { %v12303_v30 = vpop.eup %12302  ;;  %12320 = vrcp.f32 %v6947_v27  ;;  %v8523_v12 = vmul.f32 -1.442695, %v6899_v45 }
0x1c3a   :  { %v6949_v60 = vadd.f32 1.0, %v12303_v30  ;;  %12322 = vpow2.f32 %v8520_v32  ;;  %v8522_v58 = vmul.f32 -1.442695, %v6898_v22  ;;  %v9469_v47 = vpop.f32.mrb[158].mxu1  ;;  %v17837_v4 = vpop.eup %12304 }
0x1c3b   :  { %12324 = vpow2.f32 %v8523_v12  ;;  %v6901_v10 = vadd.f32 %v9469_v47, %v17815_v24  ;;  %v6541_v28 = vpop.f32.mrb[159].mxu1  ;;  %v12307_v25 = vpop.eup %12306 }
0x1c3c   :  { %12326 = vrcp.f32 %v6946_v11  ;;  %v6900_v18 = vadd.f32 %v17817_v56, %v6541_v28  ;;  %v6948_v36 = vadd.f32 1.0, %v12307_v25  ;;  %v17845_v30 = vpop.permute.xlu0 %6846 }
0x1c3d   :  { %v12309_v29 = vpop.eup %12308  ;;  %12328 = vpow2.f32 %v8522_v58  ;;  %v8525_v41 = vmul.f32 -1.442695, %v6901_v10 }
0x1c3e   :  { %v17841_v46 = vpop.eup %12310  ;;  %12330 = vrcp.f32 %v6949_v60  ;;  %v6991_v27 = vadd.f32 1.0, %v12309_v29  ;;  %v8524_v32 = vmul.f32 -1.442695, %v6900_v18  ;;  %v9472_v31 = vpop.f32.mrb[160].mxu1 }
0x1c3f   :  { %v17843_v45 = vpop.eup %12312  ;;  %12332 = vrcp.f32 %v6948_v36  ;;  %v6551_v24 = vpop.f32.mrb[161].mxu1  ;;  %v6903_v12 = vadd.f32 %v9472_v31, %v17819_v16 }
0x1c40   :  { %v12315_v22 = vpop.eup %12314  ;;  %12334 = vrcp.f32 %v6991_v27  ;;  %v6902_v47 = vadd.f32 %v17821_v55, %v6551_v24  ;;  %v17853_v36 = vpop.permute.xlu1 %6848 }
0x1c41   :  { %v12317_v56 = vpop.eup %12316  ;;  %v6990_v11 = vadd.f32 1.0, %v12315_v22  ;;  %12336 = vpow2.f32 %v8525_v41  ;;  %v6827_v31 = vpop.permute.xlu0 %6826 }
0x1c42   :  { %v17848_v58 = vpop.eup %12318  ;;  %v6993_v60 = vadd.f32 1.0, %v12317_v56  ;;  %12338 = vpow2.f32 %v8524_v32  ;;  %v9475_v10 = vpop.f32.mrb[162].mxu1 }
0x1c43   :  { %v17851_v28 = vpop.eup %12320  ;;  %12340 = vrcp.f32 %v6990_v11  ;;  %v6561_v25 = vpop.f32.mrb[163].mxu1  ;;  %v6905_v16 = vadd.f32 %v9475_v10, %v17827_v61 }
0x1c44   :  { %v12323_v18 = vpop.eup %12322  ;;  %12342 = vrcp.f32 %v6993_v60  ;;  %v6904_v22 = vadd.f32 %v6827_v31, %v6561_v25 }
0x1c45   :  { %v12325_v29 = vpop.eup %12324  ;;  %v6992_v27 = vadd.f32 1.0, %v12323_v18  ;;  %12344 = vtanh.f32 %v6903_v12 }
0x1c46   :  { %v17856_v41 = vpop.eup %12326  ;;  %v6995_v32 = vadd.f32 1.0, %v12325_v29  ;;  %12346 = vtanh.f32 %v6902_v47  ;;  %v9478_v55 = vpop.f32.mrb[164].mxu1 }
0x1c47   :  { %v12329_v24 = vpop.eup %12328  ;;  %12348 = vrcp.f32 %v6992_v27  ;;  %v6571_v56 = vpop.f32.mrb[165].mxu1  ;;  %v6907_v13 = vadd.f32 %v9478_v55, %v6833_v8 }
0x1c48   :  { %v17858_v11 = vpop.eup %12330  ;;  %12350 = vrcp.f32 %v6995_v32  ;;  %v6994_v60 = vadd.f32 1.0, %v12329_v24  ;;  %v6906_v12 = vadd.f32 %v6831_v52, %v6571_v56  ;;  %v6837_v29 = vpop.permute.xlu1 %6836 }
0x1c49   :  { %v17860_v33 = vpop.eup %12332  ;;  %12352 = vtanh.f32 %v6905_v16  ;;  %v6835_v27 = vpop.permute.xlu0 %6834 }
0x1c4a   :  { %v12335_v61 = vpop.eup %12334  ;;  %12354 = vrcp.f32 %v6994_v60  ;;  %v9481_v10 = vpop.f32.mrb[166].mxu1 }
0x1c4b   :  { %v12337_v18 = vpop.eup %12336  ;;  %12356 = vtanh.f32 %v6904_v22  ;;  %v6581_v47 = vpop.f32.mrb[167].mxu1  ;;  %v6909_v31 = vadd.f32 %v9481_v10, %v6837_v29  ;;  %v7071_v16 = vmul.f32 %v12335_v61, %v17476_v53 }
0x1c4c   :  { %v12339_v14 = vpop.eup %12338  ;;  %v6997_v25 = vadd.f32 1.0, %v12337_v18  ;;  %12358 = vtanh.f32 %v6907_v13  ;;  %v6908_v8 = vadd.f32 %v6835_v27, %v6581_v47 }
0x1c4d   :  { %v12341_v39 = vpop.eup %12340  ;;  %v6996_v32 = vadd.f32 1.0, %v12339_v14  ;;  %12360 = vtanh.f32 %v6906_v12 }
0x1c4e   :  { %v12343_v55 = vpop.eup %12342  ;;  %12362 = vrcp.f32 %v6997_v25  ;;  %v9484_v52 = vpop.f32.mrb[168].mxu1  ;;  %v7070_v56 = vmul.f32 %v12341_v39, %v17478_v20 }
0x1c4f   :  { %v12345_v24 = vpop.eup %12344  ;;  %12364 = vrcp.f32 %v6996_v32  ;;  %v6911_v22 = vadd.f32 %v9484_v52, %v17823_v62  ;;  %v6591_v60 = vpop.f32.mrb[169].mxu1  ;;  %v7073_v18 = vmul.f32 %v12343_v55, %v17488_v26 }
0x1c50   :  { %v12347_v44 = vpop.eup %12346  ;;  %v7079_v13 = vmul.f32 %v12345_v24, %v17837_v4  ;;  %12366 = vtanh.f32 %v6909_v31  ;;  %v6910_v14 = vadd.f32 %v17825_v37, %v6591_v60 }
0x1c51   :  { %v12349_v12 = vpop.eup %12348  ;;  %v7078_v10 = vmul.f32 %v12347_v44, %v17841_v46  ;;  %12368 = vtanh.f32 %v6908_v8  ;;  %v8527_v53 = vmul.f32 -1.442695, %v6911_v22 }
0x1c52   :  { %v12351_v61 = vpop.eup %12350  ;;  %v7087_v29 = vadd.f32 %v7079_v13, %v7071_v16  ;;  %v8526_v20 = vmul.f32 -1.442695, %v6910_v14  ;;  %v9487_v39 = vpop.f32.mrb[170].mxu1  ;;  %v7072_v37 = vmul.f32 %v12349_v12, %v17494_v1 }
0x1c53   :  { %v12353_v47 = vpop.eup %12352  ;;  %v7086_v62 = vadd.f32 %v7078_v10, %v7070_v56  ;;  %12370 = vpow2.f32 %v8527_v53  ;;  %v6913_v27 = vadd.f32 %v9487_v39, %v17835_v43  ;;  %v6601_v4 = vpop.f32.mrb[171].mxu1  ;;  %v7075_v26 = vmul.f32 %v12351_v61, %v17499_v40 }
0x1c54   :  { %v12355_v25 = vpop.eup %12354  ;;  %12372 = vtanh.f32 %v7087_v29  ;;  %v7081_v44 = vmul.f32 %v12353_v47, %v17843_v45  ;;  %v6912_v46 = vadd.f32 %v17830_v7, %v6601_v4  ;;  %v6853_v53 = vpop.permute.xlu1 %6852 }
0x1c55   :  { %v12357_v31 = vpop.eup %12356  ;;  %v7074_v32 = vmul.f32 %v12355_v25, %v17503_v59  ;;  %12374 = vtanh.f32 %v7086_v62  ;;  %v8529_v8 = vmul.f32 -1.442695, %v6913_v27  ;;  %v6851_v39 = vpop.permute.xlu0 %6850 }
0x1c56   :  { %v12359_v55 = vpop.eup %12358  ;;  %v7089_v16 = vadd.f32 %v7081_v44, %v7073_v18  ;;  %v7080_v43 = vmul.f32 %v12357_v31, %v17848_v58  ;;  %12376 = vpow2.f32 %v8526_v20  ;;  %v8528_v52 = vmul.f32 -1.442695, %v6912_v46  ;;  %v9490_v24 = vpop.f32.mrb[172].mxu1 }
0x1c57   :  { %v12361_v1 = vpop.eup %12360  ;;  %v7083_v56 = vmul.f32 %v12359_v55, %v17851_v28  ;;  %12378 = vpow2.f32 %v8529_v8  ;;  %v6915_v7 = vadd.f32 %v9490_v24, %v17853_v36  ;;  %v6611_v45 = vpop.f32.mrb[173].mxu1 }
0x1c58   :  { %v12363_v22 = vpop.eup %12362  ;;  %12380 = vtanh.f32 %v7089_v16  ;;  %v7088_v40 = vadd.f32 %v7080_v43, %v7072_v37  ;;  %v7082_v59 = vmul.f32 %v12361_v1, %v17856_v41  ;;  %v6914_v60 = vadd.f32 %v17845_v30, %v6611_v45 }
0x1c59   :  { %v12365_v13 = vpop.eup %12364  ;;  %v7077_v58 = vmul.f32 %v12363_v22, %v17509_v9  ;;  %v7091_v14 = vadd.f32 %v7083_v56, %v7075_v26  ;;  %12382 = vpow2.f32 %v8528_v52  ;;  %v8531_v12 = vmul.f32 -1.442695, %v6915_v7 }
0x1c5a   :  { %v12367_v10 = vpop.eup %12366  ;;  %v7076_v28 = vmul.f32 %v12365_v13, %v17511_v54  ;;  %12384 = vtanh.f32 %v7088_v40  ;;  %v7090_v36 = vadd.f32 %v7082_v59, %v7074_v32  ;;  %v8530_v61 = vmul.f32 -1.442695, %v6914_v60  ;;  %v9493_v18 = vpop.f32.mrb[174].mxu1 }
0x1c5b   :  { %v12369_v29 = vpop.eup %12368  ;;  %12386 = vtanh.f32 %v7091_v14  ;;  %v7085_v41 = vmul.f32 %v12367_v10, %v17858_v11  ;;  %v6917_v20 = vadd.f32 %v9493_v18, %v6853_v53  ;;  %v6621_v30 = vpop.f32.mrb[175].mxu1 }
0x1c5c   :  { %12388 = vtanh.f32 %v7090_v36  ;;  %v7084_v9 = vmul.f32 %v12369_v29, %v17860_v33  ;;  %v6916_v27 = vadd.f32 %v6851_v39, %v6621_v30 }
0x1c5d   :  { %v12371_v47 = vpop.eup %12370  ;;  %v7093_v62 = vadd.f32 %v7085_v41, %v7077_v58  ;;  %12390 = vpow2.f32 %v8531_v12  ;;  %v8533_v37 = vmul.f32 -1.442695, %v6917_v20 }
0x1c5e   :  { %v12373_v4 = vpop.eup %12372  ;;  %v7092_v54 = vadd.f32 %v7084_v9, %v7076_v28  ;;  %v7047_v25 = vadd.f32 1.0, %v12371_v47  ;;  %12392 = vpow2.f32 %v8530_v61  ;;  %v9496_v44 = vpop.f32.mrb[176].mxu1  ;;  %v8532_v55 = vmul.f32 -1.442695, %v6916_v27 }
0x1c5f   :  { %v17884_v46 = vpop.eup %12374  ;;  %12394 = vtanh.f32 %v7093_v62  ;;  %v7111_v11 = vadd.f32 %v9496_v44, %v16511_v38  ;;  %v6631_v31 = vpop.f32.mrb[177].mxu1 }
0x1c60   :  { %v12377_v26 = vpop.eup %12376  ;;  %12396 = vtanh.f32 %v7092_v54  ;;  %v7110_v33 = vadd.f32 %v6631_v31, %v16506_v23 }
0x1c61   :  { %v12379_v32 = vpop.eup %12378  ;;  %12398 = vrcp.f32 %v7047_v25  ;;  %v7046_v8 = vadd.f32 1.0, %v12377_v26  ;;  %v8535_v1 = vmul.f32 -1.442695, %v7111_v11 }
0x1c62   :  { %v12381_v16 = vpop.eup %12380  ;;  %v7049_v43 = vadd.f32 1.0, %v12379_v32  ;;  %12400 = vpow2.f32 %v8533_v37  ;;  %v9499_v52 = vpop.f32.mrb[178].mxu1  ;;  %v8534_v40 = vmul.f32 -1.442695, %v7110_v33 }
0x1c63   :  { %v12383_v24 = vpop.eup %12382  ;;  %12402 = vrcp.f32 %v7046_v8  ;;  %v7113_v56 = vadd.f32 %v9499_v52, %v16549_v21  ;;  %v6641_v7 = vpop.f32.mrb[179].mxu1 }
0x1c64   :  { %v12385_v45 = vpop.eup %12384  ;;  %12404 = vrcp.f32 %v7049_v43  ;;  %v7048_v22 = vadd.f32 1.0, %v12383_v24  ;;  %v7112_v59 = vadd.f32 %v6641_v7, %v16544_v51 }
0x1c65   :  { %v17890_v60 = vpop.eup %12386  ;;  %12406 = vpow2.f32 %v8532_v55  ;;  %v8537_v13 = vmul.f32 -1.442695, %v7113_v56 }
0x1c66   :  { %v17892_v58 = vpop.eup %12388  ;;  %12408 = vrcp.f32 %v7048_v22  ;;  %v9502_v14 = vpop.f32.mrb[180].mxu1  ;;  %v8536_v61 = vmul.f32 -1.442695, %v7112_v59 }
0x1c67   :  { %v12391_v12 = vpop.eup %12390  ;;  %12410 = vpow2.f32 %v8535_v1  ;;  %v7115_v10 = vadd.f32 %v9502_v14, %v16587_v50  ;;  %v6651_v53 = vpop.f32.mrb[181].mxu1 }
0x1c68   :  { %v12393_v28 = vpop.eup %12392  ;;  %v7051_v36 = vadd.f32 1.0, %v12391_v12  ;;  %12412 = vpow2.f32 %v8534_v40  ;;  %v7114_v18 = vadd.f32 %v6651_v53, %v16582_v17 }
0x1c69   :  { %v17896_v29 = vpop.eup %12394  ;;  %v7050_v41 = vadd.f32 1.0, %v12393_v28  ;;  %12414 = vpow2.f32 %v8537_v13  ;;  %v8539_v20 = vmul.f32 -1.442695, %v7115_v10 }
0x1c6a   :  { %v17898_v30 = vpop.eup %12396  ;;  %12416 = vrcp.f32 %v7051_v36  ;;  %v8538_v39 = vmul.f32 -1.442695, %v7114_v18  ;;  %v9505_v9 = vpop.f32.mrb[182].mxu1 }
0x1c6b   :  { %v12399_v47 = vpop.eup %12398  ;;  %12418 = vrcp.f32 %v7050_v41  ;;  %v7117_v62 = vadd.f32 %v9505_v9, %v16625_v19  ;;  %v6661_v27 = vpop.f32.mrb[183].mxu1 }
0x1c6c   :  { %v12401_v54 = vpop.eup %12400  ;;  %12420 = vpow2.f32 %v8536_v61  ;;  %v7116_v25 = vadd.f32 %v6661_v27, %v16620_v48  ;;  %v7103_v37 = vmul.f32 %v12399_v47, %v12373_v4 }
0x1c6d   :  { %v12403_v44 = vpop.eup %12402  ;;  %v7053_v11 = vadd.f32 1.0, %v12401_v54  ;;  %12422 = vpow2.f32 %v8539_v20  ;;  %v8541_v31 = vmul.f32 -1.442695, %v7117_v62 }
0x1c6e   :  { %v12405_v26 = vpop.eup %12404  ;;  %12424 = vpow2.f32 %v8538_v39  ;;  %v8540_v33 = vmul.f32 -1.442695, %v7116_v25  ;;  %v9508_v32 = vpop.f32.mrb[184].mxu1  ;;  %v7102_v8 = vmul.f32 %v12403_v44, %v17884_v46 }
0x1c6f   :  { %v12407_v55 = vpop.eup %12406  ;;  %12426 = vrcp.f32 %v7053_v11  ;;  %v7119_v43 = vadd.f32 %v9508_v32, %v16529_v5  ;;  %v6671_v52 = vpop.f32.mrb[185].mxu1  ;;  %v7105_v24 = vmul.f32 %v12405_v26, %v12381_v16 }
0x1c70   :  { %v12409_v1 = vpop.eup %12408  ;;  %v7052_v56 = vadd.f32 1.0, %v12407_v55  ;;  %12428 = vpow2.f32 %v8541_v31  ;;  %v7118_v4 = vadd.f32 %v6671_v52, %v16525_v34  ;;  %v17905_v7 = vpack.c.bf16 %v7103_v37, %v7102_v8 }
0x1c71   :  { %v12411_v22 = vpop.eup %12410  ;;  %12430 = vpow2.f32 %v8540_v33  ;;  %v8543_v40 = vmul.f32 -1.442695, %v7119_v43  ;;  %v7104_v59 = vmul.f32 %v12409_v1, %v12385_v45 }
0x1c72   :  { %v12413_v13 = vpop.eup %12412  ;;  %12432 = vrcp.f32 %v7052_v56  ;;  %v7167_v46 = vadd.f32 1.0, %v12411_v22  ;;  %v8542_v14 = vmul.f32 -1.442695, %v7118_v4  ;;  %10399 = vmatprep.subr.bf16.mxu0 %v17905_v7  ;;  %v9511_v12 = vpop.f32.mrb[186].mxu1 }
0x1c73   :  { %v12415_v10 = vpop.eup %12414  ;;  %v7166_v16 = vadd.f32 1.0, %v12413_v13  ;;  %12434 = vpow2.f32 %v8543_v40  ;;  %10401 = vmatpush3.bf16.msra.mxu0 %v17905_v7  ;;  %v7121_v53 = vadd.f32 %v9511_v12, %v18527_v15  ;;  %v6681_v28 = vpop.f32.mrb[187].mxu1  ;;  %v17910_v36 = vpack.c.bf16 %v7105_v24, %v7104_v59 }
0x1c74   :  { %v12417_v61 = vpop.eup %12416  ;;  %12436 = vrcp.f32 %v7167_v46  ;;  %v7169_v45 = vadd.f32 1.0, %v12415_v10  ;;  %v7120_v18 = vadd.f32 %v6681_v28, %v18528_v49 }
0x1c75   :  { %v12419_v41 = vpop.eup %12418  ;;  %12438 = vrcp.f32 %v7166_v16  ;;  %v8545_v20 = vmul.f32 -1.442695, %v7121_v53  ;;  %10403 = vmatprep.subr.bf16.mxu0 %v17910_v36  ;;  %v7107_v39 = vmul.f32 %v12417_v61, %v17890_v60 }
0x1c76   :  { %v12421_v9 = vpop.eup %12420  ;;  %12440 = vrcp.f32 %v7169_v45  ;;  %v9514_v47 = vpop.f32.mrb[188].mxu1  ;;  %v7106_v62 = vmul.f32 %v12419_v41, %v17892_v58  ;;  %v8544_v31 = vmul.f32 -1.442695, %v7120_v18 }
0x1c77   :  { %v12423_v27 = vpop.eup %12422  ;;  %v7168_v54 = vadd.f32 1.0, %v12421_v9  ;;  %12442 = vpow2.f32 %v8542_v14  ;;  %10405 = vmatpush3.bf16.msra.mxu0 %v17910_v36  ;;  %v7123_v25 = vadd.f32 %v9514_v47, %v18529_v6  ;;  %v6691_v37 = vpop.f32.mrb[189].mxu1 }
0x1c78   :  { %v12425_v44 = vpop.eup %12424  ;;  %v7171_v11 = vadd.f32 1.0, %v12423_v27  ;;  %12444 = vpow2.f32 %v8545_v20  ;;  %v17918_v26 = vpack.c.bf16 %v7107_v39, %v7106_v62  ;;  %v7122_v32 = vadd.f32 %v6691_v37, %v18530_v0 }
0x1c79   :  { %v12427_v60 = vpop.eup %12426  ;;  %12446 = vrcp.f32 %v7168_v54  ;;  %v7170_v33 = vadd.f32 1.0, %v12425_v44  ;;  %v8547_v24 = vmul.f32 -1.442695, %v7123_v25 }
0x1c7a   :  { %v12429_v58 = vpop.eup %12428  ;;  %12448 = vrcp.f32 %v7171_v11  ;;  %10407 = vmatprep.subr.bf16.mxu0 %v17918_v26  ;;  %v9517_v8 = vpop.f32.mrb[190].mxu1  ;;  %v7109_v55 = vmul.f32 %v12427_v60, %v17896_v29  ;;  %v8546_v13 = vmul.f32 -1.442695, %v7122_v32  ;;  %v18585_v32 = vld [vmem:[#allocation20_spill] sm:$0xff] }
0x1c7b   :  { %v12431_v43 = vpop.eup %12430  ;;  %12450 = vrcp.f32 %v7170_v33  ;;  %v7173_v52 = vadd.f32 1.0, %v12429_v58  ;;  %10409 = vmatpush3.bf16.msra.mxu0 %v17918_v26  ;;  %v7125_v1 = vadd.f32 %v9517_v8, %v18531_v35  ;;  %v6701_v56 = vpop.f32.mrb[191].mxu1 }
0x1c7c   :  { %v12433_v4 = vpop.eup %12432  ;;  %v7172_v22 = vadd.f32 1.0, %v12431_v43  ;;  %12452 = vpow2.f32 %v8544_v31  ;;  %v7124_v40 = vadd.f32 %v6701_v56, %v18532_v42 }
0x1c7d   :  { %v12435_v59 = vpop.eup %12434  ;;  %12454 = vrcp.f32 %v7173_v52  ;;  %v7108_v46 = vmul.f32 %v12433_v4, %v17898_v30  ;;  %v8549_v12 = vmul.f32 -1.442695, %v7125_v1  ;;  %v18586_v52 = vld [vmem:[#allocation19_spill] sm:$0xff] }
0x1c7e   :  { %v17927_v29 = vpop.eup %12436  ;;  %12456 = vrcp.f32 %v7172_v22  ;;  %v7215_v14 = vadd.f32 1.0, %v12435_v59  ;;  %v9520_v10 = vpop.f32.mrb[192].mxu1  ;;  %v8548_v53 = vmul.f32 -1.442695, %v7124_v40 }
0x1c7f   :  { %v17929_v16 = vpop.eup %12438  ;;  %12458 = vpow2.f32 %v8547_v24  ;;  %v17931_v28 = vpack.c.bf16 %v7109_v55, %v7108_v46  ;;  %v6711_v61 = vpop.f32.mrb[193].mxu1  ;;  %v7127_v20 = vadd.f32 %v9520_v10, %v18533_v63 }
0x1c80   :  { %v17933_v45 = vpop.eup %12440  ;;  %12460 = vrcp.f32 %v7215_v14  ;;  %v7126_v62 = vadd.f32 %v6711_v61, %v18534_v2 }
0x1c81   :  { %v12443_v18 = vpop.eup %12442  ;;  %12462 = vpow2.f32 %v8546_v13  ;;  %10411 = vmatprep.subr.bf16.mxu0 %v17931_v28 }
0x1c82   :  { %v12445_v30 = vpop.eup %12444  ;;  %v7214_v41 = vadd.f32 1.0, %v12443_v18  ;;  %12464 = vpow2.f32 %v8549_v12  ;;  %10413 = vmatpush3.bf16.msra.mxu0 %v17931_v28  ;;  %v9523_v39 = vpop.f32.mrb[194].mxu1  ;;  %v18587_v12 = vld [vmem:[#allocation24_spill] sm:$0xff]  ;;  %v18588_v18 = vld [vmem:[#allocation23_spill] sm:$0xff] }
0x1c83   :  { %v17938_v9 = vpop.eup %12446  ;;  %v7217_v47 = vadd.f32 1.0, %v12445_v30  ;;  %12466 = vpow2.f32 %v8548_v53  ;;  %v6721_v27 = vpop.f32.mrb[195].mxu1  ;;  %v7129_v25 = vadd.f32 %v9523_v39, %v18535_v3  ;;  %v18589_v39 = vld [vmem:[#allocation15_spill] sm:$0xff] }
0x1c84   :  { %v17941_v54 = vpop.eup %12448  ;;  %12468 = vrcp.f32 %v7214_v41  ;;  %v7128_v11 = vadd.f32 %v6721_v27, %v18536_v57 }
0x1c85   :  { %v17944_v37 = vpop.eup %12450  ;;  %12470 = vrcp.f32 %v7217_v47 }
0x1c86   :  { %v12453_v44 = vpop.eup %12452  ;;  %12472 = vtanh.f32 %v7127_v20  ;;  %v9526_v31 = vpop.f32.mrb[196].mxu1 }
0x1c87   :  { %v17947_v60 = vpop.eup %12454  ;;  %v7216_v33 = vadd.f32 1.0, %v12453_v44  ;;  %12474 = vtanh.f32 %v7126_v62  ;;  %v7131_v58 = vadd.f32 %v9526_v31, %v18585_v32  ;;  %v6731_v8 = vpop.f32.mrb[197].mxu1  ;;  %v18590_v62 = vld [vmem:[#allocation14_spill] sm:$0xff] }
0x1c88   :  { %v17950_v55 = vpop.eup %12456  ;;  %12476 = vtanh.f32 %v7129_v25  ;;  %v7130_v24 = vadd.f32 %v6731_v8, %v18586_v52 }
0x1c89   :  { %v12459_v43 = vpop.eup %12458  ;;  %12478 = vrcp.f32 %v7216_v33  ;;  %v18592_v33 = vld [vmem:[#allocation13_spill] sm:$0xff] }
0x1c8a   :  { %v12461_v1 = vpop.eup %12460  ;;  %v7219_v56 = vadd.f32 1.0, %v12459_v43  ;;  %12480 = vtanh.f32 %v7128_v11  ;;  %v9529_v4 = vpop.f32.mrb[198].mxu1  ;;  %v18591_v11 = vld [vmem:[#allocation6_spill] sm:$0xff]  ;;  %v18593_v43 = vld [vmem:[#allocation5_spill] sm:$0xff] }
0x1c8b   :  { %v12463_v22 = vpop.eup %12462  ;;  %12482 = vtanh.f32 %v7131_v58  ;;  %v6741_v40 = vpop.f32.mrb[199].mxu1  ;;  %v7133_v10 = vadd.f32 %v9529_v4, %v18587_v12  ;;  %v7295_v47 = vmul.f32 %v12461_v1, %v18589_v39  ;;  %v18595_v39 = vld [vmem:[#allocation8_spill] sm:$0xff] }
0x1c8c   :  { %v12465_v59 = vpop.eup %12464  ;;  %12484 = vrcp.f32 %v7219_v56  ;;  %v7218_v13 = vadd.f32 1.0, %v12463_v22  ;;  %v7132_v30 = vadd.f32 %v6741_v40, %v18588_v18 }
0x1c8d   :  { %v12467_v46 = vpop.eup %12466  ;;  %v7221_v14 = vadd.f32 1.0, %v12465_v59  ;;  %12486 = vtanh.f32 %v7130_v24 }
0x1c8e   :  { %v12469_v53 = vpop.eup %12468  ;;  %12488 = vrcp.f32 %v7218_v13  ;;  %v7220_v61 = vadd.f32 1.0, %v12467_v46  ;;  %v9532_v41 = vpop.f32.mrb[200].mxu1 }
0x1c8f   :  { %v12471_v20 = vpop.eup %12470  ;;  %12490 = vrcp.f32 %v7221_v14  ;;  %v7135_v27 = vadd.f32 %v9532_v41, %v18590_v62  ;;  %v6751_v25 = vpop.f32.mrb[201].mxu1  ;;  %v7294_v31 = vmul.f32 %v12469_v53, %v18591_v11  ;;  %v18594_v53 = vld [vmem:[#allocation18_spill] sm:$0xff] }
0x1c90   :  { %v12473_v44 = vpop.eup %12472  ;;  %12492 = vrcp.f32 %v7220_v61  ;;  %v7134_v58 = vadd.f32 %v6751_v25, %v18592_v33  ;;  %v7297_v24 = vmul.f32 %v12471_v20, %v18593_v43 }
0x1c91   :  { %v12475_v8 = vpop.eup %12474  ;;  %v7303_v56 = vmul.f32 %v12473_v44, %v17927_v29  ;;  %12494 = vtanh.f32 %v7133_v10  ;;  %v8551_v4 = vmul.f32 -1.442695, %v7135_v27  ;;  %v18596_v27 = vld [vmem:[#allocation17_spill] sm:$0xff] }
0x1c92   :  { %v12477_v22 = vpop.eup %12476  ;;  %v7302_v1 = vmul.f32 %v12475_v8, %v17929_v16  ;;  %12496 = vtanh.f32 %v7132_v30  ;;  %v8550_v40 = vmul.f32 -1.442695, %v7134_v58  ;;  %v9535_v59 = vpop.f32.mrb[202].mxu1 }
0x1c93   :  { %v12479_v13 = vpop.eup %12478  ;;  %v17962_v46 = vadd.f32 %v7303_v56, %v7295_v47  ;;  %v7305_v14 = vmul.f32 %v12477_v22, %v17933_v45  ;;  %12498 = vpow2.f32 %v8551_v4  ;;  %v7137_v61 = vadd.f32 %v9535_v59, %v18594_v53  ;;  %v6761_v41 = vpop.f32.mrb[203].mxu1  ;;  %v18597_v56 = vld [vmem:[#allocation7_spill] sm:$0xff] }
0x1c94   :  { %v12481_v20 = vpop.eup %12480  ;;  %v7296_v29 = vmul.f32 %v12479_v13, %v18595_v39  ;;  %v17967_v10 = vadd.f32 %v7302_v1, %v7294_v31  ;;  %12500 = vpow2.f32 %v8550_v40  ;;  %v7136_v16 = vadd.f32 %v6761_v41, %v18596_v27  ;;  %v18598_v31 = vld [vmem:[#allocation22_spill] sm:$0xff]  ;;  %v18599_v13 = vld [vmem:[#allocation21_spill] sm:$0xff] }
0x1c95   :  { %v12483_v30 = vpop.eup %12482  ;;  %v17970_v25 = vadd.f32 %v7305_v14, %v7297_v24  ;;  %v7304_v47 = vmul.f32 %v12481_v20, %v17938_v9  ;;  %v8553_v44 = vmul.f32 -1.442695, %v7137_v61  ;;  %v18600_v61 = vld [vmem:[#allocation10_spill] sm:$0xff] }
0x1c96   :  { %v12485_v11 = vpop.eup %12484  ;;  %v7307_v45 = vmul.f32 %v12483_v30, %v17941_v54  ;;  %v8552_v58 = vmul.f32 -1.442695, %v7136_v16  ;;  %v9538_v8 = vpop.f32.mrb[204].mxu1  ;;  %v18601_v16 = vld [vmem:[#allocation12_spill] sm:$0xff] }
0x1c97   :  { %v12487_v43 = vpop.eup %12486  ;;  %v7299_v4 = vmul.f32 %v12485_v11, %v18597_v56  ;;  %v17975_v22 = vadd.f32 %v7304_v47, %v7296_v29  ;;  %v7139_v1 = vadd.f32 %v9538_v8, %v18598_v31  ;;  %v6771_v40 = vpop.f32.mrb[205].mxu1  ;;  %12502 = vpow2.f32 %v8553_v44  ;;  %v18602_v8 = vld [vmem:[#allocation11_spill] sm:$0xff] }
0x1c98   :  { %v12489_v59 = vpop.eup %12488  ;;  %v7306_v24 = vmul.f32 %v12487_v43, %v17944_v37  ;;  %v7138_v9 = vadd.f32 %v6771_v40, %v18599_v13  ;;  %12504 = vpow2.f32 %v8552_v58  ;;  %v18603_v37 = vld [vmem:[#allocation9_spill] sm:$0xff] }
0x1c99   :  { %v12491_v14 = vpop.eup %12490  ;;  %v7298_v41 = vmul.f32 %v12489_v59, %v18600_v61  ;;  %v17981_v54 = vadd.f32 %v7307_v45, %v7299_v4  ;;  %v8555_v20 = vmul.f32 -1.442695, %v7139_v1  ;;  %v18604_v45 = vld [vmem:[#allocation25_spill] sm:$0xff] }
0x1c9a   :  { %v12493_v39 = vpop.eup %12492  ;;  %v7301_v30 = vmul.f32 %v12491_v14, %v18601_v16  ;;  %v8554_v29 = vmul.f32 -1.442695, %v7138_v9  ;;  %v9541_v47 = vpop.f32.mrb[206].mxu1 }
0x1c9b   :  { %v12495_v11 = vpop.eup %12494  ;;  %v7300_v56 = vmul.f32 %v12493_v39, %v18602_v8  ;;  %v17985_v31 = vadd.f32 %v7306_v24, %v7298_v41  ;;  %v7141_v44 = vadd.f32 %v9541_v47, %v18603_v37  ;;  %v6781_v43 = vpop.f32.mrb[207].mxu1  ;;  %12506 = vpow2.f32 %v8555_v20 }
0x1c9c   :  { %v12497_v40 = vpop.eup %12496  ;;  %v7309_v59 = vmul.f32 %v12495_v11, %v17947_v60  ;;  %v7140_v4 = vadd.f32 %v6781_v43, %v18604_v45  ;;  %12508 = vtanh.f32 %v17962_v46 }
0x1c9d   :  { %v12499_v1 = vpop.eup %12498  ;;  %v7308_v58 = vmul.f32 %v12497_v40, %v17950_v55  ;;  %v8557_v9 = vmul.f32 -1.442695, %v7141_v44  ;;  %12510 = vpow2.f32 %v8554_v29 }
0x1c9e   :  { %v12501_v14 = vpop.eup %12500  ;;  %v17992_v61 = vadd.f32 %v7309_v59, %v7301_v30  ;;  %v7271_v24 = vadd.f32 1.0, %v12499_v1  ;;  %v8556_v60 = vmul.f32 -1.442695, %v7140_v4 }
0x1c9f   :  { %v17994_v41 = vadd.f32 %v7308_v58, %v7300_v56  ;;  %v7270_v39 = vadd.f32 1.0, %v12501_v14  ;;  %12512 = vpow2.f32 %v8557_v9 }
0x1ca0   :  { %12514 = vtanh.f32 %v17967_v10 }
0x1ca1   :  { %12516 = vtanh.f32 %v17970_v25  ;;  %v12503_v20 = vpop.eup %12502 }
0x1ca2   :  { %12518 = vrcp.f32 %v7271_v24  ;;  %v7273_v16 = vadd.f32 1.0, %v12503_v20  ;;  %v12505_v55 = vpop.eup %12504 }
0x1ca3   :  { %12520 = vrcp.f32 %v7270_v39  ;;  %v7272_v30 = vadd.f32 1.0, %v12505_v55 }
0x1ca4   :  { %12522 = vpow2.f32 %v8556_v60 }
0x1ca5   :  { %12524 = vrcp.f32 %v7273_v16  ;;  %v12507_v47 = vpop.eup %12506 }
0x1ca6   :  { %12526 = vtanh.f32 %v17975_v22  ;;  %v12509_v29 = vpop.eup %12508  ;;  %v7275_v11 = vadd.f32 1.0, %v12507_v47 }
0x1ca7   :  { %12528 = vrcp.f32 %v7272_v30  ;;  %v12511_v8 = vpop.eup %12510 }
0x1ca8   :  { %12530 = vtanh.f32 %v17981_v54  ;;  %v7274_v44 = vadd.f32 1.0, %v12511_v8 }
0x1ca9   :  { %v12513_v56 = vpop.eup %12512  ;;  %12532 = vrcp.f32 %v7275_v11 }
0x1caa   :  { %v12515_v43 = vpop.eup %12514  ;;  %12534 = vtanh.f32 %v17985_v31  ;;  %v7277_v40 = vadd.f32 1.0, %v12513_v56 }
0x1cab   :  { %v12517_v59 = vpop.eup %12516  ;;  %12536 = vrcp.f32 %v7274_v44 }
0x1cac   :  { %v12519_v4 = vpop.eup %12518  ;;  %12538 = vrcp.f32 %v7277_v40 }
0x1cad   :  { %v12521_v1 = vpop.eup %12520  ;;  %v7327_v58 = vmul.f32 %v12519_v4, %v12509_v29  ;;  %12540 = vtanh.f32 %v17992_v61 }
0x1cae   :  { %v12523_v9 = vpop.eup %12522  ;;  %v7326_v14 = vmul.f32 %v12521_v1, %v12515_v43  ;;  %12542 = vtanh.f32 %v17994_v41 }
0x1caf   :  { %v12525_v24 = vpop.eup %12524  ;;  %v7276_v39 = vadd.f32 1.0, %v12523_v9 }
0x1cb0   :  { %v12527_v60 = vpop.eup %12526  ;;  %v10414_v20 = vpack.c.bf16 %v7327_v58, %v7326_v14  ;;  %v7329_v16 = vmul.f32 %v12525_v24, %v12517_v59 }
0x1cb1   :  { %v12529_v55 = vpop.eup %12528  ;;  %12544 = vrcp.f32 %v7276_v39  ;;  %v12825_v39 = vld [vmem:[%s18345_s7 + $0x108] sm:$0xff] }
0x1cb2   :  { %v12531_v30 = vpop.eup %12530  ;;  %10415 = vmatprep.subr.bf16.mxu0 %v10414_v20  ;;  %v7328_v47 = vmul.f32 %v12529_v55, %v12527_v60  ;;  %v12826_v60 = vld [vmem:[%s18345_s7 + $0x110] sm:$0xff] }
0x1cb3   :  { %v12533_v11 = vpop.eup %12532  ;;  %10417 = vmatpush3.bf16.msra.mxu0 %v10414_v20  ;;  %v12827_v20 = vld [vmem:[%s18345_s7 + $0x118] sm:$0xff]  ;;  %v12830_v55 = vld [vmem:[%s18345_s7 + $0x130] sm:$0xff] }
0x1cb4   :  { %v12535_v8 = vpop.eup %12534  ;;  %v10418_v29 = vpack.c.bf16 %v7329_v16, %v7328_v47  ;;  %v7331_v56 = vmul.f32 %v12533_v11, %v12531_v30  ;;  %v12828_v16 = vld [vmem:[%s18345_s7 + $0x120] sm:$0xff]  ;;  %v12834_v47 = vld [vmem:[%s18345_s7 + $0x150] sm:$0xff]  ;;  %v12835_v11 = vld [vmem:[%s18345_s7 + $0x158] sm:$0xff] }
0x1cb5   :  { %v12537_v44 = vpop.eup %12536  ;;  %v12832_v30 = vld [vmem:[%s18345_s7 + $0x140] sm:$0xff] }
0x1cb6   :  { %10419 = vmatprep.subr.bf16.mxu0 %v10418_v29  ;;  %v7330_v43 = vmul.f32 %v12537_v44, %v12535_v8  ;;  %v12539_v40 = vpop.eup %12538  ;;  %v12837_v8 = vld [vmem:[%s18345_s7 + $0x168] sm:$0xff]  ;;  %v12840_v44 = vld [vmem:[%s18345_s7 + $0x180] sm:$0xff] }
0x1cb7   :  { %10421 = vmatpush3.bf16.msra.mxu0 %v10418_v29  ;;  %v12541_v1 = vpop.eup %12540  ;;  %v12838_v29 = vld [vmem:[%s18345_s7 + $0x170] sm:$0xff] }
0x1cb8   :  { %v10422_v4 = vpack.c.bf16 %v7331_v56, %v7330_v43  ;;  %v12543_v9 = vpop.eup %12542  ;;  %v7333_v59 = vmul.f32 %v12541_v1, %v12539_v40  ;;  %v12839_v56 = vld [vmem:[%s18345_s7 + $0x178] sm:$0xff]  ;;  %v12841_v43 = vld [vmem:[%s18345_s7 + $0x188] sm:$0xff]  ;;  %v12842_v40 = vld [vmem:[%s18345_s7 + $0x190] sm:$0xff] }
0x1cb9   :  { %v12844_v1 = vld [vmem:[%s18345_s7 + $0x1a0] sm:$0xff] }
0x1cba   :  { %10423 = vmatprep.subr.bf16.mxu0 %v10422_v4 }
0x1cbb   :  { %v12545_v58 = vpop.eup %12544  ;;  %10425 = vmatpush3.bf16.msra.mxu0 %v10422_v4  ;;  %v12843_v4 = vld [vmem:[%s18345_s7 + $0x198] sm:$0xff] }
0x1cbc   :  { %v7332_v14 = vmul.f32 %v12545_v58, %v12543_v9  ;;  %v12845_v9 = vld [vmem:[%s18345_s7 + $0x1a8] sm:$0xff]  ;;  %v12847_v58 = vld [vmem:[%s18345_s7 + $0x1b8] sm:$0xff] }
0x1cbe   :  { %v10426_v24 = vpack.c.bf16 %v7333_v59, %v7332_v14  ;;  %v12846_v59 = vld [vmem:[%s18345_s7 + $0x1b0] sm:$0xff]  ;;  %v12848_v14 = vld [vmem:[%s18345_s7 + $0x1c0] sm:$0xff] }
0x1cc0   :  { %10427 = vmatprep.subr.bf16.mxu0 %v10426_v24 }
0x1cc1   :  { %10429 = vmatpush3.bf16.msra.mxu0 %v10426_v24  ;;  %v12849_v24 = vld [vmem:[%s18345_s7 + $0x1c8] sm:$0xff] }
0x1cc2   :  { %10431 = vmatprep.subr.bf16.mxu0 %v17905_v7 }
0x1cc4   :  { %9575 = vmatmul.mubr.f32.vlgmr.msra.gmra.mrb[136].mxu0 %v12825_v39  ;;  %v12850_v39 = vld [vmem:[%s18345_s7 + $0x1d0] sm:$0xff] }
0x1cc5   :  { %10433 = vmatpush3.bf16.msra.mxu0 %v17905_v7  ;;  %9577 = vmatprep.mubr.f32.mxu0 %v12826_v60  ;;  %v12829_v7 = vld [vmem:[%s18345_s7 + $0x128] sm:$0xff]  ;;  %v12851_v60 = vld [vmem:[%s18345_s7 + $0x1d8] sm:$0xff] }
0x1cc6   :  { %10435 = vmatprep.subr.bf16.mxu0 %v17910_v36 }
0x1cc8   :  { %9578 = vmatmul.mubr.f32.gmra.mrb[138].mxu0 %v12827_v20  ;;  %v12852_v20 = vld [vmem:[%s18345_s7 + $0x1e0] sm:$0xff] }
0x1cc9   :  { %10437 = vmatpush3.bf16.msra.mxu0 %v17910_v36  ;;  %9580 = vmatprep.mubr.f32.mxu0 %v12828_v16  ;;  %v12831_v36 = vld [vmem:[%s18345_s7 + $0x138] sm:$0xff]  ;;  %v12853_v16 = vld [vmem:[%s18345_s7 + $0x1e8] sm:$0xff] }
0x1cca   :  { %10439 = vmatprep.subr.bf16.mxu0 %v17918_v26 }
0x1ccc   :  { %9581 = vmatmul.mubr.f32.gmra.mrb[140].mxu0 %v12829_v7  ;;  %v12854_v7 = vld [vmem:[%s18345_s7 + $0x1f0] sm:$0xff] }
0x1ccd   :  { %10441 = vmatpush3.bf16.msra.mxu0 %v17918_v26  ;;  %9583 = vmatprep.mubr.f32.mxu0 %v12830_v55  ;;  %v12833_v26 = vld [vmem:[%s18345_s7 + $0x148] sm:$0xff]  ;;  %v12855_v55 = vld [vmem:[%s18345_s7 + $0x1f8] sm:$0xff] }
0x1cce   :  { %10443 = vmatprep.subr.bf16.mxu0 %v17931_v28 }
0x1cd0   :  { %9584 = vmatmul.mubr.f32.gmra.mrb[142].mxu0 %v12831_v36  ;;  %v7751_v36 = vld [vmem:[%s18347_s9] sm:$0xff] }
0x1cd1   :  { %10445 = vmatpush3.bf16.msra.mxu0 %v17931_v28  ;;  %9586 = vmatprep.mubr.f32.mxu0 %v12832_v30  ;;  %v12836_v28 = vld [vmem:[%s18345_s7 + $0x160] sm:$0xff] }
0x1cd4   :  { %9587 = vmatmul.mubr.f32.gmra.mrb[144].mxu0 %v12833_v26 }
0x1cd5   :  { %9589 = vmatprep.mubr.f32.mxu0 %v12834_v47 }
0x1cd8   :  { %9590 = vmatmul.mubr.f32.gmra.mrb[146].mxu0 %v12835_v11 }
0x1cd9   :  { %9592 = vmatprep.mubr.f32.mxu0 %v12836_v28 }
0x1cdc   :  { %9593 = vmatmul.mubr.f32.gmra.mrb[148].mxu0 %v12837_v8 }
0x1cdd   :  { %9595 = vmatprep.mubr.f32.mxu0 %v12838_v29 }
0x1ce0   :  { %9596 = vmatmul.mubr.f32.gmra.mrb[150].mxu0 %v12839_v56 }
0x1ce1   :  { %9598 = vmatprep.mubr.f32.mxu0 %v12840_v44 }
0x1ce4   :  { %9599 = vmatmul.mubr.f32.gmra.mrb[152].mxu0 %v12841_v43 }
0x1ce5   :  { %9601 = vmatprep.mubr.f32.mxu0 %v12842_v40 }
0x1ce8   :  { %9602 = vmatmul.mubr.f32.gmra.mrb[154].mxu0 %v12843_v4 }
0x1ce9   :  { %9604 = vmatprep.mubr.f32.mxu0 %v12844_v1 }
0x1cec   :  { %9605 = vmatmul.mubr.f32.gmra.mrb[156].mxu0 %v12845_v9 }
0x1ced   :  { %9607 = vmatprep.mubr.f32.mxu0 %v12846_v59 }
0x1cf0   :  { %9608 = vmatmul.mubr.f32.gmra.mrb[158].mxu0 %v12847_v58 }
0x1cf1   :  { %9610 = vmatprep.mubr.f32.mxu0 %v12848_v14 }
0x1cf4   :  { %9611 = vmatmul.mubr.f32.gmra.mrb[160].mxu0 %v12849_v24 }
0x1cf5   :  { %9613 = vmatprep.mubr.f32.mxu0 %v12850_v39 }
0x1cf8   :  { %9614 = vmatmul.mubr.f32.gmra.mrb[162].mxu0 %v12851_v60 }
0x1cf9   :  { %9616 = vmatprep.mubr.f32.mxu0 %v12852_v20 }
0x1cfc   :  { %9617 = vmatmul.mubr.f32.gmra.mrb[164].mxu0 %v12853_v16 }
0x1cfd   :  { %9619 = vmatprep.mubr.f32.mxu0 %v12854_v7 }
0x1d00   :  { %9620 = vmatmul.mubr.f32.gmra.mrb[166].mxu0 %v12855_v55 }
0x1d01   :  { %9654 = vmatprep.mubr.f32.mxu0 %v7751_v36 }
0x1d97   :  { %v9576_v30 = vpop.f32.mrb[136].mxu0 }
0x1d98   :  { %v7406_v26 = vadd.f32 %v9576_v30, %v16511_v38  ;;  %v7400_v47 = vpop.f32.mrb[137].mxu0 }
0x1d99   :  { %v7401_v11 = vadd.f32 %v7400_v47, %v16506_v23 }
0x1d9a   :  { %v8559_v28 = vmul.f32 -1.442695, %v7406_v26 }
0x1d9b   :  { %v8558_v8 = vmul.f32 -1.442695, %v7401_v11  ;;  %v9579_v29 = vpop.f32.mrb[138].mxu0 }
0x1d9c   :  { %12546 = vpow2.f32 %v8559_v28  ;;  %v7416_v56 = vadd.f32 %v9579_v29, %v16549_v21  ;;  %v7410_v44 = vpop.f32.mrb[139].mxu0 }
0x1d9d   :  { %12548 = vpow2.f32 %v8558_v8  ;;  %v7411_v43 = vadd.f32 %v7410_v44, %v16544_v51 }
0x1d9e   :  { %v8561_v40 = vmul.f32 -1.442695, %v7416_v56 }
0x1d9f   :  { %v8560_v4 = vmul.f32 -1.442695, %v7411_v43  ;;  %v9582_v1 = vpop.f32.mrb[140].mxu0 }
0x1da0   :  { %12550 = vpow2.f32 %v8561_v40  ;;  %v7426_v9 = vadd.f32 %v9582_v1, %v16587_v50  ;;  %v7420_v38 = vpop.f32.mrb[141].mxu0 }
0x1da1   :  { %12552 = vpow2.f32 %v8560_v4  ;;  %v7421_v23 = vadd.f32 %v7420_v38, %v16582_v17 }
0x1da2   :  { %v8563_v59 = vmul.f32 -1.442695, %v7426_v9 }
0x1da3   :  { %v8562_v58 = vmul.f32 -1.442695, %v7421_v23  ;;  %v9585_v14 = vpop.f32.mrb[142].mxu0 }
0x1da4   :  { %12554 = vpow2.f32 %v8563_v59  ;;  %v7436_v21 = vadd.f32 %v9585_v14, %v16625_v19  ;;  %v7430_v24 = vpop.f32.mrb[143].mxu0 }
0x1da5   :  { %12556 = vpow2.f32 %v8562_v58  ;;  %v7431_v51 = vadd.f32 %v7430_v24, %v16620_v48 }
0x1da6   :  { %v12547_v39 = vpop.eup %12546  ;;  %v8565_v60 = vmul.f32 -1.442695, %v7436_v21 }
0x1da7   :  { %v12549_v20 = vpop.eup %12548  ;;  %v7584_v16 = vadd.f32 1.0, %v12547_v39  ;;  %v8564_v7 = vmul.f32 -1.442695, %v7431_v51  ;;  %v9588_v50 = vpop.f32.mrb[144].mxu0 }
0x1da8   :  { %12558 = vpow2.f32 %v8565_v60  ;;  %v7446_v55 = vadd.f32 %v9588_v50, %v16529_v5  ;;  %v7440_v17 = vpop.f32.mrb[145].mxu0  ;;  %v7583_v36 = vadd.f32 1.0, %v12549_v20 }
0x1da9   :  { %v7441_v30 = vadd.f32 %v7440_v17, %v16525_v34  ;;  %12560 = vrcp.f32 %v7584_v16 }
0x1daa   :  { %v12551_v26 = vpop.eup %12550  ;;  %v8567_v19 = vmul.f32 -1.442695, %v7446_v55  ;;  %12562 = vpow2.f32 %v8564_v7 }
0x1dab   :  { %v12553_v47 = vpop.eup %12552  ;;  %v7586_v11 = vadd.f32 1.0, %v12551_v26  ;;  %v8566_v48 = vmul.f32 -1.442695, %v7441_v30  ;;  %v9591_v28 = vpop.f32.mrb[146].mxu0 }
0x1dac   :  { %12564 = vpow2.f32 %v8567_v19  ;;  %v7456_v8 = vadd.f32 %v9591_v28, %v18527_v15  ;;  %v7450_v29 = vpop.f32.mrb[147].mxu0  ;;  %v7585_v56 = vadd.f32 1.0, %v12553_v47 }
0x1dad   :  { %12566 = vrcp.f32 %v7583_v36  ;;  %v7451_v5 = vadd.f32 %v7450_v29, %v18528_v49 }
0x1dae   :  { %v12555_v44 = vpop.eup %12554  ;;  %12568 = vrcp.f32 %v7586_v11  ;;  %v8569_v43 = vmul.f32 -1.442695, %v7456_v8 }
0x1daf   :  { %v12557_v34 = vpop.eup %12556  ;;  %v7588_v40 = vadd.f32 1.0, %v12555_v44  ;;  %12570 = vpow2.f32 %v8566_v48  ;;  %v8568_v4 = vmul.f32 -1.442695, %v7451_v5  ;;  %v9594_v1 = vpop.f32.mrb[148].mxu0 }
0x1db0   :  { %12572 = vpow2.f32 %v8569_v43  ;;  %v7466_v9 = vadd.f32 %v9594_v1, %v18529_v6  ;;  %v7460_v38 = vpop.f32.mrb[149].mxu0  ;;  %v7587_v23 = vadd.f32 1.0, %v12557_v34 }
0x1db1   :  { %12574 = vrcp.f32 %v7585_v56  ;;  %v7461_v15 = vadd.f32 %v7460_v38, %v18530_v0 }
0x1db2   :  { %v12559_v59 = vpop.eup %12558  ;;  %12576 = vrcp.f32 %v7588_v40  ;;  %v8571_v58 = vmul.f32 -1.442695, %v7466_v9 }
0x1db3   :  { %v7590_v49 = vadd.f32 1.0, %v12559_v59  ;;  %12578 = vpow2.f32 %v8568_v4  ;;  %v8570_v14 = vmul.f32 -1.442695, %v7461_v15  ;;  %v9597_v21 = vpop.f32.mrb[150].mxu0  ;;  %v18121_v24 = vpop.eup %12560 }
0x1db4   :  { %12580 = vpow2.f32 %v8571_v58  ;;  %v7476_v51 = vadd.f32 %v9597_v21, %v18531_v35  ;;  %v7470_v39 = vpop.f32.mrb[151].mxu0  ;;  %v12563_v60 = vpop.eup %12562 }
0x1db5   :  { %12582 = vrcp.f32 %v7587_v23  ;;  %v7471_v6 = vadd.f32 %v7470_v39, %v18532_v42  ;;  %v7589_v16 = vadd.f32 1.0, %v12563_v60 }
0x1db6   :  { %v12565_v20 = vpop.eup %12564  ;;  %12584 = vpow2.f32 %v8570_v14  ;;  %v8573_v0 = vmul.f32 -1.442695, %v7476_v51 }
0x1db7   :  { %v18125_v7 = vpop.eup %12566  ;;  %12586 = vrcp.f32 %v7590_v49  ;;  %v7632_v50 = vadd.f32 1.0, %v12565_v20  ;;  %v8572_v55 = vmul.f32 -1.442695, %v7471_v6  ;;  %v9600_v17 = vpop.f32.mrb[152].mxu0 }
0x1db8   :  { %v18127_v36 = vpop.eup %12568  ;;  %12588 = vrcp.f32 %v7589_v16  ;;  %v7480_v30 = vpop.f32.mrb[153].mxu0  ;;  %v7486_v42 = vadd.f32 %v9600_v17, %v18533_v63 }
0x1db9   :  { %v12571_v35 = vpop.eup %12570  ;;  %12590 = vrcp.f32 %v7632_v50  ;;  %v7481_v48 = vadd.f32 %v7480_v30, %v18534_v2 }
0x1dba   :  { %v12573_v26 = vpop.eup %12572  ;;  %v7631_v19 = vadd.f32 1.0, %v12571_v35  ;;  %12592 = vpow2.f32 %v8573_v0 }
0x1dbb   :  { %v18130_v47 = vpop.eup %12574  ;;  %v7634_v11 = vadd.f32 1.0, %v12573_v26  ;;  %12594 = vpow2.f32 %v8572_v55  ;;  %v9603_v28 = vpop.f32.mrb[154].mxu0 }
0x1dbc   :  { %v18133_v8 = vpop.eup %12576  ;;  %12596 = vrcp.f32 %v7631_v19  ;;  %v7490_v29 = vpop.f32.mrb[155].mxu0  ;;  %v7496_v43 = vadd.f32 %v9603_v28, %v18535_v3 }
0x1dbd   :  { %v12579_v56 = vpop.eup %12578  ;;  %12598 = vrcp.f32 %v7634_v11  ;;  %v7491_v2 = vadd.f32 %v7490_v29, %v18536_v57 }
0x1dbe   :  { %v12581_v5 = vpop.eup %12580  ;;  %v7633_v44 = vadd.f32 1.0, %v12579_v56  ;;  %12600 = vtanh.f32 %v7486_v42 }
0x1dbf   :  { %v18136_v34 = vpop.eup %12582  ;;  %v7636_v63 = vadd.f32 1.0, %v12581_v5  ;;  %12602 = vtanh.f32 %v7481_v48  ;;  %v9606_v40 = vpop.f32.mrb[156].mxu0 }
0x1dc0   :  { %v12585_v4 = vpop.eup %12584  ;;  %12604 = vrcp.f32 %v7633_v44  ;;  %v7500_v1 = vpop.f32.mrb[157].mxu0  ;;  %v7506_v23 = vadd.f32 %v9606_v40, %v18585_v32 }
0x1dc1   :  { %v18139_v9 = vpop.eup %12586  ;;  %12606 = vrcp.f32 %v7636_v63  ;;  %v7635_v38 = vadd.f32 1.0, %v12585_v4  ;;  %v7501_v3 = vadd.f32 %v7500_v1, %v18586_v52 }
0x1dc2   :  { %v18142_v15 = vpop.eup %12588  ;;  %12608 = vtanh.f32 %v7496_v43 }
0x1dc3   :  { %v12591_v59 = vpop.eup %12590  ;;  %12610 = vrcp.f32 %v7635_v38  ;;  %v9609_v58 = vpop.f32.mrb[158].mxu0 }
0x1dc4   :  { %v12593_v49 = vpop.eup %12592  ;;  %12612 = vtanh.f32 %v7491_v2  ;;  %v7510_v14 = vpop.f32.mrb[159].mxu0  ;;  %v7516_v51 = vadd.f32 %v9609_v58, %v18587_v12  ;;  %v7712_v20 = vmul.f32 %v12591_v59, %v17962_v46 }
0x1dc5   :  { %v12595_v21 = vpop.eup %12594  ;;  %v7638_v57 = vadd.f32 1.0, %v12593_v49  ;;  %12614 = vtanh.f32 %v7506_v23  ;;  %v7511_v32 = vadd.f32 %v7510_v14, %v18588_v18 }
0x1dc6   :  { %v12597_v39 = vpop.eup %12596  ;;  %v7637_v60 = vadd.f32 1.0, %v12595_v21  ;;  %12616 = vtanh.f32 %v7501_v3 }
0x1dc7   :  { %v12599_v6 = vpop.eup %12598  ;;  %12618 = vrcp.f32 %v7638_v57  ;;  %v9612_v52 = vpop.f32.mrb[160].mxu0  ;;  %v7711_v0 = vmul.f32 %v12597_v39, %v17967_v10 }
0x1dc8   :  { %v12601_v16 = vpop.eup %12600  ;;  %12620 = vrcp.f32 %v7637_v60  ;;  %v7526_v50 = vadd.f32 %v9612_v52, %v18590_v62  ;;  %v7520_v55 = vpop.f32.mrb[161].mxu0  ;;  %v7714_v19 = vmul.f32 %v12599_v6, %v17970_v25 }
0x1dc9   :  { %v12603_v17 = vpop.eup %12602  ;;  %v7720_v12 = vmul.f32 %v12601_v16, %v18121_v24  ;;  %12622 = vtanh.f32 %v7516_v51  ;;  %v7521_v30 = vadd.f32 %v7520_v55, %v18592_v33 }
0x1dca   :  { %v12605_v35 = vpop.eup %12604  ;;  %v7719_v18 = vmul.f32 %v12603_v17, %v18125_v7  ;;  %12624 = vtanh.f32 %v7511_v32  ;;  %v8575_v46 = vmul.f32 -1.442695, %v7526_v50 }
0x1dcb   :  { %v12607_v26 = vpop.eup %12606  ;;  %v7728_v42 = vadd.f32 %v7720_v12, %v7712_v20  ;;  %v8574_v10 = vmul.f32 -1.442695, %v7521_v30  ;;  %v9615_v11 = vpop.f32.mrb[162].mxu0  ;;  %v7713_v33 = vmul.f32 %v12605_v35, %v17975_v22 }
0x1dcc   :  { %v12609_v48 = vpop.eup %12608  ;;  %v7727_v62 = vadd.f32 %v7719_v18, %v7711_v0  ;;  %12626 = vpow2.f32 %v8575_v46  ;;  %v7536_v28 = vadd.f32 %v9615_v11, %v18594_v53  ;;  %v7530_v24 = vpop.f32.mrb[163].mxu0  ;;  %v7716_v44 = vmul.f32 %v12607_v26, %v17981_v54 }
0x1dcd   :  { %v12611_v29 = vpop.eup %12610  ;;  %v7722_v56 = vmul.f32 %v12609_v48, %v18127_v36  ;;  %v7531_v7 = vadd.f32 %v7530_v24, %v18596_v27  ;;  %12628 = vpow2.f32 %v8574_v10  ;;  %v18605_v36 = vld [vmem:[#allocation22_spill] sm:$0xff] }
0x1dce   :  { %v12613_v5 = vpop.eup %12612  ;;  %v7715_v25 = vmul.f32 %v12611_v29, %v17985_v31  ;;  %v8577_v43 = vmul.f32 -1.442695, %v7536_v28 }
0x1dcf   :  { %v12615_v63 = vpop.eup %12614  ;;  %v7730_v40 = vadd.f32 %v7722_v56, %v7714_v19  ;;  %v7721_v4 = vmul.f32 %v12613_v5, %v18130_v47  ;;  %v8576_v53 = vmul.f32 -1.442695, %v7531_v7  ;;  %v9618_v2 = vpop.f32.mrb[164].mxu0 }
0x1dd0   :  { %v12617_v1 = vpop.eup %12616  ;;  %v7724_v22 = vmul.f32 %v12615_v63, %v18133_v8  ;;  %12630 = vpow2.f32 %v8577_v43  ;;  %v7546_v38 = vadd.f32 %v9618_v2, %v18605_v36  ;;  %v7540_v27 = vpop.f32.mrb[165].mxu0 }
0x1dd1   :  { %v12619_v23 = vpop.eup %12618  ;;  %v7729_v3 = vadd.f32 %v7721_v4, %v7713_v33  ;;  %v7723_v54 = vmul.f32 %v12617_v1, %v18136_v34  ;;  %v7541_v31 = vadd.f32 %v7540_v27, %v18599_v13  ;;  %12632 = vpow2.f32 %v8576_v53 }
0x1dd2   :  { %v12621_v59 = vpop.eup %12620  ;;  %v7718_v58 = vmul.f32 %v12619_v23, %v17992_v61  ;;  %v7732_v47 = vadd.f32 %v7724_v22, %v7716_v44  ;;  %v8579_v49 = vmul.f32 -1.442695, %v7546_v38  ;;  %12634 = vtanh.f32 %v7728_v42 }
0x1dd3   :  { %v12623_v14 = vpop.eup %12622  ;;  %v7717_v21 = vmul.f32 %v12621_v59, %v17994_v41  ;;  %v7731_v8 = vadd.f32 %v7723_v54, %v7715_v25  ;;  %v8578_v57 = vmul.f32 -1.442695, %v7541_v31  ;;  %v9621_v51 = vpop.f32.mrb[166].mxu0  ;;  %12636 = vtanh.f32 %v7727_v62  ;;  %v7752_v31 = vld [vmem:[%s18347_s9 + $0x8] sm:$0xff]  ;;  %v7753_v59 = vld [vmem:[%s18347_s9 + $0x10] sm:$0xff] }
0x1dd4   :  { %v12625_v39 = vpop.eup %12624  ;;  %v7726_v60 = vmul.f32 %v12623_v14, %v18139_v9  ;;  %v7556_v34 = vadd.f32 %v9621_v51, %v18603_v37  ;;  %v7550_v32 = vpop.f32.mrb[167].mxu0  ;;  %12638 = vpow2.f32 %v8579_v49  ;;  %v7756_v49 = vld [vmem:[%s18347_s9 + $0x28] sm:$0xff]  ;;  %v7757_v14 = vld [vmem:[%s18347_s9 + $0x30] sm:$0xff] }
0x1dd5   :  { %v7725_v13 = vmul.f32 %v12625_v39, %v18142_v15  ;;  %v7551_v20 = vadd.f32 %v7550_v32, %v18604_v45  ;;  %12640 = vpow2.f32 %v8578_v57  ;;  %v7760_v57 = vld [vmem:[%s18347_s9 + $0x48] sm:$0xff]  ;;  %v7761_v51 = vld [vmem:[%s18347_s9 + $0x50] sm:$0xff]  ;;  %v7762_v39 = vld [vmem:[%s18347_s9 + $0x58] sm:$0xff] }
0x1dd6   :  { %v12627_v61 = vpop.eup %12626  ;;  %v7734_v6 = vadd.f32 %v7726_v60, %v7718_v58  ;;  %v8581_v16 = vmul.f32 -1.442695, %v7556_v34  ;;  %12642 = vtanh.f32 %v7730_v40  ;;  %v7754_v58 = vld [vmem:[%s18347_s9 + $0x18] sm:$0xff]  ;;  %v7763_v60 = vld [vmem:[%s18347_s9 + $0x60] sm:$0xff]  ;;  %v7764_v34 = vld [vmem:[%s18347_s9 + $0x68] sm:$0xff] }
0x1dd7   :  { %v7733_v52 = vadd.f32 %v7725_v13, %v7717_v21  ;;  %v7688_v41 = vadd.f32 1.0, %v12627_v61  ;;  %v12629_v0 = vpop.eup %12628  ;;  %12644 = vtanh.f32 %v7729_v3  ;;  %v8580_v37 = vmul.f32 -1.442695, %v7551_v20  ;;  %v7758_v21 = vld [vmem:[%s18347_s9 + $0x38] sm:$0xff]  ;;  %v7765_v32 = vld [vmem:[%s18347_s9 + $0x70] sm:$0xff]  ;;  %v7767_v61 = vld [vmem:[%s18347_s9 + $0x80] sm:$0xff] }
0x1dd8   :  { %v7687_v9 = vadd.f32 1.0, %v12629_v0  ;;  %v7766_v13 = vld [vmem:[%s18347_s9 + $0x78] sm:$0xff]  ;;  %v7769_v20 = vld [vmem:[%s18347_s9 + $0x90] sm:$0xff] }
0x1dd9   :  { %12646 = vrcp.f32 %v7688_v41  ;;  %v7771_v41 = vld [vmem:[%s18347_s9 + $0xa0] sm:$0xff]  ;;  %v7773_v0 = vld [vmem:[%s18347_s9 + $0xb0] sm:$0xff] }
0x1dda   :  { %v12631_v50 = vpop.eup %12630  ;;  %12648 = vpow2.f32 %v8581_v16  ;;  %v7772_v16 = vld [vmem:[%s18347_s9 + $0xa8] sm:$0xff] }
0x1ddb   :  { %v7690_v55 = vadd.f32 1.0, %v12631_v50  ;;  %v12633_v17 = vpop.eup %12632  ;;  %12650 = vrcp.f32 %v7687_v9  ;;  %v7774_v50 = vld [vmem:[%s18347_s9 + $0xb8] sm:$0xff]  ;;  %v7775_v9 = vld [vmem:[%s18347_s9 + $0xc0] sm:$0xff] }
0x1ddc   :  { %v7689_v15 = vadd.f32 1.0, %v12633_v17  ;;  %v12635_v12 = vpop.eup %12634  ;;  %v7778_v17 = vld [vmem:[%s18347_s9 + $0xd8] sm:$0xff] }
0x1ddd   :  { %12652 = vrcp.f32 %v7690_v55  ;;  %v12637_v45 = vpop.eup %12636  ;;  %v7777_v55 = vld [vmem:[%s18347_s9 + $0xd0] sm:$0xff] }
0x1dde   :  { %12654 = vpow2.f32 %v8580_v37  ;;  %v12639_v30 = vpop.eup %12638  ;;  %v7776_v37 = vld [vmem:[%s18347_s9 + $0xc8] sm:$0xff] }
0x1ddf   :  { %12656 = vrcp.f32 %v7689_v15  ;;  %v12641_v35 = vpop.eup %12640  ;;  %v7692_v18 = vadd.f32 1.0, %v12639_v30  ;;  %v7779_v15 = vld [vmem:[%s18347_s9 + $0xe0] sm:$0xff]  ;;  %v7782_v30 = vld [vmem:[%s18347_s9 + $0xf8] sm:$0xff] }
0x1de0   :  { %12658 = vtanh.f32 %v7732_v47  ;;  %v12643_v46 = vpop.eup %12642  ;;  %v7691_v26 = vadd.f32 1.0, %v12641_v35  ;;  %v7755_v47 = vld [vmem:[%s18347_s9 + $0x20] sm:$0xff]  ;;  %v18264_v35 = vpop.permute.xlu1 %7902 }
0x1de1   :  { %12660 = vtanh.f32 %v7731_v8  ;;  %v12645_v19 = vpop.eup %12644  ;;  %v7759_v8 = vld [vmem:[%s18347_s9 + $0x40] sm:$0xff] }
0x1de2   :  { %12662 = vrcp.f32 %v7692_v18  ;;  %v18269_v18 = vld.sshfl [vmem:[%s18349_s11] sm:$0x33 pattern:$0x76325410] }
0x1de3   :  { %v12647_v42 = vpop.eup %12646  ;;  %12664 = vrcp.f32 %v7691_v26  ;;  %v8215_v26 = vcombine.high %v18269_v18, %v18269_v18 }
0x1de4   :  { %v12649_v10 = vpop.eup %12648  ;;  %v7744_v11 = vmul.f32 %v12647_v42, %v12635_v12  ;;  %12666 = vtanh.f32 %v7734_v6  ;;  %v7768_v6 = vld [vmem:[%s18347_s9 + $0x88] sm:$0xff] }
0x1de5   :  { %v12651_v48 = vpop.eup %12650  ;;  %v7694_v62 = vadd.f32 1.0, %v12649_v10  ;;  %v7780_v12 = vld [vmem:[%s18347_s9 + $0xe8] sm:$0xff]  ;;  %8282 = vmatprep.mubr.f32.mxu1 %v8215_v26 }
0x1de6   :  { %v7743_v24 = vmul.f32 %v12651_v48, %v12637_v45  ;;  %v7781_v45 = vld [vmem:[%s18347_s9 + $0xf0] sm:$0xff] }
0x1de7   :  { %v12653_v28 = vpop.eup %12652  ;;  %12668 = vrcp.f32 %v7694_v62 }
0x1de8   :  { %v12655_v29 = vpop.eup %12654  ;;  %v7746_v33 = vmul.f32 %v12653_v28, %v12643_v46  ;;  %v10446_v5 = vpack.c.bf16 %v7744_v11, %v7743_v24  ;;  %12670 = vtanh.f32 %v7733_v52  ;;  %v7770_v52 = vld [vmem:[%s18347_s9 + $0x98] sm:$0xff]  ;;  %v18271_v46 = vpop.permute.xlu0 %7897  ;;  %s12896_s9 = smov [#allocation2]  }
0x1de9   :  { %v12657_v56 = vpop.eup %12656  ;;  %v7693_v7 = vadd.f32 1.0, %v12655_v29  ;;  %s8296_s11 = sshll.u32 %s12896_s9, 4  ;;  %s8297_s11 = int_to_ptr.vmem [resolvable:$true] %s8296_s11 }
0x1dea   :  { %v7745_v44 = vmul.f32 %v12657_v56, %v12645_v19  ;;  %v12659_v25 = vpop.eup %12658  ;;  %10447 = vmatprep.subr.bf16.mxu0 %v10446_v5  ;;  %v7823_v19 = vpop.permute.xlu1 %7822  ;;  %s12856_s17 = scalar_lea.vmem %s8297_s11, 32  ;;  %p12861_p1 = scmp.lt.s32.totalorder %s8297_s11, %s8297_s11 }
0x1deb   :  { %12672 = vrcp.f32 %v7693_v7  ;;  %v12661_v43 = vpop.eup %12660  ;;  %10449 = vmatpush3.bf16.msra.mxu0 %v10446_v5  ;;  %p12857_p0 = scmp.ne.s32.totalorder %s8297_s11, %s12856_s17  ;;  %p12862_p2 = scmp.lt.s32.totalorder %s12856_s17, %s12856_s17 }
0x1dec   :  { %v10450_v63 = vpack.c.bf16 %v7746_v33, %v7745_v44  ;;  %v12663_v40 = vpop.eup %12662  ;;  %v7818_v42 = vpop.permute.xlu0 %7817 }
0x1ded   :  { %v12665_v4 = vpop.eup %12664  ;;  %v7748_v53 = vmul.f32 %v12663_v40, %v12659_v25  ;;  %p12863_p3 = por %p12862_p2, %p12861_p1 }
0x1dee   :  { %10451 = vmatprep.subr.bf16.mxu0 %v10450_v63  ;;  %v7747_v2 = vmul.f32 %v12665_v4, %v12661_v43  ;;  %v12667_v1 = vpop.eup %12666  ;;  %v18275_v10 = vpop.permute.xlu1 %7912 }
0x1def   :  { %10453 = vmatpush3.bf16.msra.mxu0 %v10450_v63  ;;  %p12864_p4 = pnand %p12863_p3, %p12857_p0 }
0x1df0   :  { %v10454_v22 = vpack.c.bf16 %v7748_v53, %v7747_v2  ;;  %v18277_v11 = vpop.permute.xlu0 %7907 }
0x1df1   :  { %v12669_v36 = vpop.eup %12668 }
0x1df2   :  { %10455 = vmatprep.subr.bf16.mxu0 %v10454_v22  ;;  %v7750_v38 = vmul.f32 %v12669_v36, %v12667_v1  ;;  %v12671_v27 = vpop.eup %12670  ;;  %v7833_v48 = vpop.permute.xlu1 %7832 }
0x1df3   :  { %10457 = vmatpush3.bf16.msra.mxu0 %v10454_v22 }
0x1df4   :  { %v7828_v62 = vpop.permute.xlu0 %7827 }
0x1df5   :  { %v12673_v23 = vpop.eup %12672 }
0x1df6   :  { %v7749_v3 = vmul.f32 %v12673_v23, %v12671_v27  ;;  %v18279_v28 = vpop.permute.xlu1 %7922 }
0x1df8   :  { %v10458_v54 = vpack.c.bf16 %v7750_v38, %v7749_v3  ;;  %v18281_v24 = vpop.permute.xlu0 %7917 }
0x1dfa   :  { %10459 = vmatprep.subr.bf16.mxu0 %v10458_v54  ;;  %v7843_v29 = vpop.permute.xlu1 %7842 }
0x1dfb   :  { %10461 = vmatpush3.bf16.msra.mxu0 %v10458_v54 }
0x1dfc   :  { %v7838_v33 = vpop.permute.xlu0 %7837 }
0x1dfe   :  { %9655 = vmatmul.mubr.f32.vlgmr.msra.gmra.mrb[168].mxu0 %v7752_v31  ;;  %v18283_v56 = vpop.permute.xlu1 %7932 }
0x1dff   :  { %9657 = vmatprep.mubr.f32.mxu0 %v7753_v59 }
0x1e00   :  { %v18285_v7 = vpop.permute.xlu0 %7927 }
0x1e02   :  { %9658 = vmatmul.mubr.f32.gmra.mrb[170].mxu0 %v7754_v58  ;;  %v7853_v5 = vpop.permute.xlu1 %7852 }
0x1e03   :  { %9660 = vmatprep.mubr.f32.mxu0 %v7755_v47 }
0x1e04   :  { %v7848_v44 = vpop.permute.xlu0 %7847 }
0x1e06   :  { %9661 = vmatmul.mubr.f32.gmra.mrb[172].mxu0 %v7756_v49  ;;  %v18287_v25 = vpop.permute.xlu1 %7942 }
0x1e07   :  { %9663 = vmatprep.mubr.f32.mxu0 %v7757_v14 }
0x1e08   :  { %v18289_v43 = vpop.permute.xlu0 %7937 }
0x1e0a   :  { %9664 = vmatmul.mubr.f32.gmra.mrb[174].mxu0 %v7758_v21  ;;  %v7863_v63 = vpop.permute.xlu1 %7862 }
0x1e0b   :  { %9666 = vmatprep.mubr.f32.mxu0 %v7759_v8 }
0x1e0c   :  { %v7858_v40 = vpop.permute.xlu0 %7857 }
0x1e0e   :  { %9667 = vmatmul.mubr.f32.gmra.mrb[176].mxu0 %v7760_v57  ;;  %v18291_v4 = vpop.permute.xlu1 %7952 }
0x1e0f   :  { %9669 = vmatprep.mubr.f32.mxu0 %v7761_v51 }
0x1e10   :  { %v18293_v53 = vpop.permute.xlu0 %7947 }
0x1e12   :  { %9670 = vmatmul.mubr.f32.gmra.mrb[178].mxu0 %v7762_v39  ;;  %v7873_v38 = vpop.permute.xlu1 %7872 }
0x1e13   :  { %9672 = vmatprep.mubr.f32.mxu0 %v7763_v60 }
0x1e14   :  { %v7868_v3 = vpop.permute.xlu0 %7867 }
0x1e16   :  { %9673 = vmatmul.mubr.f32.gmra.mrb[180].mxu0 %v7764_v34  ;;  %v18295_v21 = vpop.permute.xlu1 %7962 }
0x1e17   :  { %9675 = vmatprep.mubr.f32.mxu0 %v7765_v32 }
0x1e18   :  { %v18297_v57 = vpop.permute.xlu0 %7957 }
0x1e1a   :  { %9676 = vmatmul.mubr.f32.gmra.mrb[182].mxu0 %v7766_v13  ;;  %v7883_v13 = vpop.permute.xlu1 %7882 }
0x1e1b   :  { %9678 = vmatprep.mubr.f32.mxu0 %v7767_v61 }
0x1e1e   :  { %9679 = vmatmul.mubr.f32.gmra.mrb[184].mxu0 %v7768_v6 }
0x1e1f   :  { %9681 = vmatprep.mubr.f32.mxu0 %v7769_v20  ;;  %v7878_v20 = vpop.permute.xlu0 %7877 }
0x1e22   :  { %9682 = vmatmul.mubr.f32.gmra.mrb[186].mxu0 %v7770_v52 }
0x1e23   :  { %9684 = vmatprep.mubr.f32.mxu0 %v7771_v41 }
0x1e26   :  { %9685 = vmatmul.mubr.f32.gmra.mrb[188].mxu0 %v7772_v16 }
0x1e27   :  { %9687 = vmatprep.mubr.f32.mxu0 %v7773_v0 }
0x1e2a   :  { %9688 = vmatmul.mubr.f32.gmra.mrb[190].mxu0 %v7774_v50 }
0x1e2b   :  { %9690 = vmatprep.mubr.f32.mxu0 %v7775_v9 }
0x1e2e   :  { %9691 = vmatmul.mubr.f32.gmra.mrb[192].mxu0 %v7776_v37 }
0x1e2f   :  { %9693 = vmatprep.mubr.f32.mxu0 %v7777_v55  ;;  %v18301_v55 = vpop.permute.xlu1 %7972 }
0x1e32   :  { %9694 = vmatmul.mubr.f32.gmra.mrb[194].mxu0 %v7778_v17 }
0x1e33   :  { %9696 = vmatprep.mubr.f32.mxu0 %v7779_v15  ;;  %v18303_v15 = vpop.permute.xlu0 %7967 }
0x1e36   :  { %9697 = vmatmul.mubr.f32.gmra.mrb[196].mxu0 %v7780_v12 }
0x1e37   :  { %9699 = vmatprep.mubr.f32.mxu0 %v7781_v45 }
0x1e3a   :  { %9700 = vmatmul.mubr.f32.gmra.mrb[198].mxu0 %v7782_v30 }
0x1ed1   :  { %v9656_v2 = vpop.f32.mrb[168].mxu0 }
0x1ed2   :  { %v8047_v1 = vadd.f32 %v9656_v2, %v7823_v19  ;;  %v8041_v22 = vpop.f32.mrb[169].mxu0 }
0x1ed3   :  { %v8042_v36 = vadd.f32 %v8041_v22, %v7818_v42  ;;  %v7893_v42 = vpop.permute.xlu1 %7892 }
0x1ed5   :  { %v10464_v27 = vpack.c.bf16 %v8047_v1, %v8042_v36  ;;  %v9659_v23 = vpop.f32.mrb[170].mxu0 }
0x1ed6   :  { %v8057_v54 = vadd.f32 %v9659_v23, %v7833_v48  ;;  %v8051_v31 = vpop.f32.mrb[171].mxu0 }
0x1ed7   :  { %v8052_v59 = vadd.f32 %v8051_v31, %v7828_v62 }
0x1ed9   :  { %v10468_v58 = vpack.c.bf16 %v8057_v54, %v8052_v59  ;;  %v9662_v47 = vpop.f32.mrb[172].mxu0 }
0x1eda   :  { %v8067_v49 = vadd.f32 %v9662_v47, %v7843_v29  ;;  %v8061_v14 = vpop.f32.mrb[173].mxu0  ;;  %v7888_v29 = vpop.permute.xlu0 %7887 }
0x1edb   :  { %v8062_v8 = vadd.f32 %v8061_v14, %v7838_v33 }
0x1edd   :  { %v10472_v51 = vpack.c.bf16 %v8067_v49, %v8062_v8  ;;  %v9665_v39 = vpop.f32.mrb[174].mxu0 }
0x1ede   :  { %v8077_v60 = vadd.f32 %v9665_v39, %v7853_v5  ;;  %v8071_v34 = vpop.f32.mrb[175].mxu0 }
0x1edf   :  { %v8072_v32 = vadd.f32 %v8071_v34, %v7848_v44 }
0x1ee1   :  { %v10476_v61 = vpack.c.bf16 %v8077_v60, %v8072_v32  ;;  %v9668_v6 = vpop.f32.mrb[176].mxu0 }
0x1ee2   :  { %v8087_v52 = vadd.f32 %v9668_v6, %v7863_v63  ;;  %v8081_v41 = vpop.f32.mrb[177].mxu0 }
0x1ee3   :  { %v8082_v16 = vadd.f32 %v8081_v41, %v7858_v40 }
0x1ee5   :  { %v10480_v0 = vpack.c.bf16 %v8087_v52, %v8082_v16  ;;  %v9671_v50 = vpop.f32.mrb[178].mxu0 }
0x1ee6   :  { %v18299_v9 = vadd.f32 %v9671_v50, %v7873_v38  ;;  %v8091_v37 = vpop.f32.mrb[179].mxu0 }
0x1ee7   :  { %v8092_v17 = vadd.f32 %v8091_v37, %v7868_v3 }
0x1ee9   :  { %v10484_v12 = vpack.c.bf16 %v18299_v9, %v8092_v17  ;;  %v9674_v45 = vpop.f32.mrb[180].mxu0 }
0x1eea   :  { %v18306_v30 = vadd.f32 %v9674_v45, %v7883_v13  ;;  %v8101_v26 = vpop.f32.mrb[181].mxu0 }
0x1eeb   :  { %v8102_v19 = vadd.f32 %v8101_v26, %v7878_v20 }
0x1eed   :  { %v10488_v48 = vpack.c.bf16 %v18306_v30, %v8102_v19  ;;  %v9677_v62 = vpop.f32.mrb[182].mxu0 }
0x1eee   :  { %v8117_v33 = vadd.f32 %v9677_v62, %v7893_v42  ;;  %v8111_v5 = vpop.f32.mrb[183].mxu0 }
0x1eef   :  { %v8112_v44 = vadd.f32 %v8111_v5, %v7888_v29 }
0x1ef1   :  { %v10492_v63 = vpack.c.bf16 %v8117_v33, %v8112_v44  ;;  %v9680_v40 = vpop.f32.mrb[184].mxu0 }
0x1ef2   :  { %v8127_v2 = vadd.f32 %v9680_v40, %v18264_v35  ;;  %v8121_v1 = vpop.f32.mrb[185].mxu0 }
0x1ef3   :  { %v8122_v22 = vadd.f32 %v8121_v1, %v18271_v46 }
0x1ef5   :  { %v10462_v36 = vpack.c.bf16 %v8127_v2, %v8122_v22  ;;  %v9683_v38 = vpop.f32.mrb[186].mxu0 }
0x1ef6   :  { %v8137_v23 = vadd.f32 %v9683_v38, %v18275_v10  ;;  %v8131_v3 = vpop.f32.mrb[187].mxu0 }
0x1ef7   :  { %v8132_v54 = vadd.f32 %v8131_v3, %v18277_v11  ;;  %10463 = vmatprep.subr.bf16.mxu1 %v10462_v36 }
0x1ef8   :  { %10465 = vmatpush3.bf16.msra.mxu1 %v10464_v27 }
0x1ef9   :  { %v10466_v31 = vpack.c.bf16 %v8137_v23, %v8132_v54  ;;  %v9686_v59 = vpop.f32.mrb[188].mxu0 }
0x1efa   :  { %v8147_v47 = vadd.f32 %v9686_v59, %v18279_v28  ;;  %v8141_v49 = vpop.f32.mrb[189].mxu0 }
0x1efb   :  { %v8142_v14 = vadd.f32 %v8141_v49, %v18281_v24  ;;  %10467 = vmatprep.subr.bf16.mxu1 %v10466_v31 }
0x1efc   :  { %10469 = vmatpush3.bf16.msra.mxu1 %v10468_v58 }
0x1efd   :  { %v10470_v35 = vpack.c.bf16 %v8147_v47, %v8142_v14  ;;  %v9689_v46 = vpop.f32.mrb[190].mxu0 }
0x1efe   :  { %v8157_v8 = vadd.f32 %v9689_v46, %v18283_v56  ;;  %v8151_v39 = vpop.f32.mrb[191].mxu0 }
0x1eff   :  { %v8152_v10 = vadd.f32 %v8151_v39, %v18285_v7  ;;  %10471 = vmatprep.subr.bf16.mxu1 %v10470_v35 }
0x1f00   :  { %10473 = vmatpush3.bf16.msra.mxu1 %v10472_v51 }
0x1f01   :  { %v10474_v11 = vpack.c.bf16 %v8157_v8, %v8152_v10  ;;  %v9692_v27 = vpop.f32.mrb[192].mxu0 }
0x1f02   :  { %v8167_v60 = vadd.f32 %v9692_v27, %v18287_v25  ;;  %v8161_v34 = vpop.f32.mrb[193].mxu0 }
0x1f03   :  { %v8162_v28 = vadd.f32 %v8161_v34, %v18289_v43  ;;  %10475 = vmatprep.subr.bf16.mxu1 %v10474_v11 }
0x1f04   :  { %10477 = vmatpush3.bf16.msra.mxu1 %v10476_v61 }
0x1f05   :  { %v10478_v24 = vpack.c.bf16 %v8167_v60, %v8162_v28  ;;  %v9695_v58 = vpop.f32.mrb[194].mxu0 }
0x1f06   :  { %v8177_v32 = vadd.f32 %v9695_v58, %v18291_v4  ;;  %v8171_v13 = vpop.f32.mrb[195].mxu0 }
0x1f07   :  { %v8172_v56 = vadd.f32 %v8171_v13, %v18293_v53  ;;  %10479 = vmatprep.subr.bf16.mxu1 %v10478_v24 }
0x1f08   :  { %10481 = vmatpush3.bf16.msra.mxu1 %v10480_v0  ;;  %v8205_v0 = vpop.permute.xlu0 %8204 }
0x1f09   :  { %v10482_v7 = vpack.c.bf16 %v8177_v32, %v8172_v56  ;;  %v9698_v51 = vpop.f32.mrb[196].mxu0 }
0x1f0a   :  { %v8187_v6 = vadd.f32 %v9698_v51, %v18295_v21  ;;  %v8181_v20 = vpop.f32.mrb[197].mxu0 }
0x1f0b   :  { %v8182_v25 = vadd.f32 %v8181_v20, %v18297_v57  ;;  %10483 = vmatprep.subr.bf16.mxu1 %v10482_v7 }
0x1f0c   :  { %10485 = vmatpush3.bf16.msra.mxu1 %v10484_v12 }
0x1f0d   :  { %v10486_v43 = vpack.c.bf16 %v8187_v6, %v8182_v25  ;;  %v9701_v61 = vpop.f32.mrb[198].mxu0 }
0x1f0e   :  { %v8197_v52 = vadd.f32 %v9701_v61, %v18301_v55  ;;  %v8191_v41 = vpop.f32.mrb[199].mxu0 }
0x1f0f   :  { %v8192_v4 = vadd.f32 %v8191_v41, %v18303_v15  ;;  %10487 = vmatprep.subr.bf16.mxu1 %v10486_v43 }
0x1f10   :  { %10489 = vmatpush3.bf16.msra.mxu1 %v10488_v48 }
0x1f11   :  { %v10490_v53 = vpack.c.bf16 %v8197_v52, %v8192_v4 }
0x1f13   :  { %10491 = vmatprep.subr.bf16.mxu1 %v10490_v53 }
0x1f14   :  { %10493 = vmatpush3.bf16.msra.mxu1 %v10492_v63 }
0x1f17   :  { %8283 = vmatmul.mubr.f32.vlgmr.msra.gmra.mrb[208].mxu1 %v18269_v18 }
0x1fea   :  { %v9055_v21 = vpop.f32.mrb[208].mxu1 }
0x1feb   :  { %v9056_v16 = vpop.f32.mrb[209].mxu1 }
0x1fec   :  { %v9057_v57 = vadd.f32 %v9056_v16, %v9055_v21 }
0x1fee   :  { %v8285_v50 = vadd.f32 %v9057_v57, %v8205_v0 }
0x1ff0   :  { %8289 = vst.msk [vmem:[#allocation2] sm:$0x3] %vm8288_vm10, %v8285_v50 }
0x1ff1   :  { %12867 = shalt.err (!%p12864_p4)
}
0x1ff2   :  { %s12868_s0 = scalar_lea.hbm %s18359_s21, 32 }
0x1ff3   :  { %p12869_p5 = scmp.ne.s32.totalorder %s18359_s21, %s12868_s0  ;;  %p12872_p6 = scmp.lt.u32.totalorder %s12868_s0, %s18359_s21 }
0x1ff5   :  { %p12874_p7 = pnand %p12872_p6, %p12869_p5 }
0x1ff7   :  { %12877 = shalt.err (!%p12874_p7)
}
0x1ff8   :  { %8299 = dma.vmem_to_hbm [thread:$0]  %s8297_s11, 32, %s18359_s21, [#allocation3]  }
0x1ff9   :  { %12878 = dma.done.wait [#allocation3], 32  }
0x1ffa   :  { %12879 = vsyncadd [#allocation3], 4294967264 }
0x1ffb   :  { %8303 = vsyncpa [#allocation3], 1 }

</bundles_post_ra>
